<compile_context>
chip_gen: v6e
topology: v6e:2x2x1
jax: 0.10.0
libtpu: 0.0.40
codegen_flags: <defaults>
</compile_context>

<pallas_src>
import math

import jax
import jax.numpy as jnp
from jax.experimental import pallas as pl
from jax.experimental.pallas import tpu as pltpu

EPS = 1e-5  # nn.InstanceNorm2d default

# Module configuration this kernel implements.
_PADDING_TYPE = "reflect"
_NORM_AFFINE = False
_USE_DROPOUT = False


def _round_up(x: int, m: int) -> int:
    return ((x + m - 1) // m) * m


def _resnet_block_kernel(x_ref, w1_ref, w2_ref, o_ref, pad_ref, acc_ref):
    """Fused pad->conv3x3->IN->ReLU->pad->conv3x3->IN->residual for one image.

    x_ref  : (1, H, W, C)  activation block (caller dtype)
    w?_ref : (9, C, C)     conv weights, tap-major (dy*3 + dx, cin, cout)
    o_ref  : (1, H, W, C)
    pad_ref: (H+2, Wp, C)  VMEM reflect-pad scratch, Wp = round_up(W + 2, 8)
    acc_ref: (H*Wp, C)     f32 VMEM MXU accumulator (reused by both convs)
    """
    _, H, W, C = o_ref.shape
    Hp, Wp, _ = pad_ref.shape
    inv_n = 1.0 / float(H * W)

    # Columns [W+2, Wp) of the pad scratch only ever feed accumulator columns
    # >= W (discarded below); zero them once so they never hold junk.
    if Wp > W + 2:
        pad_ref[:, W + 2:, :] = jnp.zeros((Hp, Wp - (W + 2), C), pad_ref.dtype)

    def reflect_pad(img):
        # ReflectionPad2d(1) into pad_ref[:, :W+2, :].
        img = img.astype(pad_ref.dtype)
        pad_ref[1:H + 1, 1:W + 1, :] = img
        pad_ref[0:1, 1:W + 1, :] = img[1:2]                  # top    <- row 1
        pad_ref[H + 1:H + 2, 1:W + 1, :] = img[H - 2:H - 1]  # bottom <- row H-2
        pad_ref[:, 0:1, :] = pad_ref[:, 2:3, :]              # left   <- col 1 (corners ok)
        pad_ref[:, W + 1:W + 2, :] = pad_ref[:, W - 1:W, :]  # right  <- col W-2

    def conv3x3_instnorm(img, w_ref):
        # 3x3 VALID conv over the reflect-padded image (MXU, f32 accumulation),
        # then InstanceNorm2d(affine=False). Returns (H, W, C) float32.
        reflect_pad(img)
        # Flatten (Hp, Wp, C) -> (Hp*Wp, C); layout-free because Wp % 8 == 0.
        pad_flat = pad_ref[...].reshape(Hp * Wp, C)
        first = True
        for dx in range(3):
            # Column shift w -> w+dx as a sublane rotation (XLU slot); the dy
            # taps below are then aligned row slices (no relayout copies).
            # pltpu.roll follows jnp.roll semantics, so shift = N - dx.
            shifted = pad_flat if dx == 0 else pltpu.roll(
                pad_flat, Hp * Wp - dx, axis=0)
            for dy in range(3):
                rows = shifted[dy * Wp:dy * Wp + H * Wp]     # aligned (Wp % 8 == 0)
                contrib = jnp.dot(rows, w_ref[dy * 3 + dx],
                                  preferred_element_type=jnp.float32)
                if first:
                    acc_ref[...] = contrib
                    first = False
                else:
                    acc_ref[...] += contrib
        # Compact the valid W columns once, then two-pass stats (numerically
        # safer than E[x^2]-E[x]^2) and fused normalize.
        valid = acc_ref[...].reshape(H, Wp, C)[:, :W, :]     # (H, W, C) f32
        mean = jnp.sum(valid, axis=(0, 1), keepdims=True) * inv_n
        centered = valid - mean
        var = jnp.sum(centered * centered, axis=(0, 1), keepdims=True) * inv_n
        return centered * jax.lax.rsqrt(var + EPS)

    # NOTE: conv biases are omitted on purpose: InstanceNorm(affine=False) right
    # after each conv removes any per-channel constant exactly (mean shifts by b,
    # variance unchanged), so the block output is identical.
    y = jnp.maximum(conv3x3_instnorm(x_ref[0], w1_ref), 0.0)   # conv1 + IN + ReLU
    z = conv3x3_instnorm(y, w2_ref)                            # conv2 + IN
    # Residual: re-read the VMEM-resident input block instead of keeping a second
    # copy of x live across both convs.
    o_ref[0] = (x_ref[0].astype(jnp.float32) + z).astype(o_ref.dtype)


def _vmem_budget_bytes(H: int, W: int, C: int, act_dtype) -> int:
    """Explicit VMEM request: working set + pipeline buffers + headroom, clamped
    to ~3/4 of physical VMEM (never ask for all of v7x's 64 MiB)."""
    Hp, Wp = H + 2, _round_up(W + 2, 8)
    item = jnp.dtype(act_dtype).itemsize
    io_blocks = 2 * 2 * H * W * C * item              # x & out blocks, double-buffered
    weights = 2 * 2 * 9 * C * C * item                # w1 & w2, double-buffered
    scratch = Hp * Wp * C * item + H * Wp * C * 4     # pad buffer + f32 accumulator
    values = 2 * Hp * Wp * C * item + 3 * H * W * C * 4   # pad_flat/rolled + y/centered/z
    need = int(1.4 * (io_blocks + weights + scratch + values)) + (4 << 20)
    try:
        phys = getattr(pltpu.get_tpu_info(), "vmem_capacity_bytes", None)
    except Exception:
        phys = None
    cap = (phys * 3) // 4 if phys else 96 * 1024 * 1024
    return int(min(max(need, 32 * 1024 * 1024), cap))


def resnet_block_forward_nhwc(x, w1, b1, w2, b2):
    """ResnetBlock forward, NHWC activations (preferred entry point).

    x : (N, H, W, C) float array (bf16 recommended in production: halves HBM and
        pad-scratch bytes; accumulation/stats stay f32 inside the kernel).
    w1, w2 : (3, 3, C, C) HWIO conv weights;  b1, b2 : (C,) conv biases.
    """
    # Bias-cancellation guard: dropping the conv bias in-kernel is exact only for
    # this config (InstanceNorm affine=False directly after each conv, no dropout).
    if _NORM_AFFINE or _USE_DROPOUT or _PADDING_TYPE != "reflect":
        raise NotImplementedError(
            "kernel assumes reflect padding + InstanceNorm(affine=False) + no "
            "dropout; the conv-bias cancellation does not hold otherwise.")
    del b1, b2

    N, H, W, C = x.shape
    dt = x.dtype
    Wp = _round_up(W + 2, 8)
    w1m = jnp.reshape(w1, (9, C, C)).astype(dt)   # tap-major: (dy*3+dx, cin, cout)
    w2m = jnp.reshape(w2, (9, C, C)).astype(dt)

    # TODO(synk): for v7x (2 TensorCores, 64 MiB VMEM) add an H-strip grid axis
    # with cross-strip instance-norm stats so N=1 images use both cores; the
    # whole-image-per-step design below fits VMEM but leaves one core idle.
    # TODO(synk): weights are grid-invariant yet still double-buffered by the
    # default pipeline; single-buffering them would save ~2*9*C*C*itemsize VMEM.
    return pl.pallas_call(
        _resnet_block_kernel,
        out_shape=jax.ShapeDtypeStruct((N, H, W, C), dt),
        grid=(N,),
        in_specs=[
            pl.BlockSpec((1, H, W, C), lambda n: (n, 0, 0, 0)),
            pl.BlockSpec((9, C, C), lambda n: (0, 0, 0)),
            pl.BlockSpec((9, C, C), lambda n: (0, 0, 0)),
        ],
        out_specs=pl.BlockSpec((1, H, W, C), lambda n: (n, 0, 0, 0)),
        scratch_shapes=[
            pltpu.VMEM((H + 2, Wp, C), dt),        # reflect-pad buffer (both convs)
            pltpu.VMEM((H * Wp, C), jnp.float32),  # MXU accumulator (both convs)
        ],
        compiler_params=pltpu.CompilerParams(
            dimension_semantics=("parallel",),
            vmem_limit_bytes=_vmem_budget_bytes(H, W, C, dt)),
    )(x, w1m, w2m)


def resnet_block_forward(x_nchw, w1, b1, w2, b2):
    """PyTorch-layout (NCHW) convenience wrapper.

    In a full resnet_9blocks generator call resnet_block_forward_nhwc directly and
    keep activations NHWC across blocks: these transposes are full-tensor HBM
    passes and should not sit in the per-block hot path.
    """
    x = jnp.transpose(x_nchw, (0, 2, 3, 1))            # NCHW -> NHWC, dtype kept
    out = resnet_block_forward_nhwc(x, w1, b1, w2, b2)
    return jnp.transpose(out, (0, 3, 1, 2))


def _ref_forward(x_nchw, w1, b1, w2, b2):
    """Pure-JAX reference of the same forward (with bias), for correctness."""
    def conv(xpad_nhwc, w, b):
        o = jax.lax.conv_general_dilated(
            xpad_nhwc, w, window_strides=(1, 1), padding="VALID",
            dimension_numbers=("NHWC", "HWIO", "NHWC"))
        return o + b.reshape(1, 1, 1, -1)

    def inorm(y):
        m = jnp.mean(y, axis=(1, 2), keepdims=True)
        v = jnp.mean((y - m) ** 2, axis=(1, 2), keepdims=True)
        return (y - m) * jax.lax.rsqrt(v + EPS)

    xh = jnp.transpose(x_nchw, (0, 2, 3, 1))
    pad = lambda a: jnp.pad(a, ((0, 0), (1, 1), (1, 1), (0, 0)), mode="reflect")
    y = jnp.maximum(inorm(conv(pad(xh), w1, b1)), 0.0)
    z = inorm(conv(pad(y), w2, b2))
    return jnp.transpose(xh + z, (0, 3, 1, 2))


if __name__ == "__main__":
    # Small shapes consistent with the module's forward (NCHW, C=dim).
    N, C, H, W = 2, 4, 16, 16

    key = jax.random.PRNGKey(0)
    k_x, k_w1, k_b1, k_w2, k_b2 = jax.random.split(key, 5)

    x = jax.random.normal(k_x, (N, C, H, W), jnp.float32)

    # Deterministic Conv2d-style init (uniform +/- 1/sqrt(fan_in)), HWIO weights.
    fan_in = C * 3 * 3
    bound = 1.0 / math.sqrt(fan_in)
    w1 = jax.random.uniform(k_w1, (3, 3, C, C), jnp.float32, -bound, bound)
    b1 = jax.random.uniform(k_b1, (C,), jnp.float32, -bound, bound)
    w2 = jax.random.uniform(k_w2, (3, 3, C, C), jnp.float32, -bound, bound)
    b2 = jax.random.uniform(k_b2, (C,), jnp.float32, -bound, bound)

    out = jax.block_until_ready(resnet_block_forward(x, w1, b1, w2, b2))
    ref = jax.block_until_ready(_ref_forward(x, w1, b1, w2, b2))

    assert out.shape == x.shape and out.dtype == x.dtype
    max_err = float(jnp.max(jnp.abs(out - ref)))
    assert max_err < 1e-4, f"mismatch vs reference: {max_err}"
    print("KERNEL_OK")
</pallas_src>

<mosaic_0001>
module attributes {stable_mosaic.version = 11 : i64} {
  func.func @_resnet_block_kernel(%arg0: i32, %arg1: memref<1x16x16x4xf32, #tpu.memory_space<vmem>>, %arg2: memref<9x4x4xf32, #tpu.memory_space<vmem>>, %arg3: memref<9x4x4xf32, #tpu.memory_space<vmem>>, %arg4: memref<1x16x16x4xf32, #tpu.memory_space<vmem>>, %arg5: memref<18x24x4xf32, #tpu.memory_space<vmem>>, %arg6: memref<384x4xf32, #tpu.memory_space<vmem>>) attributes {dimension_semantics = [#tpu.dimension_semantics<parallel>], iteration_bounds = array<i64: 2>, scalar_prefetch = 0 : i64, scratch_operands = 2 : i64, tpu.core_type = #tpu.core_type<tc>, window_params = [{transform_indices = @transform_0, window_bounds = array<i64: 1, 16, 16, 4>}, {pipeline_mode = #tpu.pipeline_mode<synchronous>, transform_indices = @transform_1, window_bounds = array<i64: 9, 4, 4>}, {pipeline_mode = #tpu.pipeline_mode<synchronous>, transform_indices = @transform_2, window_bounds = array<i64: 9, 4, 4>}, {transform_indices = @transform_3, window_bounds = array<i64: 1, 16, 16, 4>}]} {
    %cst = arith.constant 0.000000e+00 : f32
    %0 = vector.broadcast %cst : f32 to vector<18x6x4xf32>
    %c0 = arith.constant 0 : index
    %c18 = arith.constant 18 : index
    %c0_0 = arith.constant 0 : index
    %1 = vector.load %arg5[%c0, %c18, %c0_0] : memref<18x24x4xf32, #tpu.memory_space<vmem>>, vector<18x6x4xf32>
    tpu.vector_store %arg5[%c0, %c18, %c0_0], %0 {strides = array<i32>} : memref<18x24x4xf32, #tpu.memory_space<vmem>>, vector<18x6x4xf32>,
    %c0_1 = arith.constant 0 : index
    %c0_2 = arith.constant 0 : index
    %c0_3 = arith.constant 0 : index
    %c0_4 = arith.constant 0 : index
    %2 = vector.load %arg1[%c0_1, %c0_2, %c0_3, %c0_4] : memref<1x16x16x4xf32, #tpu.memory_space<vmem>>, vector<1x16x16x4xf32>
    %3 = vector.shape_cast %2 : vector<1x16x16x4xf32> to vector<16x16x4xf32>
    %c1 = arith.constant 1 : index
    %c1_5 = arith.constant 1 : index
    %c0_6 = arith.constant 0 : index
    %4 = vector.load %arg5[%c1, %c1_5, %c0_6] : memref<18x24x4xf32, #tpu.memory_space<vmem>>, vector<16x16x4xf32>
    tpu.vector_store %arg5[%c1, %c1_5, %c0_6], %3 {strides = array<i32>} : memref<18x24x4xf32, #tpu.memory_space<vmem>>, vector<16x16x4xf32>,
    %5 = vector.extract_strided_slice %3 {offsets = [1, 0, 0], sizes = [1, 16, 4], strides = [1, 1, 1]} : vector<16x16x4xf32> to vector<1x16x4xf32>
    %c0_7 = arith.constant 0 : index
    %c1_8 = arith.constant 1 : index
    %c0_9 = arith.constant 0 : index
    %6 = vector.load %arg5[%c0_7, %c1_8, %c0_9] : memref<18x24x4xf32, #tpu.memory_space<vmem>>, vector<1x16x4xf32>
    tpu.vector_store %arg5[%c0_7, %c1_8, %c0_9], %5 {strides = array<i32>} : memref<18x24x4xf32, #tpu.memory_space<vmem>>, vector<1x16x4xf32>,
    %7 = vector.extract_strided_slice %3 {offsets = [14, 0, 0], sizes = [1, 16, 4], strides = [1, 1, 1]} : vector<16x16x4xf32> to vector<1x16x4xf32>
    %c17 = arith.constant 17 : index
    %c1_10 = arith.constant 1 : index
    %c0_11 = arith.constant 0 : index
    %8 = vector.load %arg5[%c17, %c1_10, %c0_11] : memref<18x24x4xf32, #tpu.memory_space<vmem>>, vector<1x16x4xf32>
    tpu.vector_store %arg5[%c17, %c1_10, %c0_11], %7 {strides = array<i32>} : memref<18x24x4xf32, #tpu.memory_space<vmem>>, vector<1x16x4xf32>,
    %c0_12 = arith.constant 0 : index
    %c2 = arith.constant 2 : index
    %c0_13 = arith.constant 0 : index
    %9 = vector.load %arg5[%c0_12, %c2, %c0_13] : memref<18x24x4xf32, #tpu.memory_space<vmem>>, vector<18x1x4xf32>
    %c0_14 = arith.constant 0 : index
    %c0_15 = arith.constant 0 : index
    %c0_16 = arith.constant 0 : index
    %10 = vector.load %arg5[%c0_14, %c0_15, %c0_16] : memref<18x24x4xf32, #tpu.memory_space<vmem>>, vector<18x1x4xf32>
    tpu.vector_store %arg5[%c0_14, %c0_15, %c0_16], %9 {strides = array<i32>} : memref<18x24x4xf32, #tpu.memory_space<vmem>>, vector<18x1x4xf32>,
    %c0_17 = arith.constant 0 : index
    %c15 = arith.constant 15 : index
    %c0_18 = arith.constant 0 : index
    %11 = vector.load %arg5[%c0_17, %c15, %c0_18] : memref<18x24x4xf32, #tpu.memory_space<vmem>>, vector<18x1x4xf32>
    %c0_19 = arith.constant 0 : index
    %c17_20 = arith.constant 17 : index
    %c0_21 = arith.constant 0 : index
    %12 = vector.load %arg5[%c0_19, %c17_20, %c0_21] : memref<18x24x4xf32, #tpu.memory_space<vmem>>, vector<18x1x4xf32>
    tpu.vector_store %arg5[%c0_19, %c17_20, %c0_21], %11 {strides = array<i32>} : memref<18x24x4xf32, #tpu.memory_space<vmem>>, vector<18x1x4xf32>,
    %c0_22 = arith.constant 0 : index
    %c0_23 = arith.constant 0 : index
    %c0_24 = arith.constant 0 : index
    %13 = vector.load %arg5[%c0_22, %c0_23, %c0_24] : memref<18x24x4xf32, #tpu.memory_space<vmem>>, vector<18x24x4xf32>
    %14 = vector.shape_cast %13 : vector<18x24x4xf32> to vector<432x4xf32>
    %15 = vector.extract_strided_slice %14 {offsets = [0, 0], sizes = [384, 4], strides = [1, 1]} : vector<432x4xf32> to vector<384x4xf32>
    %c0_25 = arith.constant 0 : index
    %c0_26 = arith.constant 0 : index
    %c0_27 = arith.constant 0 : index
    %16 = vector.load %arg2[%c0_25, %c0_26, %c0_27] : memref<9x4x4xf32, #tpu.memory_space<vmem>>, vector<1x4x4xf32>
    %17 = vector.shape_cast %16 : vector<1x4x4xf32> to vector<4x4xf32>
    %cst_28 = arith.constant dense<0.000000e+00> : vector<384x4xf32>
    %18 = tpu.matmul %15, %17, %cst_28 {dimension_numbers = #tpu.dot_dimension_numbers<[1], [0], [0], [1], [0, 0, 1, 1], [], []>} : vector<384x4xf32>, vector<4x4xf32>, vector<384x4xf32> -> vector<384x4xf32>
    %c0_29 = arith.constant 0 : index
    %c0_30 = arith.constant 0 : index
    %19 = vector.load %arg6[%c0_29, %c0_30] : memref<384x4xf32, #tpu.memory_space<vmem>>, vector<384x4xf32>
    tpu.vector_store %arg6[%c0_29, %c0_30], %18 {strides = array<i32>} : memref<384x4xf32, #tpu.memory_space<vmem>>, vector<384x4xf32>,
    %20 = vector.extract_strided_slice %14 {offsets = [24, 0], sizes = [384, 4], strides = [1, 1]} : vector<432x4xf32> to vector<384x4xf32>
    %c3 = arith.constant 3 : index
    %c0_31 = arith.constant 0 : index
    %c0_32 = arith.constant 0 : index
    %21 = vector.load %arg2[%c3, %c0_31, %c0_32] : memref<9x4x4xf32, #tpu.memory_space<vmem>>, vector<1x4x4xf32>
    %22 = vector.shape_cast %21 : vector<1x4x4xf32> to vector<4x4xf32>
    %cst_33 = arith.constant dense<0.000000e+00> : vector<384x4xf32>
    %23 = tpu.matmul %20, %22, %cst_33 {dimension_numbers = #tpu.dot_dimension_numbers<[1], [0], [0], [1], [0, 0, 1, 1], [], []>} : vector<384x4xf32>, vector<4x4xf32>, vector<384x4xf32> -> vector<384x4xf32>
    %c0_34 = arith.constant 0 : index
    %c0_35 = arith.constant 0 : index
    %24 = vector.load %arg6[%c0_34, %c0_35] : memref<384x4xf32, #tpu.memory_space<vmem>>, vector<384x4xf32>
    %25 = arith.addf %24, %23 : vector<384x4xf32>
    %c0_36 = arith.constant 0 : index
    %c0_37 = arith.constant 0 : index
    %26 = vector.load %arg6[%c0_36, %c0_37] : memref<384x4xf32, #tpu.memory_space<vmem>>, vector<384x4xf32>
    tpu.vector_store %arg6[%c0_36, %c0_37], %25 {strides = array<i32>} : memref<384x4xf32, #tpu.memory_space<vmem>>, vector<384x4xf32>,
    %27 = vector.extract_strided_slice %14 {offsets = [48, 0], sizes = [384, 4], strides = [1, 1]} : vector<432x4xf32> to vector<384x4xf32>
    %c6 = arith.constant 6 : index
    %c0_38 = arith.constant 0 : index
    %c0_39 = arith.constant 0 : index
    %28 = vector.load %arg2[%c6, %c0_38, %c0_39] : memref<9x4x4xf32, #tpu.memory_space<vmem>>, vector<1x4x4xf32>
    %29 = vector.shape_cast %28 : vector<1x4x4xf32> to vector<4x4xf32>
    %cst_40 = arith.constant dense<0.000000e+00> : vector<384x4xf32>
    %30 = tpu.matmul %27, %29, %cst_40 {dimension_numbers = #tpu.dot_dimension_numbers<[1], [0], [0], [1], [0, 0, 1, 1], [], []>} : vector<384x4xf32>, vector<4x4xf32>, vector<384x4xf32> -> vector<384x4xf32>
    %c0_41 = arith.constant 0 : index
    %c0_42 = arith.constant 0 : index
    %31 = vector.load %arg6[%c0_41, %c0_42] : memref<384x4xf32, #tpu.memory_space<vmem>>, vector<384x4xf32>
    %32 = arith.addf %31, %30 : vector<384x4xf32>
    %c0_43 = arith.constant 0 : index
    %c0_44 = arith.constant 0 : index
    %33 = vector.load %arg6[%c0_43, %c0_44] : memref<384x4xf32, #tpu.memory_space<vmem>>, vector<384x4xf32>
    tpu.vector_store %arg6[%c0_43, %c0_44], %32 {strides = array<i32>} : memref<384x4xf32, #tpu.memory_space<vmem>>, vector<384x4xf32>,
    %c431_i32 = arith.constant 431 : i32
    %34 = tpu.dynamic_rotate %14 by %c431_i32 dim 0 : vector<432x4xf32>, i32 -> vector<432x4xf32>
    %35 = vector.extract_strided_slice %34 {offsets = [0, 0], sizes = [384, 4], strides = [1, 1]} : vector<432x4xf32> to vector<384x4xf32>
    %c1_45 = arith.constant 1 : index
    %c0_46 = arith.constant 0 : index
    %c0_47 = arith.constant 0 : index
    %36 = vector.load %arg2[%c1_45, %c0_46, %c0_47] : memref<9x4x4xf32, #tpu.memory_space<vmem>>, vector<1x4x4xf32>
    %37 = vector.shape_cast %36 : vector<1x4x4xf32> to vector<4x4xf32>
    %cst_48 = arith.constant dense<0.000000e+00> : vector<384x4xf32>
    %38 = tpu.matmul %35, %37, %cst_48 {dimension_numbers = #tpu.dot_dimension_numbers<[1], [0], [0], [1], [0, 0, 1, 1], [], []>} : vector<384x4xf32>, vector<4x4xf32>, vector<384x4xf32> -> vector<384x4xf32>
    %c0_49 = arith.constant 0 : index
    %c0_50 = arith.constant 0 : index
    %39 = vector.load %arg6[%c0_49, %c0_50] : memref<384x4xf32, #tpu.memory_space<vmem>>, vector<384x4xf32>
    %40 = arith.addf %39, %38 : vector<384x4xf32>
    %c0_51 = arith.constant 0 : index
    %c0_52 = arith.constant 0 : index
    %41 = vector.load %arg6[%c0_51, %c0_52] : memref<384x4xf32, #tpu.memory_space<vmem>>, vector<384x4xf32>
    tpu.vector_store %arg6[%c0_51, %c0_52], %40 {strides = array<i32>} : memref<384x4xf32, #tpu.memory_space<vmem>>, vector<384x4xf32>,
    %42 = vector.extract_strided_slice %34 {offsets = [24, 0], sizes = [384, 4], strides = [1, 1]} : vector<432x4xf32> to vector<384x4xf32>
    %c4 = arith.constant 4 : index
    %c0_53 = arith.constant 0 : index
    %c0_54 = arith.constant 0 : index
    %43 = vector.load %arg2[%c4, %c0_53, %c0_54] : memref<9x4x4xf32, #tpu.memory_space<vmem>>, vector<1x4x4xf32>
    %44 = vector.shape_cast %43 : vector<1x4x4xf32> to vector<4x4xf32>
    %cst_55 = arith.constant dense<0.000000e+00> : vector<384x4xf32>
    %45 = tpu.matmul %42, %44, %cst_55 {dimension_numbers = #tpu.dot_dimension_numbers<[1], [0], [0], [1], [0, 0, 1, 1], [], []>} : vector<384x4xf32>, vector<4x4xf32>, vector<384x4xf32> -> vector<384x4xf32>
    %c0_56 = arith.constant 0 : index
    %c0_57 = arith.constant 0 : index
    %46 = vector.load %arg6[%c0_56, %c0_57] : memref<384x4xf32, #tpu.memory_space<vmem>>, vector<384x4xf32>
    %47 = arith.addf %46, %45 : vector<384x4xf32>
    %c0_58 = arith.constant 0 : index
    %c0_59 = arith.constant 0 : index
    %48 = vector.load %arg6[%c0_58, %c0_59] : memref<384x4xf32, #tpu.memory_space<vmem>>, vector<384x4xf32>
    tpu.vector_store %arg6[%c0_58, %c0_59], %47 {strides = array<i32>} : memref<384x4xf32, #tpu.memory_space<vmem>>, vector<384x4xf32>,
    %49 = vector.extract_strided_slice %34 {offsets = [48, 0], sizes = [384, 4], strides = [1, 1]} : vector<432x4xf32> to vector<384x4xf32>
    %c7 = arith.constant 7 : index
    %c0_60 = arith.constant 0 : index
    %c0_61 = arith.constant 0 : index
    %50 = vector.load %arg2[%c7, %c0_60, %c0_61] : memref<9x4x4xf32, #tpu.memory_space<vmem>>, vector<1x4x4xf32>
    %51 = vector.shape_cast %50 : vector<1x4x4xf32> to vector<4x4xf32>
    %cst_62 = arith.constant dense<0.000000e+00> : vector<384x4xf32>
    %52 = tpu.matmul %49, %51, %cst_62 {dimension_numbers = #tpu.dot_dimension_numbers<[1], [0], [0], [1], [0, 0, 1, 1], [], []>} : vector<384x4xf32>, vector<4x4xf32>, vector<384x4xf32> -> vector<384x4xf32>
    %c0_63 = arith.constant 0 : index
    %c0_64 = arith.constant 0 : index
    %53 = vector.load %arg6[%c0_63, %c0_64] : memref<384x4xf32, #tpu.memory_space<vmem>>, vector<384x4xf32>
    %54 = arith.addf %53, %52 : vector<384x4xf32>
    %c0_65 = arith.constant 0 : index
    %c0_66 = arith.constant 0 : index
    %55 = vector.load %arg6[%c0_65, %c0_66] : memref<384x4xf32, #tpu.memory_space<vmem>>, vector<384x4xf32>
    tpu.vector_store %arg6[%c0_65, %c0_66], %54 {strides = array<i32>} : memref<384x4xf32, #tpu.memory_space<vmem>>, vector<384x4xf32>,
    %c430_i32 = arith.constant 430 : i32
    %56 = tpu.dynamic_rotate %14 by %c430_i32 dim 0 : vector<432x4xf32>, i32 -> vector<432x4xf32>
    %57 = vector.extract_strided_slice %56 {offsets = [0, 0], sizes = [384, 4], strides = [1, 1]} : vector<432x4xf32> to vector<384x4xf32>
    %c2_67 = arith.constant 2 : index
    %c0_68 = arith.constant 0 : index
    %c0_69 = arith.constant 0 : index
    %58 = vector.load %arg2[%c2_67, %c0_68, %c0_69] : memref<9x4x4xf32, #tpu.memory_space<vmem>>, vector<1x4x4xf32>
    %59 = vector.shape_cast %58 : vector<1x4x4xf32> to vector<4x4xf32>
    %cst_70 = arith.constant dense<0.000000e+00> : vector<384x4xf32>
    %60 = tpu.matmul %57, %59, %cst_70 {dimension_numbers = #tpu.dot_dimension_numbers<[1], [0], [0], [1], [0, 0, 1, 1], [], []>} : vector<384x4xf32>, vector<4x4xf32>, vector<384x4xf32> -> vector<384x4xf32>
    %c0_71 = arith.constant 0 : index
    %c0_72 = arith.constant 0 : index
    %61 = vector.load %arg6[%c0_71, %c0_72] : memref<384x4xf32, #tpu.memory_space<vmem>>, vector<384x4xf32>
    %62 = arith.addf %61, %60 : vector<384x4xf32>
    %c0_73 = arith.constant 0 : index
    %c0_74 = arith.constant 0 : index
    %63 = vector.load %arg6[%c0_73, %c0_74] : memref<384x4xf32, #tpu.memory_space<vmem>>, vector<384x4xf32>
    tpu.vector_store %arg6[%c0_73, %c0_74], %62 {strides = array<i32>} : memref<384x4xf32, #tpu.memory_space<vmem>>, vector<384x4xf32>,
    %64 = vector.extract_strided_slice %56 {offsets = [24, 0], sizes = [384, 4], strides = [1, 1]} : vector<432x4xf32> to vector<384x4xf32>
    %c5 = arith.constant 5 : index
    %c0_75 = arith.constant 0 : index
    %c0_76 = arith.constant 0 : index
    %65 = vector.load %arg2[%c5, %c0_75, %c0_76] : memref<9x4x4xf32, #tpu.memory_space<vmem>>, vector<1x4x4xf32>
    %66 = vector.shape_cast %65 : vector<1x4x4xf32> to vector<4x4xf32>
    %cst_77 = arith.constant dense<0.000000e+00> : vector<384x4xf32>
    %67 = tpu.matmul %64, %66, %cst_77 {dimension_numbers = #tpu.dot_dimension_numbers<[1], [0], [0], [1], [0, 0, 1, 1], [], []>} : vector<384x4xf32>, vector<4x4xf32>, vector<384x4xf32> -> vector<384x4xf32>
    %c0_78 = arith.constant 0 : index
    %c0_79 = arith.constant 0 : index
    %68 = vector.load %arg6[%c0_78, %c0_79] : memref<384x4xf32, #tpu.memory_space<vmem>>, vector<384x4xf32>
    %69 = arith.addf %68, %67 : vector<384x4xf32>
    %c0_80 = arith.constant 0 : index
    %c0_81 = arith.constant 0 : index
    %70 = vector.load %arg6[%c0_80, %c0_81] : memref<384x4xf32, #tpu.memory_space<vmem>>, vector<384x4xf32>
    tpu.vector_store %arg6[%c0_80, %c0_81], %69 {strides = array<i32>} : memref<384x4xf32, #tpu.memory_space<vmem>>, vector<384x4xf32>,
    %71 = vector.extract_strided_slice %56 {offsets = [48, 0], sizes = [384, 4], strides = [1, 1]} : vector<432x4xf32> to vector<384x4xf32>
    %c8 = arith.constant 8 : index
    %c0_82 = arith.constant 0 : index
    %c0_83 = arith.constant 0 : index
    %72 = vector.load %arg2[%c8, %c0_82, %c0_83] : memref<9x4x4xf32, #tpu.memory_space<vmem>>, vector<1x4x4xf32>
    %73 = vector.shape_cast %72 : vector<1x4x4xf32> to vector<4x4xf32>
    %cst_84 = arith.constant dense<0.000000e+00> : vector<384x4xf32>
    %74 = tpu.matmul %71, %73, %cst_84 {dimension_numbers = #tpu.dot_dimension_numbers<[1], [0], [0], [1], [0, 0, 1, 1], [], []>} : vector<384x4xf32>, vector<4x4xf32>, vector<384x4xf32> -> vector<384x4xf32>
    %c0_85 = arith.constant 0 : index
    %c0_86 = arith.constant 0 : index
    %75 = vector.load %arg6[%c0_85, %c0_86] : memref<384x4xf32, #tpu.memory_space<vmem>>, vector<384x4xf32>
    %76 = arith.addf %75, %74 : vector<384x4xf32>
    %c0_87 = arith.constant 0 : index
    %c0_88 = arith.constant 0 : index
    %77 = vector.load %arg6[%c0_87, %c0_88] : memref<384x4xf32, #tpu.memory_space<vmem>>, vector<384x4xf32>
    tpu.vector_store %arg6[%c0_87, %c0_88], %76 {strides = array<i32>} : memref<384x4xf32, #tpu.memory_space<vmem>>, vector<384x4xf32>,
    %c0_89 = arith.constant 0 : index
    %c0_90 = arith.constant 0 : index
    %78 = vector.load %arg6[%c0_89, %c0_90] : memref<384x4xf32, #tpu.memory_space<vmem>>, vector<384x4xf32>
    %79 = vector.shape_cast %78 : vector<384x4xf32> to vector<16x24x4xf32>
    %80 = vector.extract_strided_slice %79 {offsets = [0, 0, 0], sizes = [16, 16, 4], strides = [1, 1, 1]} : vector<16x24x4xf32> to vector<16x16x4xf32>
    %cst_91 = arith.constant dense<0.000000e+00> : vector<4xf32>
    %81 = vector.multi_reduction <add>, %80, %cst_91 [0, 1] : vector<16x16x4xf32> to vector<4xf32>
    %82 = vector.shape_cast %81 : vector<4xf32> to vector<1x1x4xf32>
    %cst_92 = arith.constant 3.906250e-03 : f32
    %83 = vector.broadcast %cst_92 : f32 to vector<1x1x4xf32>
    %84 = arith.mulf %82, %83 : vector<1x1x4xf32>
    %85 = vector.broadcast %84 : vector<1x1x4xf32> to vector<16x16x4xf32>
    %86 = arith.subf %80, %85 : vector<16x16x4xf32>
    %87 = arith.mulf %86, %86 : vector<16x16x4xf32>
    %cst_93 = arith.constant dense<0.000000e+00> : vector<4xf32>
    %88 = vector.multi_reduction <add>, %87, %cst_93 [0, 1] : vector<16x16x4xf32> to vector<4xf32>
    %89 = vector.shape_cast %88 : vector<4xf32> to vector<1x1x4xf32>
    %cst_94 = arith.constant 3.906250e-03 : f32
    %90 = vector.broadcast %cst_94 : f32 to vector<1x1x4xf32>
    %91 = arith.mulf %89, %90 : vector<1x1x4xf32>
    %cst_95 = arith.constant 9.99999974E-6 : f32
    %92 = vector.broadcast %cst_95 : f32 to vector<1x1x4xf32>
    %93 = arith.addf %91, %92 : vector<1x1x4xf32>
    %94 = math.rsqrt %93 : vector<1x1x4xf32>
    %95 = vector.broadcast %94 : vector<1x1x4xf32> to vector<16x16x4xf32>
    %96 = arith.mulf %86, %95 : vector<16x16x4xf32>
    %cst_96 = arith.constant 0.000000e+00 : f32
    %97 = vector.broadcast %cst_96 : f32 to vector<16x16x4xf32>
    %98 = arith.maximumf %96, %97 : vector<16x16x4xf32>
    %c1_97 = arith.constant 1 : index
    %c1_98 = arith.constant 1 : index
    %c0_99 = arith.constant 0 : index
    %99 = vector.load %arg5[%c1_97, %c1_98, %c0_99] : memref<18x24x4xf32, #tpu.memory_space<vmem>>, vector<16x16x4xf32>
    tpu.vector_store %arg5[%c1_97, %c1_98, %c0_99], %98 {strides = array<i32>} : memref<18x24x4xf32, #tpu.memory_space<vmem>>, vector<16x16x4xf32>,
    %100 = vector.extract_strided_slice %98 {offsets = [1, 0, 0], sizes = [1, 16, 4], strides = [1, 1, 1]} : vector<16x16x4xf32> to vector<1x16x4xf32>
    %c0_100 = arith.constant 0 : index
    %c1_101 = arith.constant 1 : index
    %c0_102 = arith.constant 0 : index
    %101 = vector.load %arg5[%c0_100, %c1_101, %c0_102] : memref<18x24x4xf32, #tpu.memory_space<vmem>>, vector<1x16x4xf32>
    tpu.vector_store %arg5[%c0_100, %c1_101, %c0_102], %100 {strides = array<i32>} : memref<18x24x4xf32, #tpu.memory_space<vmem>>, vector<1x16x4xf32>,
    %102 = vector.extract_strided_slice %98 {offsets = [14, 0, 0], sizes = [1, 16, 4], strides = [1, 1, 1]} : vector<16x16x4xf32> to vector<1x16x4xf32>
    %c17_103 = arith.constant 17 : index
    %c1_104 = arith.constant 1 : index
    %c0_105 = arith.constant 0 : index
    %103 = vector.load %arg5[%c17_103, %c1_104, %c0_105] : memref<18x24x4xf32, #tpu.memory_space<vmem>>, vector<1x16x4xf32>
    tpu.vector_store %arg5[%c17_103, %c1_104, %c0_105], %102 {strides = array<i32>} : memref<18x24x4xf32, #tpu.memory_space<vmem>>, vector<1x16x4xf32>,
    %c0_106 = arith.constant 0 : index
    %c2_107 = arith.constant 2 : index
    %c0_108 = arith.constant 0 : index
    %104 = vector.load %arg5[%c0_106, %c2_107, %c0_108] : memref<18x24x4xf32, #tpu.memory_space<vmem>>, vector<18x1x4xf32>
    %c0_109 = arith.constant 0 : index
    %c0_110 = arith.constant 0 : index
    %c0_111 = arith.constant 0 : index
    %105 = vector.load %arg5[%c0_109, %c0_110, %c0_111] : memref<18x24x4xf32, #tpu.memory_space<vmem>>, vector<18x1x4xf32>
    tpu.vector_store %arg5[%c0_109, %c0_110, %c0_111], %104 {strides = array<i32>} : memref<18x24x4xf32, #tpu.memory_space<vmem>>, vector<18x1x4xf32>,
    %c0_112 = arith.constant 0 : index
    %c15_113 = arith.constant 15 : index
    %c0_114 = arith.constant 0 : index
    %106 = vector.load %arg5[%c0_112, %c15_113, %c0_114] : memref<18x24x4xf32, #tpu.memory_space<vmem>>, vector<18x1x4xf32>
    %c0_115 = arith.constant 0 : index
    %c17_116 = arith.constant 17 : index
    %c0_117 = arith.constant 0 : index
    %107 = vector.load %arg5[%c0_115, %c17_116, %c0_117] : memref<18x24x4xf32, #tpu.memory_space<vmem>>, vector<18x1x4xf32>
    tpu.vector_store %arg5[%c0_115, %c17_116, %c0_117], %106 {strides = array<i32>} : memref<18x24x4xf32, #tpu.memory_space<vmem>>, vector<18x1x4xf32>,
    %c0_118 = arith.constant 0 : index
    %c0_119 = arith.constant 0 : index
    %c0_120 = arith.constant 0 : index
    %108 = vector.load %arg5[%c0_118, %c0_119, %c0_120] : memref<18x24x4xf32, #tpu.memory_space<vmem>>, vector<18x24x4xf32>
    %109 = vector.shape_cast %108 : vector<18x24x4xf32> to vector<432x4xf32>
    %110 = vector.extract_strided_slice %109 {offsets = [0, 0], sizes = [384, 4], strides = [1, 1]} : vector<432x4xf32> to vector<384x4xf32>
    %c0_121 = arith.constant 0 : index
    %c0_122 = arith.constant 0 : index
    %c0_123 = arith.constant 0 : index
    %111 = vector.load %arg3[%c0_121, %c0_122, %c0_123] : memref<9x4x4xf32, #tpu.memory_space<vmem>>, vector<1x4x4xf32>
    %112 = vector.shape_cast %111 : vector<1x4x4xf32> to vector<4x4xf32>
    %cst_124 = arith.constant dense<0.000000e+00> : vector<384x4xf32>
    %113 = tpu.matmul %110, %112, %cst_124 {dimension_numbers = #tpu.dot_dimension_numbers<[1], [0], [0], [1], [0, 0, 1, 1], [], []>} : vector<384x4xf32>, vector<4x4xf32>, vector<384x4xf32> -> vector<384x4xf32>
    %c0_125 = arith.constant 0 : index
    %c0_126 = arith.constant 0 : index
    %114 = vector.load %arg6[%c0_125, %c0_126] : memref<384x4xf32, #tpu.memory_space<vmem>>, vector<384x4xf32>
    tpu.vector_store %arg6[%c0_125, %c0_126], %113 {strides = array<i32>} : memref<384x4xf32, #tpu.memory_space<vmem>>, vector<384x4xf32>,
    %115 = vector.extract_strided_slice %109 {offsets = [24, 0], sizes = [384, 4], strides = [1, 1]} : vector<432x4xf32> to vector<384x4xf32>
    %c3_127 = arith.constant 3 : index
    %c0_128 = arith.constant 0 : index
    %c0_129 = arith.constant 0 : index
    %116 = vector.load %arg3[%c3_127, %c0_128, %c0_129] : memref<9x4x4xf32, #tpu.memory_space<vmem>>, vector<1x4x4xf32>
    %117 = vector.shape_cast %116 : vector<1x4x4xf32> to vector<4x4xf32>
    %cst_130 = arith.constant dense<0.000000e+00> : vector<384x4xf32>
    %118 = tpu.matmul %115, %117, %cst_130 {dimension_numbers = #tpu.dot_dimension_numbers<[1], [0], [0], [1], [0, 0, 1, 1], [], []>} : vector<384x4xf32>, vector<4x4xf32>, vector<384x4xf32> -> vector<384x4xf32>
    %c0_131 = arith.constant 0 : index
    %c0_132 = arith.constant 0 : index
    %119 = vector.load %arg6[%c0_131, %c0_132] : memref<384x4xf32, #tpu.memory_space<vmem>>, vector<384x4xf32>
    %120 = arith.addf %119, %118 : vector<384x4xf32>
    %c0_133 = arith.constant 0 : index
    %c0_134 = arith.constant 0 : index
    %121 = vector.load %arg6[%c0_133, %c0_134] : memref<384x4xf32, #tpu.memory_space<vmem>>, vector<384x4xf32>
    tpu.vector_store %arg6[%c0_133, %c0_134], %120 {strides = array<i32>} : memref<384x4xf32, #tpu.memory_space<vmem>>, vector<384x4xf32>,
    %122 = vector.extract_strided_slice %109 {offsets = [48, 0], sizes = [384, 4], strides = [1, 1]} : vector<432x4xf32> to vector<384x4xf32>
    %c6_135 = arith.constant 6 : index
    %c0_136 = arith.constant 0 : index
    %c0_137 = arith.constant 0 : index
    %123 = vector.load %arg3[%c6_135, %c0_136, %c0_137] : memref<9x4x4xf32, #tpu.memory_space<vmem>>, vector<1x4x4xf32>
    %124 = vector.shape_cast %123 : vector<1x4x4xf32> to vector<4x4xf32>
    %cst_138 = arith.constant dense<0.000000e+00> : vector<384x4xf32>
    %125 = tpu.matmul %122, %124, %cst_138 {dimension_numbers = #tpu.dot_dimension_numbers<[1], [0], [0], [1], [0, 0, 1, 1], [], []>} : vector<384x4xf32>, vector<4x4xf32>, vector<384x4xf32> -> vector<384x4xf32>
    %c0_139 = arith.constant 0 : index
    %c0_140 = arith.constant 0 : index
    %126 = vector.load %arg6[%c0_139, %c0_140] : memref<384x4xf32, #tpu.memory_space<vmem>>, vector<384x4xf32>
    %127 = arith.addf %126, %125 : vector<384x4xf32>
    %c0_141 = arith.constant 0 : index
    %c0_142 = arith.constant 0 : index
    %128 = vector.load %arg6[%c0_141, %c0_142] : memref<384x4xf32, #tpu.memory_space<vmem>>, vector<384x4xf32>
    tpu.vector_store %arg6[%c0_141, %c0_142], %127 {strides = array<i32>} : memref<384x4xf32, #tpu.memory_space<vmem>>, vector<384x4xf32>,
    %c431_i32_143 = arith.constant 431 : i32
    %129 = tpu.dynamic_rotate %109 by %c431_i32_143 dim 0 : vector<432x4xf32>, i32 -> vector<432x4xf32>
    %130 = vector.extract_strided_slice %129 {offsets = [0, 0], sizes = [384, 4], strides = [1, 1]} : vector<432x4xf32> to vector<384x4xf32>
    %c1_144 = arith.constant 1 : index
    %c0_145 = arith.constant 0 : index
    %c0_146 = arith.constant 0 : index
    %131 = vector.load %arg3[%c1_144, %c0_145, %c0_146] : memref<9x4x4xf32, #tpu.memory_space<vmem>>, vector<1x4x4xf32>
    %132 = vector.shape_cast %131 : vector<1x4x4xf32> to vector<4x4xf32>
    %cst_147 = arith.constant dense<0.000000e+00> : vector<384x4xf32>
    %133 = tpu.matmul %130, %132, %cst_147 {dimension_numbers = #tpu.dot_dimension_numbers<[1], [0], [0], [1], [0, 0, 1, 1], [], []>} : vector<384x4xf32>, vector<4x4xf32>, vector<384x4xf32> -> vector<384x4xf32>
    %c0_148 = arith.constant 0 : index
    %c0_149 = arith.constant 0 : index
    %134 = vector.load %arg6[%c0_148, %c0_149] : memref<384x4xf32, #tpu.memory_space<vmem>>, vector<384x4xf32>
    %135 = arith.addf %134, %133 : vector<384x4xf32>
    %c0_150 = arith.constant 0 : index
    %c0_151 = arith.constant 0 : index
    %136 = vector.load %arg6[%c0_150, %c0_151] : memref<384x4xf32, #tpu.memory_space<vmem>>, vector<384x4xf32>
    tpu.vector_store %arg6[%c0_150, %c0_151], %135 {strides = array<i32>} : memref<384x4xf32, #tpu.memory_space<vmem>>, vector<384x4xf32>,
    %137 = vector.extract_strided_slice %129 {offsets = [24, 0], sizes = [384, 4], strides = [1, 1]} : vector<432x4xf32> to vector<384x4xf32>
    %c4_152 = arith.constant 4 : index
    %c0_153 = arith.constant 0 : index
    %c0_154 = arith.constant 0 : index
    %138 = vector.load %arg3[%c4_152, %c0_153, %c0_154] : memref<9x4x4xf32, #tpu.memory_space<vmem>>, vector<1x4x4xf32>
    %139 = vector.shape_cast %138 : vector<1x4x4xf32> to vector<4x4xf32>
    %cst_155 = arith.constant dense<0.000000e+00> : vector<384x4xf32>
    %140 = tpu.matmul %137, %139, %cst_155 {dimension_numbers = #tpu.dot_dimension_numbers<[1], [0], [0], [1], [0, 0, 1, 1], [], []>} : vector<384x4xf32>, vector<4x4xf32>, vector<384x4xf32> -> vector<384x4xf32>
    %c0_156 = arith.constant 0 : index
    %c0_157 = arith.constant 0 : index
    %141 = vector.load %arg6[%c0_156, %c0_157] : memref<384x4xf32, #tpu.memory_space<vmem>>, vector<384x4xf32>
    %142 = arith.addf %141, %140 : vector<384x4xf32>
    %c0_158 = arith.constant 0 : index
    %c0_159 = arith.constant 0 : index
    %143 = vector.load %arg6[%c0_158, %c0_159] : memref<384x4xf32, #tpu.memory_space<vmem>>, vector<384x4xf32>
    tpu.vector_store %arg6[%c0_158, %c0_159], %142 {strides = array<i32>} : memref<384x4xf32, #tpu.memory_space<vmem>>, vector<384x4xf32>,
    %144 = vector.extract_strided_slice %129 {offsets = [48, 0], sizes = [384, 4], strides = [1, 1]} : vector<432x4xf32> to vector<384x4xf32>
    %c7_160 = arith.constant 7 : index
    %c0_161 = arith.constant 0 : index
    %c0_162 = arith.constant 0 : index
    %145 = vector.load %arg3[%c7_160, %c0_161, %c0_162] : memref<9x4x4xf32, #tpu.memory_space<vmem>>, vector<1x4x4xf32>
    %146 = vector.shape_cast %145 : vector<1x4x4xf32> to vector<4x4xf32>
    %cst_163 = arith.constant dense<0.000000e+00> : vector<384x4xf32>
    %147 = tpu.matmul %144, %146, %cst_163 {dimension_numbers = #tpu.dot_dimension_numbers<[1], [0], [0], [1], [0, 0, 1, 1], [], []>} : vector<384x4xf32>, vector<4x4xf32>, vector<384x4xf32> -> vector<384x4xf32>
    %c0_164 = arith.constant 0 : index
    %c0_165 = arith.constant 0 : index
    %148 = vector.load %arg6[%c0_164, %c0_165] : memref<384x4xf32, #tpu.memory_space<vmem>>, vector<384x4xf32>
    %149 = arith.addf %148, %147 : vector<384x4xf32>
    %c0_166 = arith.constant 0 : index
    %c0_167 = arith.constant 0 : index
    %150 = vector.load %arg6[%c0_166, %c0_167] : memref<384x4xf32, #tpu.memory_space<vmem>>, vector<384x4xf32>
    tpu.vector_store %arg6[%c0_166, %c0_167], %149 {strides = array<i32>} : memref<384x4xf32, #tpu.memory_space<vmem>>, vector<384x4xf32>,
    %c430_i32_168 = arith.constant 430 : i32
    %151 = tpu.dynamic_rotate %109 by %c430_i32_168 dim 0 : vector<432x4xf32>, i32 -> vector<432x4xf32>
    %152 = vector.extract_strided_slice %151 {offsets = [0, 0], sizes = [384, 4], strides = [1, 1]} : vector<432x4xf32> to vector<384x4xf32>
    %c2_169 = arith.constant 2 : index
    %c0_170 = arith.constant 0 : index
    %c0_171 = arith.constant 0 : index
    %153 = vector.load %arg3[%c2_169, %c0_170, %c0_171] : memref<9x4x4xf32, #tpu.memory_space<vmem>>, vector<1x4x4xf32>
    %154 = vector.shape_cast %153 : vector<1x4x4xf32> to vector<4x4xf32>
    %cst_172 = arith.constant dense<0.000000e+00> : vector<384x4xf32>
    %155 = tpu.matmul %152, %154, %cst_172 {dimension_numbers = #tpu.dot_dimension_numbers<[1], [0], [0], [1], [0, 0, 1, 1], [], []>} : vector<384x4xf32>, vector<4x4xf32>, vector<384x4xf32> -> vector<384x4xf32>
    %c0_173 = arith.constant 0 : index
    %c0_174 = arith.constant 0 : index
    %156 = vector.load %arg6[%c0_173, %c0_174] : memref<384x4xf32, #tpu.memory_space<vmem>>, vector<384x4xf32>
    %157 = arith.addf %156, %155 : vector<384x4xf32>
    %c0_175 = arith.constant 0 : index
    %c0_176 = arith.constant 0 : index
    %158 = vector.load %arg6[%c0_175, %c0_176] : memref<384x4xf32, #tpu.memory_space<vmem>>, vector<384x4xf32>
    tpu.vector_store %arg6[%c0_175, %c0_176], %157 {strides = array<i32>} : memref<384x4xf32, #tpu.memory_space<vmem>>, vector<384x4xf32>,
    %159 = vector.extract_strided_slice %151 {offsets = [24, 0], sizes = [384, 4], strides = [1, 1]} : vector<432x4xf32> to vector<384x4xf32>
    %c5_177 = arith.constant 5 : index
    %c0_178 = arith.constant 0 : index
    %c0_179 = arith.constant 0 : index
    %160 = vector.load %arg3[%c5_177, %c0_178, %c0_179] : memref<9x4x4xf32, #tpu.memory_space<vmem>>, vector<1x4x4xf32>
    %161 = vector.shape_cast %160 : vector<1x4x4xf32> to vector<4x4xf32>
    %cst_180 = arith.constant dense<0.000000e+00> : vector<384x4xf32>
    %162 = tpu.matmul %159, %161, %cst_180 {dimension_numbers = #tpu.dot_dimension_numbers<[1], [0], [0], [1], [0, 0, 1, 1], [], []>} : vector<384x4xf32>, vector<4x4xf32>, vector<384x4xf32> -> vector<384x4xf32>
    %c0_181 = arith.constant 0 : index
    %c0_182 = arith.constant 0 : index
    %163 = vector.load %arg6[%c0_181, %c0_182] : memref<384x4xf32, #tpu.memory_space<vmem>>, vector<384x4xf32>
    %164 = arith.addf %163, %162 : vector<384x4xf32>
    %c0_183 = arith.constant 0 : index
    %c0_184 = arith.constant 0 : index
    %165 = vector.load %arg6[%c0_183, %c0_184] : memref<384x4xf32, #tpu.memory_space<vmem>>, vector<384x4xf32>
    tpu.vector_store %arg6[%c0_183, %c0_184], %164 {strides = array<i32>} : memref<384x4xf32, #tpu.memory_space<vmem>>, vector<384x4xf32>,
    %166 = vector.extract_strided_slice %151 {offsets = [48, 0], sizes = [384, 4], strides = [1, 1]} : vector<432x4xf32> to vector<384x4xf32>
    %c8_185 = arith.constant 8 : index
    %c0_186 = arith.constant 0 : index
    %c0_187 = arith.constant 0 : index
    %167 = vector.load %arg3[%c8_185, %c0_186, %c0_187] : memref<9x4x4xf32, #tpu.memory_space<vmem>>, vector<1x4x4xf32>
    %168 = vector.shape_cast %167 : vector<1x4x4xf32> to vector<4x4xf32>
    %cst_188 = arith.constant dense<0.000000e+00> : vector<384x4xf32>
    %169 = tpu.matmul %166, %168, %cst_188 {dimension_numbers = #tpu.dot_dimension_numbers<[1], [0], [0], [1], [0, 0, 1, 1], [], []>} : vector<384x4xf32>, vector<4x4xf32>, vector<384x4xf32> -> vector<384x4xf32>
    %c0_189 = arith.constant 0 : index
    %c0_190 = arith.constant 0 : index
    %170 = vector.load %arg6[%c0_189, %c0_190] : memref<384x4xf32, #tpu.memory_space<vmem>>, vector<384x4xf32>
    %171 = arith.addf %170, %169 : vector<384x4xf32>
    %c0_191 = arith.constant 0 : index
    %c0_192 = arith.constant 0 : index
    %172 = vector.load %arg6[%c0_191, %c0_192] : memref<384x4xf32, #tpu.memory_space<vmem>>, vector<384x4xf32>
    tpu.vector_store %arg6[%c0_191, %c0_192], %171 {strides = array<i32>} : memref<384x4xf32, #tpu.memory_space<vmem>>, vector<384x4xf32>,
    %c0_193 = arith.constant 0 : index
    %c0_194 = arith.constant 0 : index
    %173 = vector.load %arg6[%c0_193, %c0_194] : memref<384x4xf32, #tpu.memory_space<vmem>>, vector<384x4xf32>
    %174 = vector.shape_cast %173 : vector<384x4xf32> to vector<16x24x4xf32>
    %175 = vector.extract_strided_slice %174 {offsets = [0, 0, 0], sizes = [16, 16, 4], strides = [1, 1, 1]} : vector<16x24x4xf32> to vector<16x16x4xf32>
    %cst_195 = arith.constant dense<0.000000e+00> : vector<4xf32>
    %176 = vector.multi_reduction <add>, %175, %cst_195 [0, 1] : vector<16x16x4xf32> to vector<4xf32>
    %177 = vector.shape_cast %176 : vector<4xf32> to vector<1x1x4xf32>
    %cst_196 = arith.constant 3.906250e-03 : f32
    %178 = vector.broadcast %cst_196 : f32 to vector<1x1x4xf32>
    %179 = arith.mulf %177, %178 : vector<1x1x4xf32>
    %180 = vector.broadcast %179 : vector<1x1x4xf32> to vector<16x16x4xf32>
    %181 = arith.subf %175, %180 : vector<16x16x4xf32>
    %182 = arith.mulf %181, %181 : vector<16x16x4xf32>
    %cst_197 = arith.constant dense<0.000000e+00> : vector<4xf32>
    %183 = vector.multi_reduction <add>, %182, %cst_197 [0, 1] : vector<16x16x4xf32> to vector<4xf32>
    %184 = vector.shape_cast %183 : vector<4xf32> to vector<1x1x4xf32>
    %cst_198 = arith.constant 3.906250e-03 : f32
    %185 = vector.broadcast %cst_198 : f32 to vector<1x1x4xf32>
    %186 = arith.mulf %184, %185 : vector<1x1x4xf32>
    %cst_199 = arith.constant 9.99999974E-6 : f32
    %187 = vector.broadcast %cst_199 : f32 to vector<1x1x4xf32>
    %188 = arith.addf %186, %187 : vector<1x1x4xf32>
    %189 = math.rsqrt %188 : vector<1x1x4xf32>
    %190 = vector.broadcast %189 : vector<1x1x4xf32> to vector<16x16x4xf32>
    %191 = arith.mulf %181, %190 : vector<16x16x4xf32>
    %c0_200 = arith.constant 0 : index
    %c0_201 = arith.constant 0 : index
    %c0_202 = arith.constant 0 : index
    %c0_203 = arith.constant 0 : index
    %192 = vector.load %arg1[%c0_200, %c0_201, %c0_202, %c0_203] : memref<1x16x16x4xf32, #tpu.memory_space<vmem>>, vector<1x16x16x4xf32>
    %193 = vector.shape_cast %192 : vector<1x16x16x4xf32> to vector<16x16x4xf32>
    %194 = arith.addf %193, %191 : vector<16x16x4xf32>
    %c0_204 = arith.constant 0 : index
    %c0_205 = arith.constant 0 : index
    %c0_206 = arith.constant 0 : index
    %c0_207 = arith.constant 0 : index
    %195 = vector.load %arg4[%c0_204, %c0_205, %c0_206, %c0_207] : memref<1x16x16x4xf32, #tpu.memory_space<vmem>>, vector<1x16x16x4xf32>
    %196 = vector.shape_cast %195 : vector<1x16x16x4xf32> to vector<16x16x4xf32>
    %197 = vector.shape_cast %194 : vector<16x16x4xf32> to vector<1x16x16x4xf32>
    tpu.vector_store %arg4[%c0_204, %c0_205, %c0_206, %c0_207], %197 {strides = array<i32>} : memref<1x16x16x4xf32, #tpu.memory_space<vmem>>, vector<1x16x16x4xf32>,
    return
  }
  func.func @transform_0(%arg0: i32) -> (i32, i32, i32, i32) {
    %c0_i32 = arith.constant 0 : i32
    %c0_i32_0 = arith.constant 0 : i32
    %c0_i32_1 = arith.constant 0 : i32
    %c0_i32_2 = arith.constant 0 : i32
    return %arg0, %c0_i32, %c0_i32_0, %c0_i32_1 : i32, i32, i32, i32
  }
  func.func @transform_1(%arg0: i32) -> (i32, i32, i32) {
    %c0_i32 = arith.constant 0 : i32
    %c0_i32_0 = arith.constant 0 : i32
    %c0_i32_1 = arith.constant 0 : i32
    %c0_i32_2 = arith.constant 0 : i32
    return %c0_i32, %c0_i32_0, %c0_i32_1 : i32, i32, i32
  }
  func.func @transform_2(%arg0: i32) -> (i32, i32, i32) {
    %c0_i32 = arith.constant 0 : i32
    %c0_i32_0 = arith.constant 0 : i32
    %c0_i32_1 = arith.constant 0 : i32
    %c0_i32_2 = arith.constant 0 : i32
    return %c0_i32, %c0_i32_0, %c0_i32_1 : i32, i32, i32
  }
  func.func @transform_3(%arg0: i32) -> (i32, i32, i32, i32) {
    %c0_i32 = arith.constant 0 : i32
    %c0_i32_0 = arith.constant 0 : i32
    %c0_i32_1 = arith.constant 0 : i32
    %c0_i32_2 = arith.constant 0 : i32
    return %arg0, %c0_i32, %c0_i32_0, %c0_i32_1 : i32, i32, i32, i32
  }
}

</mosaic_0001>

<bundles_post_ra>
// kernel: tpu_custom_call.1
= control target key start
LH: loop header
LB: loop body
LE: loop exit
PB: predicated region body
PF: predicated region fallthrough
CT: control target
= control target key end

     0   :  { %s13931_s12 = smov 0   ;;  %s19141_s0 = inlined_call_operand.vmem [shape: f32[2,16,16,4], index: 0, kind: input, shape index: {}]   ;;  %s19142_s1 = inlined_call_operand.vmem [shape: f32[9,4,4], index: 1, kind: input, shape index: {}]   ;;  %s19143_s2 = inlined_call_operand.vmem [shape: f32[9,4,4], index: 2, kind: input, shape index: {}]   ;;  %s19144_s3 = inlined_call_operand.vmem [shape: f32[2,16,16,4], index: 3, kind: output, shape index: {}]  }
   0x1 LB: > { %s10660_s13 = sadd.s32 4294967295, %s13908_s12   ;;  %p10664_p0 = scmp.ge.s32.totalorder %s13908_s12, 1  ;;  %s13908_s12 = sphi %s13931_s12, %s13_s12  }
   0x2   : > { %p137_p1 = scmp.lt.s32.totalorder %s13908_s12, 3 }
   0x4   : > { %p138_p2 = pnand %p10664_p0, %p137_p1 }
   0x6   : > { %141 = sbr.rel (%p138_p2) target bundleno = 1699 (0x6a3), region = 32 }
   0xb   : > { %v388_v0 = vld [vmem:[%s19142_s1] sm:$0xf]  ;;  %vm533_vm0 = vcmask 1043456   ;;  %p161_p3 = scmp.lt.s32.totalorder %s10660_s13, 1  ;;  %v13946_v1 = vld [vmem:[%s19142_s1 + $0x18] sm:$0xf] }
   0xc   : > { %12453 = vmatprep.subr.msk.mxu0 %vm533_vm0, %v388_v0  ;;  %vm171_vm1 = vcmask 29696   ;;  %v10718_v2 = vld [vmem:[%s19142_s1 + $0xc] sm:$0xf]  ;;  %v13910_v3 = vmov 0.0   ;;  %v13976_v4 = vld [vmem:[%s19142_s1 + $0x4] sm:$0xf] }
   0xd   : > { %12454 = vmatpush3.msk.msra.mxu0 %vm533_vm0, %v388_v0  ;;  %s19193_s13 = smov (!%p161_p3, %s10660_s13), 1  ;;  %172 = vst.msk [vmem:[#allocation2 + $0x12] sm:$0x3f] %vm171_vm1, %v13910_v3  ;;  %173 = vst.msk [vmem:[#allocation2 + $0x2a] sm:$0x3f] %vm171_vm1, %v13910_v3  ;;  %12527 = vmatprep.subr.msk.mxu1 %vm533_vm0, %v10718_v2  ;;  %vm223_vm2 = vcmask 31744  }
   0xe   : > { %174 = vst.msk [vmem:[#allocation2 + $0x42] sm:$0x3f] %vm171_vm1, %v13910_v3  ;;  %175 = vst.msk [vmem:[#allocation2 + $0x5a] sm:$0x3f] %vm171_vm1, %v13910_v3  ;;  %12601 = vmatprep.subr.msk.mxu0 %vm533_vm0, %v13946_v1  ;;  %12528 = vmatpush3.msk.msra.mxu1 %vm533_vm0, %v10718_v2  ;;  %s11569_s22 = sshll.u32 %s19193_s13, 8  ;;  %vm279_vm3 = vcmask 24576  }
   0xf   : > { %176 = vst.msk [vmem:[#allocation2 + $0x72] sm:$0x3f] %vm171_vm1, %v13910_v3  ;;  %177 = vst.msk [vmem:[#allocation2 + $0x8a] sm:$0x3f] %vm171_vm1, %v13910_v3  ;;  %12675 = vmatprep.subr.msk.mxu1 %vm533_vm0, %v13976_v4  ;;  %s13989_s25 = scalar_lea.vmem %s19141_s0, %s11569_s22  ;;  %v14073_v51 = vld [vmem:[%s19142_s1 + $0x10] sm:$0xf]  ;;  %s19022_s6 = scalar_lea.vmem %s19144_s3, %s11569_s22 }
  0x10   : > { %178 = vst.msk [vmem:[#allocation2 + $0xa2] sm:$0x3f] %vm171_vm1, %v13910_v3  ;;  %179 = vst.msk [vmem:[#allocation2 + $0xba] sm:$0x3f] %vm171_vm1, %v13910_v3  ;;  %v192_v5 = vld [vmem:[%s13989_s25 + $0x10] sm:$0xff]  ;;  %v193_v6 = vld [vmem:[%s13989_s25 + $0x18] sm:$0xff] }
  0x11   : > { %180 = vst.msk [vmem:[#allocation2 + $0xd2] sm:$0x3f] %vm171_vm1, %v13910_v3  ;;  %181 = vst.msk [vmem:[#allocation2 + $0xea] sm:$0x3f] %vm171_vm1, %v13910_v3  ;;  %v190_v7 = vld [vmem:[%s13989_s25] sm:$0xff]  ;;  %v191_v8 = vld [vmem:[%s13989_s25 + $0x8] sm:$0xff] }
  0x12   : > { %182 = vst.msk [vmem:[#allocation2 + $0x102] sm:$0x3f] %vm171_vm1, %v13910_v3  ;;  %183 = vst.msk [vmem:[#allocation2 + $0x11a] sm:$0x3f] %vm171_vm1, %v13910_v3  ;;  %v194_v9 = vld [vmem:[%s13989_s25 + $0x20] sm:$0xff]  ;;  %v195_v10 = vld [vmem:[%s13989_s25 + $0x28] sm:$0xff] }
  0x13   : > { %184 = vst.msk [vmem:[#allocation2 + $0x132] sm:$0x3f] %vm171_vm1, %v13910_v3  ;;  %185 = vst.msk [vmem:[#allocation2 + $0x14a] sm:$0x3f] %vm171_vm1, %v13910_v3  ;;  %v196_v11 = vld [vmem:[%s13989_s25 + $0x30] sm:$0xff]  ;;  %v197_v12 = vld [vmem:[%s13989_s25 + $0x38] sm:$0xff] }
  0x14   : > { %186 = vst.msk [vmem:[#allocation2 + $0x162] sm:$0x3f] %vm171_vm1, %v13910_v3  ;;  %187 = vst.msk [vmem:[#allocation2 + $0x17a] sm:$0x3f] %vm171_vm1, %v13910_v3  ;;  %v198_v13 = vld [vmem:[%s13989_s25 + $0x40] sm:$0xff]  ;;  %v199_v14 = vld [vmem:[%s13989_s25 + $0x48] sm:$0xff] }
  0x15   : > { %188 = vst.msk [vmem:[#allocation2 + $0x192] sm:$0x3f] %vm171_vm1, %v13910_v3  ;;  %189 = vst.msk [vmem:[#allocation2 + $0x1aa] sm:$0x3f] %vm171_vm1, %v13910_v3  ;;  %v200_v15 = vld [vmem:[%s13989_s25 + $0x50] sm:$0xff]  ;;  %v201_v16 = vld [vmem:[%s13989_s25 + $0x58] sm:$0xff] }
  0x16   : > { %226 = vst.msk [vmem:[#allocation2 + $0x31] sm:$0xff] %vm223_vm2, %v192_v5  ;;  %256 = vst.msk [vmem:[#allocation2 + $0x1] sm:$0xff] %vm223_vm2, %v192_v5  ;;  %v202_v17 = vld [vmem:[%s13989_s25 + $0x60] sm:$0xff]  ;;  %v203_v18 = vld [vmem:[%s13989_s25 + $0x68] sm:$0xff] }
  0x17   : > { %227 = vst.msk [vmem:[#allocation2 + $0x39] sm:$0xff] %vm223_vm2, %v193_v6  ;;  %257 = vst.msk [vmem:[#allocation2 + $0x9] sm:$0xff] %vm223_vm2, %v193_v6  ;;  %v204_v19 = vld [vmem:[%s13989_s25 + $0x70] sm:$0xff]  ;;  %v205_v20 = vld [vmem:[%s13989_s25 + $0x78] sm:$0xff] }
  0x18   : > { %224 = vst.msk [vmem:[#allocation2 + $0x19] sm:$0xff] %vm223_vm2, %v190_v7  ;;  %225 = vst.msk [vmem:[#allocation2 + $0x21] sm:$0xff] %vm223_vm2, %v191_v8  ;;  %v206_v21 = vld [vmem:[%s13989_s25 + $0x80] sm:$0xff]  ;;  %v207_v22 = vld [vmem:[%s13989_s25 + $0x88] sm:$0xff] }
  0x19   : > { %228 = vst.msk [vmem:[#allocation2 + $0x49] sm:$0xff] %vm223_vm2, %v194_v9  ;;  %229 = vst.msk [vmem:[#allocation2 + $0x51] sm:$0xff] %vm223_vm2, %v195_v10  ;;  %v208_v23 = vld [vmem:[%s13989_s25 + $0x90] sm:$0xff]  ;;  %v209_v24 = vld [vmem:[%s13989_s25 + $0x98] sm:$0xff] }
  0x1a   : > { %230 = vst.msk [vmem:[#allocation2 + $0x61] sm:$0xff] %vm223_vm2, %v196_v11  ;;  %231 = vst.msk [vmem:[#allocation2 + $0x69] sm:$0xff] %vm223_vm2, %v197_v12  ;;  %v210_v25 = vld [vmem:[%s13989_s25 + $0xa0] sm:$0xff]  ;;  %v211_v26 = vld [vmem:[%s13989_s25 + $0xa8] sm:$0xff] }
  0x1b   : > { %232 = vst.msk [vmem:[#allocation2 + $0x79] sm:$0xff] %vm223_vm2, %v198_v13  ;;  %233 = vst.msk [vmem:[#allocation2 + $0x81] sm:$0xff] %vm223_vm2, %v199_v14  ;;  %v212_v27 = vld [vmem:[%s13989_s25 + $0xb0] sm:$0xff]  ;;  %v213_v28 = vld [vmem:[%s13989_s25 + $0xb8] sm:$0xff] }
  0x1c   : > { %234 = vst.msk [vmem:[#allocation2 + $0x91] sm:$0xff] %vm223_vm2, %v200_v15  ;;  %235 = vst.msk [vmem:[#allocation2 + $0x99] sm:$0xff] %vm223_vm2, %v201_v16  ;;  %v214_v2 = vld [vmem:[%s13989_s25 + $0xc0] sm:$0xff]  ;;  %v215_v3 = vld [vmem:[%s13989_s25 + $0xc8] sm:$0xff] }
  0x1d   : > { %236 = vst.msk [vmem:[#allocation2 + $0xa9] sm:$0xff] %vm223_vm2, %v202_v17  ;;  %237 = vst.msk [vmem:[#allocation2 + $0xb1] sm:$0xff] %vm223_vm2, %v203_v18  ;;  %v261_v29 = vld [vmem:[#allocation2 + $0x2] sm:$0x1]  ;;  %v263_v33 = vld [vmem:[#allocation2 + $0x32] sm:$0x1] }
  0x1e   : > { %238 = vst.msk [vmem:[#allocation2 + $0xc1] sm:$0xff] %vm223_vm2, %v204_v19  ;;  %239 = vst.msk [vmem:[#allocation2 + $0xc9] sm:$0xff] %vm223_vm2, %v205_v20  ;;  %v298_v30 = vld [vmem:[#allocation2 + $0xf] sm:$0x1]  ;;  %v300_v34 = vld [vmem:[#allocation2 + $0x3f] sm:$0x1] }
  0x1f   : > { %240 = vst.msk [vmem:[#allocation2 + $0xd9] sm:$0xff] %vm223_vm2, %v206_v21  ;;  %241 = vst.msk [vmem:[#allocation2 + $0xe1] sm:$0xff] %vm223_vm2, %v207_v22  ;;  %v262_v31 = vld [vmem:[#allocation2 + $0x1a] sm:$0x1]  ;;  %v299_v32 = vld [vmem:[#allocation2 + $0x27] sm:$0x1] }
  0x20   : > { %242 = vst.msk [vmem:[#allocation2 + $0xf1] sm:$0xff] %vm223_vm2, %v208_v23  ;;  %243 = vst.msk [vmem:[#allocation2 + $0xf9] sm:$0xff] %vm223_vm2, %v209_v24  ;;  %v264_v35 = vld [vmem:[#allocation2 + $0x4a] sm:$0x1]  ;;  %v301_v36 = vld [vmem:[#allocation2 + $0x57] sm:$0x1] }
  0x21   : > { %244 = vst.msk [vmem:[#allocation2 + $0x109] sm:$0xff] %vm223_vm2, %v210_v25  ;;  %245 = vst.msk [vmem:[#allocation2 + $0x111] sm:$0xff] %vm223_vm2, %v211_v26  ;;  %v265_v37 = vld [vmem:[#allocation2 + $0x62] sm:$0x1]  ;;  %v302_v38 = vld [vmem:[#allocation2 + $0x6f] sm:$0x1] }
  0x22   : > { %246 = vst.msk [vmem:[#allocation2 + $0x121] sm:$0xff] %vm223_vm2, %v212_v27  ;;  %247 = vst.msk [vmem:[#allocation2 + $0x129] sm:$0xff] %vm223_vm2, %v213_v28  ;;  %v266_v39 = vld [vmem:[#allocation2 + $0x7a] sm:$0x1]  ;;  %v303_v40 = vld [vmem:[#allocation2 + $0x87] sm:$0x1] }
  0x23   : > { %280 = vst.msk [vmem:[#allocation2] sm:$0x1] %vm279_vm3, %v261_v29  ;;  %316 = vst.msk [vmem:[#allocation2 + $0x11] sm:$0x1] %vm279_vm3, %v298_v30  ;;  %v267_v41 = vld [vmem:[#allocation2 + $0x92] sm:$0x1] }
  0x24   : > { %281 = vst.msk [vmem:[#allocation2 + $0x18] sm:$0x1] %vm279_vm3, %v262_v31  ;;  %317 = vst.msk [vmem:[#allocation2 + $0x29] sm:$0x1] %vm279_vm3, %v299_v32  ;;  %v304_v42 = vld [vmem:[#allocation2 + $0x9f] sm:$0x1] }
  0x25   : > { %282 = vst.msk [vmem:[#allocation2 + $0x30] sm:$0x1] %vm279_vm3, %v263_v33  ;;  %318 = vst.msk [vmem:[#allocation2 + $0x41] sm:$0x1] %vm279_vm3, %v300_v34  ;;  %v14053_v43 = vld [vmem:[#allocation2 + $0x8] sm:$0xff]  ;;  %v14067_v50 = vld [vmem:[#allocation2 + $0x20] sm:$0xff] }
  0x26   : > { %283 = vst.msk [vmem:[#allocation2 + $0x48] sm:$0x1] %vm279_vm3, %v264_v35  ;;  %319 = vst.msk [vmem:[#allocation2 + $0x59] sm:$0x1] %vm279_vm3, %v301_v36  ;;  %v268_v44 = vld [vmem:[#allocation2 + $0xaa] sm:$0x1] }
  0x27   : > { %284 = vst.msk [vmem:[#allocation2 + $0x60] sm:$0x1] %vm279_vm3, %v265_v37  ;;  %320 = vst.msk [vmem:[#allocation2 + $0x71] sm:$0x1] %vm279_vm3, %v302_v38  ;;  %v305_v45 = vld [vmem:[#allocation2 + $0xb7] sm:$0x1] }
  0x28   : > { %285 = vst.msk [vmem:[#allocation2 + $0x78] sm:$0x1] %vm279_vm3, %v266_v39  ;;  %321 = vst.msk [vmem:[#allocation2 + $0x89] sm:$0x1] %vm279_vm3, %v303_v40  ;;  %v269_v48 = vld [vmem:[#allocation2 + $0xc2] sm:$0x1] }
  0x29   : > { %286 = vst.msk [vmem:[#allocation2 + $0x90] sm:$0x1] %vm279_vm3, %v267_v41  ;;  %322 = vst.msk [vmem:[#allocation2 + $0xa1] sm:$0x1] %vm279_vm3, %v304_v42  ;;  %v306_v52 = vld [vmem:[#allocation2 + $0xcf] sm:$0x1] }
  0x2a   : > { %v14057_v46 = vld [vmem:[#allocation2] sm:$0xff]  ;;  %v14059_v47 = vld [vmem:[#allocation2 + $0x10] sm:$0xff]  ;;  %287 = vst.msk [vmem:[#allocation2 + $0xa8] sm:$0x1] %vm279_vm3, %v268_v44  ;;  %323 = vst.msk [vmem:[#allocation2 + $0xb9] sm:$0x1] %vm279_vm3, %v305_v45 }
  0x2b   : > { %12455 = vmatprep.mubr.msk.f32.mxu0 %vm223_vm2, %v14057_v46  ;;  %v14065_v49 = vld [vmem:[#allocation2 + $0x18] sm:$0xff]  ;;  %288 = vst.msk [vmem:[#allocation2 + $0xc0] sm:$0x1] %vm279_vm3, %v269_v48  ;;  %324 = vst.msk [vmem:[#allocation2 + $0xd1] sm:$0x1] %vm279_vm3, %v306_v52  ;;  %v14084_v54 = vld [vmem:[#allocation2 + $0x28] sm:$0xff] }
  0x2c   : > { %12456 = vmatmul.mubr.msk.f32.vlgmr.msra.gmra.mxu0 %vm223_vm2, %v14053_v43  ;;  %12529 = vmatprep.mubr.msk.f32.mxu1 %vm223_vm2, %v14065_v49  ;;  %v270_v53 = vld [vmem:[#allocation2 + $0xda] sm:$0x1]  ;;  %v14091_v55 = vld [vmem:[#allocation2 + $0x30] sm:$0xff]  ;;  %v307_v56 = vld [vmem:[#allocation2 + $0xe7] sm:$0x1]  ;;  %248 = vst.msk [vmem:[#allocation2 + $0x139] sm:$0xff] %vm223_vm2, %v214_v2 }
  0x2d   : > { %12602 = vmatpush3.msk.msra.mxu0 %vm533_vm0, %v13946_v1  ;;  %12458 = vmatprep.mubr.msk.f32.mxu0 %vm223_vm2, %v14059_v47  ;;  %289 = vst.msk [vmem:[#allocation2 + $0xd8] sm:$0x1] %vm279_vm3, %v270_v53  ;;  %325 = vst.msk [vmem:[#allocation2 + $0xe9] sm:$0x1] %vm279_vm3, %v307_v56  ;;  %v271_v57 = vld [vmem:[#allocation2 + $0xf2] sm:$0x1] }
  0x2e   : > { %12530 = vmatmul.mubr.msk.f32.vlgmr.msra.gmra.mxu1 %vm223_vm2, %v14067_v50  ;;  %12749 = vmatprep.subr.msk.mxu0 %vm533_vm0, %v14073_v51  ;;  %290 = vst.msk [vmem:[#allocation2 + $0xf0] sm:$0x1] %vm279_vm3, %v271_v57  ;;  %v14103_v58 = vld [vmem:[#allocation2 + $0x38] sm:$0xff]  ;;  %v272_v60 = vld [vmem:[#allocation2 + $0x10a] sm:$0x1]  ;;  %v14107_v61 = vld [vmem:[#allocation2 + $0x40] sm:$0xff] }
  0x2f   : > { %12532 = vmatprep.mubr.msk.f32.mxu1 %vm223_vm2, %v14084_v54  ;;  %12676 = vmatpush3.msk.msra.mxu1 %vm533_vm0, %v13976_v4  ;;  %v308_v59 = vld [vmem:[#allocation2 + $0xff] sm:$0x1]  ;;  %291 = vst.msk [vmem:[#allocation2 + $0x108] sm:$0x1] %vm279_vm3, %v272_v60  ;;  %v309_v62 = vld [vmem:[#allocation2 + $0x117] sm:$0x1] }
  0x30   : > { %12459 = vmatmul.mubr.msk.f32.gmra.mxu0 %vm223_vm2, %v14065_v49  ;;  %326 = vst.msk [vmem:[#allocation2 + $0x101] sm:$0x1] %vm279_vm3, %v308_v59  ;;  %v273_v63 = vld [vmem:[#allocation2 + $0x122] sm:$0x1]  ;;  %327 = vst.msk [vmem:[#allocation2 + $0x119] sm:$0x1] %vm279_vm3, %v309_v62 }
  0x31   : > { %12461 = vmatprep.mubr.msk.f32.mxu0 %vm223_vm2, %v14067_v50  ;;  %292 = vst.msk [vmem:[#allocation2 + $0x120] sm:$0x1] %vm279_vm3, %v273_v63  ;;  %v310_v0 = vld [vmem:[#allocation2 + $0x12f] sm:$0x1]  ;;  %v216_v4 = vld [vmem:[%s13989_s25 + $0xd0] sm:$0xff]  ;;  %v217_v5 = vld [vmem:[%s13989_s25 + $0xd8] sm:$0xff] }
  0x32   : > { %12533 = vmatmul.mubr.msk.f32.gmra.mxu1 %vm223_vm2, %v14091_v55  ;;  %v14119_v1 = vld [vmem:[#allocation2 + $0x48] sm:$0xff]  ;;  %328 = vst.msk [vmem:[#allocation2 + $0x131] sm:$0x1] %vm279_vm3, %v310_v0  ;;  %v218_v6 = vld [vmem:[%s13989_s25 + $0xe0] sm:$0xff]  ;;  %v14131_v7 = vld [vmem:[#allocation2 + $0x50] sm:$0xff] }
  0x33   : > { %12535 = vmatprep.mubr.msk.f32.mxu1 %vm223_vm2, %v14103_v58  ;;  %249 = vst.msk [vmem:[#allocation2 + $0x141] sm:$0xff] %vm223_vm2, %v215_v3  ;;  %250 = vst.msk [vmem:[#allocation2 + $0x151] sm:$0xff] %vm223_vm2, %v216_v4  ;;  %v219_v8 = vld [vmem:[%s13989_s25 + $0xe8] sm:$0xff]  ;;  %v220_v9 = vld [vmem:[%s13989_s25 + $0xf0] sm:$0xff]  ;;  %v1870_v3 = vlaneseq }
  0x34   : > { %12462 = vmatmul.mubr.msk.f32.gmra.mxu0 %vm223_vm2, %v14084_v54  ;;  %251 = vst.msk [vmem:[#allocation2 + $0x159] sm:$0xff] %vm223_vm2, %v217_v5  ;;  %252 = vst.msk [vmem:[#allocation2 + $0x169] sm:$0xff] %vm223_vm2, %v218_v6  ;;  %v221_v10 = vld [vmem:[%s13989_s25 + $0xf8] sm:$0xff]  ;;  %v14154_v12 = vld [vmem:[#allocation2 + $0x60] sm:$0xff] }
  0x35   : > { %12464 = vmatprep.mubr.msk.f32.mxu0 %vm223_vm2, %v14091_v55  ;;  %259 = vst.msk [vmem:[#allocation2 + $0x199] sm:$0xff] %vm223_vm2, %v218_v6  ;;  %253 = vst.msk [vmem:[#allocation2 + $0x171] sm:$0xff] %vm223_vm2, %v219_v8  ;;  %v14150_v11 = vld [vmem:[#allocation2 + $0x58] sm:$0xff]  ;;  %v14162_v15 = vld [vmem:[#allocation2 + $0x68] sm:$0xff]  ;;  %v14383_v6 = vshrl.u32 %v1870_v3, 7  ;;  %v1826_v3 = vrot.slane %v14131_v7, 1 }
  0x36   : > { %12536 = vmatmul.mubr.msk.f32.gmra.mxu1 %vm223_vm2, %v14107_v61  ;;  %260 = vst.msk [vmem:[#allocation2 + $0x1a1] sm:$0xff] %vm223_vm2, %v219_v8  ;;  %254 = vst.msk [vmem:[#allocation2 + $0x181] sm:$0xff] %vm223_vm2, %v220_v9  ;;  %v274_v13 = vld [vmem:[#allocation2 + $0x13a] sm:$0x1]  ;;  %v14168_v18 = vld [vmem:[#allocation2 + $0x70] sm:$0xff] }
  0x37   : > { %12538 = vmatprep.mubr.msk.f32.mxu1 %vm223_vm2, %v14119_v1  ;;  %255 = vst.msk [vmem:[#allocation2 + $0x189] sm:$0xff] %vm223_vm2, %v221_v10  ;;  %v14182_v23 = vld [vmem:[#allocation2 + $0x78] sm:$0xff]  ;;  %v14186_v24 = vld [vmem:[#allocation2 + $0x80] sm:$0xff]  ;;  %v14194_v25 = vld [vmem:[#allocation2 + $0x88] sm:$0xff]  ;;  %vm1872_vm4 = vcmp.lt.s32.totalorder %v14383_v6, 7  ;;  %vm3505_vm5 = vcmp.lt.s32.totalorder %v14383_v6, 6 }
  0x38   : > { %12465 = vmatmul.mubr.msk.f32.gmra.mxu0 %vm223_vm2, %v14103_v58  ;;  %293 = vst.msk [vmem:[#allocation2 + $0x138] sm:$0x1] %vm279_vm3, %v274_v13  ;;  %v14198_v26 = vld [vmem:[#allocation2 + $0x90] sm:$0xff]  ;;  %v14206_v27 = vld [vmem:[#allocation2 + $0x98] sm:$0xff]  ;;  %v14210_v28 = vld [vmem:[#allocation2 + $0xa0] sm:$0xff]  ;;  %v1816_v13 = vrot.slane %v14057_v46, 1 }
  0x39   : > { %12467 = vmatprep.mubr.msk.f32.mxu0 %vm223_vm2, %v14107_v61  ;;  %v14218_v29 = vld [vmem:[#allocation2 + $0xa8] sm:$0xff]  ;;  %v14222_v30 = vld [vmem:[#allocation2 + $0xb0] sm:$0xff]  ;;  %v14230_v31 = vld [vmem:[#allocation2 + $0xb8] sm:$0xff]  ;;  %19161 = vst [vmem:[#allocation4_spill] sm:$0xff] %v14383_v6 }
  0x3a   : > { %12539 = vmatmul.mubr.msk.f32.gmra.mxu1 %vm223_vm2, %v14131_v7  ;;  %v311_v14 = vld [vmem:[#allocation2 + $0x147] sm:$0x1]  ;;  %v275_v16 = vld [vmem:[#allocation2 + $0x152] sm:$0x1]  ;;  %v14242_v33 = vld [vmem:[#allocation2 + $0xc8] sm:$0xff] }
  0x3b   : > { %12541 = vmatprep.mubr.msk.f32.mxu1 %vm223_vm2, %v14150_v11  ;;  %329 = vst.msk [vmem:[#allocation2 + $0x149] sm:$0x1] %vm279_vm3, %v311_v14  ;;  %v312_v17 = vld [vmem:[#allocation2 + $0x15f] sm:$0x1]  ;;  %294 = vst.msk [vmem:[#allocation2 + $0x150] sm:$0x1] %vm279_vm3, %v275_v16 }
  0x3c   : > { %12468 = vmatmul.mubr.msk.f32.gmra.mxu0 %vm223_vm2, %v14119_v1  ;;  %330 = vst.msk [vmem:[#allocation2 + $0x161] sm:$0x1] %vm279_vm3, %v312_v17  ;;  %v276_v19 = vld [vmem:[#allocation2 + $0x16a] sm:$0x1]  ;;  %v313_v20 = vld [vmem:[#allocation2 + $0x177] sm:$0x1] }
  0x3d   : > { %12470 = vmatprep.mubr.msk.f32.mxu0 %vm223_vm2, %v14131_v7  ;;  %295 = vst.msk [vmem:[#allocation2 + $0x168] sm:$0x1] %vm279_vm3, %v276_v19  ;;  %331 = vst.msk [vmem:[#allocation2 + $0x179] sm:$0x1] %vm279_vm3, %v313_v20  ;;  %v277_v21 = vld [vmem:[#allocation2 + $0x182] sm:$0x1] }
  0x3e   : > { %12542 = vmatmul.mubr.msk.f32.gmra.mxu1 %vm223_vm2, %v14154_v12  ;;  %v314_v22 = vld [vmem:[#allocation2 + $0x18f] sm:$0x1]  ;;  %296 = vst.msk [vmem:[#allocation2 + $0x180] sm:$0x1] %vm279_vm3, %v277_v21  ;;  %v14234_v32 = vld [vmem:[#allocation2 + $0xc0] sm:$0xff]  ;;  %v14246_v34 = vld [vmem:[#allocation2 + $0xd0] sm:$0xff] }
  0x3f   : > { %12544 = vmatprep.mubr.msk.f32.mxu1 %vm223_vm2, %v14162_v15  ;;  %332 = vst.msk [vmem:[#allocation2 + $0x191] sm:$0x1] %vm279_vm3, %v314_v22  ;;  %v14254_v35 = vld [vmem:[#allocation2 + $0xd8] sm:$0xff]  ;;  %v14258_v36 = vld [vmem:[#allocation2 + $0xe0] sm:$0xff]  ;;  %v14267_v38 = vld [vmem:[#allocation2 + $0xe8] sm:$0xff]  ;;  %v1817_v14 = vrot.slane %v14053_v43, 1 }
  0x40   : > { %12471 = vmatmul.mubr.msk.f32.gmra.mxu0 %vm223_vm2, %v14150_v11  ;;  %v278_v37 = vld [vmem:[#allocation2 + $0x19a] sm:$0x1]  ;;  %v14271_v39 = vld [vmem:[#allocation2 + $0xf0] sm:$0xff]  ;;  %v315_v40 = vld [vmem:[#allocation2 + $0x1a7] sm:$0x1]  ;;  %v1818_v16 = vrot.slane %v14059_v47, 1 }
  0x41   : > { %12473 = vmatprep.mubr.msk.f32.mxu0 %vm223_vm2, %v14154_v12  ;;  %297 = vst.msk [vmem:[#allocation2 + $0x198] sm:$0x1] %vm279_vm3, %v278_v37  ;;  %v14280_v41 = vld [vmem:[%s19142_s1 + $0x1c] sm:$0xf]  ;;  %333 = vst.msk [vmem:[#allocation2 + $0x1a9] sm:$0x1] %vm279_vm3, %v315_v40  ;;  %v1925_v43 = vsel %vm1872_vm4, %v1816_v13, %v1817_v14 }
  0x42   : > { %12545 = vmatmul.mubr.msk.f32.gmra.mxu1 %vm223_vm2, %v14168_v18  ;;  %12823 = vmatprep.subr.msk.mxu1 %vm533_vm0, %v14280_v41  ;;  %v14287_v42 = vld [vmem:[#allocation2 + $0xf8] sm:$0xff]  ;;  %v14291_v44 = vld [vmem:[#allocation2 + $0x100] sm:$0xff]  ;;  %v14299_v45 = vld [vmem:[#allocation2 + $0x108] sm:$0xff]  ;;  %v1819_v19 = vrot.slane %v14065_v49, 1  ;;  %v1924_v47 = vsel %vm1872_vm4, %v1817_v14, %v1818_v16  ;;  %v1820_v20 = vrot.slane %v14067_v50, 1  ;;  %v1821_v22 = vrot.slane %v14084_v54, 1 }
  0x43   : > { %12547 = vmatprep.mubr.msk.f32.mxu1 %vm223_vm2, %v14182_v23  ;;  %v14303_v48 = vld [vmem:[#allocation2 + $0x110] sm:$0xff]  ;;  %v14311_v52 = vld [vmem:[#allocation2 + $0x118] sm:$0xff]  ;;  %v14315_v53 = vld [vmem:[#allocation2 + $0x120] sm:$0xff]  ;;  %v1822_v37 = vrot.slane %v14091_v55, 1  ;;  %v1823_v54 = vrot.slane %v14103_v58, 1  ;;  %v1824_v40 = vrot.slane %v14107_v61, 1 }
  0x44   : > { %12474 = vmatmul.mubr.msk.f32.gmra.mxu0 %vm223_vm2, %v14162_v15  ;;  %v14323_v56 = vld [vmem:[#allocation2 + $0x128] sm:$0xff]  ;;  %v14327_v57 = vld [vmem:[#allocation2 + $0x130] sm:$0xff]  ;;  %v14335_v59 = vld [vmem:[#allocation2 + $0x138] sm:$0xff]  ;;  %v1923_v49 = vsel %vm1872_vm4, %v1818_v16, %v1819_v19  ;;  %v14444_v50 = vsel %vm1872_vm4, %v1819_v19, %v1820_v20  ;;  %v1827_v14 = vrot.slane %v14150_v11, 1  ;;  %v1828_v16 = vrot.slane %v14154_v12, 1 }
  0x45   : > { %12476 = vmatprep.mubr.msk.f32.mxu0 %vm223_vm2, %v14168_v18  ;;  %v14339_v60 = vld [vmem:[#allocation2 + $0x140] sm:$0xff]  ;;  %v14347_v62 = vld [vmem:[#allocation2 + $0x148] sm:$0xff]  ;;  %v14351_v63 = vld [vmem:[#allocation2 + $0x150] sm:$0xff]  ;;  %v1830_v19 = vrot.slane %v14168_v18, 1 }
  0x46   : > { %12548 = vmatmul.mubr.msk.f32.gmra.mxu1 %vm223_vm2, %v14186_v24  ;;  %v14359_v0 = vld [vmem:[#allocation2 + $0x158] sm:$0xff]  ;;  %v14363_v2 = vld [vmem:[#allocation2 + $0x160] sm:$0xff]  ;;  %v14371_v4 = vld [vmem:[#allocation2 + $0x168] sm:$0xff] }
  0x47   : > { %12550 = vmatprep.mubr.msk.f32.mxu1 %vm223_vm2, %v14194_v25  ;;  %v14375_v5 = vld [vmem:[#allocation2 + $0x170] sm:$0xff]  ;;  %v14385_v8 = vld [vmem:[#allocation2 + $0x178] sm:$0xff]  ;;  %v14391_v9 = vld [vmem:[#allocation2 + $0x180] sm:$0xff] }
  0x48   : > { %12477 = vmatmul.mubr.msk.f32.gmra.mxu0 %vm223_vm2, %v14182_v23  ;;  %v14395_v10 = vld [vmem:[#allocation2 + $0x188] sm:$0xff]  ;;  %v14407_v17 = vld [vmem:[#allocation2 + $0x190] sm:$0xff] }
  0x49   : > { %12479 = vmatprep.mubr.msk.f32.mxu0 %vm223_vm2, %v14186_v24  ;;  %v14427_v21 = vld [vmem:[%s19142_s1 + $0x8] sm:$0xf] }
  0x4a   : > { %12551 = vmatmul.mubr.msk.f32.gmra.mxu1 %vm223_vm2, %v14198_v26 }
  0x4b   : > { %12553 = vmatprep.mubr.msk.f32.mxu1 %vm223_vm2, %v14206_v27 }
  0x4c   : > { %12480 = vmatmul.mubr.msk.f32.gmra.mxu0 %vm223_vm2, %v14194_v25 }
  0x4d   : > { %12482 = vmatprep.mubr.msk.f32.mxu0 %vm223_vm2, %v14198_v26 }
  0x4e   : > { %12554 = vmatmul.mubr.msk.f32.gmra.mxu1 %vm223_vm2, %v14210_v28 }
  0x4f   : > { %12556 = vmatprep.mubr.msk.f32.mxu1 %vm223_vm2, %v14218_v29 }
  0x50   : > { %12483 = vmatmul.mubr.msk.f32.gmra.mxu0 %vm223_vm2, %v14206_v27 }
  0x51   : > { %12485 = vmatprep.mubr.msk.f32.mxu0 %vm223_vm2, %v14210_v28 }
  0x52   : > { %12557 = vmatmul.mubr.msk.f32.gmra.mxu1 %vm223_vm2, %v14222_v30 }
  0x53   : > { %12559 = vmatprep.mubr.msk.f32.mxu1 %vm223_vm2, %v14230_v31 }
  0x54   : > { %12486 = vmatmul.mubr.msk.f32.gmra.mxu0 %vm223_vm2, %v14218_v29 }
  0x55   : > { %12488 = vmatprep.mubr.msk.f32.mxu0 %vm223_vm2, %v14222_v30 }
  0x56   : > { %12560 = vmatmul.mubr.msk.f32.gmra.mxu1 %vm223_vm2, %v14234_v32 }
  0x57   : > { %12562 = vmatprep.mubr.msk.f32.mxu1 %vm223_vm2, %v14242_v33 }
  0x58   : > { %12489 = vmatmul.mubr.msk.f32.gmra.mxu0 %vm223_vm2, %v14230_v31 }
  0x59   : > { %12491 = vmatprep.mubr.msk.f32.mxu0 %vm223_vm2, %v14234_v32 }
  0x5a   : > { %12563 = vmatmul.mubr.msk.f32.gmra.mxu1 %vm223_vm2, %v14246_v34 }
  0x5b   : > { %12565 = vmatprep.mubr.msk.f32.mxu1 %vm223_vm2, %v14254_v35 }
  0x5c   : > { %12492 = vmatmul.mubr.msk.f32.gmra.mxu0 %vm223_vm2, %v14242_v33 }
  0x5d   : > { %12494 = vmatprep.mubr.msk.f32.mxu0 %vm223_vm2, %v14246_v34 }
  0x5e   : > { %12566 = vmatmul.mubr.msk.f32.gmra.mxu1 %vm223_vm2, %v14258_v36 }
  0x5f   : > { %12568 = vmatprep.mubr.msk.f32.mxu1 %vm223_vm2, %v14267_v38 }
  0x60   : > { %12495 = vmatmul.mubr.msk.f32.gmra.mxu0 %vm223_vm2, %v14254_v35 }
  0x61   : > { %12497 = vmatprep.mubr.msk.f32.mxu0 %vm223_vm2, %v14258_v36 }
  0x62   : > { %12569 = vmatmul.mubr.msk.f32.gmra.mxu1 %vm223_vm2, %v14271_v39 }
  0x63   : > { %12571 = vmatprep.mubr.msk.f32.mxu1 %vm223_vm2, %v14287_v42 }
  0x64   : > { %12498 = vmatmul.mubr.msk.f32.gmra.mxu0 %vm223_vm2, %v14267_v38 }
  0x65   : > { %12500 = vmatprep.mubr.msk.f32.mxu0 %vm223_vm2, %v14271_v39 }
  0x66   : > { %12572 = vmatmul.mubr.msk.f32.gmra.mxu1 %vm223_vm2, %v14291_v44 }
  0x67   : > { %12574 = vmatprep.mubr.msk.f32.mxu1 %vm223_vm2, %v14299_v45 }
  0x68   : > { %12501 = vmatmul.mubr.msk.f32.gmra.mxu0 %vm223_vm2, %v14287_v42 }
  0x69   : > { %12503 = vmatprep.mubr.msk.f32.mxu0 %vm223_vm2, %v14291_v44 }
  0x6a   : > { %12575 = vmatmul.mubr.msk.f32.gmra.mxu1 %vm223_vm2, %v14303_v48 }
  0x6b   : > { %12577 = vmatprep.mubr.msk.f32.mxu1 %vm223_vm2, %v14311_v52 }
  0x6c   : > { %12504 = vmatmul.mubr.msk.f32.gmra.mxu0 %vm223_vm2, %v14299_v45 }
  0x6d   : > { %12506 = vmatprep.mubr.msk.f32.mxu0 %vm223_vm2, %v14303_v48 }
  0x6e   : > { %12578 = vmatmul.mubr.msk.f32.gmra.mxu1 %vm223_vm2, %v14315_v53 }
  0x6f   : > { %12580 = vmatprep.mubr.msk.f32.mxu1 %vm223_vm2, %v14323_v56 }
  0x70   : > { %12507 = vmatmul.mubr.msk.f32.gmra.mxu0 %vm223_vm2, %v14311_v52 }
  0x71   : > { %12509 = vmatprep.mubr.msk.f32.mxu0 %vm223_vm2, %v14315_v53 }
  0x72   : > { %12581 = vmatmul.mubr.msk.f32.gmra.mxu1 %vm223_vm2, %v14327_v57 }
  0x73   : > { %12583 = vmatprep.mubr.msk.f32.mxu1 %vm223_vm2, %v14335_v59 }
  0x74   : > { %12510 = vmatmul.mubr.msk.f32.gmra.mxu0 %vm223_vm2, %v14323_v56 }
  0x75   : > { %12512 = vmatprep.mubr.msk.f32.mxu0 %vm223_vm2, %v14327_v57 }
  0x76   : > { %12584 = vmatmul.mubr.msk.f32.gmra.mxu1 %vm223_vm2, %v14339_v60 }
  0x77   : > { %12586 = vmatprep.mubr.msk.f32.mxu1 %vm223_vm2, %v14347_v62 }
  0x78   : > { %12513 = vmatmul.mubr.msk.f32.gmra.mxu0 %vm223_vm2, %v14335_v59 }
  0x79   : > { %12515 = vmatprep.mubr.msk.f32.mxu0 %vm223_vm2, %v14339_v60 }
  0x7a   : > { %12587 = vmatmul.mubr.msk.f32.gmra.mxu1 %vm223_vm2, %v14351_v63 }
  0x7b   : > { %12589 = vmatprep.mubr.msk.f32.mxu1 %vm223_vm2, %v14359_v0 }
  0x7c   : > { %12516 = vmatmul.mubr.msk.f32.gmra.mxu0 %vm223_vm2, %v14347_v62 }
  0x7d   : > { %12518 = vmatprep.mubr.msk.f32.mxu0 %vm223_vm2, %v14351_v63 }
  0x7e   : > { %12590 = vmatmul.mubr.msk.f32.gmra.mxu1 %vm223_vm2, %v14363_v2 }
  0x7f   : > { %12592 = vmatprep.mubr.msk.f32.mxu1 %vm223_vm2, %v14371_v4 }
  0x80   : > { %12519 = vmatmul.mubr.msk.f32.gmra.mxu0 %vm223_vm2, %v14359_v0 }
  0x81   : > { %12521 = vmatprep.mubr.msk.f32.mxu0 %vm223_vm2, %v14363_v2 }
  0x82   : > { %12593 = vmatmul.mubr.msk.f32.gmra.mxu1 %vm223_vm2, %v14375_v5 }
  0x83   : > { %12595 = vmatprep.mubr.msk.f32.mxu1 %vm223_vm2, %v14385_v8 }
  0x84   : > { %12522 = vmatmul.mubr.msk.f32.gmra.mxu0 %vm223_vm2, %v14371_v4 }
  0x85   : > { %12524 = vmatprep.mubr.msk.f32.mxu0 %vm223_vm2, %v14375_v5 }
  0x86   : > { %12596 = vmatmul.mubr.msk.f32.gmra.mxu1 %vm223_vm2, %v14391_v9 }
  0x87   : > { %12598 = vmatprep.mubr.msk.f32.mxu1 %vm223_vm2, %v14395_v10 }
  0x88   : > { %12525 = vmatmul.mubr.msk.f32.gmra.mxu0 %vm223_vm2, %v14385_v8 }
  0x89   : > { %12603 = vmatprep.mubr.msk.f32.mxu0 %vm223_vm2, %v14091_v55  ;;  %v14464_v55 = vsel %vm1872_vm4, %v1821_v22, %v1822_v37 }
  0x8a   : > { %12599 = vmatmul.mubr.msk.f32.gmra.mxu1 %vm223_vm2, %v14407_v17 }
  0x8b   : > { %12677 = vmatprep.mubr.msk.f32.mxu1 %vm223_vm2, %v1925_v43  ;;  %v1829_v43 = vrot.slane %v14162_v15, 1 }
  0x8c   : > { %12604 = vmatmul.mubr.msk.f32.vlgmr.msra.gmra.mxu0 %vm223_vm2, %v14103_v58  ;;  %v14471_v58 = vsel %vm1872_vm4, %v1822_v37, %v1823_v54  ;;  %v1835_v37 = vrot.slane %v14206_v27, 1 }
  0x8d   : > { %12750 = vmatpush3.msk.msra.mxu0 %vm533_vm0, %v14073_v51  ;;  %12606 = vmatprep.mubr.msk.f32.mxu0 %vm223_vm2, %v14107_v61  ;;  %v14453_v51 = vsel %vm1872_vm4, %v1820_v20, %v1821_v22  ;;  %v14482_v61 = vsel %vm1872_vm4, %v1823_v54, %v1824_v40  ;;  %v1832_v20 = vrot.slane %v14186_v24, 1  ;;  %v1834_v22 = vrot.slane %v14198_v26, 1 }
  0x8e   : > { %12678 = vmatmul.mubr.msk.f32.vlgmr.msra.gmra.mxu1 %vm223_vm2, %v1924_v47  ;;  %12897 = vmatprep.subr.msk.mxu0 %vm533_vm0, %v14427_v21  ;;  %v1831_v47 = vrot.slane %v14182_v23, 1  ;;  %v1836_v54 = vrot.slane %v14210_v28, 1 }
  0x8f   : > { %12680 = vmatprep.mubr.msk.f32.mxu1 %vm223_vm2, %v1923_v49  ;;  %12824 = vmatpush3.msk.msra.mxu1 %vm533_vm0, %v14280_v41  ;;  %v1825_v41 = vrot.slane %v14119_v1, 1  ;;  %v1833_v49 = vrot.slane %v14194_v25, 1 }
  0x90   : > { %12607 = vmatmul.mubr.msk.f32.gmra.mxu0 %vm223_vm2, %v14119_v1 }
  0x91   : > { %12609 = vmatprep.mubr.msk.f32.mxu0 %vm223_vm2, %v14131_v7  ;;  %v14489_v1 = vsel %vm1872_vm4, %v1824_v40, %v1825_v41  ;;  %v14500_v7 = vsel %vm1872_vm4, %v1825_v41, %v1826_v3  ;;  %v1837_v40 = vrot.slane %v14218_v29, 1  ;;  %v1838_v41 = vrot.slane %v14222_v30, 1 }
  0x92   : > { %12681 = vmatmul.mubr.msk.f32.gmra.mxu1 %vm223_vm2, %v14444_v50 }
  0x93   : > { %12683 = vmatprep.mubr.msk.f32.mxu1 %vm223_vm2, %v14453_v51 }
  0x94   : > { %12610 = vmatmul.mubr.msk.f32.gmra.mxu0 %vm223_vm2, %v14150_v11  ;;  %v14507_v11 = vsel %vm1872_vm4, %v1826_v3, %v1827_v14  ;;  %v1839_v3 = vrot.slane %v14230_v31, 1 }
  0x95   : > { %12612 = vmatprep.mubr.msk.f32.mxu0 %vm223_vm2, %v14154_v12  ;;  %v14518_v12 = vsel %vm1872_vm4, %v1827_v14, %v1828_v16  ;;  %v1840_v14 = vrot.slane %v14234_v32, 1 }
  0x96   : > { %12684 = vmatmul.mubr.msk.f32.gmra.mxu1 %vm223_vm2, %v14464_v55 }
  0x97   : > { %12686 = vmatprep.mubr.msk.f32.mxu1 %vm223_vm2, %v14471_v58 }
  0x98   : > { %12613 = vmatmul.mubr.msk.f32.gmra.mxu0 %vm223_vm2, %v14162_v15  ;;  %v14525_v15 = vsel %vm1872_vm4, %v1828_v16, %v1829_v43  ;;  %v1841_v16 = vrot.slane %v14242_v33, 1 }
  0x99   : > { %12615 = vmatprep.mubr.msk.f32.mxu0 %vm223_vm2, %v14168_v18  ;;  %v14536_v18 = vsel %vm1872_vm4, %v1829_v43, %v1830_v19  ;;  %v1842_v43 = vrot.slane %v14246_v34, 1 }
  0x9a   : > { %12687 = vmatmul.mubr.msk.f32.gmra.mxu1 %vm223_vm2, %v14482_v61 }
  0x9b   : > { %12689 = vmatprep.mubr.msk.f32.mxu1 %vm223_vm2, %v14489_v1 }
  0x9c   : > { %12616 = vmatmul.mubr.msk.f32.gmra.mxu0 %vm223_vm2, %v14182_v23  ;;  %v14543_v23 = vsel %vm1872_vm4, %v1830_v19, %v1831_v47  ;;  %v1843_v19 = vrot.slane %v14254_v35, 1 }
  0x9d   : > { %12618 = vmatprep.mubr.msk.f32.mxu0 %vm223_vm2, %v14186_v24  ;;  %v14554_v24 = vsel %vm1872_vm4, %v1831_v47, %v1832_v20  ;;  %v1844_v47 = vrot.slane %v14258_v36, 1 }
  0x9e   : > { %12690 = vmatmul.mubr.msk.f32.gmra.mxu1 %vm223_vm2, %v14500_v7 }
  0x9f   : > { %12692 = vmatprep.mubr.msk.f32.mxu1 %vm223_vm2, %v14507_v11 }
  0xa0   : > { %12619 = vmatmul.mubr.msk.f32.gmra.mxu0 %vm223_vm2, %v14194_v25  ;;  %v14561_v25 = vsel %vm1872_vm4, %v1832_v20, %v1833_v49  ;;  %v1845_v20 = vrot.slane %v14267_v38, 1 }
  0xa1   : > { %12621 = vmatprep.mubr.msk.f32.mxu0 %vm223_vm2, %v14198_v26  ;;  %v14572_v26 = vsel %vm1872_vm4, %v1833_v49, %v1834_v22  ;;  %v1846_v49 = vrot.slane %v14271_v39, 1 }
  0xa2   : > { %12693 = vmatmul.mubr.msk.f32.gmra.mxu1 %vm223_vm2, %v14518_v12 }
  0xa3   : > { %12695 = vmatprep.mubr.msk.f32.mxu1 %vm223_vm2, %v14525_v15 }
  0xa4   : > { %12622 = vmatmul.mubr.msk.f32.gmra.mxu0 %vm223_vm2, %v14206_v27  ;;  %v14579_v27 = vsel %vm1872_vm4, %v1834_v22, %v1835_v37  ;;  %v1847_v22 = vrot.slane %v14287_v42, 1 }
  0xa5   : > { %12624 = vmatprep.mubr.msk.f32.mxu0 %vm223_vm2, %v14210_v28  ;;  %v14590_v28 = vsel %vm1872_vm4, %v1835_v37, %v1836_v54  ;;  %v1848_v37 = vrot.slane %v14291_v44, 1 }
  0xa6   : > { %12696 = vmatmul.mubr.msk.f32.gmra.mxu1 %vm223_vm2, %v14536_v18 }
  0xa7   : > { %12698 = vmatprep.mubr.msk.f32.mxu1 %vm223_vm2, %v14543_v23 }
  0xa8   : > { %12625 = vmatmul.mubr.msk.f32.gmra.mxu0 %vm223_vm2, %v14218_v29  ;;  %v14597_v29 = vsel %vm1872_vm4, %v1836_v54, %v1837_v40  ;;  %v14686_v54 = vld [vmem:[%s19142_s1 + $0x14] sm:$0xf] }
  0xa9   : > { %12627 = vmatprep.mubr.msk.f32.mxu0 %vm223_vm2, %v14222_v30  ;;  %v14608_v30 = vsel %vm1872_vm4, %v1837_v40, %v1838_v41  ;;  %v1849_v40 = vrot.slane %v14299_v45, 1  ;;  %12971 = vmatprep.subr.msk.mxu1 %vm533_vm0, %v14686_v54 }
  0xaa   : > { %12699 = vmatmul.mubr.msk.f32.gmra.mxu1 %vm223_vm2, %v14554_v24 }
  0xab   : > { %12701 = vmatprep.mubr.msk.f32.mxu1 %vm223_vm2, %v14561_v25 }
  0xac   : > { %12628 = vmatmul.mubr.msk.f32.gmra.mxu0 %vm223_vm2, %v14230_v31  ;;  %v14615_v31 = vsel %vm1872_vm4, %v1838_v41, %v1839_v3  ;;  %v1850_v41 = vrot.slane %v14303_v48, 1 }
  0xad   : > { %12630 = vmatprep.mubr.msk.f32.mxu0 %vm223_vm2, %v14234_v32  ;;  %v14626_v32 = vsel %vm1872_vm4, %v1839_v3, %v1840_v14  ;;  %v1851_v3 = vrot.slane %v14311_v52, 1 }
  0xae   : > { %12702 = vmatmul.mubr.msk.f32.gmra.mxu1 %vm223_vm2, %v14572_v26 }
  0xaf   : > { %12704 = vmatprep.mubr.msk.f32.mxu1 %vm223_vm2, %v14579_v27 }
  0xb0   : > { %12631 = vmatmul.mubr.msk.f32.gmra.mxu0 %vm223_vm2, %v14242_v33  ;;  %v14633_v33 = vsel %vm1872_vm4, %v1840_v14, %v1841_v16  ;;  %v1852_v14 = vrot.slane %v14315_v53, 1 }
  0xb1   : > { %12633 = vmatprep.mubr.msk.f32.mxu0 %vm223_vm2, %v14246_v34  ;;  %v14644_v34 = vsel %vm1872_vm4, %v1841_v16, %v1842_v43  ;;  %v1853_v16 = vrot.slane %v14323_v56, 1 }
  0xb2   : > { %12705 = vmatmul.mubr.msk.f32.gmra.mxu1 %vm223_vm2, %v14590_v28 }
  0xb3   : > { %12707 = vmatprep.mubr.msk.f32.mxu1 %vm223_vm2, %v14597_v29 }
  0xb4   : > { %12634 = vmatmul.mubr.msk.f32.gmra.mxu0 %vm223_vm2, %v14254_v35  ;;  %v14651_v35 = vsel %vm1872_vm4, %v1842_v43, %v1843_v19  ;;  %v1854_v43 = vrot.slane %v14327_v57, 1 }
  0xb5   : > { %12636 = vmatprep.mubr.msk.f32.mxu0 %vm223_vm2, %v14258_v36  ;;  %v14662_v36 = vsel %vm1872_vm4, %v1843_v19, %v1844_v47  ;;  %v1855_v19 = vrot.slane %v14335_v59, 1 }
  0xb6   : > { %12708 = vmatmul.mubr.msk.f32.gmra.mxu1 %vm223_vm2, %v14608_v30 }
  0xb7   : > { %12710 = vmatprep.mubr.msk.f32.mxu1 %vm223_vm2, %v14615_v31 }
  0xb8   : > { %12637 = vmatmul.mubr.msk.f32.gmra.mxu0 %vm223_vm2, %v14267_v38  ;;  %v14669_v38 = vsel %vm1872_vm4, %v1844_v47, %v1845_v20  ;;  %v1856_v47 = vrot.slane %v14339_v60, 1 }
  0xb9   : > { %12639 = vmatprep.mubr.msk.f32.mxu0 %vm223_vm2, %v14271_v39  ;;  %v14680_v39 = vsel %vm1872_vm4, %v1845_v20, %v1846_v49  ;;  %v1857_v20 = vrot.slane %v14347_v62, 1 }
  0xba   : > { %12711 = vmatmul.mubr.msk.f32.gmra.mxu1 %vm223_vm2, %v14626_v32 }
  0xbb   : > { %12713 = vmatprep.mubr.msk.f32.mxu1 %vm223_vm2, %v14633_v33 }
  0xbc   : > { %12640 = vmatmul.mubr.msk.f32.gmra.mxu0 %vm223_vm2, %v14287_v42  ;;  %v14692_v42 = vsel %vm1872_vm4, %v1846_v49, %v1847_v22  ;;  %v1858_v49 = vrot.slane %v14351_v63, 1 }
  0xbd   : > { %12642 = vmatprep.mubr.msk.f32.mxu0 %vm223_vm2, %v14291_v44  ;;  %v14705_v44 = vsel %vm1872_vm4, %v1847_v22, %v1848_v37  ;;  %v1859_v22 = vrot.slane %v14359_v0, 1 }
  0xbe   : > { %12714 = vmatmul.mubr.msk.f32.gmra.mxu1 %vm223_vm2, %v14644_v34 }
  0xbf   : > { %12716 = vmatprep.mubr.msk.f32.mxu1 %vm223_vm2, %v14651_v35 }
  0xc0   : > { %12643 = vmatmul.mubr.msk.f32.gmra.mxu0 %vm223_vm2, %v14299_v45  ;;  %v14712_v45 = vsel %vm1872_vm4, %v1848_v37, %v1849_v40  ;;  %v1860_v37 = vrot.slane %v14363_v2, 1 }
  0xc1   : > { %12645 = vmatprep.mubr.msk.f32.mxu0 %vm223_vm2, %v14303_v48  ;;  %v14723_v48 = vsel %vm1872_vm4, %v1849_v40, %v1850_v41  ;;  %v1861_v40 = vrot.slane %v14371_v4, 1 }
  0xc2   : > { %12717 = vmatmul.mubr.msk.f32.gmra.mxu1 %vm223_vm2, %v14662_v36 }
  0xc3   : > { %12719 = vmatprep.mubr.msk.f32.mxu1 %vm223_vm2, %v14669_v38 }
  0xc4   : > { %12646 = vmatmul.mubr.msk.f32.gmra.mxu0 %vm223_vm2, %v14311_v52  ;;  %v14730_v52 = vsel %vm1872_vm4, %v1850_v41, %v1851_v3  ;;  %v1862_v41 = vrot.slane %v14375_v5, 1 }
  0xc5   : > { %12648 = vmatprep.mubr.msk.f32.mxu0 %vm223_vm2, %v14315_v53  ;;  %v14741_v53 = vsel %vm1872_vm4, %v1851_v3, %v1852_v14  ;;  %v1863_v3 = vrot.slane %v14385_v8, 1 }
  0xc6   : > { %12720 = vmatmul.mubr.msk.f32.gmra.mxu1 %vm223_vm2, %v14680_v39 }
  0xc7   : > { %12722 = vmatprep.mubr.msk.f32.mxu1 %vm223_vm2, %v14692_v42 }
  0xc8   : > { %12649 = vmatmul.mubr.msk.f32.gmra.mxu0 %vm223_vm2, %v14323_v56  ;;  %v14748_v56 = vsel %vm1872_vm4, %v1852_v14, %v1853_v16  ;;  %v14825_v14 = vld [vmem:[#allocation2 + $0x198] sm:$0xff] }
  0xc9   : > { %12651 = vmatprep.mubr.msk.f32.mxu0 %vm223_vm2, %v14327_v57  ;;  %v14759_v57 = vsel %vm1872_vm4, %v1853_v16, %v1854_v43  ;;  %v14827_v16 = vld [vmem:[#allocation2 + $0x1a0] sm:$0xff] }
  0xca   : > { %12723 = vmatmul.mubr.msk.f32.gmra.mxu1 %vm223_vm2, %v14705_v44 }
  0xcb   : > { %12725 = vmatprep.mubr.msk.f32.mxu1 %vm223_vm2, %v14712_v45 }
  0xcc   : > { %12652 = vmatmul.mubr.msk.f32.gmra.mxu0 %vm223_vm2, %v14335_v59  ;;  %v14766_v59 = vsel %vm1872_vm4, %v1854_v43, %v1855_v19 }
  0xcd   : > { %12654 = vmatprep.mubr.msk.f32.mxu0 %vm223_vm2, %v14339_v60  ;;  %v14777_v60 = vsel %vm1872_vm4, %v1855_v19, %v1856_v47  ;;  %v14869_v19 = vld [vmem:[%s19142_s1 + $0x20] sm:$0xf] }
  0xce   : > { %12726 = vmatmul.mubr.msk.f32.gmra.mxu1 %vm223_vm2, %v14723_v48 }
  0xcf   : > { %12728 = vmatprep.mubr.msk.f32.mxu1 %vm223_vm2, %v14730_v52 }
  0xd0   : > { %12655 = vmatmul.mubr.msk.f32.gmra.mxu0 %vm223_vm2, %v14347_v62  ;;  %v14784_v62 = vsel %vm1872_vm4, %v1856_v47, %v1857_v20 }
  0xd1   : > { %12657 = vmatprep.mubr.msk.f32.mxu0 %vm223_vm2, %v14351_v63  ;;  %v14795_v63 = vsel %vm1872_vm4, %v1857_v20, %v1858_v49 }
  0xd2   : > { %12729 = vmatmul.mubr.msk.f32.gmra.mxu1 %vm223_vm2, %v14741_v53 }
  0xd3   : > { %12731 = vmatprep.mubr.msk.f32.mxu1 %vm223_vm2, %v14748_v56 }
  0xd4   : > { %12658 = vmatmul.mubr.msk.f32.gmra.mxu0 %vm223_vm2, %v14359_v0  ;;  %v14802_v0 = vsel %vm1872_vm4, %v1858_v49, %v1859_v22 }
  0xd5   : > { %12660 = vmatprep.mubr.msk.f32.mxu0 %vm223_vm2, %v14363_v2  ;;  %v14813_v2 = vsel %vm1872_vm4, %v1859_v22, %v1860_v37 }
  0xd6   : > { %12732 = vmatmul.mubr.msk.f32.gmra.mxu1 %vm223_vm2, %v14759_v57 }
  0xd7   : > { %12734 = vmatprep.mubr.msk.f32.mxu1 %vm223_vm2, %v14766_v59 }
  0xd8   : > { %12661 = vmatmul.mubr.msk.f32.gmra.mxu0 %vm223_vm2, %v14371_v4  ;;  %v14820_v4 = vsel %vm1872_vm4, %v1860_v37, %v1861_v40 }
  0xd9   : > { %12663 = vmatprep.mubr.msk.f32.mxu0 %vm223_vm2, %v14375_v5  ;;  %v14835_v5 = vsel %vm1872_vm4, %v1861_v40, %v1862_v41 }
  0xda   : > { %12735 = vmatmul.mubr.msk.f32.gmra.mxu1 %vm223_vm2, %v14777_v60 }
  0xdb   : > { %12737 = vmatprep.mubr.msk.f32.mxu1 %vm223_vm2, %v14784_v62 }
  0xdc   : > { %12664 = vmatmul.mubr.msk.f32.gmra.mxu0 %vm223_vm2, %v14385_v8  ;;  %v14842_v8 = vsel %vm1872_vm4, %v1862_v41, %v1863_v3 }
  0xdd   : > { %12666 = vmatprep.mubr.msk.f32.mxu0 %vm223_vm2, %v14391_v9 }
  0xde   : > { %12738 = vmatmul.mubr.msk.f32.gmra.mxu1 %vm223_vm2, %v14795_v63 }
  0xdf   : > { %12740 = vmatprep.mubr.msk.f32.mxu1 %vm223_vm2, %v14802_v0 }
  0xe0   : > { %12667 = vmatmul.mubr.msk.f32.gmra.mxu0 %vm223_vm2, %v14395_v10  ;;  %v1864_v10 = vrot.slane %v14391_v9, 1 }
  0xe1   : > { %12669 = vmatprep.mubr.msk.f32.mxu0 %vm223_vm2, %v14407_v17  ;;  %v14846_v17 = vld [vmem:[#allocation2 + $0x1a8] sm:$0xff] }
  0xe2   : > { %12741 = vmatmul.mubr.msk.f32.gmra.mxu1 %vm223_vm2, %v14813_v2  ;;  %v14856_v43 = vsel %vm1872_vm4, %v1863_v3, %v1864_v10 }
  0xe3   : > { %12743 = vmatprep.mubr.msk.f32.mxu1 %vm223_vm2, %v14820_v4 }
  0xe4   : > { %12670 = vmatmul.mubr.msk.f32.gmra.mxu0 %vm223_vm2, %v14825_v14 }
  0xe5   : > { %12672 = vmatprep.mubr.msk.f32.mxu0 %vm223_vm2, %v14827_v16 }
  0xe6   : > { %12744 = vmatmul.mubr.msk.f32.gmra.mxu1 %vm223_vm2, %v14835_v5 }
  0xe7   : > { %12746 = vmatprep.mubr.msk.f32.mxu1 %vm223_vm2, %v14842_v8 }
  0xe8   : > { %12673 = vmatmul.mubr.msk.f32.gmra.mxu0 %vm223_vm2, %v14846_v17 }
  0xe9   : > { %12751 = vmatprep.mubr.msk.f32.mxu0 %vm223_vm2, %v14444_v50 }
  0xea   : > { %12747 = vmatmul.mubr.msk.f32.gmra.mxu1 %vm223_vm2, %v14856_v43 }
  0xeb   : > { %12825 = vmatprep.mubr.msk.f32.mxu1 %vm223_vm2, %v14471_v58 }
  0xec   : > { %v12457_v47 = vpop.f32.mrf.mxu0  ;;  %12752 = vmatmul.mubr.msk.f32.vlgmr.msra.gmra.mxu0 %vm223_vm2, %v14453_v51 }
  0xed   : > { %843 = vst.msk [vmem:[#allocation3 + $0x8] sm:$0xff] %vm223_vm2, %v12457_v47  ;;  %12898 = vmatpush3.msk.msra.mxu0 %vm533_vm0, %v14427_v21  ;;  %12754 = vmatprep.mubr.msk.f32.mxu0 %vm223_vm2, %v14464_v55 }
  0xee   : > { %v603_v50 = vpop.f32.mrf.mxu0  ;;  %v12531_v20 = vpop.f32.mrf.mxu1  ;;  %12826 = vmatmul.mubr.msk.f32.vlgmr.msra.gmra.mxu1 %vm223_vm2, %v14482_v61  ;;  %13045 = vmatprep.subr.msk.mxu0 %vm533_vm0, %v14869_v19 }
  0xef   : > { %842 = vst.msk [vmem:[#allocation3] sm:$0xff] %vm223_vm2, %v603_v50  ;;  %12828 = vmatprep.mubr.msk.f32.mxu1 %vm223_vm2, %v14489_v1  ;;  %12972 = vmatpush3.msk.msra.mxu1 %vm533_vm0, %v14686_v54 }
  0xf0   : > { %v12460_v21 = vpop.f32.mrf.mxu0  ;;  %12755 = vmatmul.mubr.msk.f32.gmra.mxu0 %vm223_vm2, %v14471_v58  ;;  %v970_v51 = vpop.f32.mrf.mxu1 }
  0xf1   : > { %845 = vst.msk [vmem:[#allocation3 + $0x18] sm:$0xff] %vm223_vm2, %v12460_v21  ;;  %12757 = vmatprep.mubr.msk.f32.mxu0 %vm223_vm2, %v14482_v61 }
  0xf2   : > { %v613_v55 = vpop.f32.mrf.mxu0  ;;  %v12534_v49 = vpop.f32.mrf.mxu1  ;;  %12829 = vmatmul.mubr.msk.f32.gmra.mxu1 %vm223_vm2, %v14500_v7 }
  0xf3   : > { %844 = vst.msk [vmem:[#allocation3 + $0x10] sm:$0xff] %vm223_vm2, %v613_v55  ;;  %12831 = vmatprep.mubr.msk.f32.mxu1 %vm223_vm2, %v14507_v11 }
  0xf4   : > { %v12463_v54 = vpop.f32.mrf.mxu0  ;;  %v1210_v22 = vld [vmem:[#allocation3 + $0x8] sm:$0xff]  ;;  %12758 = vmatmul.mubr.msk.f32.gmra.mxu0 %vm223_vm2, %v14489_v1  ;;  %v980_v58 = vpop.f32.mrf.mxu1 }
  0xf5   : > { %847 = vst.msk [vmem:[#allocation3 + $0x28] sm:$0xff] %vm223_vm2, %v12463_v54  ;;  %v1258_v37 = vadd.f32 %v12531_v20, %v1210_v22  ;;  %12760 = vmatprep.mubr.msk.f32.mxu0 %vm223_vm2, %v14500_v7 }
  0xf6   : > { %v623_v61 = vpop.f32.mrf.mxu0  ;;  %v1209_v40 = vld [vmem:[#allocation3] sm:$0xff]  ;;  %v12537_v41 = vpop.f32.mrf.mxu1  ;;  %12832 = vmatmul.mubr.msk.f32.gmra.mxu1 %vm223_vm2, %v14518_v12 }
  0xf7   : > { %1306 = vst.msk [vmem:[#allocation3 + $0x8] sm:$0xff] %vm223_vm2, %v1258_v37  ;;  %846 = vst.msk [vmem:[#allocation3 + $0x20] sm:$0xff] %vm223_vm2, %v623_v61  ;;  %v1257_v3 = vadd.f32 %v1209_v40, %v970_v51  ;;  %12834 = vmatprep.mubr.msk.f32.mxu1 %vm223_vm2, %v14525_v15 }
  0xf8   : > { %v12466_v1 = vpop.f32.mrf.mxu0  ;;  %v1212_v47 = vld [vmem:[#allocation3 + $0x18] sm:$0xff]  ;;  %12761 = vmatmul.mubr.msk.f32.gmra.mxu0 %vm223_vm2, %v14507_v11  ;;  %v990_v7 = vpop.f32.mrf.mxu1 }
  0xf9   : > { %1305 = vst.msk [vmem:[#allocation3] sm:$0xff] %vm223_vm2, %v1257_v3  ;;  %849 = vst.msk [vmem:[#allocation3 + $0x38] sm:$0xff] %vm223_vm2, %v12466_v1  ;;  %v1260_v50 = vadd.f32 %v12534_v49, %v1212_v47  ;;  %12763 = vmatprep.mubr.msk.f32.mxu0 %vm223_vm2, %v14518_v12 }
  0xfa   : > { %v633_v20 = vpop.f32.mrf.mxu0  ;;  %v1211_v21 = vld [vmem:[#allocation3 + $0x10] sm:$0xff]  ;;  %v12540_v51 = vpop.f32.mrf.mxu1  ;;  %12835 = vmatmul.mubr.msk.f32.gmra.mxu1 %vm223_vm2, %v14536_v18 }
  0xfb   : > { %1308 = vst.msk [vmem:[#allocation3 + $0x18] sm:$0xff] %vm223_vm2, %v1260_v50  ;;  %848 = vst.msk [vmem:[#allocation3 + $0x30] sm:$0xff] %vm223_vm2, %v633_v20  ;;  %v1259_v11 = vadd.f32 %v1211_v21, %v980_v58  ;;  %12837 = vmatprep.mubr.msk.f32.mxu1 %vm223_vm2, %v14543_v23 }
  0xfc   : > { %v12469_v55 = vpop.f32.mrf.mxu0  ;;  %v1214_v54 = vld [vmem:[#allocation3 + $0x28] sm:$0xff]  ;;  %12764 = vmatmul.mubr.msk.f32.gmra.mxu0 %vm223_vm2, %v14525_v15  ;;  %v1000_v12 = vpop.f32.mrf.mxu1 }
  0xfd   : > { %1307 = vst.msk [vmem:[#allocation3 + $0x10] sm:$0xff] %vm223_vm2, %v1259_v11  ;;  %851 = vst.msk [vmem:[#allocation3 + $0x48] sm:$0xff] %vm223_vm2, %v12469_v55  ;;  %v1262_v49 = vadd.f32 %v12537_v41, %v1214_v54  ;;  %12766 = vmatprep.mubr.msk.f32.mxu0 %vm223_vm2, %v14536_v18 }
  0xfe   : > { %v643_v22 = vpop.f32.mrf.mxu0  ;;  %v1213_v37 = vld [vmem:[#allocation3 + $0x20] sm:$0xff]  ;;  %v12543_v58 = vpop.f32.mrf.mxu1  ;;  %12838 = vmatmul.mubr.msk.f32.gmra.mxu1 %vm223_vm2, %v14554_v24 }
  0xff   : > { %1310 = vst.msk [vmem:[#allocation3 + $0x28] sm:$0xff] %vm223_vm2, %v1262_v49  ;;  %850 = vst.msk [vmem:[#allocation3 + $0x40] sm:$0xff] %vm223_vm2, %v643_v22  ;;  %v1261_v15 = vadd.f32 %v1213_v37, %v990_v7  ;;  %12840 = vmatprep.mubr.msk.f32.mxu1 %vm223_vm2, %v14561_v25 }
 0x100   : > { %v12472_v61 = vpop.f32.mrf.mxu0  ;;  %v1216_v40 = vld [vmem:[#allocation3 + $0x38] sm:$0xff]  ;;  %12767 = vmatmul.mubr.msk.f32.gmra.mxu0 %vm223_vm2, %v14543_v23  ;;  %v1010_v18 = vpop.f32.mrf.mxu1 }
 0x101   : > { %1309 = vst.msk [vmem:[#allocation3 + $0x20] sm:$0xff] %vm223_vm2, %v1261_v15  ;;  %853 = vst.msk [vmem:[#allocation3 + $0x58] sm:$0xff] %vm223_vm2, %v12472_v61  ;;  %v1264_v41 = vadd.f32 %v12540_v51, %v1216_v40  ;;  %12769 = vmatprep.mubr.msk.f32.mxu0 %vm223_vm2, %v14554_v24 }
 0x102   : > { %v653_v3 = vpop.f32.mrf.mxu0  ;;  %v1215_v1 = vld [vmem:[#allocation3 + $0x30] sm:$0xff]  ;;  %v12546_v47 = vpop.f32.mrf.mxu1  ;;  %12841 = vmatmul.mubr.msk.f32.gmra.mxu1 %vm223_vm2, %v14572_v26 }
 0x103   : > { %1312 = vst.msk [vmem:[#allocation3 + $0x38] sm:$0xff] %vm223_vm2, %v1264_v41  ;;  %852 = vst.msk [vmem:[#allocation3 + $0x50] sm:$0xff] %vm223_vm2, %v653_v3  ;;  %v1263_v23 = vadd.f32 %v1215_v1, %v1000_v12  ;;  %12843 = vmatprep.mubr.msk.f32.mxu1 %vm223_vm2, %v14579_v27 }
 0x104   : > { %v12475_v7 = vpop.f32.mrf.mxu0  ;;  %v1218_v50 = vld [vmem:[#allocation3 + $0x48] sm:$0xff]  ;;  %12770 = vmatmul.mubr.msk.f32.gmra.mxu0 %vm223_vm2, %v14561_v25  ;;  %v1020_v24 = vpop.f32.mrf.mxu1 }
 0x105   : > { %1311 = vst.msk [vmem:[#allocation3 + $0x30] sm:$0xff] %vm223_vm2, %v1263_v23  ;;  %855 = vst.msk [vmem:[#allocation3 + $0x68] sm:$0xff] %vm223_vm2, %v12475_v7  ;;  %v1266_v20 = vadd.f32 %v12543_v58, %v1218_v50  ;;  %12772 = vmatprep.mubr.msk.f32.mxu0 %vm223_vm2, %v14572_v26 }
 0x106   : > { %v663_v21 = vpop.f32.mrf.mxu0  ;;  %v1217_v51 = vld [vmem:[#allocation3 + $0x40] sm:$0xff]  ;;  %v12549_v11 = vpop.f32.mrf.mxu1  ;;  %12844 = vmatmul.mubr.msk.f32.gmra.mxu1 %vm223_vm2, %v14590_v28 }
 0x107   : > { %1314 = vst.msk [vmem:[#allocation3 + $0x48] sm:$0xff] %vm223_vm2, %v1266_v20  ;;  %854 = vst.msk [vmem:[#allocation3 + $0x60] sm:$0xff] %vm223_vm2, %v663_v21  ;;  %v1265_v25 = vadd.f32 %v1217_v51, %v1010_v18  ;;  %12846 = vmatprep.mubr.msk.f32.mxu1 %vm223_vm2, %v14597_v29 }
 0x108   : > { %v12478_v55 = vpop.f32.mrf.mxu0  ;;  %v1220_v54 = vld [vmem:[#allocation3 + $0x58] sm:$0xff]  ;;  %12773 = vmatmul.mubr.msk.f32.gmra.mxu0 %vm223_vm2, %v14579_v27  ;;  %v1030_v26 = vpop.f32.mrf.mxu1 }
 0x109   : > { %1313 = vst.msk [vmem:[#allocation3 + $0x40] sm:$0xff] %vm223_vm2, %v1265_v25  ;;  %857 = vst.msk [vmem:[#allocation3 + $0x78] sm:$0xff] %vm223_vm2, %v12478_v55  ;;  %v1268_v12 = vadd.f32 %v12546_v47, %v1220_v54  ;;  %12775 = vmatprep.mubr.msk.f32.mxu0 %vm223_vm2, %v14590_v28 }
 0x10a   : > { %v673_v49 = vpop.f32.mrf.mxu0  ;;  %v1219_v22 = vld [vmem:[#allocation3 + $0x50] sm:$0xff]  ;;  %v12552_v37 = vpop.f32.mrf.mxu1  ;;  %12847 = vmatmul.mubr.msk.f32.gmra.mxu1 %vm223_vm2, %v14608_v30 }
 0x10b   : > { %1316 = vst.msk [vmem:[#allocation3 + $0x58] sm:$0xff] %vm223_vm2, %v1268_v12  ;;  %856 = vst.msk [vmem:[#allocation3 + $0x70] sm:$0xff] %vm223_vm2, %v673_v49  ;;  %v1267_v27 = vadd.f32 %v1219_v22, %v1020_v24  ;;  %12849 = vmatprep.mubr.msk.f32.mxu1 %vm223_vm2, %v14615_v31 }
 0x10c   : > { %v12481_v58 = vpop.f32.mrf.mxu0  ;;  %v1222_v15 = vld [vmem:[#allocation3 + $0x68] sm:$0xff]  ;;  %12776 = vmatmul.mubr.msk.f32.gmra.mxu0 %vm223_vm2, %v14597_v29  ;;  %v1040_v28 = vpop.f32.mrf.mxu1 }
 0x10d   : > { %1315 = vst.msk [vmem:[#allocation3 + $0x50] sm:$0xff] %vm223_vm2, %v1267_v27  ;;  %859 = vst.msk [vmem:[#allocation3 + $0x88] sm:$0xff] %vm223_vm2, %v12481_v58  ;;  %v1270_v61 = vadd.f32 %v12549_v11, %v1222_v15  ;;  %12778 = vmatprep.mubr.msk.f32.mxu0 %vm223_vm2, %v14608_v30 }
 0x10e   : > { %v683_v40 = vpop.f32.mrf.mxu0  ;;  %v1221_v18 = vld [vmem:[#allocation3 + $0x60] sm:$0xff]  ;;  %v12555_v41 = vpop.f32.mrf.mxu1  ;;  %12850 = vmatmul.mubr.msk.f32.gmra.mxu1 %vm223_vm2, %v14626_v32 }
 0x10f   : > { %1318 = vst.msk [vmem:[#allocation3 + $0x68] sm:$0xff] %vm223_vm2, %v1270_v61  ;;  %858 = vst.msk [vmem:[#allocation3 + $0x80] sm:$0xff] %vm223_vm2, %v683_v40  ;;  %v1269_v29 = vadd.f32 %v1221_v18, %v1030_v26  ;;  %12852 = vmatprep.mubr.msk.f32.mxu1 %vm223_vm2, %v14633_v33 }
 0x110   : > { %v12484_v3 = vpop.f32.mrf.mxu0  ;;  %v1224_v1 = vld [vmem:[#allocation3 + $0x78] sm:$0xff]  ;;  %12779 = vmatmul.mubr.msk.f32.gmra.mxu0 %vm223_vm2, %v14615_v31  ;;  %v1050_v30 = vpop.f32.mrf.mxu1 }
 0x111   : > { %1317 = vst.msk [vmem:[#allocation3 + $0x60] sm:$0xff] %vm223_vm2, %v1269_v29  ;;  %861 = vst.msk [vmem:[#allocation3 + $0x98] sm:$0xff] %vm223_vm2, %v12484_v3  ;;  %v1272_v47 = vadd.f32 %v12552_v37, %v1224_v1  ;;  %12781 = vmatprep.mubr.msk.f32.mxu0 %vm223_vm2, %v14626_v32 }
 0x112   : > { %v693_v23 = vpop.f32.mrf.mxu0  ;;  %v1223_v7 = vld [vmem:[#allocation3 + $0x70] sm:$0xff]  ;;  %v12558_v50 = vpop.f32.mrf.mxu1  ;;  %12853 = vmatmul.mubr.msk.f32.gmra.mxu1 %vm223_vm2, %v14644_v34 }
 0x113   : > { %1320 = vst.msk [vmem:[#allocation3 + $0x78] sm:$0xff] %vm223_vm2, %v1272_v47  ;;  %860 = vst.msk [vmem:[#allocation3 + $0x90] sm:$0xff] %vm223_vm2, %v693_v23  ;;  %v1271_v31 = vadd.f32 %v1223_v7, %v1040_v28  ;;  %12855 = vmatprep.mubr.msk.f32.mxu1 %vm223_vm2, %v14651_v35 }
 0x114   : > { %v12487_v24 = vpop.f32.mrf.mxu0  ;;  %v1226_v20 = vld [vmem:[#allocation3 + $0x88] sm:$0xff]  ;;  %12782 = vmatmul.mubr.msk.f32.gmra.mxu0 %vm223_vm2, %v14633_v33  ;;  %v1060_v32 = vpop.f32.mrf.mxu1 }
 0x115   : > { %1319 = vst.msk [vmem:[#allocation3 + $0x70] sm:$0xff] %vm223_vm2, %v1271_v31  ;;  %863 = vst.msk [vmem:[#allocation3 + $0xa8] sm:$0xff] %vm223_vm2, %v12487_v24  ;;  %v1274_v21 = vadd.f32 %v12555_v41, %v1226_v20  ;;  %12784 = vmatprep.mubr.msk.f32.mxu0 %vm223_vm2, %v14644_v34 }
 0x116   : > { %v703_v51 = vpop.f32.mrf.mxu0  ;;  %v1225_v11 = vld [vmem:[#allocation3 + $0x80] sm:$0xff]  ;;  %v12561_v25 = vpop.f32.mrf.mxu1  ;;  %12856 = vmatmul.mubr.msk.f32.gmra.mxu1 %vm223_vm2, %v14662_v36 }
 0x117   : > { %1322 = vst.msk [vmem:[#allocation3 + $0x88] sm:$0xff] %vm223_vm2, %v1274_v21  ;;  %862 = vst.msk [vmem:[#allocation3 + $0xa0] sm:$0xff] %vm223_vm2, %v703_v51  ;;  %v1273_v33 = vadd.f32 %v1225_v11, %v1050_v30  ;;  %12858 = vmatprep.mubr.msk.f32.mxu1 %vm223_vm2, %v14669_v38 }
 0x118   : > { %v12490_v55 = vpop.f32.mrf.mxu0  ;;  %v1228_v54 = vld [vmem:[#allocation3 + $0x98] sm:$0xff]  ;;  %12785 = vmatmul.mubr.msk.f32.gmra.mxu0 %vm223_vm2, %v14651_v35  ;;  %v1070_v34 = vpop.f32.mrf.mxu1 }
 0x119   : > { %1321 = vst.msk [vmem:[#allocation3 + $0x80] sm:$0xff] %vm223_vm2, %v1273_v33  ;;  %865 = vst.msk [vmem:[#allocation3 + $0xb8] sm:$0xff] %vm223_vm2, %v12490_v55  ;;  %v1276_v26 = vadd.f32 %v12558_v50, %v1228_v54  ;;  %12787 = vmatprep.mubr.msk.f32.mxu0 %vm223_vm2, %v14662_v36 }
 0x11a   : > { %v713_v12 = vpop.f32.mrf.mxu0  ;;  %v1227_v49 = vld [vmem:[#allocation3 + $0x90] sm:$0xff]  ;;  %v12564_v22 = vpop.f32.mrf.mxu1  ;;  %12859 = vmatmul.mubr.msk.f32.gmra.mxu1 %vm223_vm2, %v14680_v39 }
 0x11b   : > { %1324 = vst.msk [vmem:[#allocation3 + $0x98] sm:$0xff] %vm223_vm2, %v1276_v26  ;;  %864 = vst.msk [vmem:[#allocation3 + $0xb0] sm:$0xff] %vm223_vm2, %v713_v12  ;;  %v1275_v35 = vadd.f32 %v1227_v49, %v1060_v32  ;;  %12861 = vmatprep.mubr.msk.f32.mxu1 %vm223_vm2, %v14692_v42 }
 0x11c   : > { %v12493_v37 = vpop.f32.mrf.mxu0  ;;  %v1230_v27 = vld [vmem:[#allocation3 + $0xa8] sm:$0xff]  ;;  %12788 = vmatmul.mubr.msk.f32.gmra.mxu0 %vm223_vm2, %v14669_v38  ;;  %v1080_v36 = vpop.f32.mrf.mxu1 }
 0x11d   : > { %1323 = vst.msk [vmem:[#allocation3 + $0x90] sm:$0xff] %vm223_vm2, %v1275_v35  ;;  %867 = vst.msk [vmem:[#allocation3 + $0xc8] sm:$0xff] %vm223_vm2, %v12493_v37  ;;  %v1278_v58 = vadd.f32 %v12561_v25, %v1230_v27  ;;  %12790 = vmatprep.mubr.msk.f32.mxu0 %vm223_vm2, %v14680_v39 }
 0x11e   : > { %v723_v15 = vpop.f32.mrf.mxu0  ;;  %v1229_v28 = vld [vmem:[#allocation3 + $0xa0] sm:$0xff]  ;;  %v12567_v61 = vpop.f32.mrf.mxu1  ;;  %12862 = vmatmul.mubr.msk.f32.gmra.mxu1 %vm223_vm2, %v14705_v44 }
 0x11f   : > { %1326 = vst.msk [vmem:[#allocation3 + $0xa8] sm:$0xff] %vm223_vm2, %v1278_v58  ;;  %866 = vst.msk [vmem:[#allocation3 + $0xc0] sm:$0xff] %vm223_vm2, %v723_v15  ;;  %v1277_v38 = vadd.f32 %v1229_v28, %v1070_v34  ;;  %12864 = vmatprep.mubr.msk.f32.mxu1 %vm223_vm2, %v14712_v45 }
 0x120   : > { %v12496_v40 = vpop.f32.mrf.mxu0  ;;  %v1232_v18 = vld [vmem:[#allocation3 + $0xb8] sm:$0xff]  ;;  %12791 = vmatmul.mubr.msk.f32.gmra.mxu0 %vm223_vm2, %v14692_v42  ;;  %v1090_v39 = vpop.f32.mrf.mxu1 }
 0x121   : > { %1325 = vst.msk [vmem:[#allocation3 + $0xa0] sm:$0xff] %vm223_vm2, %v1277_v38  ;;  %869 = vst.msk [vmem:[#allocation3 + $0xd8] sm:$0xff] %vm223_vm2, %v12496_v40  ;;  %v1280_v41 = vadd.f32 %v12564_v22, %v1232_v18  ;;  %12793 = vmatprep.mubr.msk.f32.mxu0 %vm223_vm2, %v14705_v44 }
 0x122   : > { %v733_v29 = vpop.f32.mrf.mxu0  ;;  %v1231_v3 = vld [vmem:[#allocation3 + $0xb0] sm:$0xff]  ;;  %v12570_v1 = vpop.f32.mrf.mxu1  ;;  %12865 = vmatmul.mubr.msk.f32.gmra.mxu1 %vm223_vm2, %v14723_v48 }
 0x123   : > { %1328 = vst.msk [vmem:[#allocation3 + $0xb8] sm:$0xff] %vm223_vm2, %v1280_v41  ;;  %868 = vst.msk [vmem:[#allocation3 + $0xd0] sm:$0xff] %vm223_vm2, %v733_v29  ;;  %v1279_v42 = vadd.f32 %v1231_v3, %v1080_v36  ;;  %12867 = vmatprep.mubr.msk.f32.mxu1 %vm223_vm2, %v14730_v52 }
 0x124   : > { %v12499_v30 = vpop.f32.mrf.mxu0  ;;  %v1234_v47 = vld [vmem:[#allocation3 + $0xc8] sm:$0xff]  ;;  %12794 = vmatmul.mubr.msk.f32.gmra.mxu0 %vm223_vm2, %v14712_v45  ;;  %v1100_v44 = vpop.f32.mrf.mxu1 }
 0x125   : > { %1327 = vst.msk [vmem:[#allocation3 + $0xb0] sm:$0xff] %vm223_vm2, %v1279_v42  ;;  %871 = vst.msk [vmem:[#allocation3 + $0xe8] sm:$0xff] %vm223_vm2, %v12499_v30  ;;  %v1282_v23 = vadd.f32 %v12567_v61, %v1234_v47  ;;  %12796 = vmatprep.mubr.msk.f32.mxu0 %vm223_vm2, %v14723_v48 }
 0x126   : > { %v743_v7 = vpop.f32.mrf.mxu0  ;;  %v1233_v50 = vld [vmem:[#allocation3 + $0xc0] sm:$0xff]  ;;  %v12573_v31 = vpop.f32.mrf.mxu1  ;;  %12868 = vmatmul.mubr.msk.f32.gmra.mxu1 %vm223_vm2, %v14741_v53 }
 0x127   : > { %1330 = vst.msk [vmem:[#allocation3 + $0xc8] sm:$0xff] %vm223_vm2, %v1282_v23  ;;  %870 = vst.msk [vmem:[#allocation3 + $0xe0] sm:$0xff] %vm223_vm2, %v743_v7  ;;  %v1281_v45 = vadd.f32 %v1233_v50, %v1090_v39  ;;  %12870 = vmatprep.mubr.msk.f32.mxu1 %vm223_vm2, %v14748_v56  ;;  %v13799_v23 = vld [vmem:[#allocation2 + $0x190] sm:$0xff] }
 0x128   : > { %v12502_v24 = vpop.f32.mrf.mxu0  ;;  %v1236_v20 = vld [vmem:[#allocation3 + $0xd8] sm:$0xff]  ;;  %12797 = vmatmul.mubr.msk.f32.gmra.mxu0 %vm223_vm2, %v14730_v52  ;;  %v1110_v48 = vpop.f32.mrf.mxu1  ;;  %v1866_v7 = vrot.slane %v13799_v23, 1 }
 0x129   : > { %1329 = vst.msk [vmem:[#allocation3 + $0xc0] sm:$0xff] %vm223_vm2, %v1281_v45  ;;  %873 = vst.msk [vmem:[#allocation3 + $0xf8] sm:$0xff] %vm223_vm2, %v12502_v24  ;;  %v1284_v32 = vadd.f32 %v12570_v1, %v1236_v20  ;;  %12799 = vmatprep.mubr.msk.f32.mxu0 %vm223_vm2, %v14741_v53  ;;  %v13798_v1 = vld [vmem:[#allocation2 + $0x188] sm:$0xff]  ;;  %v1868_v20 = vrot.slane %v14827_v16, 1 }
 0x12a   : > { %v753_v21 = vpop.f32.mrf.mxu0  ;;  %v1235_v51 = vld [vmem:[#allocation3 + $0xd0] sm:$0xff]  ;;  %v12576_v11 = vpop.f32.mrf.mxu1  ;;  %12871 = vmatmul.mubr.msk.f32.gmra.mxu1 %vm223_vm2, %v14759_v57  ;;  %v1865_v42 = vrot.slane %v13798_v1, 1 }
 0x12b   : > { %1332 = vst.msk [vmem:[#allocation3 + $0xd8] sm:$0xff] %vm223_vm2, %v1284_v32  ;;  %872 = vst.msk [vmem:[#allocation3 + $0xf0] sm:$0xff] %vm223_vm2, %v753_v21  ;;  %v1283_v52 = vadd.f32 %v1235_v51, %v1100_v44  ;;  %12873 = vmatprep.mubr.msk.f32.mxu1 %vm223_vm2, %v14766_v59 }
 0x12c   : > { %v12505_v25 = vpop.f32.mrf.mxu0  ;;  %v1238_v33 = vld [vmem:[#allocation3 + $0xe8] sm:$0xff]  ;;  %12800 = vmatmul.mubr.msk.f32.gmra.mxu0 %vm223_vm2, %v14748_v56  ;;  %v1120_v53 = vpop.f32.mrf.mxu1  ;;  %v1877_v24 = vsel %vm1872_vm4, %v1864_v10, %v1865_v42  ;;  %v1869_v10 = vrot.slane %v14846_v17, 1  ;;  %v1876_v21 = vsel %vm1872_vm4, %v1865_v42, %v1866_v7  ;;  %v15141_v17 = vld [vmem:[#allocation2] sm:$0xff] }
 0x12d   : > { %1331 = vst.msk [vmem:[#allocation3 + $0xd0] sm:$0xff] %vm223_vm2, %v1283_v52  ;;  %875 = vst.msk [vmem:[#allocation3 + $0x108] sm:$0xff] %vm223_vm2, %v12505_v25  ;;  %v1286_v55 = vadd.f32 %v12573_v31, %v1238_v33  ;;  %12802 = vmatprep.mubr.msk.f32.mxu0 %vm223_vm2, %v14759_v57  ;;  %v19145_v52 = vrot.slane %v15141_v17, 2  ;;  %v13801_v25 = vld [vmem:[#allocation2 + $0x8] sm:$0xff] }
 0x12e   : > { %v763_v54 = vpop.f32.mrf.mxu0  ;;  %v1237_v34 = vld [vmem:[#allocation3 + $0xe0] sm:$0xff]  ;;  %v12579_v26 = vpop.f32.mrf.mxu1  ;;  %12874 = vmatmul.mubr.msk.f32.gmra.mxu1 %vm223_vm2, %v14777_v60  ;;  %19162 = vst [vmem:[#allocation5_spill] sm:$0xff] %v15141_v17  ;;  %v3452_v33 = vrot.slane %v13801_v25, 2  ;;  %v13809_v25 = vld [vmem:[#allocation2 + $0x48] sm:$0xff] }
 0x12f   : > { %1334 = vst.msk [vmem:[#allocation3 + $0xe8] sm:$0xff] %vm223_vm2, %v1286_v55  ;;  %874 = vst.msk [vmem:[#allocation3 + $0x100] sm:$0xff] %vm223_vm2, %v763_v54  ;;  %v1285_v56 = vadd.f32 %v1237_v34, %v1110_v48  ;;  %12876 = vmatprep.mubr.msk.f32.mxu1 %vm223_vm2, %v14784_v62  ;;  %v13850_v17 = vld [vmem:[#allocation2 + $0x190] sm:$0xff] }
 0x130   : > { %v12508_v12 = vpop.f32.mrf.mxu0  ;;  %v1240_v49 = vld [vmem:[#allocation3 + $0xf8] sm:$0xff]  ;;  %12803 = vmatmul.mubr.msk.f32.gmra.mxu0 %vm223_vm2, %v14766_v59  ;;  %v1130_v57 = vpop.f32.mrf.mxu1 }
 0x131   : > { %1333 = vst.msk [vmem:[#allocation3 + $0xe0] sm:$0xff] %vm223_vm2, %v1285_v56  ;;  %877 = vst.msk [vmem:[#allocation3 + $0x118] sm:$0xff] %vm223_vm2, %v12508_v12  ;;  %v1288_v22 = vadd.f32 %v12576_v11, %v1240_v49  ;;  %12805 = vmatprep.mubr.msk.f32.mxu0 %vm223_vm2, %v14777_v60  ;;  %v13802_v56 = vld [vmem:[#allocation2 + $0x10] sm:$0xff] }
 0x132   : > { %v773_v35 = vpop.f32.mrf.mxu0  ;;  %v1239_v37 = vld [vmem:[#allocation3 + $0xf0] sm:$0xff]  ;;  %v12582_v27 = vpop.f32.mrf.mxu1  ;;  %12877 = vmatmul.mubr.msk.f32.gmra.mxu1 %vm223_vm2, %v14795_v63  ;;  %v3453_v12 = vrot.slane %v13802_v56, 2 }
 0x133   : > { %1336 = vst.msk [vmem:[#allocation3 + $0xf8] sm:$0xff] %vm223_vm2, %v1288_v22  ;;  %876 = vst.msk [vmem:[#allocation3 + $0x110] sm:$0xff] %vm223_vm2, %v773_v35  ;;  %v1287_v59 = vadd.f32 %v1239_v37, %v1120_v53  ;;  %12879 = vmatprep.mubr.msk.f32.mxu1 %vm223_vm2, %v14802_v0  ;;  %v3558_v35 = vsel %vm3505_vm5, %v19145_v52, %v3452_v33 }
 0x134   : > { %v12511_v36 = vpop.f32.mrf.mxu0  ;;  %v1242_v58 = vld [vmem:[#allocation3 + $0x108] sm:$0xff]  ;;  %12806 = vmatmul.mubr.msk.f32.gmra.mxu0 %vm223_vm2, %v14784_v62  ;;  %v1140_v60 = vpop.f32.mrf.mxu1 }
 0x135   : > { %1335 = vst.msk [vmem:[#allocation3 + $0xf0] sm:$0xff] %vm223_vm2, %v1287_v59  ;;  %879 = vst.msk [vmem:[#allocation3 + $0x128] sm:$0xff] %vm223_vm2, %v12511_v36  ;;  %v1290_v15 = vadd.f32 %v12579_v26, %v1242_v58  ;;  %12808 = vmatprep.mubr.msk.f32.mxu0 %vm223_vm2, %v14795_v63  ;;  %v1873_v26 = vsel %vm1872_vm4, %v1868_v20, %v1869_v10  ;;  %v13804_v36 = vld [vmem:[#allocation2 + $0x20] sm:$0xff] }
 0x136   : > { %v783_v28 = vpop.f32.mrf.mxu0  ;;  %v1241_v61 = vld [vmem:[#allocation3 + $0x100] sm:$0xff]  ;;  %v12585_v38 = vpop.f32.mrf.mxu1  ;;  %12880 = vmatmul.mubr.msk.f32.gmra.mxu1 %vm223_vm2, %v14813_v2  ;;  %v3455_v58 = vrot.slane %v13804_v36, 2 }
 0x137   : > { %1338 = vst.msk [vmem:[#allocation3 + $0x108] sm:$0xff] %vm223_vm2, %v1290_v15  ;;  %878 = vst.msk [vmem:[#allocation3 + $0x120] sm:$0xff] %vm223_vm2, %v783_v28  ;;  %v1289_v62 = vadd.f32 %v1241_v61, %v1130_v57  ;;  %12882 = vmatprep.mubr.msk.f32.mxu1 %vm223_vm2, %v14820_v4  ;;  %v1926_v15 = vsel %vm1872_vm4, %v1869_v10, %v1816_v13 }
 0x138   : > { %v12514_v40 = vpop.f32.mrf.mxu0  ;;  %v1244_v18 = vld [vmem:[#allocation3 + $0x118] sm:$0xff]  ;;  %12809 = vmatmul.mubr.msk.f32.gmra.mxu0 %vm223_vm2, %v14802_v0  ;;  %v1150_v63 = vpop.f32.mrf.mxu1 }
 0x139   : > { %1337 = vst.msk [vmem:[#allocation3 + $0x100] sm:$0xff] %vm223_vm2, %v1289_v62  ;;  %881 = vst.msk [vmem:[#allocation3 + $0x138] sm:$0xff] %vm223_vm2, %v12514_v40  ;;  %v1292_v39 = vadd.f32 %v12582_v27, %v1244_v18  ;;  %12811 = vmatprep.mubr.msk.f32.mxu0 %vm223_vm2, %v14813_v2  ;;  %v13803_v27 = vld [vmem:[#allocation2 + $0x18] sm:$0xff]  ;;  %v3557_v40 = vsel %vm3505_vm5, %v3452_v33, %v3453_v12  ;;  %v13805_v18 = vld [vmem:[#allocation2 + $0x28] sm:$0xff]  ;;  %v3460_v33 = vrot.slane %v13809_v25, 2 }
 0x13a   : > { %v793_v41 = vpop.f32.mrf.mxu0  ;;  %v1243_v29 = vld [vmem:[#allocation3 + $0x110] sm:$0xff]  ;;  %v12588_v3 = vpop.f32.mrf.mxu1  ;;  %12883 = vmatmul.mubr.msk.f32.gmra.mxu1 %vm223_vm2, %v14835_v5  ;;  %v3454_v59 = vrot.slane %v13803_v27, 2  ;;  %v3456_v46 = vrot.slane %v13805_v18, 2 }
 0x13b   : > { %1340 = vst.msk [vmem:[#allocation3 + $0x118] sm:$0xff] %vm223_vm2, %v1292_v39  ;;  %880 = vst.msk [vmem:[#allocation3 + $0x130] sm:$0xff] %vm223_vm2, %v793_v41  ;;  %v1291_v0 = vadd.f32 %v1243_v29, %v1140_v60  ;;  %12885 = vmatprep.mubr.msk.f32.mxu1 %vm223_vm2, %v14842_v8 }
 0x13c   : > { %v12517_v30 = vpop.f32.mrf.mxu0  ;;  %v1246_v47 = vld [vmem:[#allocation3 + $0x128] sm:$0xff]  ;;  %12812 = vmatmul.mubr.msk.f32.gmra.mxu0 %vm223_vm2, %v14820_v4  ;;  %v1160_v2 = vpop.f32.mrf.mxu1  ;;  %v1867_v4 = vrot.slane %v14825_v14, 1  ;;  %v3556_v13 = vsel %vm3505_vm5, %v3453_v12, %v3454_v59  ;;  %v3555_v29 = vsel %vm3505_vm5, %v3454_v59, %v3455_v58 }
 0x13d   : > { %1339 = vst.msk [vmem:[#allocation3 + $0x110] sm:$0xff] %vm223_vm2, %v1291_v0  ;;  %883 = vst.msk [vmem:[#allocation3 + $0x148] sm:$0xff] %vm223_vm2, %v12517_v30  ;;  %v1294_v44 = vadd.f32 %v12585_v38, %v1246_v47  ;;  %12814 = vmatprep.mubr.msk.f32.mxu0 %vm223_vm2, %v14835_v5  ;;  %v1673_v47 = vld [vmem:[#allocation3 + $0x8] sm:$0xff] }
 0x13e   : > { %v803_v50 = vpop.f32.mrf.mxu0  ;;  %v1245_v31 = vld [vmem:[#allocation3 + $0x120] sm:$0xff]  ;;  %v12591_v45 = vpop.f32.mrf.mxu1  ;;  %12886 = vmatmul.mubr.msk.f32.gmra.mxu1 %vm223_vm2, %v14856_v43  ;;  %v1874_v53 = vsel %vm1872_vm4, %v1867_v4, %v1868_v20  ;;  %v13811_v59 = vld [vmem:[#allocation2 + $0x58] sm:$0xff] }
 0x13f   : > { %1342 = vst.msk [vmem:[#allocation3 + $0x128] sm:$0xff] %vm223_vm2, %v1294_v44  ;;  %882 = vst.msk [vmem:[#allocation3 + $0x140] sm:$0xff] %vm223_vm2, %v803_v50  ;;  %v1293_v5 = vadd.f32 %v1245_v31, %v1150_v63  ;;  %12888 = vmatprep.mubr.msk.f32.mxu1 %vm223_vm2, %v1877_v24  ;;  %v13807_v50 = vld [vmem:[#allocation2 + $0x38] sm:$0xff]  ;;  %v3462_v36 = vrot.slane %v13811_v59, 2 }
 0x140   : > { %v12520_v48 = vpop.f32.mrf.mxu0  ;;  %v1248_v32 = vld [vmem:[#allocation3 + $0x138] sm:$0xff]  ;;  %12815 = vmatmul.mubr.msk.f32.gmra.mxu0 %vm223_vm2, %v14842_v8  ;;  %v1170_v9 = vpop.f32.mrf.mxu1  ;;  %v1875_v8 = vsel %vm1872_vm4, %v1866_v7, %v1867_v4  ;;  %v3554_v7 = vsel %vm3505_vm5, %v3455_v58, %v3456_v46  ;;  %v3458_v31 = vrot.slane %v13807_v50, 2  ;;  %v1672_v4 = vld [vmem:[#allocation3] sm:$0xff] }
 0x141   : > { %1341 = vst.msk [vmem:[#allocation3 + $0x120] sm:$0xff] %vm223_vm2, %v1293_v5  ;;  %885 = vst.msk [vmem:[#allocation3 + $0x158] sm:$0xff] %vm223_vm2, %v12520_v48  ;;  %v1296_v14 = vadd.f32 %v12588_v3, %v1248_v32  ;;  %12817 = vmatprep.mubr.msk.f32.mxu0 %vm223_vm2, %v14856_v43  ;;  %v13806_v3 = vld [vmem:[#allocation2 + $0x30] sm:$0xff]  ;;  %v13808_v48 = vld [vmem:[#allocation2 + $0x40] sm:$0xff] }
 0x142   : > { %v813_v16 = vpop.f32.mrf.mxu0  ;;  %v1247_v51 = vld [vmem:[#allocation3 + $0x130] sm:$0xff]  ;;  %v12594_v11 = vpop.f32.mrf.mxu1  ;;  %12889 = vmatmul.mubr.msk.f32.gmra.mxu1 %vm223_vm2, %v1876_v21  ;;  %v3457_v1 = vrot.slane %v13806_v3, 2  ;;  %v3459_v32 = vrot.slane %v13808_v48, 2 }
 0x143   : > { %1344 = vst.msk [vmem:[#allocation3 + $0x138] sm:$0xff] %vm223_vm2, %v1296_v14  ;;  %884 = vst.msk [vmem:[#allocation3 + $0x150] sm:$0xff] %vm223_vm2, %v813_v16  ;;  %v1295_v43 = vadd.f32 %v1247_v51, %v1160_v2  ;;  %12891 = vmatprep.mubr.msk.f32.mxu1 %vm223_vm2, %v1875_v8 }
 0x144   : > { %v12523_v55 = vpop.f32.mrf.mxu0  ;;  %v1250_v54 = vld [vmem:[#allocation3 + $0x148] sm:$0xff]  ;;  %12818 = vmatmul.mubr.msk.f32.gmra.mxu0 %vm223_vm2, %v1877_v24  ;;  %v1180_v34 = vpop.f32.mrf.mxu1  ;;  %v3553_v5 = vsel %vm3505_vm5, %v3456_v46, %v3457_v1  ;;  %v15220_v27 = vsel %vm3505_vm5, %v3459_v32, %v3460_v33 }
 0x145   : > { %1343 = vst.msk [vmem:[#allocation3 + $0x130] sm:$0xff] %vm223_vm2, %v1295_v43  ;;  %887 = vst.msk [vmem:[#allocation3 + $0x168] sm:$0xff] %vm223_vm2, %v12523_v55  ;;  %v1298_v49 = vadd.f32 %v12591_v45, %v1250_v54  ;;  %12820 = vmatprep.mubr.msk.f32.mxu0 %vm223_vm2, %v1876_v21  ;;  %v1675_v21 = vld [vmem:[#allocation3 + $0x18] sm:$0xff]  ;;  %v1674_v55 = vld [vmem:[#allocation3 + $0x10] sm:$0xff]  ;;  %v15205_v54 = vsel %vm3505_vm5, %v3458_v31, %v3459_v32 }
 0x146   : > { %v823_v57 = vpop.f32.mrf.mxu0  ;;  %v1249_v22 = vld [vmem:[#allocation3 + $0x140] sm:$0xff]  ;;  %v12597_v37 = vpop.f32.mrf.mxu1  ;;  %12892 = vmatmul.mubr.msk.f32.gmra.mxu1 %vm223_vm2, %v1874_v53 }
 0x147   : > { %1346 = vst.msk [vmem:[#allocation3 + $0x148] sm:$0xff] %vm223_vm2, %v1298_v49  ;;  %886 = vst.msk [vmem:[#allocation3 + $0x160] sm:$0xff] %vm223_vm2, %v823_v57  ;;  %v1297_v60 = vadd.f32 %v1249_v22, %v1170_v9  ;;  %12894 = vmatprep.mubr.msk.f32.mxu1 %vm223_vm2, %v1873_v26  ;;  %v13810_v26 = vld [vmem:[#allocation2 + $0x50] sm:$0xff]  ;;  %v1677_v22 = vld [vmem:[#allocation3 + $0x28] sm:$0xff] }
 0x148   : > { %v12526_v28 = vpop.f32.mrf.mxu0  ;;  %v1252_v61 = vld [vmem:[#allocation3 + $0x158] sm:$0xff]  ;;  %12821 = vmatmul.mubr.msk.f32.gmra.mxu0 %vm223_vm2, %v1875_v8  ;;  %v1190_v38 = vpop.f32.mrf.mxu1  ;;  %v15201_v8 = vsel %vm3505_vm5, %v3457_v1, %v3458_v31  ;;  %v3461_v56 = vrot.slane %v13810_v26, 2 }
 0x149   : > { %1345 = vst.msk [vmem:[#allocation3 + $0x140] sm:$0xff] %vm223_vm2, %v1297_v60  ;;  %889 = vst.msk [vmem:[#allocation3 + $0x178] sm:$0xff] %vm223_vm2, %v12526_v28  ;;  %v1300_v62 = vadd.f32 %v12594_v11, %v1252_v61  ;;  %12899 = vmatprep.mubr.msk.f32.mxu0 %vm223_vm2, %v3558_v35  ;;  %v1676_v60 = vld [vmem:[#allocation3 + $0x20] sm:$0xff]  ;;  %v13813_v1 = vld [vmem:[#allocation2 + $0x68] sm:$0xff] }
 0x14a   : > { %v833_v63 = vpop.f32.mrf.mxu0  ;;  %v1251_v39 = vld [vmem:[#allocation3 + $0x150] sm:$0xff]  ;;  %v12600_v41 = vpop.f32.mrf.mxu1  ;;  %12895 = vmatmul.mubr.msk.f32.gmra.mxu1 %vm223_vm2, %v1926_v15  ;;  %v15224_v28 = vsel %vm3505_vm5, %v3460_v33, %v3461_v56  ;;  %v15239_v3 = vsel %vm3505_vm5, %v3461_v56, %v3462_v36 }
 0x14b   : > { %1348 = vst.msk [vmem:[#allocation3 + $0x158] sm:$0xff] %vm223_vm2, %v1300_v62  ;;  %888 = vst.msk [vmem:[#allocation3 + $0x170] sm:$0xff] %vm223_vm2, %v833_v63  ;;  %v1299_v42 = vadd.f32 %v1251_v39, %v1180_v34  ;;  %12973 = vmatprep.mubr.msk.f32.mxu1 %vm223_vm2, %v3555_v29  ;;  %v1679_v63 = vld [vmem:[#allocation3 + $0x38] sm:$0xff] }
 0x14c   : > { %v1254_v0 = vld [vmem:[#allocation3 + $0x168] sm:$0xff]  ;;  %v12605_v30 = vpop.f32.mrf.mxu0  ;;  %12900 = vmatmul.mubr.msk.f32.vlgmr.msra.gmra.mxu0 %vm223_vm2, %v3557_v40  ;;  %v1200_v2 = vpop.f32.mrf.mxu1 }
 0x14d   : > { %1347 = vst.msk [vmem:[#allocation3 + $0x150] sm:$0xff] %vm223_vm2, %v1299_v42  ;;  %v1302_v44 = vadd.f32 %v12597_v37, %v1254_v0  ;;  %v1721_v23 = vadd.f32 %v12605_v30, %v1673_v47  ;;  %13046 = vmatpush3.msk.msra.mxu0 %vm533_vm0, %v14869_v19  ;;  %12902 = vmatprep.mubr.msk.f32.mxu0 %vm223_vm2, %v3556_v13  ;;  %v3464_v42 = vrot.slane %v13813_v1, 2  ;;  %v1678_v30 = vld [vmem:[#allocation3 + $0x30] sm:$0xff] }
 0x14e   : > { %v1253_v45 = vld [vmem:[#allocation3 + $0x160] sm:$0xff]  ;;  %v1433_v24 = vpop.f32.mrf.mxu0  ;;  %v12679_v20 = vpop.f32.mrf.mxu1  ;;  %12974 = vmatmul.mubr.msk.f32.vlgmr.msra.gmra.mxu1 %vm223_vm2, %v3554_v7 }
 0x14f   : > { %1350 = vst.msk [vmem:[#allocation3 + $0x168] sm:$0xff] %vm223_vm2, %v1302_v44  ;;  %1769 = vst.msk [vmem:[#allocation3 + $0x8] sm:$0xff] %vm223_vm2, %v1721_v23  ;;  %v1301_v19 = vadd.f32 %v1253_v45, %v1190_v38  ;;  %v1720_v9 = vadd.f32 %v1672_v4, %v1433_v24  ;;  %12976 = vmatprep.mubr.msk.f32.mxu1 %vm223_vm2, %v3553_v5  ;;  %v13812_v38 = vld [vmem:[#allocation2 + $0x60] sm:$0xff]  ;;  %v13814_v23 = vld [vmem:[#allocation2 + $0x70] sm:$0xff] }
 0x150   : > { %v1256_v10 = vld [vmem:[#allocation3 + $0x178] sm:$0xff]  ;;  %v12608_v14 = vpop.f32.mrf.mxu0  ;;  %12903 = vmatmul.mubr.msk.f32.gmra.mxu0 %vm223_vm2, %v3555_v29  ;;  %v2142_v16 = vpop.f32.mrf.mxu1  ;;  %v3463_v62 = vrot.slane %v13812_v38, 2  ;;  %v1681_v24 = vld [vmem:[#allocation3 + $0x48] sm:$0xff] }
 0x151   : > { %1349 = vst.msk [vmem:[#allocation3 + $0x160] sm:$0xff] %vm223_vm2, %v1301_v19  ;;  %1768 = vst.msk [vmem:[#allocation3] sm:$0xff] %vm223_vm2, %v1720_v9  ;;  %v1304_v51 = vadd.f32 %v12600_v41, %v1256_v10  ;;  %v1723_v11 = vadd.f32 %v12608_v14, %v1675_v21  ;;  %12905 = vmatprep.mubr.msk.f32.mxu0 %vm223_vm2, %v3554_v7  ;;  %v3465_v7 = vrot.slane %v13814_v23, 2  ;;  %v13815_v19 = vld [vmem:[#allocation2 + $0x78] sm:$0xff]  ;;  %v1680_v14 = vld [vmem:[#allocation3 + $0x40] sm:$0xff] }
 0x152   : > { %v1255_v43 = vld [vmem:[#allocation3 + $0x170] sm:$0xff]  ;;  %v1443_v53 = vpop.f32.mrf.mxu0  ;;  %v12682_v34 = vpop.f32.mrf.mxu1  ;;  %12977 = vmatmul.mubr.msk.f32.gmra.mxu1 %vm223_vm2, %v15201_v8  ;;  %v15259_v32 = vsel %vm3505_vm5, %v3463_v62, %v3464_v42  ;;  %v3466_v9 = vrot.slane %v13815_v19, 2  ;;  %v13821_v19 = vld [vmem:[#allocation2 + $0xa8] sm:$0xff] }
 0x153   : > { %1352 = vst.msk [vmem:[#allocation3 + $0x178] sm:$0xff] %vm223_vm2, %v1304_v51  ;;  %1771 = vst.msk [vmem:[#allocation3 + $0x18] sm:$0xff] %vm223_vm2, %v1723_v11  ;;  %v1303_v12 = vadd.f32 %v1255_v43, %v1200_v2  ;;  %v1722_v49 = vadd.f32 %v1674_v55, %v1443_v53  ;;  %12979 = vmatprep.mubr.msk.f32.mxu1 %vm223_vm2, %v15205_v54  ;;  %v15243_v2 = vsel %vm3505_vm5, %v3462_v36, %v3463_v62  ;;  %v13816_v11 = vld [vmem:[#allocation2 + $0x80] sm:$0xff]  ;;  %v1683_v55 = vld [vmem:[#allocation3 + $0x58] sm:$0xff] }
 0x154   : > { %v12611_v57 = vpop.f32.mrf.mxu0  ;;  %12906 = vmatmul.mubr.msk.f32.gmra.mxu0 %vm223_vm2, %v3553_v5  ;;  %v2152_v35 = vpop.f32.mrf.mxu1  ;;  %v3467_v25 = vrot.slane %v13816_v11, 2 }
 0x155   : > { %1351 = vst.msk [vmem:[#allocation3 + $0x170] sm:$0xff] %vm223_vm2, %v1303_v12  ;;  %1770 = vst.msk [vmem:[#allocation3 + $0x10] sm:$0xff] %vm223_vm2, %v1722_v49  ;;  %v1725_v37 = vadd.f32 %v12611_v57, %v1677_v22  ;;  %12908 = vmatprep.mubr.msk.f32.mxu0 %vm223_vm2, %v15201_v8  ;;  %v15279_v49 = vsel %vm3505_vm5, %v3465_v7, %v3466_v9  ;;  %v13817_v57 = vld [vmem:[#allocation2 + $0x88] sm:$0xff] }
 0x156   : > { %v1453_v58 = vpop.f32.mrf.mxu0  ;;  %v2382_v15 = vld [vmem:[#allocation3 + $0x8] sm:$0xff]  ;;  %v12685_v61 = vpop.f32.mrf.mxu1  ;;  %12980 = vmatmul.mubr.msk.f32.gmra.mxu1 %vm223_vm2, %v15220_v27  ;;  %v3468_v22 = vrot.slane %v13817_v57, 2  ;;  %v15283_v36 = vsel %vm3505_vm5, %v3466_v9, %v3467_v25  ;;  %v3472_v9 = vrot.slane %v13821_v19, 2 }
 0x157   : > { %1773 = vst.msk [vmem:[#allocation3 + $0x28] sm:$0xff] %vm223_vm2, %v1725_v37  ;;  %v1724_v40 = vadd.f32 %v1676_v60, %v1453_v58  ;;  %v2430_v18 = vadd.f32 %v12679_v20, %v2382_v15  ;;  %12982 = vmatprep.mubr.msk.f32.mxu1 %vm223_vm2, %v15224_v28  ;;  %v1682_v37 = vld [vmem:[#allocation3 + $0x50] sm:$0xff]  ;;  %v13818_v60 = vld [vmem:[#allocation2 + $0x90] sm:$0xff]  ;;  %v1693_v19 = vld [vmem:[#allocation3 + $0xa8] sm:$0xff] }
 0x158   : > { %v12614_v46 = vpop.f32.mrf.mxu0  ;;  %v2381_v39 = vld [vmem:[#allocation3] sm:$0xff]  ;;  %12909 = vmatmul.mubr.msk.f32.gmra.mxu0 %vm223_vm2, %v15205_v54  ;;  %v2162_v13 = vpop.f32.mrf.mxu1  ;;  %v3469_v15 = vrot.slane %v13818_v60, 2 }
 0x159   : > { %1772 = vst.msk [vmem:[#allocation3 + $0x20] sm:$0xff] %vm223_vm2, %v1724_v40  ;;  %2478 = vst.msk [vmem:[#allocation3 + $0x8] sm:$0xff] %vm223_vm2, %v2430_v18  ;;  %v1727_v41 = vadd.f32 %v12614_v46, %v1679_v63  ;;  %v2429_v29 = vadd.f32 %v2381_v39, %v2142_v16  ;;  %12911 = vmatprep.mubr.msk.f32.mxu0 %vm223_vm2, %v15220_v27  ;;  %v15263_v16 = vsel %vm3505_vm5, %v3464_v42, %v3465_v7  ;;  %v1685_v40 = vld [vmem:[#allocation3 + $0x68] sm:$0xff]  ;;  %v1684_v42 = vld [vmem:[#allocation3 + $0x60] sm:$0xff] }
 0x15a   : > { %v1463_v0 = vpop.f32.mrf.mxu0  ;;  %v2384_v47 = vld [vmem:[#allocation3 + $0x18] sm:$0xff]  ;;  %v12688_v44 = vpop.f32.mrf.mxu1  ;;  %12983 = vmatmul.mubr.msk.f32.gmra.mxu1 %vm223_vm2, %v15239_v3 }
 0x15b   : > { %1775 = vst.msk [vmem:[#allocation3 + $0x38] sm:$0xff] %vm223_vm2, %v1727_v41  ;;  %2477 = vst.msk [vmem:[#allocation3] sm:$0xff] %vm223_vm2, %v2429_v29  ;;  %v1726_v50 = vadd.f32 %v1678_v30, %v1463_v0  ;;  %v2432_v31 = vadd.f32 %v12682_v34, %v2384_v47  ;;  %12985 = vmatprep.mubr.msk.f32.mxu1 %vm223_vm2, %v15243_v2  ;;  %v13819_v41 = vld [vmem:[#allocation2 + $0x98] sm:$0xff]  ;;  %v15303_v30 = vsel %vm3505_vm5, %v3468_v22, %v3469_v15 }
 0x15c   : > { %v12617_v45 = vpop.f32.mrf.mxu0  ;;  %v2383_v4 = vld [vmem:[#allocation3 + $0x10] sm:$0xff]  ;;  %12912 = vmatmul.mubr.msk.f32.gmra.mxu0 %vm223_vm2, %v15224_v28  ;;  %v2172_v5 = vpop.f32.mrf.mxu1  ;;  %v3470_v29 = vrot.slane %v13819_v41, 2 }
 0x15d   : > { %1774 = vst.msk [vmem:[#allocation3 + $0x30] sm:$0xff] %vm223_vm2, %v1726_v50  ;;  %2480 = vst.msk [vmem:[#allocation3 + $0x18] sm:$0xff] %vm223_vm2, %v2432_v31  ;;  %v1729_v20 = vadd.f32 %v12617_v45, %v1681_v24  ;;  %v2431_v48 = vadd.f32 %v2383_v4, %v2152_v35  ;;  %12914 = vmatprep.mubr.msk.f32.mxu0 %vm223_vm2, %v15239_v3  ;;  %v1687_v45 = vld [vmem:[#allocation3 + $0x78] sm:$0xff] }
 0x15e   : > { %v1473_v10 = vpop.f32.mrf.mxu0  ;;  %v2386_v21 = vld [vmem:[#allocation3 + $0x28] sm:$0xff]  ;;  %v12691_v51 = vpop.f32.mrf.mxu1  ;;  %12986 = vmatmul.mubr.msk.f32.gmra.mxu1 %vm223_vm2, %v15259_v32 }
 0x15f   : > { %1777 = vst.msk [vmem:[#allocation3 + $0x48] sm:$0xff] %vm223_vm2, %v1729_v20  ;;  %2479 = vst.msk [vmem:[#allocation3 + $0x10] sm:$0xff] %vm223_vm2, %v2431_v48  ;;  %v1728_v33 = vadd.f32 %v1680_v14, %v1473_v10  ;;  %v2434_v43 = vadd.f32 %v12685_v61, %v2386_v21  ;;  %12988 = vmatprep.mubr.msk.f32.mxu1 %vm223_vm2, %v15263_v16  ;;  %v15319_v48 = vsel %vm3505_vm5, %v3469_v15, %v3470_v29  ;;  %v1686_v14 = vld [vmem:[#allocation3 + $0x70] sm:$0xff] }
 0x160   : > { %v12620_v53 = vpop.f32.mrf.mxu0  ;;  %v2385_v34 = vld [vmem:[#allocation3 + $0x20] sm:$0xff]  ;;  %12915 = vmatmul.mubr.msk.f32.gmra.mxu0 %vm223_vm2, %v15243_v2  ;;  %v2182_v26 = vpop.f32.mrf.mxu1 }
 0x161   : > { %1776 = vst.msk [vmem:[#allocation3 + $0x40] sm:$0xff] %vm223_vm2, %v1728_v33  ;;  %2482 = vst.msk [vmem:[#allocation3 + $0x28] sm:$0xff] %vm223_vm2, %v2434_v43  ;;  %v1731_v56 = vadd.f32 %v12620_v53, %v1683_v55  ;;  %v2433_v12 = vadd.f32 %v2385_v34, %v2162_v13  ;;  %12917 = vmatprep.mubr.msk.f32.mxu0 %vm223_vm2, %v15259_v32  ;;  %v15299_v13 = vsel %vm3505_vm5, %v3467_v25, %v3468_v22  ;;  %v13822_v25 = vld [vmem:[#allocation2 + $0xb0] sm:$0xff]  ;;  %v1689_v34 = vld [vmem:[#allocation3 + $0x88] sm:$0xff] }
 0x162   : > { %v1483_v35 = vpop.f32.mrf.mxu0  ;;  %v2388_v59 = vld [vmem:[#allocation3 + $0x38] sm:$0xff]  ;;  %v12694_v58 = vpop.f32.mrf.mxu1  ;;  %12989 = vmatmul.mubr.msk.f32.gmra.mxu1 %vm223_vm2, %v15279_v49  ;;  %v3473_v33 = vrot.slane %v13822_v25, 2  ;;  %v13827_v25 = vld [vmem:[#allocation2 + $0xd8] sm:$0xff] }
 0x163   : > { %1779 = vst.msk [vmem:[#allocation3 + $0x58] sm:$0xff] %vm223_vm2, %v1731_v56  ;;  %2481 = vst.msk [vmem:[#allocation3 + $0x20] sm:$0xff] %vm223_vm2, %v2433_v12  ;;  %v1730_v61 = vadd.f32 %v1682_v37, %v1483_v35  ;;  %v2436_v38 = vadd.f32 %v12688_v44, %v2388_v59  ;;  %12991 = vmatprep.mubr.msk.f32.mxu1 %vm223_vm2, %v15283_v36  ;;  %v13820_v44 = vld [vmem:[#allocation2 + $0xa0] sm:$0xff]  ;;  %v13823_v35 = vld [vmem:[#allocation2 + $0xb8] sm:$0xff] }
 0x164   : > { %v12623_v62 = vpop.f32.mrf.mxu0  ;;  %v2387_v18 = vld [vmem:[#allocation3 + $0x30] sm:$0xff]  ;;  %12918 = vmatmul.mubr.msk.f32.gmra.mxu0 %vm223_vm2, %v15263_v16  ;;  %v2192_v46 = vpop.f32.mrf.mxu1  ;;  %v3471_v23 = vrot.slane %v13820_v44, 2  ;;  %v3474_v37 = vrot.slane %v13823_v35, 2  ;;  %v15343_v15 = vsel %vm3505_vm5, %v3472_v9, %v3473_v33 }
 0x165   : > { %1778 = vst.msk [vmem:[#allocation3 + $0x50] sm:$0xff] %vm223_vm2, %v1730_v61  ;;  %2484 = vst.msk [vmem:[#allocation3 + $0x38] sm:$0xff] %vm223_vm2, %v2436_v38  ;;  %v1733_v63 = vadd.f32 %v12623_v62, %v1685_v40  ;;  %v2435_v39 = vadd.f32 %v2387_v18, %v2172_v5  ;;  %12920 = vmatprep.mubr.msk.f32.mxu0 %vm223_vm2, %v15279_v49  ;;  %v13824_v38 = vld [vmem:[#allocation2 + $0xc0] sm:$0xff] }
 0x166   : > { %v1493_v1 = vpop.f32.mrf.mxu0  ;;  %v2390_v0 = vld [vmem:[#allocation3 + $0x48] sm:$0xff]  ;;  %v12697_v47 = vpop.f32.mrf.mxu1  ;;  %12992 = vmatmul.mubr.msk.f32.gmra.mxu1 %vm223_vm2, %v15299_v13  ;;  %v15339_v22 = vsel %vm3505_vm5, %v3471_v23, %v3472_v9  ;;  %v3475_v62 = vrot.slane %v13824_v38, 2 }
 0x167   : > { %1781 = vst.msk [vmem:[#allocation3 + $0x68] sm:$0xff] %vm223_vm2, %v1733_v63  ;;  %2483 = vst.msk [vmem:[#allocation3 + $0x30] sm:$0xff] %vm223_vm2, %v2435_v39  ;;  %v1732_v7 = vadd.f32 %v1684_v42, %v1493_v1  ;;  %v2438_v50 = vadd.f32 %v12691_v51, %v2390_v0  ;;  %12994 = vmatprep.mubr.msk.f32.mxu1 %vm223_vm2, %v15303_v30  ;;  %v15323_v51 = vsel %vm3505_vm5, %v3470_v29, %v3471_v23  ;;  %v1691_v63 = vld [vmem:[#allocation3 + $0x98] sm:$0xff]  ;;  %v1690_v23 = vld [vmem:[#allocation3 + $0x90] sm:$0xff] }
 0x168   : > { %v12626_v31 = vpop.f32.mrf.mxu0  ;;  %v2389_v24 = vld [vmem:[#allocation3 + $0x40] sm:$0xff]  ;;  %12921 = vmatmul.mubr.msk.f32.gmra.mxu0 %vm223_vm2, %v15283_v36  ;;  %v2202_v4 = vpop.f32.mrf.mxu1  ;;  %v15359_v42 = vsel %vm3505_vm5, %v3473_v33, %v3474_v37  ;;  %v13825_v0 = vld [vmem:[#allocation2 + $0xc8] sm:$0xff]  ;;  %v3478_v33 = vrot.slane %v13827_v25, 2 }
 0x169   : > { %1780 = vst.msk [vmem:[#allocation3 + $0x60] sm:$0xff] %vm223_vm2, %v1732_v7  ;;  %2486 = vst.msk [vmem:[#allocation3 + $0x48] sm:$0xff] %vm223_vm2, %v2438_v50  ;;  %v1735_v5 = vadd.f32 %v12626_v31, %v1687_v45  ;;  %v2437_v20 = vadd.f32 %v2389_v24, %v2182_v26  ;;  %12923 = vmatprep.mubr.msk.f32.mxu0 %vm223_vm2, %v15299_v13  ;;  %v15363_v50 = vsel %vm3505_vm5, %v3474_v37, %v3475_v62  ;;  %v13826_v45 = vld [vmem:[#allocation2 + $0xd0] sm:$0xff] }
 0x16a   : > { %v1503_v10 = vpop.f32.mrf.mxu0  ;;  %v2392_v21 = vld [vmem:[#allocation3 + $0x58] sm:$0xff]  ;;  %v12700_v11 = vpop.f32.mrf.mxu1  ;;  %12995 = vmatmul.mubr.msk.f32.gmra.mxu1 %vm223_vm2, %v15319_v48  ;;  %v3477_v24 = vrot.slane %v13826_v45, 2 }
 0x16b   : > { %1783 = vst.msk [vmem:[#allocation3 + $0x78] sm:$0xff] %vm223_vm2, %v1735_v5  ;;  %2485 = vst.msk [vmem:[#allocation3 + $0x40] sm:$0xff] %vm223_vm2, %v2437_v20  ;;  %v1734_v43 = vadd.f32 %v1686_v14, %v1503_v10  ;;  %v2440_v53 = vadd.f32 %v12694_v58, %v2392_v21  ;;  %12997 = vmatprep.mubr.msk.f32.mxu1 %vm223_vm2, %v15323_v51  ;;  %v1688_v58 = vld [vmem:[#allocation3 + $0x80] sm:$0xff] }
 0x16c   : > { %v12629_v55 = vpop.f32.mrf.mxu0  ;;  %v2391_v26 = vld [vmem:[#allocation3 + $0x50] sm:$0xff]  ;;  %12924 = vmatmul.mubr.msk.f32.gmra.mxu0 %vm223_vm2, %v15303_v30  ;;  %v2212_v56 = vpop.f32.mrf.mxu1 }
 0x16d   : > { %1782 = vst.msk [vmem:[#allocation3 + $0x70] sm:$0xff] %vm223_vm2, %v1734_v43  ;;  %2488 = vst.msk [vmem:[#allocation3 + $0x58] sm:$0xff] %vm223_vm2, %v2440_v53  ;;  %v1737_v12 = vadd.f32 %v12629_v55, %v1689_v34  ;;  %v2439_v57 = vadd.f32 %v2391_v26, %v2192_v46  ;;  %12926 = vmatprep.mubr.msk.f32.mxu0 %vm223_vm2, %v15319_v48  ;;  %v1692_v53 = vld [vmem:[#allocation3 + $0xa0] sm:$0xff] }
 0x16e   : > { %v1513_v59 = vpop.f32.mrf.mxu0  ;;  %v2394_v60 = vld [vmem:[#allocation3 + $0x68] sm:$0xff]  ;;  %v12703_v61 = vpop.f32.mrf.mxu1  ;;  %12998 = vmatmul.mubr.msk.f32.gmra.mxu1 %vm223_vm2, %v15339_v22 }
 0x16f   : > { %1785 = vst.msk [vmem:[#allocation3 + $0x88] sm:$0xff] %vm223_vm2, %v1737_v12  ;;  %2487 = vst.msk [vmem:[#allocation3 + $0x50] sm:$0xff] %vm223_vm2, %v2439_v57  ;;  %v1736_v40 = vadd.f32 %v1688_v58, %v1513_v59  ;;  %v2442_v18 = vadd.f32 %v12697_v47, %v2394_v60  ;;  %13000 = vmatprep.mubr.msk.f32.mxu1 %vm223_vm2, %v15343_v15  ;;  %v3476_v47 = vrot.slane %v13825_v0, 2  ;;  %v1695_v59 = vld [vmem:[#allocation3 + $0xb8] sm:$0xff] }
 0x170   : > { %v12632_v46 = vpop.f32.mrf.mxu0  ;;  %v2393_v39 = vld [vmem:[#allocation3 + $0x60] sm:$0xff]  ;;  %12927 = vmatmul.mubr.msk.f32.gmra.mxu0 %vm223_vm2, %v15323_v51  ;;  %v2222_v41 = vpop.f32.mrf.mxu1 }
 0x171   : > { %1784 = vst.msk [vmem:[#allocation3 + $0x80] sm:$0xff] %vm223_vm2, %v1736_v40  ;;  %2490 = vst.msk [vmem:[#allocation3 + $0x68] sm:$0xff] %vm223_vm2, %v2442_v18  ;;  %v1739_v29 = vadd.f32 %v12632_v46, %v1691_v63  ;;  %v2441_v1 = vadd.f32 %v2393_v39, %v2202_v4  ;;  %12929 = vmatprep.mubr.msk.f32.mxu0 %vm223_vm2, %v15339_v22  ;;  %v15383_v34 = vsel %vm3505_vm5, %v3476_v47, %v3477_v24  ;;  %v13829_v40 = vld [vmem:[#allocation2 + $0xe8] sm:$0xff]  ;;  %v1694_v63 = vld [vmem:[#allocation3 + $0xb0] sm:$0xff] }
 0x172   : > { %v1523_v44 = vpop.f32.mrf.mxu0  ;;  %v2396_v7 = vld [vmem:[#allocation3 + $0x78] sm:$0xff]  ;;  %v12706_v31 = vpop.f32.mrf.mxu1  ;;  %13001 = vmatmul.mubr.msk.f32.gmra.mxu1 %vm223_vm2, %v15359_v42  ;;  %v3480_v18 = vrot.slane %v13829_v40, 2  ;;  %v1698_v40 = vld [vmem:[#allocation3 + $0xd0] sm:$0xff] }
 0x173   : > { %1787 = vst.msk [vmem:[#allocation3 + $0x98] sm:$0xff] %vm223_vm2, %v1739_v29  ;;  %2489 = vst.msk [vmem:[#allocation3 + $0x60] sm:$0xff] %vm223_vm2, %v2441_v1  ;;  %v1738_v4 = vadd.f32 %v1690_v23, %v1523_v44  ;;  %v2444_v5 = vadd.f32 %v12700_v11, %v2396_v7  ;;  %13003 = vmatprep.mubr.msk.f32.mxu1 %vm223_vm2, %v15363_v50  ;;  %v15379_v11 = vsel %vm3505_vm5, %v3475_v62, %v3476_v47  ;;  %v1697_v7 = vld [vmem:[#allocation3 + $0xc8] sm:$0xff] }
 0x174   : > { %v12635_v20 = vpop.f32.mrf.mxu0  ;;  %v2395_v9 = vld [vmem:[#allocation3 + $0x70] sm:$0xff]  ;;  %12930 = vmatmul.mubr.msk.f32.gmra.mxu0 %vm223_vm2, %v15343_v15  ;;  %v2232_v10 = vpop.f32.mrf.mxu1 }
 0x175   : > { %1786 = vst.msk [vmem:[#allocation3 + $0x90] sm:$0xff] %vm223_vm2, %v1738_v4  ;;  %2492 = vst.msk [vmem:[#allocation3 + $0x78] sm:$0xff] %vm223_vm2, %v2444_v5  ;;  %v1741_v14 = vadd.f32 %v12635_v20, %v1693_v19  ;;  %v2443_v21 = vadd.f32 %v2395_v9, %v2212_v56  ;;  %12932 = vmatprep.mubr.msk.f32.mxu0 %vm223_vm2, %v15359_v42  ;;  %v13828_v56 = vld [vmem:[#allocation2 + $0xe0] sm:$0xff]  ;;  %v13831_v20 = vld [vmem:[#allocation2 + $0xf8] sm:$0xff] }
 0x176   : > { %v1533_v43 = vpop.f32.mrf.mxu0  ;;  %v2398_v55 = vld [vmem:[#allocation3 + $0x88] sm:$0xff]  ;;  %v12709_v26 = vpop.f32.mrf.mxu1  ;;  %13004 = vmatmul.mubr.msk.f32.gmra.mxu1 %vm223_vm2, %v15379_v11  ;;  %v3479_v12 = vrot.slane %v13828_v56, 2  ;;  %v3482_v19 = vrot.slane %v13831_v20, 2 }
 0x177   : > { %1789 = vst.msk [vmem:[#allocation3 + $0xa8] sm:$0xff] %vm223_vm2, %v1741_v14  ;;  %2491 = vst.msk [vmem:[#allocation3 + $0x70] sm:$0xff] %vm223_vm2, %v2443_v21  ;;  %v1740_v57 = vadd.f32 %v1692_v53, %v1533_v43  ;;  %v2446_v35 = vadd.f32 %v12703_v61, %v2398_v55  ;;  %13006 = vmatprep.mubr.msk.f32.mxu1 %vm223_vm2, %v15383_v34  ;;  %v15399_v61 = vsel %vm3505_vm5, %v3477_v24, %v3478_v33  ;;  %v1696_v14 = vld [vmem:[#allocation3 + $0xc0] sm:$0xff] }
 0x178   : > { %v12638_v37 = vpop.f32.mrf.mxu0  ;;  %v2397_v58 = vld [vmem:[#allocation3 + $0x80] sm:$0xff]  ;;  %12933 = vmatmul.mubr.msk.f32.gmra.mxu0 %vm223_vm2, %v15363_v50  ;;  %v2242_v60 = vpop.f32.mrf.mxu1  ;;  %v15403_v29 = vsel %vm3505_vm5, %v3478_v33, %v3479_v12 }
 0x179   : > { %1788 = vst.msk [vmem:[#allocation3 + $0xa0] sm:$0xff] %vm223_vm2, %v1740_v57  ;;  %2494 = vst.msk [vmem:[#allocation3 + $0x88] sm:$0xff] %vm223_vm2, %v2446_v35  ;;  %v1743_v38 = vadd.f32 %v12638_v37, %v1695_v59  ;;  %v2445_v62 = vadd.f32 %v2397_v58, %v2222_v41  ;;  %12935 = vmatprep.mubr.msk.f32.mxu0 %vm223_vm2, %v15379_v11  ;;  %v13830_v41 = vld [vmem:[#allocation2 + $0xf0] sm:$0xff]  ;;  %v13833_v58 = vld [vmem:[#allocation2 + $0x108] sm:$0xff] }
 0x17a   : > { %v1543_v46 = vpop.f32.mrf.mxu0  ;;  %v2400_v39 = vld [vmem:[#allocation3 + $0x98] sm:$0xff]  ;;  %v12712_v1 = vpop.f32.mrf.mxu1  ;;  %13007 = vmatmul.mubr.msk.f32.gmra.mxu1 %vm223_vm2, %v15399_v61  ;;  %v3481_v0 = vrot.slane %v13830_v41, 2 }
 0x17b   : > { %1791 = vst.msk [vmem:[#allocation3 + $0xb8] sm:$0xff] %vm223_vm2, %v1743_v38  ;;  %2493 = vst.msk [vmem:[#allocation3 + $0x80] sm:$0xff] %vm223_vm2, %v2445_v62  ;;  %v1742_v47 = vadd.f32 %v1694_v63, %v1543_v46  ;;  %v2448_v44 = vadd.f32 %v12706_v31, %v2400_v39  ;;  %13009 = vmatprep.mubr.msk.f32.mxu1 %vm223_vm2, %v15403_v29  ;;  %v15419_v31 = vsel %vm3505_vm5, %v3479_v12, %v3480_v18  ;;  %v1699_v12 = vld [vmem:[#allocation3 + $0xd8] sm:$0xff] }
 0x17c   : > { %v12641_v23 = vpop.f32.mrf.mxu0  ;;  %v2399_v45 = vld [vmem:[#allocation3 + $0x90] sm:$0xff]  ;;  %12936 = vmatmul.mubr.msk.f32.gmra.mxu0 %vm223_vm2, %v15383_v34  ;;  %v2252_v24 = vpop.f32.mrf.mxu1  ;;  %v15423_v25 = vsel %vm3505_vm5, %v3480_v18, %v3481_v0  ;;  %v3484_v38 = vrot.slane %v13833_v58, 2 }
 0x17d   : > { %1790 = vst.msk [vmem:[#allocation3 + $0xb0] sm:$0xff] %vm223_vm2, %v1742_v47  ;;  %2496 = vst.msk [vmem:[#allocation3 + $0x98] sm:$0xff] %vm223_vm2, %v2448_v44  ;;  %v1745_v4 = vadd.f32 %v12641_v23, %v1697_v7  ;;  %v2447_v5 = vadd.f32 %v2399_v45, %v2232_v10  ;;  %12938 = vmatprep.mubr.msk.f32.mxu0 %vm223_vm2, %v15399_v61  ;;  %v13832_v10 = vld [vmem:[#allocation2 + $0x100] sm:$0xff]  ;;  %v1701_v44 = vld [vmem:[#allocation3 + $0xe8] sm:$0xff] }
 0x17e   : > { %v1553_v9 = vpop.f32.mrf.mxu0  ;;  %v2402_v21 = vld [vmem:[#allocation3 + $0xa8] sm:$0xff]  ;;  %v12715_v33 = vpop.f32.mrf.mxu1  ;;  %13010 = vmatmul.mubr.msk.f32.gmra.mxu1 %vm223_vm2, %v15419_v31  ;;  %v3483_v43 = vrot.slane %v13832_v10, 2 }
 0x17f   : > { %1793 = vst.msk [vmem:[#allocation3 + $0xc8] sm:$0xff] %vm223_vm2, %v1745_v4  ;;  %2495 = vst.msk [vmem:[#allocation3 + $0x90] sm:$0xff] %vm223_vm2, %v2447_v5  ;;  %v1744_v53 = vadd.f32 %v1696_v14, %v1553_v9  ;;  %v2450_v55 = vadd.f32 %v12709_v26, %v2402_v21  ;;  %13012 = vmatprep.mubr.msk.f32.mxu1 %vm223_vm2, %v15423_v25  ;;  %v15439_v26 = vsel %vm3505_vm5, %v3481_v0, %v3482_v19  ;;  %v13835_v5 = vld [vmem:[#allocation2 + $0x118] sm:$0xff]  ;;  %v1700_v9 = vld [vmem:[#allocation3 + $0xe0] sm:$0xff] }
 0x180   : > { %v12644_v56 = vpop.f32.mrf.mxu0  ;;  %v2401_v57 = vld [vmem:[#allocation3 + $0xa0] sm:$0xff]  ;;  %12939 = vmatmul.mubr.msk.f32.gmra.mxu0 %vm223_vm2, %v15403_v29  ;;  %v2262_v35 = vpop.f32.mrf.mxu1  ;;  %v15443_v46 = vsel %vm3505_vm5, %v3482_v19, %v3483_v43  ;;  %v3486_v20 = vrot.slane %v13835_v5, 2 }
 0x181   : > { %1792 = vst.msk [vmem:[#allocation3 + $0xc0] sm:$0xff] %vm223_vm2, %v1744_v53  ;;  %2498 = vst.msk [vmem:[#allocation3 + $0xa8] sm:$0xff] %vm223_vm2, %v2450_v55  ;;  %v1747_v37 = vadd.f32 %v12644_v56, %v1699_v12  ;;  %v2449_v59 = vadd.f32 %v2401_v57, %v2242_v60  ;;  %12941 = vmatprep.mubr.msk.f32.mxu0 %vm223_vm2, %v15419_v31  ;;  %v13834_v60 = vld [vmem:[#allocation2 + $0x110] sm:$0xff]  ;;  %v1703_v12 = vld [vmem:[#allocation3 + $0xf8] sm:$0xff] }
 0x182   : > { %v1563_v62 = vpop.f32.mrf.mxu0  ;;  %v2404_v18 = vld [vmem:[#allocation3 + $0xb8] sm:$0xff]  ;;  %v12718_v63 = vpop.f32.mrf.mxu1  ;;  %13013 = vmatmul.mubr.msk.f32.gmra.mxu1 %vm223_vm2, %v15439_v26  ;;  %v3485_v39 = vrot.slane %v13834_v60, 2 }
 0x183   : > { %1795 = vst.msk [vmem:[#allocation3 + $0xd8] sm:$0xff] %vm223_vm2, %v1747_v37  ;;  %2497 = vst.msk [vmem:[#allocation3 + $0xa0] sm:$0xff] %vm223_vm2, %v2449_v59  ;;  %v1746_v41 = vadd.f32 %v1698_v40, %v1563_v62  ;;  %v2452_v0 = vadd.f32 %v12712_v1, %v2404_v18  ;;  %13015 = vmatprep.mubr.msk.f32.mxu1 %vm223_vm2, %v15443_v46  ;;  %v15459_v1 = vsel %vm3505_vm5, %v3483_v43, %v3484_v38  ;;  %v1702_v18 = vld [vmem:[#allocation3 + $0xf0] sm:$0xff] }
 0x184   : > { %v12647_v47 = vpop.f32.mrf.mxu0  ;;  %v2403_v23 = vld [vmem:[#allocation3 + $0xb0] sm:$0xff]  ;;  %12942 = vmatmul.mubr.msk.f32.gmra.mxu0 %vm223_vm2, %v15423_v25  ;;  %v2272_v7 = vpop.f32.mrf.mxu1  ;;  %v15463_v21 = vsel %vm3505_vm5, %v3484_v38, %v3485_v39  ;;  %v13837_v38 = vld [vmem:[#allocation2 + $0x128] sm:$0xff] }
 0x185   : > { %1794 = vst.msk [vmem:[#allocation3 + $0xd0] sm:$0xff] %vm223_vm2, %v1746_v41  ;;  %2500 = vst.msk [vmem:[#allocation3 + $0xb8] sm:$0xff] %vm223_vm2, %v2452_v0  ;;  %v1749_v45 = vadd.f32 %v12647_v47, %v1701_v44  ;;  %v2451_v4 = vadd.f32 %v2403_v23, %v2252_v24  ;;  %12944 = vmatprep.mubr.msk.f32.mxu0 %vm223_vm2, %v15439_v26  ;;  %v13836_v24 = vld [vmem:[#allocation2 + $0x120] sm:$0xff]  ;;  %v3488_v62 = vrot.slane %v13837_v38, 2  ;;  %v1707_v38 = vld [vmem:[#allocation3 + $0x118] sm:$0xff] }
 0x186   : > { %v1573_v19 = vpop.f32.mrf.mxu0  ;;  %v2406_v14 = vld [vmem:[#allocation3 + $0xc8] sm:$0xff]  ;;  %v12721_v10 = vpop.f32.mrf.mxu1  ;;  %13016 = vmatmul.mubr.msk.f32.gmra.mxu1 %vm223_vm2, %v15459_v1  ;;  %v3487_v53 = vrot.slane %v13836_v24, 2 }
 0x187   : > { %1797 = vst.msk [vmem:[#allocation3 + $0xe8] sm:$0xff] %vm223_vm2, %v1749_v45  ;;  %2499 = vst.msk [vmem:[#allocation3 + $0xb0] sm:$0xff] %vm223_vm2, %v2451_v4  ;;  %v1748_v43 = vadd.f32 %v1700_v9, %v1573_v19  ;;  %v2454_v55 = vadd.f32 %v12715_v33, %v2406_v14  ;;  %13018 = vmatprep.mubr.msk.f32.mxu1 %vm223_vm2, %v15463_v21  ;;  %v15479_v33 = vsel %vm3505_vm5, %v3485_v39, %v3486_v20  ;;  %v1705_v45 = vld [vmem:[#allocation3 + $0x108] sm:$0xff] }
 0x188   : > { %v12650_v56 = vpop.f32.mrf.mxu0  ;;  %v2405_v57 = vld [vmem:[#allocation3 + $0xc0] sm:$0xff]  ;;  %12945 = vmatmul.mubr.msk.f32.gmra.mxu0 %vm223_vm2, %v15443_v46  ;;  %v2282_v37 = vpop.f32.mrf.mxu1  ;;  %v15483_v41 = vsel %vm3505_vm5, %v3486_v20, %v3487_v53  ;;  %v13839_v9 = vld [vmem:[#allocation2 + $0x138] sm:$0xff] }
 0x189   : > { %1796 = vst.msk [vmem:[#allocation3 + $0xe0] sm:$0xff] %vm223_vm2, %v1748_v43  ;;  %2502 = vst.msk [vmem:[#allocation3 + $0xc8] sm:$0xff] %vm223_vm2, %v2454_v55  ;;  %v1751_v59 = vadd.f32 %v12650_v56, %v1703_v12  ;;  %v2453_v58 = vadd.f32 %v2405_v57, %v2262_v35  ;;  %12947 = vmatprep.mubr.msk.f32.mxu0 %vm223_vm2, %v15459_v1  ;;  %v13838_v35 = vld [vmem:[#allocation2 + $0x130] sm:$0xff]  ;;  %v3490_v14 = vrot.slane %v13839_v9, 2 }
 0x18a   : > { %v1583_v40 = vpop.f32.mrf.mxu0  ;;  %v2408_v60 = vld [vmem:[#allocation3 + $0xd8] sm:$0xff]  ;;  %v12724_v0 = vpop.f32.mrf.mxu1  ;;  %13019 = vmatmul.mubr.msk.f32.gmra.mxu1 %vm223_vm2, %v15479_v33  ;;  %v3489_v47 = vrot.slane %v13838_v35, 2  ;;  %v1704_v43 = vld [vmem:[#allocation3 + $0x100] sm:$0xff] }
 0x18b   : > { %1799 = vst.msk [vmem:[#allocation3 + $0xf8] sm:$0xff] %vm223_vm2, %v1751_v59  ;;  %2501 = vst.msk [vmem:[#allocation3 + $0xc0] sm:$0xff] %vm223_vm2, %v2453_v58  ;;  %v1750_v39 = vadd.f32 %v1702_v18, %v1583_v40  ;;  %v2456_v44 = vadd.f32 %v12718_v63, %v2408_v60  ;;  %13021 = vmatprep.mubr.msk.f32.mxu1 %vm223_vm2, %v15483_v41  ;;  %v15499_v63 = vsel %vm3505_vm5, %v3487_v53, %v3488_v62  ;;  %v13841_v35 = vld [vmem:[#allocation2 + $0x148] sm:$0xff] }
 0x18c   : > { %v12653_v23 = vpop.f32.mrf.mxu0  ;;  %v2407_v4 = vld [vmem:[#allocation3 + $0xd0] sm:$0xff]  ;;  %12948 = vmatmul.mubr.msk.f32.gmra.mxu0 %vm223_vm2, %v15463_v21  ;;  %v2292_v5 = vpop.f32.mrf.mxu1  ;;  %v15503_v56 = vsel %vm3505_vm5, %v3488_v62, %v3489_v47 }
 0x18d   : > { %1798 = vst.msk [vmem:[#allocation3 + $0xf0] sm:$0xff] %vm223_vm2, %v1750_v39  ;;  %2504 = vst.msk [vmem:[#allocation3 + $0xd8] sm:$0xff] %vm223_vm2, %v2456_v44  ;;  %v1753_v20 = vadd.f32 %v12653_v23, %v1705_v45  ;;  %v2455_v19 = vadd.f32 %v2407_v4, %v2272_v7  ;;  %12950 = vmatprep.mubr.msk.f32.mxu0 %vm223_vm2, %v15479_v33  ;;  %v13840_v7 = vld [vmem:[#allocation2 + $0x140] sm:$0xff]  ;;  %v3492_v39 = vrot.slane %v13841_v35, 2 }
 0x18e   : > { %v1593_v24 = vpop.f32.mrf.mxu0  ;;  %v2410_v55 = vld [vmem:[#allocation3 + $0xe8] sm:$0xff]  ;;  %v12727_v12 = vpop.f32.mrf.mxu1  ;;  %13022 = vmatmul.mubr.msk.f32.gmra.mxu1 %vm223_vm2, %v15499_v63  ;;  %v3491_v57 = vrot.slane %v13840_v7, 2  ;;  %v1706_v23 = vld [vmem:[#allocation3 + $0x110] sm:$0xff] }
 0x18f   : > { %1801 = vst.msk [vmem:[#allocation3 + $0x108] sm:$0xff] %vm223_vm2, %v1753_v20  ;;  %2503 = vst.msk [vmem:[#allocation3 + $0xd0] sm:$0xff] %vm223_vm2, %v2455_v19  ;;  %v1752_v53 = vadd.f32 %v1704_v43, %v1593_v24  ;;  %v2458_v59 = vadd.f32 %v12721_v10, %v2410_v55  ;;  %13024 = vmatprep.mubr.msk.f32.mxu1 %vm223_vm2, %v15503_v56  ;;  %v15519_v10 = vsel %vm3505_vm5, %v3489_v47, %v3490_v14  ;;  %v1709_v43 = vld [vmem:[#allocation3 + $0x128] sm:$0xff] }
 0x190   : > { %v12656_v58 = vpop.f32.mrf.mxu0  ;;  %v2409_v40 = vld [vmem:[#allocation3 + $0xe0] sm:$0xff]  ;;  %12951 = vmatmul.mubr.msk.f32.gmra.mxu0 %vm223_vm2, %v15483_v41  ;;  %v2302_v62 = vpop.f32.mrf.mxu1  ;;  %v15523_v4 = vsel %vm3505_vm5, %v3490_v14, %v3491_v57 }
 0x191   : > { %1800 = vst.msk [vmem:[#allocation3 + $0x100] sm:$0xff] %vm223_vm2, %v1752_v53  ;;  %2506 = vst.msk [vmem:[#allocation3 + $0xe8] sm:$0xff] %vm223_vm2, %v2458_v59  ;;  %v1755_v18 = vadd.f32 %v12656_v58, %v1707_v38  ;;  %v2457_v60 = vadd.f32 %v2409_v40, %v2282_v37  ;;  %12953 = vmatprep.mubr.msk.f32.mxu0 %vm223_vm2, %v15499_v63  ;;  %v13842_v37 = vld [vmem:[#allocation2 + $0x150] sm:$0xff]  ;;  %v13843_v59 = vld [vmem:[#allocation2 + $0x158] sm:$0xff] }
 0x192   : > { %v1603_v44 = vpop.f32.mrf.mxu0  ;;  %v2412_v45 = vld [vmem:[#allocation3 + $0xf8] sm:$0xff]  ;;  %v12730_v20 = vpop.f32.mrf.mxu1  ;;  %13025 = vmatmul.mubr.msk.f32.gmra.mxu1 %vm223_vm2, %v15519_v10  ;;  %v3493_v19 = vrot.slane %v13842_v37, 2  ;;  %v3494_v58 = vrot.slane %v13843_v59, 2  ;;  %v1708_v40 = vld [vmem:[#allocation3 + $0x120] sm:$0xff] }
 0x193   : > { %1803 = vst.msk [vmem:[#allocation3 + $0x118] sm:$0xff] %vm223_vm2, %v1755_v18  ;;  %2505 = vst.msk [vmem:[#allocation3 + $0xe0] sm:$0xff] %vm223_vm2, %v2457_v60  ;;  %v1754_v47 = vadd.f32 %v1706_v23, %v1603_v44  ;;  %v2460_v9 = vadd.f32 %v12724_v0, %v2412_v45  ;;  %13027 = vmatprep.mubr.msk.f32.mxu1 %vm223_vm2, %v15523_v4  ;;  %v15539_v0 = vsel %vm3505_vm5, %v3491_v57, %v3492_v39  ;;  %v1711_v37 = vld [vmem:[#allocation3 + $0x138] sm:$0xff] }
 0x194   : > { %v12659_v24 = vpop.f32.mrf.mxu0  ;;  %v2411_v55 = vld [vmem:[#allocation3 + $0xf0] sm:$0xff]  ;;  %12954 = vmatmul.mubr.msk.f32.gmra.mxu0 %vm223_vm2, %v15503_v56  ;;  %v2312_v14 = vpop.f32.mrf.mxu1  ;;  %v15543_v60 = vsel %vm3505_vm5, %v3492_v39, %v3493_v19 }
 0x195   : > { %1802 = vst.msk [vmem:[#allocation3 + $0x110] sm:$0xff] %vm223_vm2, %v1754_v47  ;;  %2508 = vst.msk [vmem:[#allocation3 + $0xf8] sm:$0xff] %vm223_vm2, %v2460_v9  ;;  %v1757_v7 = vadd.f32 %v12659_v24, %v1709_v43  ;;  %v2459_v53 = vadd.f32 %v2411_v55, %v2292_v5  ;;  %12956 = vmatprep.mubr.msk.f32.mxu0 %vm223_vm2, %v15519_v10  ;;  %v13844_v5 = vld [vmem:[#allocation2 + $0x160] sm:$0xff]  ;;  %v13845_v43 = vld [vmem:[#allocation2 + $0x168] sm:$0xff] }
 0x196   : > { %v1613_v38 = vpop.f32.mrf.mxu0  ;;  %v2414_v18 = vld [vmem:[#allocation3 + $0x108] sm:$0xff]  ;;  %v12733_v35 = vpop.f32.mrf.mxu1  ;;  %13028 = vmatmul.mubr.msk.f32.gmra.mxu1 %vm223_vm2, %v15539_v0  ;;  %v3495_v44 = vrot.slane %v13844_v5, 2  ;;  %v3496_v55 = vrot.slane %v13845_v43, 2 }
 0x197   : > { %1805 = vst.msk [vmem:[#allocation3 + $0x128] sm:$0xff] %vm223_vm2, %v1757_v7  ;;  %2507 = vst.msk [vmem:[#allocation3 + $0xf0] sm:$0xff] %vm223_vm2, %v2459_v53  ;;  %v1756_v57 = vadd.f32 %v1708_v40, %v1613_v38  ;;  %v2462_v23 = vadd.f32 %v12727_v12, %v2414_v18  ;;  %13030 = vmatprep.mubr.msk.f32.mxu1 %vm223_vm2, %v15543_v60  ;;  %v15559_v12 = vsel %vm3505_vm5, %v3493_v19, %v3494_v58  ;;  %v1710_v53 = vld [vmem:[#allocation3 + $0x130] sm:$0xff] }
 0x198   : > { %v12662_v45 = vpop.f32.mrf.mxu0  ;;  %v2413_v47 = vld [vmem:[#allocation3 + $0x100] sm:$0xff]  ;;  %12957 = vmatmul.mubr.msk.f32.gmra.mxu0 %vm223_vm2, %v15523_v4  ;;  %v2322_v39 = vpop.f32.mrf.mxu1  ;;  %v15563_v38 = vsel %vm3505_vm5, %v3494_v58, %v3495_v44 }
 0x199   : > { %1804 = vst.msk [vmem:[#allocation3 + $0x120] sm:$0xff] %vm223_vm2, %v1756_v57  ;;  %2510 = vst.msk [vmem:[#allocation3 + $0x108] sm:$0xff] %vm223_vm2, %v2462_v23  ;;  %v1759_v9 = vadd.f32 %v12662_v45, %v1711_v37  ;;  %v2461_v24 = vadd.f32 %v2413_v47, %v2302_v62  ;;  %12959 = vmatprep.mubr.msk.f32.mxu0 %vm223_vm2, %v15539_v0  ;;  %v13846_v62 = vld [vmem:[#allocation2 + $0x170] sm:$0xff]  ;;  %v1713_v23 = vld [vmem:[#allocation3 + $0x148] sm:$0xff] }
 0x19a   : > { %v1623_v7 = vpop.f32.mrf.mxu0  ;;  %v2416_v59 = vld [vmem:[#allocation3 + $0x118] sm:$0xff]  ;;  %v12736_v40 = vpop.f32.mrf.mxu1  ;;  %13031 = vmatmul.mubr.msk.f32.gmra.mxu1 %vm223_vm2, %v15559_v12  ;;  %v3497_v18 = vrot.slane %v13846_v62, 2 }
 0x19b   : > { %1807 = vst.msk [vmem:[#allocation3 + $0x138] sm:$0xff] %vm223_vm2, %v1759_v9  ;;  %2509 = vst.msk [vmem:[#allocation3 + $0x100] sm:$0xff] %vm223_vm2, %v2461_v24  ;;  %v1758_v19 = vadd.f32 %v1710_v53, %v1623_v7  ;;  %v2464_v5 = vadd.f32 %v12730_v20, %v2416_v59  ;;  %13033 = vmatprep.mubr.msk.f32.mxu1 %vm223_vm2, %v15563_v38  ;;  %v15579_v20 = vsel %vm3505_vm5, %v3495_v44, %v3496_v55  ;;  %v13847_v9 = vld [vmem:[#allocation2 + $0x178] sm:$0xff]  ;;  %v1712_v7 = vld [vmem:[#allocation3 + $0x140] sm:$0xff] }
 0x19c   : > { %v12665_v57 = vpop.f32.mrf.mxu0  ;;  %v2415_v45 = vld [vmem:[#allocation3 + $0x110] sm:$0xff]  ;;  %12960 = vmatmul.mubr.msk.f32.gmra.mxu0 %vm223_vm2, %v15543_v60  ;;  %v2332_v58 = vpop.f32.mrf.mxu1  ;;  %v3498_v24 = vrot.slane %v13847_v9, 2  ;;  %v15583_v59 = vsel %vm3505_vm5, %v3496_v55, %v3497_v18  ;;  %v1715_v55 = vld [vmem:[#allocation3 + $0x158] sm:$0xff] }
 0x19d   : > { %1806 = vst.msk [vmem:[#allocation3 + $0x130] sm:$0xff] %vm223_vm2, %v1758_v19  ;;  %2512 = vst.msk [vmem:[#allocation3 + $0x118] sm:$0xff] %vm223_vm2, %v2464_v5  ;;  %v1761_v37 = vadd.f32 %v12665_v57, %v1713_v23  ;;  %v2463_v47 = vadd.f32 %v2415_v45, %v2312_v14  ;;  %12962 = vmatprep.mubr.msk.f32.mxu0 %vm223_vm2, %v15559_v12  ;;  %v13848_v14 = vld [vmem:[#allocation2 + $0x180] sm:$0xff]  ;;  %v13849_v57 = vld [vmem:[#allocation2 + $0x188] sm:$0xff] }
 0x19e   : > { %v1633_v43 = vpop.f32.mrf.mxu0  ;;  %v2418_v53 = vld [vmem:[#allocation3 + $0x128] sm:$0xff]  ;;  %v12739_v62 = vpop.f32.mrf.mxu1  ;;  %13034 = vmatmul.mubr.msk.f32.gmra.mxu1 %vm223_vm2, %v15579_v20  ;;  %v3499_v19 = vrot.slane %v13848_v14, 2  ;;  %v3500_v23 = vrot.slane %v13849_v57, 2  ;;  %v3501_v14 = vrot.slane %v13850_v17, 2 }
 0x19f   : > { %1809 = vst.msk [vmem:[#allocation3 + $0x148] sm:$0xff] %vm223_vm2, %v1761_v37  ;;  %2511 = vst.msk [vmem:[#allocation3 + $0x110] sm:$0xff] %vm223_vm2, %v2463_v47  ;;  %v1760_v44 = vadd.f32 %v1712_v7, %v1633_v43  ;;  %v2466_v5 = vadd.f32 %v12733_v35, %v2418_v53  ;;  %13036 = vmatprep.mubr.msk.f32.mxu1 %vm223_vm2, %v15583_v59  ;;  %v15599_v47 = vsel %vm3505_vm5, %v3497_v18, %v3498_v24  ;;  %v1714_v7 = vld [vmem:[#allocation3 + $0x150] sm:$0xff] }
 0x1a0   : > { %v12668_v45 = vpop.f32.mrf.mxu0  ;;  %v2417_v9 = vld [vmem:[#allocation3 + $0x120] sm:$0xff]  ;;  %12963 = vmatmul.mubr.msk.f32.gmra.mxu0 %vm223_vm2, %v15563_v38  ;;  %v2342_v52 = vpop.f32.mrf.mxu1  ;;  %v15603_v57 = vsel %vm3505_vm5, %v3498_v24, %v3499_v19  ;;  %v15613_v18 = vsel %vm3505_vm5, %v3499_v19, %v3500_v23 }
 0x1a1   : > { %1808 = vst.msk [vmem:[#allocation3 + $0x140] sm:$0xff] %vm223_vm2, %v1760_v44  ;;  %2514 = vst.msk [vmem:[#allocation3 + $0x128] sm:$0xff] %vm223_vm2, %v2466_v5  ;;  %v1763_v37 = vadd.f32 %v12668_v45, %v1715_v55  ;;  %v2465_v35 = vadd.f32 %v2417_v9, %v2322_v39  ;;  %12965 = vmatprep.mubr.msk.f32.mxu0 %vm223_vm2, %v15579_v20  ;;  %v15615_v5 = vld [vmem:[#allocation2 + $0x198] sm:$0xff] }
 0x1a2   : > { %v1643_v43 = vpop.f32.mrf.mxu0  ;;  %v2420_v53 = vld [vmem:[#allocation3 + $0x138] sm:$0xff]  ;;  %v12742_v17 = vpop.f32.mrf.mxu1  ;;  %13037 = vmatmul.mubr.msk.f32.gmra.mxu1 %vm223_vm2, %v15599_v47  ;;  %v1717_v55 = vld [vmem:[#allocation3 + $0x168] sm:$0xff] }
 0x1a3   : > { %1811 = vst.msk [vmem:[#allocation3 + $0x158] sm:$0xff] %vm223_vm2, %v1763_v37  ;;  %2513 = vst.msk [vmem:[#allocation3 + $0x120] sm:$0xff] %vm223_vm2, %v2465_v35  ;;  %v1762_v39 = vadd.f32 %v1714_v7, %v1643_v43  ;;  %v2468_v44 = vadd.f32 %v12736_v40, %v2420_v53  ;;  %13039 = vmatprep.mubr.msk.f32.mxu1 %vm223_vm2, %v15603_v57  ;;  %v15622_v40 = vsel %vm3505_vm5, %v3500_v23, %v3501_v14  ;;  %v1716_v7 = vld [vmem:[#allocation3 + $0x160] sm:$0xff] }
 0x1a4   : > { %v12671_v45 = vpop.f32.mrf.mxu0  ;;  %v2419_v9 = vld [vmem:[#allocation3 + $0x130] sm:$0xff]  ;;  %12966 = vmatmul.mubr.msk.f32.gmra.mxu0 %vm223_vm2, %v15583_v59  ;;  %v2352_v37 = vpop.f32.mrf.mxu1 }
 0x1a5   : > { %1810 = vst.msk [vmem:[#allocation3 + $0x150] sm:$0xff] %vm223_vm2, %v1762_v39  ;;  %2516 = vst.msk [vmem:[#allocation3 + $0x138] sm:$0xff] %vm223_vm2, %v2468_v44  ;;  %v1765_v19 = vadd.f32 %v12671_v45, %v1717_v55  ;;  %v2467_v35 = vadd.f32 %v2419_v9, %v2332_v58  ;;  %12968 = vmatprep.mubr.msk.f32.mxu0 %vm223_vm2, %v15599_v47  ;;  %v19163_v58 = vrot.slane %v15615_v5, 2  ;;  %v1719_v55 = vld [vmem:[#allocation3 + $0x178] sm:$0xff] }
 0x1a6   : > { %v1653_v43 = vpop.f32.mrf.mxu0  ;;  %v2422_v53 = vld [vmem:[#allocation3 + $0x148] sm:$0xff]  ;;  %v12745_v24 = vpop.f32.mrf.mxu1  ;;  %13040 = vmatmul.mubr.msk.f32.gmra.mxu1 %vm223_vm2, %v15613_v18 }
 0x1a7   : > { %1813 = vst.msk [vmem:[#allocation3 + $0x168] sm:$0xff] %vm223_vm2, %v1765_v19  ;;  %2515 = vst.msk [vmem:[#allocation3 + $0x130] sm:$0xff] %vm223_vm2, %v2467_v35  ;;  %v1764_v23 = vadd.f32 %v1716_v7, %v1653_v43  ;;  %v2470_v39 = vadd.f32 %v12739_v62, %v2422_v53  ;;  %13042 = vmatprep.mubr.msk.f32.mxu1 %vm223_vm2, %v15622_v40  ;;  %v15638_v44 = vsel %vm3505_vm5, %v3501_v14, %v19163_v58  ;;  %v1718_v7 = vld [vmem:[#allocation3 + $0x170] sm:$0xff] }
 0x1a8   : > { %v12674_v45 = vpop.f32.mrf.mxu0  ;;  %v2421_v9 = vld [vmem:[#allocation3 + $0x140] sm:$0xff]  ;;  %12969 = vmatmul.mubr.msk.f32.gmra.mxu0 %vm223_vm2, %v15603_v57  ;;  %v2362_v19 = vpop.f32.mrf.mxu1 }
 0x1a9   : > { %1812 = vst.msk [vmem:[#allocation3 + $0x160] sm:$0xff] %vm223_vm2, %v1764_v23  ;;  %2518 = vst.msk [vmem:[#allocation3 + $0x148] sm:$0xff] %vm223_vm2, %v2470_v39  ;;  %v1767_v62 = vadd.f32 %v12674_v45, %v1719_v55  ;;  %v2469_v35 = vadd.f32 %v2421_v9, %v2342_v52  ;;  %13047 = vmatprep.mubr.msk.f32.mxu0 %vm223_vm2, %v15201_v8  ;;  %v2845_v45 = vld [vmem:[#allocation3 + $0x8] sm:$0xff] }
 0x1aa   : > { %v1663_v43 = vpop.f32.mrf.mxu0  ;;  %v2424_v14 = vld [vmem:[#allocation3 + $0x158] sm:$0xff]  ;;  %v12748_v53 = vpop.f32.mrf.mxu1  ;;  %13043 = vmatmul.mubr.msk.f32.gmra.mxu1 %vm223_vm2, %v15638_v44 }
 0x1ab   : > { %1815 = vst.msk [vmem:[#allocation3 + $0x178] sm:$0xff] %vm223_vm2, %v1767_v62  ;;  %2517 = vst.msk [vmem:[#allocation3 + $0x140] sm:$0xff] %vm223_vm2, %v2469_v35  ;;  %v1766_v58 = vadd.f32 %v1718_v7, %v1663_v43  ;;  %v2472_v23 = vadd.f32 %v12742_v17, %v2424_v14  ;;  %v2844_v35 = vld [vmem:[#allocation3] sm:$0xff] }
 0x1ac   : > { %v2423_v6 = vld [vmem:[#allocation3 + $0x150] sm:$0xff]  ;;  %v12753_v39 = vpop.f32.mrf.mxu0  ;;  %13048 = vmatmul.mubr.msk.f32.vlgmr.msra.gmra.mxu0 %vm223_vm2, %v15205_v54  ;;  %v2372_v52 = vpop.f32.mrf.mxu1 }
 0x1ad   : > { %1814 = vst.msk [vmem:[#allocation3 + $0x170] sm:$0xff] %vm223_vm2, %v1766_v58  ;;  %2520 = vst.msk [vmem:[#allocation3 + $0x158] sm:$0xff] %vm223_vm2, %v2472_v23  ;;  %v2471_v8 = vadd.f32 %v2423_v6, %v2352_v37  ;;  %v2893_v55 = vadd.f32 %v12753_v39, %v2845_v45  ;;  %13050 = vmatprep.mubr.msk.f32.mxu0 %vm223_vm2, %v15220_v27  ;;  %v2847_v58 = vld [vmem:[#allocation3 + $0x18] sm:$0xff] }
 0x1ae   : > { %v2426_v9 = vld [vmem:[#allocation3 + $0x168] sm:$0xff]  ;;  %v2605_v62 = vpop.f32.mrf.mxu0  ;;  %v12827_v17 = vpop.f32.mrf.mxu1 }
 0x1af   : > { %2519 = vst.msk [vmem:[#allocation3 + $0x150] sm:$0xff] %vm223_vm2, %v2471_v8  ;;  %2941 = vst.msk [vmem:[#allocation3 + $0x8] sm:$0xff] %vm223_vm2, %v2893_v55  ;;  %v2474_v43 = vadd.f32 %v12745_v24, %v2426_v9  ;;  %v2892_v54 = vadd.f32 %v2844_v35, %v2605_v62  ;;  %v2846_v24 = vld [vmem:[#allocation3 + $0x10] sm:$0xff]  ;;  %v2849_v62 = vld [vmem:[#allocation3 + $0x28] sm:$0xff] }
 0x1b0   : > { %v2425_v7 = vld [vmem:[#allocation3 + $0x160] sm:$0xff]  ;;  %v12756_v14 = vpop.f32.mrf.mxu0  ;;  %13051 = vmatmul.mubr.msk.f32.gmra.mxu0 %vm223_vm2, %v15224_v28  ;;  %v3068_v6 = vpop.f32.mrf.mxu1 }
 0x1b1   : > { %2522 = vst.msk [vmem:[#allocation3 + $0x168] sm:$0xff] %vm223_vm2, %v2474_v43  ;;  %2940 = vst.msk [vmem:[#allocation3] sm:$0xff] %vm223_vm2, %v2892_v54  ;;  %v2473_v27 = vadd.f32 %v2425_v7, %v2362_v19  ;;  %v2895_v37 = vadd.f32 %v12756_v14, %v2847_v58  ;;  %13053 = vmatprep.mubr.msk.f32.mxu0 %vm223_vm2, %v15239_v3  ;;  %v2848_v54 = vld [vmem:[#allocation3 + $0x20] sm:$0xff] }
 0x1b2   : > { %v2428_v23 = vld [vmem:[#allocation3 + $0x178] sm:$0xff]  ;;  %v2615_v39 = vpop.f32.mrf.mxu0  ;;  %v12830_v45 = vpop.f32.mrf.mxu1 }
 0x1b3   : > { %2521 = vst.msk [vmem:[#allocation3 + $0x160] sm:$0xff] %vm223_vm2, %v2473_v27  ;;  %2943 = vst.msk [vmem:[#allocation3 + $0x18] sm:$0xff] %vm223_vm2, %v2895_v37  ;;  %v2476_v8 = vadd.f32 %v12748_v53, %v2428_v23  ;;  %v2894_v28 = vadd.f32 %v2846_v24, %v2615_v39  ;;  %v2851_v27 = vld [vmem:[#allocation3 + $0x38] sm:$0xff]  ;;  %v2850_v24 = vld [vmem:[#allocation3 + $0x30] sm:$0xff] }
 0x1b4   : > { %v2427_v55 = vld [vmem:[#allocation3 + $0x170] sm:$0xff]  ;;  %v12759_v9 = vpop.f32.mrf.mxu0  ;;  %13054 = vmatmul.mubr.msk.f32.gmra.mxu0 %vm223_vm2, %v15243_v2  ;;  %v3078_v19 = vpop.f32.mrf.mxu1 }
 0x1b5   : > { %2524 = vst.msk [vmem:[#allocation3 + $0x178] sm:$0xff] %vm223_vm2, %v2476_v8  ;;  %2942 = vst.msk [vmem:[#allocation3 + $0x10] sm:$0xff] %vm223_vm2, %v2894_v28  ;;  %v2475_v3 = vadd.f32 %v2427_v55, %v2372_v52  ;;  %v2897_v35 = vadd.f32 %v12759_v9, %v2849_v62  ;;  %13056 = vmatprep.mubr.msk.f32.mxu0 %vm223_vm2, %v15259_v32  ;;  %v2853_v9 = vld [vmem:[#allocation3 + $0x48] sm:$0xff] }
 0x1b6   : > { %v2625_v43 = vpop.f32.mrf.mxu0  ;;  %v3308_v53 = vld [vmem:[#allocation3 + $0x8] sm:$0xff]  ;;  %v12833_v7 = vpop.f32.mrf.mxu1 }
 0x1b7   : > { %2523 = vst.msk [vmem:[#allocation3 + $0x170] sm:$0xff] %vm223_vm2, %v2475_v3  ;;  %2945 = vst.msk [vmem:[#allocation3 + $0x28] sm:$0xff] %vm223_vm2, %v2897_v35  ;;  %v2896_v14 = vadd.f32 %v2848_v54, %v2625_v43  ;;  %v3356_v2 = vadd.f32 %v12827_v17, %v3308_v53  ;;  %v2852_v43 = vld [vmem:[#allocation3 + $0x40] sm:$0xff] }
 0x1b8   : > { %v12762_v58 = vpop.f32.mrf.mxu0  ;;  %v3307_v37 = vld [vmem:[#allocation3] sm:$0xff]  ;;  %13057 = vmatmul.mubr.msk.f32.gmra.mxu0 %vm223_vm2, %v15263_v16  ;;  %v3088_v52 = vpop.f32.mrf.mxu1 }
 0x1b9   : > { %2944 = vst.msk [vmem:[#allocation3 + $0x20] sm:$0xff] %vm223_vm2, %v2896_v14  ;;  %3404 = vst.msk [vmem:[#allocation3 + $0x8] sm:$0xff] %vm223_vm2, %v3356_v2  ;;  %v2899_v32 = vadd.f32 %v12762_v58, %v2851_v27  ;;  %v3355_v23 = vadd.f32 %v3307_v37, %v3068_v6  ;;  %13059 = vmatprep.mubr.msk.f32.mxu0 %vm223_vm2, %v15279_v49  ;;  %v2855_v2 = vld [vmem:[#allocation3 + $0x58] sm:$0xff] }
 0x1ba   : > { %v2635_v39 = vpop.f32.mrf.mxu0  ;;  %v3310_v8 = vld [vmem:[#allocation3 + $0x18] sm:$0xff]  ;;  %v12836_v17 = vpop.f32.mrf.mxu1 }
 0x1bb   : > { %2947 = vst.msk [vmem:[#allocation3 + $0x38] sm:$0xff] %vm223_vm2, %v2899_v32  ;;  %3403 = vst.msk [vmem:[#allocation3] sm:$0xff] %vm223_vm2, %v3355_v23  ;;  %v2898_v28 = vadd.f32 %v2850_v24, %v2635_v39  ;;  %v3358_v16 = vadd.f32 %v12830_v45, %v3310_v8  ;;  %v2854_v32 = vld [vmem:[#allocation3 + $0x50] sm:$0xff]  ;;  %v2857_v8 = vld [vmem:[#allocation3 + $0x68] sm:$0xff] }
 0x1bc   : > { %v12765_v55 = vpop.f32.mrf.mxu0  ;;  %v3309_v62 = vld [vmem:[#allocation3 + $0x10] sm:$0xff]  ;;  %13060 = vmatmul.mubr.msk.f32.gmra.mxu0 %vm223_vm2, %v15283_v36  ;;  %v3098_v6 = vpop.f32.mrf.mxu1 }
 0x1bd   : > { %2946 = vst.msk [vmem:[#allocation3 + $0x30] sm:$0xff] %vm223_vm2, %v2898_v28  ;;  %3406 = vst.msk [vmem:[#allocation3 + $0x18] sm:$0xff] %vm223_vm2, %v3358_v16  ;;  %v2901_v49 = vadd.f32 %v12765_v55, %v2853_v9  ;;  %v3357_v3 = vadd.f32 %v3309_v62, %v3078_v19  ;;  %13062 = vmatprep.mubr.msk.f32.mxu0 %vm223_vm2, %v15299_v13  ;;  %v2856_v9 = vld [vmem:[#allocation3 + $0x60] sm:$0xff] }
 0x1be   : > { %v2645_v35 = vpop.f32.mrf.mxu0  ;;  %v3312_v54 = vld [vmem:[#allocation3 + $0x28] sm:$0xff]  ;;  %v12839_v45 = vpop.f32.mrf.mxu1 }
 0x1bf   : > { %2949 = vst.msk [vmem:[#allocation3 + $0x48] sm:$0xff] %vm223_vm2, %v2901_v49  ;;  %3405 = vst.msk [vmem:[#allocation3 + $0x10] sm:$0xff] %vm223_vm2, %v3357_v3  ;;  %v2900_v53 = vadd.f32 %v2852_v43, %v2645_v35  ;;  %v3360_v36 = vadd.f32 %v12833_v7, %v3312_v54  ;;  %v2859_v35 = vld [vmem:[#allocation3 + $0x78] sm:$0xff] }
 0x1c0   : > { %v12768_v14 = vpop.f32.mrf.mxu0  ;;  %v3311_v58 = vld [vmem:[#allocation3 + $0x20] sm:$0xff]  ;;  %13063 = vmatmul.mubr.msk.f32.gmra.mxu0 %vm223_vm2, %v15303_v30  ;;  %v3108_v19 = vpop.f32.mrf.mxu1 }
 0x1c1   : > { %2948 = vst.msk [vmem:[#allocation3 + $0x40] sm:$0xff] %vm223_vm2, %v2900_v53  ;;  %3408 = vst.msk [vmem:[#allocation3 + $0x28] sm:$0xff] %vm223_vm2, %v3360_v36  ;;  %v2903_v13 = vadd.f32 %v12768_v14, %v2855_v2  ;;  %v3359_v27 = vadd.f32 %v3311_v58, %v3088_v52  ;;  %13065 = vmatprep.mubr.msk.f32.mxu0 %vm223_vm2, %v15319_v48  ;;  %v2858_v36 = vld [vmem:[#allocation3 + $0x70] sm:$0xff] }
 0x1c2   : > { %v2655_v37 = vpop.f32.mrf.mxu0  ;;  %v3314_v23 = vld [vmem:[#allocation3 + $0x38] sm:$0xff]  ;;  %v12842_v7 = vpop.f32.mrf.mxu1 }
 0x1c3   : > { %2951 = vst.msk [vmem:[#allocation3 + $0x58] sm:$0xff] %vm223_vm2, %v2903_v13  ;;  %3407 = vst.msk [vmem:[#allocation3 + $0x20] sm:$0xff] %vm223_vm2, %v3359_v27  ;;  %v2902_v39 = vadd.f32 %v2854_v32, %v2655_v37  ;;  %v3362_v30 = vadd.f32 %v12836_v17, %v3314_v23  ;;  %v2861_v13 = vld [vmem:[#allocation3 + $0x88] sm:$0xff]  ;;  %v2860_v23 = vld [vmem:[#allocation3 + $0x80] sm:$0xff] }
 0x1c4   : > { %v12771_v24 = vpop.f32.mrf.mxu0  ;;  %v3313_v28 = vld [vmem:[#allocation3 + $0x30] sm:$0xff]  ;;  %13066 = vmatmul.mubr.msk.f32.gmra.mxu0 %vm223_vm2, %v15323_v51  ;;  %v3118_v52 = vpop.f32.mrf.mxu1 }
 0x1c5   : > { %2950 = vst.msk [vmem:[#allocation3 + $0x50] sm:$0xff] %vm223_vm2, %v2902_v39  ;;  %3410 = vst.msk [vmem:[#allocation3 + $0x38] sm:$0xff] %vm223_vm2, %v3362_v30  ;;  %v2905_v48 = vadd.f32 %v12771_v24, %v2857_v8  ;;  %v3361_v16 = vadd.f32 %v3313_v28, %v3098_v6  ;;  %13068 = vmatprep.mubr.msk.f32.mxu0 %vm223_vm2, %v15339_v22  ;;  %v2863_v8 = vld [vmem:[#allocation3 + $0x98] sm:$0xff] }
 0x1c6   : > { %v2665_v55 = vpop.f32.mrf.mxu0  ;;  %v3316_v62 = vld [vmem:[#allocation3 + $0x48] sm:$0xff]  ;;  %v12845_v17 = vpop.f32.mrf.mxu1 }
 0x1c7   : > { %2953 = vst.msk [vmem:[#allocation3 + $0x68] sm:$0xff] %vm223_vm2, %v2905_v48  ;;  %3409 = vst.msk [vmem:[#allocation3 + $0x30] sm:$0xff] %vm223_vm2, %v3361_v16  ;;  %v2904_v49 = vadd.f32 %v2856_v9, %v2665_v55  ;;  %v3364_v51 = vadd.f32 %v12839_v45, %v3316_v62  ;;  %v2862_v55 = vld [vmem:[#allocation3 + $0x90] sm:$0xff] }
 0x1c8   : > { %v12774_v3 = vpop.f32.mrf.mxu0  ;;  %v3315_v43 = vld [vmem:[#allocation3 + $0x40] sm:$0xff]  ;;  %13069 = vmatmul.mubr.msk.f32.gmra.mxu0 %vm223_vm2, %v15343_v15  ;;  %v3128_v6 = vpop.f32.mrf.mxu1 }
 0x1c9   : > { %2952 = vst.msk [vmem:[#allocation3 + $0x60] sm:$0xff] %vm223_vm2, %v2904_v49  ;;  %3412 = vst.msk [vmem:[#allocation3 + $0x48] sm:$0xff] %vm223_vm2, %v3364_v51  ;;  %v2907_v22 = vadd.f32 %v12774_v3, %v2859_v35  ;;  %v3363_v54 = vadd.f32 %v3315_v43, %v3108_v19  ;;  %13071 = vmatprep.mubr.msk.f32.mxu0 %vm223_vm2, %v15359_v42  ;;  %v2865_v51 = vld [vmem:[#allocation3 + $0xa8] sm:$0xff] }
 0x1ca   : > { %v2675_v53 = vpop.f32.mrf.mxu0  ;;  %v3318_v14 = vld [vmem:[#allocation3 + $0x58] sm:$0xff]  ;;  %v12848_v45 = vpop.f32.mrf.mxu1 }
 0x1cb   : > { %2955 = vst.msk [vmem:[#allocation3 + $0x78] sm:$0xff] %vm223_vm2, %v2907_v22  ;;  %3411 = vst.msk [vmem:[#allocation3 + $0x40] sm:$0xff] %vm223_vm2, %v3363_v54  ;;  %v2906_v2 = vadd.f32 %v2858_v36, %v2675_v53  ;;  %v3366_v15 = vadd.f32 %v12842_v7, %v3318_v14  ;;  %v2864_v22 = vld [vmem:[#allocation3 + $0xa0] sm:$0xff] }
 0x1cc   : > { %v12777_v58 = vpop.f32.mrf.mxu0  ;;  %v3317_v27 = vld [vmem:[#allocation3 + $0x50] sm:$0xff]  ;;  %13072 = vmatmul.mubr.msk.f32.gmra.mxu0 %vm223_vm2, %v15363_v50  ;;  %v3138_v19 = vpop.f32.mrf.mxu1 }
 0x1cd   : > { %2954 = vst.msk [vmem:[#allocation3 + $0x70] sm:$0xff] %vm223_vm2, %v2906_v2  ;;  %3414 = vst.msk [vmem:[#allocation3 + $0x58] sm:$0xff] %vm223_vm2, %v3366_v15  ;;  %v2909_v42 = vadd.f32 %v12777_v58, %v2861_v13  ;;  %v3365_v37 = vadd.f32 %v3317_v27, %v3118_v52  ;;  %13074 = vmatprep.mubr.msk.f32.mxu0 %vm223_vm2, %v15379_v11  ;;  %v2866_v27 = vld [vmem:[#allocation3 + $0xb0] sm:$0xff] }
 0x1ce   : > { %v2685_v32 = vpop.f32.mrf.mxu0  ;;  %v3320_v39 = vld [vmem:[#allocation3 + $0x68] sm:$0xff]  ;;  %v12851_v7 = vpop.f32.mrf.mxu1 }
 0x1cf   : > { %2957 = vst.msk [vmem:[#allocation3 + $0x88] sm:$0xff] %vm223_vm2, %v2909_v42  ;;  %3413 = vst.msk [vmem:[#allocation3 + $0x50] sm:$0xff] %vm223_vm2, %v3365_v37  ;;  %v2908_v30 = vadd.f32 %v2860_v23, %v2685_v32  ;;  %v3368_v50 = vadd.f32 %v12845_v17, %v3320_v39  ;;  %v2869_v23 = vld [vmem:[#allocation3 + $0xc8] sm:$0xff] }
 0x1d0   : > { %v12780_v24 = vpop.f32.mrf.mxu0  ;;  %v3319_v28 = vld [vmem:[#allocation3 + $0x60] sm:$0xff]  ;;  %13075 = vmatmul.mubr.msk.f32.gmra.mxu0 %vm223_vm2, %v15383_v34  ;;  %v3148_v52 = vpop.f32.mrf.mxu1 }
 0x1d1   : > { %2956 = vst.msk [vmem:[#allocation3 + $0x80] sm:$0xff] %vm223_vm2, %v2908_v30  ;;  %3416 = vst.msk [vmem:[#allocation3 + $0x68] sm:$0xff] %vm223_vm2, %v3368_v50  ;;  %v2911_v11 = vadd.f32 %v12780_v24, %v2863_v8  ;;  %v3367_v48 = vadd.f32 %v3319_v28, %v3128_v6  ;;  %13077 = vmatprep.mubr.msk.f32.mxu0 %vm223_vm2, %v15399_v61  ;;  %v2868_v24 = vld [vmem:[#allocation3 + $0xc0] sm:$0xff] }
 0x1d2   : > { %v2695_v16 = vpop.f32.mrf.mxu0  ;;  %v3322_v9 = vld [vmem:[#allocation3 + $0x78] sm:$0xff]  ;;  %v12854_v62 = vpop.f32.mrf.mxu1 }
 0x1d3   : > { %2959 = vst.msk [vmem:[#allocation3 + $0x98] sm:$0xff] %vm223_vm2, %v2911_v11  ;;  %3415 = vst.msk [vmem:[#allocation3 + $0x60] sm:$0xff] %vm223_vm2, %v3367_v48  ;;  %v2910_v17 = vadd.f32 %v2862_v55, %v2695_v16  ;;  %v3370_v34 = vadd.f32 %v12848_v45, %v3322_v9  ;;  %v2867_v45 = vld [vmem:[#allocation3 + $0xb8] sm:$0xff] }
 0x1d4   : > { %v12783_v49 = vpop.f32.mrf.mxu0  ;;  %v3321_v3 = vld [vmem:[#allocation3 + $0x70] sm:$0xff]  ;;  %13078 = vmatmul.mubr.msk.f32.gmra.mxu0 %vm223_vm2, %v15403_v29  ;;  %v3158_v35 = vpop.f32.mrf.mxu1  ;;  %v2871_v48 = vld [vmem:[#allocation3 + $0xd8] sm:$0xff] }
 0x1d5   : > { %2958 = vst.msk [vmem:[#allocation3 + $0x90] sm:$0xff] %vm223_vm2, %v2910_v17  ;;  %3418 = vst.msk [vmem:[#allocation3 + $0x78] sm:$0xff] %vm223_vm2, %v3370_v34  ;;  %v2913_v61 = vadd.f32 %v12783_v49, %v2865_v51  ;;  %v3369_v43 = vadd.f32 %v3321_v3, %v3138_v19  ;;  %13080 = vmatprep.mubr.msk.f32.mxu0 %vm223_vm2, %v15419_v31  ;;  %v2870_v17 = vld [vmem:[#allocation3 + $0xd0] sm:$0xff] }
 0x1d6   : > { %v2705_v6 = vpop.f32.mrf.mxu0  ;;  %v3324_v54 = vld [vmem:[#allocation3 + $0x88] sm:$0xff]  ;;  %v12857_v53 = vpop.f32.mrf.mxu1 }
 0x1d7   : > { %2961 = vst.msk [vmem:[#allocation3 + $0xa8] sm:$0xff] %vm223_vm2, %v2913_v61  ;;  %3417 = vst.msk [vmem:[#allocation3 + $0x70] sm:$0xff] %vm223_vm2, %v3369_v43  ;;  %v2912_v36 = vadd.f32 %v2864_v22, %v2705_v6  ;;  %v3372_v29 = vadd.f32 %v12851_v7, %v3324_v54  ;;  %v2872_v54 = vld [vmem:[#allocation3 + $0xe0] sm:$0xff] }
 0x1d8   : > { %v12786_v14 = vpop.f32.mrf.mxu0  ;;  %v3323_v2 = vld [vmem:[#allocation3 + $0x80] sm:$0xff]  ;;  %13081 = vmatmul.mubr.msk.f32.gmra.mxu0 %vm223_vm2, %v15423_v25  ;;  %v3168_v15 = vpop.f32.mrf.mxu1 }
 0x1d9   : > { %2960 = vst.msk [vmem:[#allocation3 + $0xa0] sm:$0xff] %vm223_vm2, %v2912_v36  ;;  %3420 = vst.msk [vmem:[#allocation3 + $0x88] sm:$0xff] %vm223_vm2, %v3372_v29  ;;  %v2915_v31 = vadd.f32 %v12786_v14, %v2867_v45  ;;  %v3371_v58 = vadd.f32 %v3323_v2, %v3148_v52  ;;  %13083 = vmatprep.mubr.msk.f32.mxu0 %vm223_vm2, %v15439_v26  ;;  %v2875_v45 = vld [vmem:[#allocation3 + $0xf8] sm:$0xff] }
 0x1da   : > { %v2715_v13 = vpop.f32.mrf.mxu0  ;;  %v3326_v19 = vld [vmem:[#allocation3 + $0x98] sm:$0xff]  ;;  %v12860_v42 = vpop.f32.mrf.mxu1 }
 0x1db   : > { %2963 = vst.msk [vmem:[#allocation3 + $0xb8] sm:$0xff] %vm223_vm2, %v2915_v31  ;;  %3419 = vst.msk [vmem:[#allocation3 + $0x80] sm:$0xff] %vm223_vm2, %v3371_v58  ;;  %v2914_v37 = vadd.f32 %v2866_v27, %v2715_v13  ;;  %v3374_v25 = vadd.f32 %v12854_v62, %v3326_v19  ;;  %v2874_v13 = vld [vmem:[#allocation3 + $0xf0] sm:$0xff] }
 0x1dc   : > { %v12789_v32 = vpop.f32.mrf.mxu0  ;;  %v3325_v39 = vld [vmem:[#allocation3 + $0x90] sm:$0xff]  ;;  %13084 = vmatmul.mubr.msk.f32.gmra.mxu0 %vm223_vm2, %v15443_v46  ;;  %v3178_v7 = vpop.f32.mrf.mxu1 }
 0x1dd   : > { %2962 = vst.msk [vmem:[#allocation3 + $0xb0] sm:$0xff] %vm223_vm2, %v2914_v37  ;;  %3422 = vst.msk [vmem:[#allocation3 + $0x98] sm:$0xff] %vm223_vm2, %v3374_v25  ;;  %v2917_v26 = vadd.f32 %v12789_v32, %v2869_v23  ;;  %v3373_v30 = vadd.f32 %v3325_v39, %v3158_v35  ;;  %13086 = vmatprep.mubr.msk.f32.mxu0 %vm223_vm2, %v15459_v1  ;;  %v2873_v35 = vld [vmem:[#allocation3 + $0xe8] sm:$0xff] }
 0x1de   : > { %v2725_v50 = vpop.f32.mrf.mxu0  ;;  %v3328_v8 = vld [vmem:[#allocation3 + $0xa8] sm:$0xff]  ;;  %v12863_v28 = vpop.f32.mrf.mxu1 }
 0x1df   : > { %2965 = vst.msk [vmem:[#allocation3 + $0xc8] sm:$0xff] %vm223_vm2, %v2917_v26  ;;  %3421 = vst.msk [vmem:[#allocation3 + $0x90] sm:$0xff] %vm223_vm2, %v3373_v30  ;;  %v2916_v52 = vadd.f32 %v2868_v24, %v2725_v50  ;;  %v3376_v46 = vadd.f32 %v12857_v53, %v3328_v8  ;;  %v2877_v25 = vld [vmem:[#allocation3 + $0x108] sm:$0xff]  ;;  %v2876_v26 = vld [vmem:[#allocation3 + $0x100] sm:$0xff] }
 0x1e0   : > { %v12792_v11 = vpop.f32.mrf.mxu0  ;;  %v3327_v16 = vld [vmem:[#allocation3 + $0xa0] sm:$0xff]  ;;  %13087 = vmatmul.mubr.msk.f32.gmra.mxu0 %vm223_vm2, %v15463_v21  ;;  %v3188_v55 = vpop.f32.mrf.mxu1 }
 0x1e1   : > { %2964 = vst.msk [vmem:[#allocation3 + $0xc0] sm:$0xff] %vm223_vm2, %v2916_v52  ;;  %3424 = vst.msk [vmem:[#allocation3 + $0xa8] sm:$0xff] %vm223_vm2, %v3376_v46  ;;  %v2919_v1 = vadd.f32 %v12792_v11, %v2871_v48  ;;  %v3375_v9 = vadd.f32 %v3327_v16, %v3168_v15  ;;  %13089 = vmatprep.mubr.msk.f32.mxu0 %vm223_vm2, %v15479_v33  ;;  %v2878_v16 = vld [vmem:[#allocation3 + $0x110] sm:$0xff] }
 0x1e2   : > { %v2735_v62 = vpop.f32.mrf.mxu0  ;;  %v3330_v34 = vld [vmem:[#allocation3 + $0xb8] sm:$0xff]  ;;  %v12866_v49 = vpop.f32.mrf.mxu1 }
 0x1e3   : > { %2967 = vst.msk [vmem:[#allocation3 + $0xd8] sm:$0xff] %vm223_vm2, %v2919_v1  ;;  %3423 = vst.msk [vmem:[#allocation3 + $0xa0] sm:$0xff] %vm223_vm2, %v3375_v9  ;;  %v2918_v51 = vadd.f32 %v2870_v17, %v2735_v62  ;;  %v3378_v21 = vadd.f32 %v12860_v42, %v3330_v34  ;;  %v2881_v17 = vld [vmem:[#allocation3 + $0x128] sm:$0xff] }
 0x1e4   : > { %v12795_v3 = vpop.f32.mrf.mxu0  ;;  %v3329_v61 = vld [vmem:[#allocation3 + $0xb0] sm:$0xff]  ;;  %13090 = vmatmul.mubr.msk.f32.gmra.mxu0 %vm223_vm2, %v15483_v41  ;;  %v3198_v43 = vpop.f32.mrf.mxu1 }
 0x1e5   : > { %2966 = vst.msk [vmem:[#allocation3 + $0xd0] sm:$0xff] %vm223_vm2, %v2918_v51  ;;  %3426 = vst.msk [vmem:[#allocation3 + $0xb8] sm:$0xff] %vm223_vm2, %v3378_v21  ;;  %v2921_v33 = vadd.f32 %v12795_v3, %v2873_v35  ;;  %v3377_v6 = vadd.f32 %v3329_v61, %v3178_v7  ;;  %13092 = vmatprep.mubr.msk.f32.mxu0 %vm223_vm2, %v15499_v63  ;;  %v2880_v3 = vld [vmem:[#allocation3 + $0x120] sm:$0xff] }
 0x1e6   : > { %v2745_v22 = vpop.f32.mrf.mxu0  ;;  %v3332_v53 = vld [vmem:[#allocation3 + $0xc8] sm:$0xff]  ;;  %v12869_v36 = vpop.f32.mrf.mxu1 }
 0x1e7   : > { %2969 = vst.msk [vmem:[#allocation3 + $0xe8] sm:$0xff] %vm223_vm2, %v2921_v33  ;;  %3425 = vst.msk [vmem:[#allocation3 + $0xb0] sm:$0xff] %vm223_vm2, %v3377_v6  ;;  %v2920_v29 = vadd.f32 %v2872_v54, %v2745_v22  ;;  %v3380_v41 = vadd.f32 %v12863_v28, %v3332_v53  ;;  %v2879_v28 = vld [vmem:[#allocation3 + $0x118] sm:$0xff] }
 0x1e8   : > { %v12798_v14 = vpop.f32.mrf.mxu0  ;;  %v3331_v2 = vld [vmem:[#allocation3 + $0xc0] sm:$0xff]  ;;  %13093 = vmatmul.mubr.msk.f32.gmra.mxu0 %vm223_vm2, %v15503_v56  ;;  %v3208_v15 = vpop.f32.mrf.mxu1  ;;  %v2883_v6 = vld [vmem:[#allocation3 + $0x138] sm:$0xff] }
 0x1e9   : > { %2968 = vst.msk [vmem:[#allocation3 + $0xe0] sm:$0xff] %vm223_vm2, %v2920_v29  ;;  %3428 = vst.msk [vmem:[#allocation3 + $0xc8] sm:$0xff] %vm223_vm2, %v3380_v41  ;;  %v2923_v63 = vadd.f32 %v12798_v14, %v2875_v45  ;;  %v3379_v31 = vadd.f32 %v3331_v2, %v3188_v55  ;;  %13095 = vmatprep.mubr.msk.f32.mxu0 %vm223_vm2, %v15519_v10  ;;  %v2882_v29 = vld [vmem:[#allocation3 + $0x130] sm:$0xff] }
 0x1ea   : > { %v2755_v58 = vpop.f32.mrf.mxu0  ;;  %v3334_v27 = vld [vmem:[#allocation3 + $0xd8] sm:$0xff]  ;;  %v12872_v19 = vpop.f32.mrf.mxu1 }
 0x1eb   : > { %2971 = vst.msk [vmem:[#allocation3 + $0xf8] sm:$0xff] %vm223_vm2, %v2923_v63  ;;  %3427 = vst.msk [vmem:[#allocation3 + $0xc0] sm:$0xff] %vm223_vm2, %v3379_v31  ;;  %v2922_v42 = vadd.f32 %v2874_v13, %v2755_v58  ;;  %v3382_v56 = vadd.f32 %v12866_v49, %v3334_v27  ;;  %v13852_v13 = vld [vmem:[#allocation2 + $0x1a0] sm:$0xff] }
 0x1ec   : > { %v12801_v37 = vpop.f32.mrf.mxu0  ;;  %v3333_v32 = vld [vmem:[#allocation3 + $0xd0] sm:$0xff]  ;;  %13096 = vmatmul.mubr.msk.f32.gmra.mxu0 %vm223_vm2, %v15523_v4  ;;  %v3218_v23 = vpop.f32.mrf.mxu1  ;;  %v3503_v27 = vrot.slane %v13852_v13, 2 }
 0x1ed   : > { %2970 = vst.msk [vmem:[#allocation3 + $0xf0] sm:$0xff] %vm223_vm2, %v2922_v42  ;;  %3430 = vst.msk [vmem:[#allocation3 + $0xd8] sm:$0xff] %vm223_vm2, %v3382_v56  ;;  %v2925_v10 = vadd.f32 %v12801_v37, %v2877_v25  ;;  %v3381_v39 = vadd.f32 %v3333_v32, %v3198_v43  ;;  %13098 = vmatprep.mubr.msk.f32.mxu0 %vm223_vm2, %v15539_v0  ;;  %v2884_v42 = vld [vmem:[#allocation3 + $0x140] sm:$0xff]  ;;  %v13853_v25 = vld [vmem:[#allocation2 + $0x1a8] sm:$0xff] }
 0x1ee   : > { %v2765_v7 = vpop.f32.mrf.mxu0  ;;  %v3336_v30 = vld [vmem:[#allocation3 + $0xe8] sm:$0xff]  ;;  %v12875_v50 = vpop.f32.mrf.mxu1  ;;  %v3504_v32 = vrot.slane %v13853_v25, 2 }
 0x1ef   : > { %2973 = vst.msk [vmem:[#allocation3 + $0x108] sm:$0xff] %vm223_vm2, %v2925_v10  ;;  %3429 = vst.msk [vmem:[#allocation3 + $0xd0] sm:$0xff] %vm223_vm2, %v3381_v39  ;;  %v2924_v24 = vadd.f32 %v2876_v26, %v2765_v7  ;;  %v3384_v4 = vadd.f32 %v12869_v36, %v3336_v30  ;;  %v2887_v39 = vld [vmem:[#allocation3 + $0x158] sm:$0xff] }
 0x1f0   : > { %v12804_v8 = vpop.f32.mrf.mxu0  ;;  %v3335_v52 = vld [vmem:[#allocation3 + $0xe0] sm:$0xff]  ;;  %13099 = vmatmul.mubr.msk.f32.gmra.mxu0 %vm223_vm2, %v15543_v60  ;;  %v3228_v46 = vpop.f32.mrf.mxu1 }
 0x1f1   : > { %2972 = vst.msk [vmem:[#allocation3 + $0x100] sm:$0xff] %vm223_vm2, %v2924_v24  ;;  %3432 = vst.msk [vmem:[#allocation3 + $0xe8] sm:$0xff] %vm223_vm2, %v3384_v4  ;;  %v2927_v0 = vadd.f32 %v12804_v8, %v2879_v28  ;;  %v3383_v11 = vadd.f32 %v3335_v52, %v3208_v15  ;;  %13101 = vmatprep.mubr.msk.f32.mxu0 %vm223_vm2, %v15559_v12  ;;  %v2885_v15 = vld [vmem:[#allocation3 + $0x148] sm:$0xff]  ;;  %v2886_v28 = vld [vmem:[#allocation3 + $0x150] sm:$0xff] }
 0x1f2   : > { %v2775_v48 = vpop.f32.mrf.mxu0  ;;  %v3338_v55 = vld [vmem:[#allocation3 + $0xf8] sm:$0xff]  ;;  %v12878_v1 = vpop.f32.mrf.mxu1 }
 0x1f3   : > { %2975 = vst.msk [vmem:[#allocation3 + $0x118] sm:$0xff] %vm223_vm2, %v2927_v0  ;;  %3431 = vst.msk [vmem:[#allocation3 + $0xe0] sm:$0xff] %vm223_vm2, %v3383_v11  ;;  %v2926_v9 = vadd.f32 %v2878_v16, %v2775_v48  ;;  %v3386_v60 = vadd.f32 %v12872_v19, %v3338_v55 }
 0x1f4   : > { %v12807_v62 = vpop.f32.mrf.mxu0  ;;  %v3337_v34 = vld [vmem:[#allocation3 + $0xf0] sm:$0xff]  ;;  %13102 = vmatmul.mubr.msk.f32.gmra.mxu0 %vm223_vm2, %v15563_v38  ;;  %v3238_v49 = vpop.f32.mrf.mxu1 }
 0x1f5   : > { %2974 = vst.msk [vmem:[#allocation3 + $0x110] sm:$0xff] %vm223_vm2, %v2926_v9  ;;  %3434 = vst.msk [vmem:[#allocation3 + $0xf8] sm:$0xff] %vm223_vm2, %v3386_v60  ;;  %v2929_v12 = vadd.f32 %v12807_v62, %v2881_v17  ;;  %v3385_v51 = vadd.f32 %v3337_v34, %v3218_v23  ;;  %13104 = vmatprep.mubr.msk.f32.mxu0 %vm223_vm2, %v15579_v20  ;;  %v19166_v9 = vld [vmem:[#allocation5_spill] sm:$0xff]  ;;  %v2888_v34 = vld [vmem:[#allocation3 + $0x160] sm:$0xff] }
 0x1f6   : > { %v2785_v21 = vpop.f32.mrf.mxu0  ;;  %v3340_v35 = vld [vmem:[#allocation3 + $0x108] sm:$0xff]  ;;  %v12881_v61 = vpop.f32.mrf.mxu1  ;;  %v19167_v60 = vrot.slane %v19166_v9, 2 }
 0x1f7   : > { %2977 = vst.msk [vmem:[#allocation3 + $0x128] sm:$0xff] %vm223_vm2, %v2929_v12  ;;  %3433 = vst.msk [vmem:[#allocation3 + $0xf0] sm:$0xff] %vm223_vm2, %v3385_v51  ;;  %v2928_v43 = vadd.f32 %v2880_v3, %v2785_v21  ;;  %v3388_v38 = vadd.f32 %v12875_v50, %v3340_v35  ;;  %v19164_v50 = vrot.slane %v15615_v5, 2  ;;  %v2891_v35 = vld [vmem:[#allocation3 + $0x178] sm:$0xff] }
 0x1f8   : > { %v12810_v33 = vpop.f32.mrf.mxu0  ;;  %v3339_v22 = vld [vmem:[#allocation3 + $0x100] sm:$0xff]  ;;  %13105 = vmatmul.mubr.msk.f32.gmra.mxu0 %vm223_vm2, %v15583_v59  ;;  %v3248_v54 = vpop.f32.mrf.mxu1  ;;  %v3559_v62 = vsel %vm3505_vm5, %v3504_v32, %v19167_v60  ;;  %v4020_v60 = vld [vmem:[#allocation3 + $0x30] sm:$0xff] }
 0x1f9   : > { %2976 = vst.msk [vmem:[#allocation3 + $0x120] sm:$0xff] %vm223_vm2, %v2928_v43  ;;  %3436 = vst.msk [vmem:[#allocation3 + $0x108] sm:$0xff] %vm223_vm2, %v3388_v38  ;;  %v2931_v20 = vadd.f32 %v12810_v33, %v2883_v6  ;;  %v3387_v53 = vadd.f32 %v3339_v22, %v3228_v46  ;;  %13107 = vmatprep.mubr.msk.f32.mxu0 %vm223_vm2, %v15599_v47  ;;  %v3507_v4 = vsel %vm3505_vm5, %v19164_v50, %v3503_v27  ;;  %v2890_v22 = vld [vmem:[#allocation3 + $0x170] sm:$0xff] }
 0x1fa   : > { %v2795_v36 = vpop.f32.mrf.mxu0  ;;  %v3342_v41 = vld [vmem:[#allocation3 + $0x118] sm:$0xff]  ;;  %v12884_v14 = vpop.f32.mrf.mxu1 }
 0x1fb   : > { %2979 = vst.msk [vmem:[#allocation3 + $0x138] sm:$0xff] %vm223_vm2, %v2931_v20  ;;  %3435 = vst.msk [vmem:[#allocation3 + $0x100] sm:$0xff] %vm223_vm2, %v3387_v53  ;;  %v2930_v45 = vadd.f32 %v2882_v29, %v2795_v36  ;;  %v3390_v59 = vadd.f32 %v12878_v1, %v3342_v41 }
 0x1fc   : > { %v12813_v2 = vpop.f32.mrf.mxu0  ;;  %v3341_v63 = vld [vmem:[#allocation3 + $0x110] sm:$0xff]  ;;  %13108 = vmatmul.mubr.msk.f32.gmra.mxu0 %vm223_vm2, %v15603_v57  ;;  %v3258_v31 = vpop.f32.mrf.mxu1 }
 0x1fd   : > { %2978 = vst.msk [vmem:[#allocation3 + $0x130] sm:$0xff] %vm223_vm2, %v2930_v45  ;;  %3438 = vst.msk [vmem:[#allocation3 + $0x118] sm:$0xff] %vm223_vm2, %v3390_v59  ;;  %v2933_v47 = vadd.f32 %v12813_v2, %v2885_v15  ;;  %v3389_v58 = vadd.f32 %v3341_v63, %v3238_v49  ;;  %13110 = vmatprep.mubr.msk.f32.mxu0 %vm223_vm2, %v15613_v18 }
 0x1fe   : > { %v2805_v19 = vpop.f32.mrf.mxu0  ;;  %v3344_v56 = vld [vmem:[#allocation3 + $0x128] sm:$0xff]  ;;  %v12887_v37 = vpop.f32.mrf.mxu1 }
 0x1ff   : > { %2981 = vst.msk [vmem:[#allocation3 + $0x148] sm:$0xff] %vm223_vm2, %v2933_v47  ;;  %3437 = vst.msk [vmem:[#allocation3 + $0x110] sm:$0xff] %vm223_vm2, %v3389_v58  ;;  %v2932_v57 = vadd.f32 %v2884_v42, %v2805_v19  ;;  %v3392_v23 = vadd.f32 %v12881_v61, %v3344_v56  ;;  %v4017_v42 = vld [vmem:[#allocation3 + $0x18] sm:$0xff] }
 0x200   : > { %v12816_v10 = vpop.f32.mrf.mxu0  ;;  %v3343_v7 = vld [vmem:[#allocation3 + $0x120] sm:$0xff]  ;;  %13111 = vmatmul.mubr.msk.f32.gmra.mxu0 %vm223_vm2, %v15622_v40  ;;  %v3268_v18 = vpop.f32.mrf.mxu1  ;;  %v3506_v40 = vsel %vm3505_vm5, %v3503_v27, %v3504_v32 }
 0x201   : > { %2980 = vst.msk [vmem:[#allocation3 + $0x140] sm:$0xff] %vm223_vm2, %v2932_v57  ;;  %3440 = vst.msk [vmem:[#allocation3 + $0x128] sm:$0xff] %vm223_vm2, %v3392_v23  ;;  %v2935_v26 = vadd.f32 %v12816_v10, %v2887_v39  ;;  %v3391_v30 = vadd.f32 %v3343_v7, %v3248_v54  ;;  %13113 = vmatprep.mubr.msk.f32.mxu0 %vm223_vm2, %v15638_v44  ;;  %v2889_v44 = vld [vmem:[#allocation3 + $0x168] sm:$0xff]  ;;  %v4016_v23 = vld [vmem:[#allocation3 + $0x10] sm:$0xff] }
 0x202   : > { %v2815_v8 = vpop.f32.mrf.mxu0  ;;  %v3346_v52 = vld [vmem:[#allocation3 + $0x138] sm:$0xff]  ;;  %v12890_v46 = vpop.f32.mrf.mxu1 }
 0x203   : > { %2983 = vst.msk [vmem:[#allocation3 + $0x158] sm:$0xff] %vm223_vm2, %v2935_v26  ;;  %3439 = vst.msk [vmem:[#allocation3 + $0x120] sm:$0xff] %vm223_vm2, %v3391_v30  ;;  %v2934_v0 = vadd.f32 %v2886_v28, %v2815_v8  ;;  %v3394_v11 = vadd.f32 %v12884_v14, %v3346_v52  ;;  %v4015_v14 = vld [vmem:[#allocation3 + $0x8] sm:$0xff]  ;;  %v4018_v52 = vld [vmem:[#allocation3 + $0x20] sm:$0xff] }
 0x204   : > { %v12819_v48 = vpop.f32.mrf.mxu0  ;;  %v3345_v16 = vld [vmem:[#allocation3 + $0x130] sm:$0xff]  ;;  %13114 = vmatmul.mubr.msk.f32.gmra.mxu0 %vm223_vm2, %v3507_v4  ;;  %v3278_v5 = vpop.f32.mrf.mxu1  ;;  %v4019_v30 = vld [vmem:[#allocation3 + $0x28] sm:$0xff] }
 0x205   : > { %2982 = vst.msk [vmem:[#allocation3 + $0x150] sm:$0xff] %vm223_vm2, %v2934_v0  ;;  %3442 = vst.msk [vmem:[#allocation3 + $0x138] sm:$0xff] %vm223_vm2, %v3394_v11  ;;  %v2937_v55 = vadd.f32 %v12819_v48, %v2889_v44  ;;  %v3393_v1 = vadd.f32 %v3345_v16, %v3258_v31  ;;  %13116 = vmatprep.mubr.msk.f32.mxu0 %vm223_vm2, %v3506_v40  ;;  %v4014_v31 = vld [vmem:[#allocation3] sm:$0xff]  ;;  %v4021_v44 = vld [vmem:[#allocation3 + $0x38] sm:$0xff] }
 0x206   : > { %v2825_v17 = vpop.f32.mrf.mxu0  ;;  %v3348_v49 = vld [vmem:[#allocation3 + $0x148] sm:$0xff]  ;;  %v12893_v12 = vpop.f32.mrf.mxu1 }
 0x207   : > { %2985 = vst.msk [vmem:[#allocation3 + $0x168] sm:$0xff] %vm223_vm2, %v2937_v55  ;;  %3441 = vst.msk [vmem:[#allocation3 + $0x130] sm:$0xff] %vm223_vm2, %v3393_v1  ;;  %v2936_v51 = vadd.f32 %v2888_v34, %v2825_v17  ;;  %v3396_v21 = vadd.f32 %v12887_v37, %v3348_v49 }
 0x208   : > { %v12822_v3 = vpop.f32.mrf.mxu0  ;;  %v3347_v61 = vld [vmem:[#allocation3 + $0x140] sm:$0xff]  ;;  %13117 = vmatmul.mubr.msk.f32.gmra.mxu0 %vm223_vm2, %v3559_v62  ;;  %v3288_v43 = vpop.f32.mrf.mxu1 }
 0x209   : > { %2984 = vst.msk [vmem:[#allocation3 + $0x160] sm:$0xff] %vm223_vm2, %v2936_v51  ;;  %3444 = vst.msk [vmem:[#allocation3 + $0x148] sm:$0xff] %vm223_vm2, %v3396_v21  ;;  %v2939_v38 = vadd.f32 %v12822_v3, %v2891_v35  ;;  %v3395_v33 = vadd.f32 %v3347_v61, %v3268_v18  ;;  %v4023_v51 = vld [vmem:[#allocation3 + $0x48] sm:$0xff] }
 0x20a   : > { %v2835_v6 = vpop.f32.mrf.mxu0  ;;  %v3350_v54 = vld [vmem:[#allocation3 + $0x158] sm:$0xff]  ;;  %v12896_v20 = vpop.f32.mrf.mxu1 }
 0x20b   : > { %2987 = vst.msk [vmem:[#allocation3 + $0x178] sm:$0xff] %vm223_vm2, %v2939_v38  ;;  %3443 = vst.msk [vmem:[#allocation3 + $0x140] sm:$0xff] %vm223_vm2, %v3395_v33  ;;  %v2938_v53 = vadd.f32 %v2890_v22, %v2835_v6  ;;  %v3398_v36 = vadd.f32 %v12890_v46, %v3350_v54  ;;  %v4022_v38 = vld [vmem:[#allocation3 + $0x40] sm:$0xff] }
 0x20c   : > { %v3349_v29 = vld [vmem:[#allocation3 + $0x150] sm:$0xff]  ;;  %v12901_v41 = vpop.f32.mrf.mxu0  ;;  %v3298_v45 = vpop.f32.mrf.mxu1 }
 0x20d   : > { %2986 = vst.msk [vmem:[#allocation3 + $0x170] sm:$0xff] %vm223_vm2, %v2938_v53  ;;  %3446 = vst.msk [vmem:[#allocation3 + $0x158] sm:$0xff] %vm223_vm2, %v3398_v36  ;;  %v3397_v59 = vadd.f32 %v3349_v29, %v3278_v5  ;;  %v4063_v2 = vadd.f32 %v12901_v41, %v4015_v14  ;;  %v4025_v53 = vld [vmem:[#allocation3 + $0x58] sm:$0xff] }
 0x20e   : > { %v3352_v15 = vld [vmem:[#allocation3 + $0x168] sm:$0xff]  ;;  %v3775_v63 = vpop.f32.mrf.mxu0  ;;  %v12975_v47 = vpop.f32.mrf.mxu1 }
 0x20f   : > { %3445 = vst.msk [vmem:[#allocation3 + $0x150] sm:$0xff] %vm223_vm2, %v3397_v59  ;;  %4111 = vst.msk [vmem:[#allocation3 + $0x8] sm:$0xff] %vm223_vm2, %v4063_v2  ;;  %v3400_v58 = vadd.f32 %v12893_v12, %v3352_v15  ;;  %v4062_v13 = vadd.f32 %v4014_v31, %v3775_v63  ;;  %v4024_v59 = vld [vmem:[#allocation3 + $0x50] sm:$0xff] }
 0x210   : > { %v3351_v27 = vld [vmem:[#allocation3 + $0x160] sm:$0xff]  ;;  %v12904_v19 = vpop.f32.mrf.mxu0  ;;  %v4238_v56 = vpop.f32.mrf.mxu1 }
 0x211   : > { %3448 = vst.msk [vmem:[#allocation3 + $0x168] sm:$0xff] %vm223_vm2, %v3400_v58  ;;  %4110 = vst.msk [vmem:[#allocation3] sm:$0xff] %vm223_vm2, %v4062_v13  ;;  %v3399_v37 = vadd.f32 %v3351_v27, %v3288_v43  ;;  %v4065_v25 = vadd.f32 %v12904_v19, %v4017_v42  ;;  %v4027_v58 = vld [vmem:[#allocation3 + $0x68] sm:$0xff] }
 0x212   : > { %v3354_v32 = vld [vmem:[#allocation3 + $0x178] sm:$0xff]  ;;  %v3785_v57 = vpop.f32.mrf.mxu0  ;;  %v12978_v10 = vpop.f32.mrf.mxu1 }
 0x213   : > { %3447 = vst.msk [vmem:[#allocation3 + $0x160] sm:$0xff] %vm223_vm2, %v3399_v37  ;;  %4113 = vst.msk [vmem:[#allocation3 + $0x18] sm:$0xff] %vm223_vm2, %v4065_v25  ;;  %v3402_v39 = vadd.f32 %v12896_v20, %v3354_v32  ;;  %v4064_v7 = vadd.f32 %v4016_v23, %v3785_v57  ;;  %v4026_v37 = vld [vmem:[#allocation3 + $0x60] sm:$0xff] }
 0x214   : > { %v3353_v18 = vld [vmem:[#allocation3 + $0x170] sm:$0xff]  ;;  %v12907_v26 = vpop.f32.mrf.mxu0  ;;  %v4248_v50 = vpop.f32.mrf.mxu1 }
 0x215   : > { %3450 = vst.msk [vmem:[#allocation3 + $0x178] sm:$0xff] %vm223_vm2, %v3402_v39  ;;  %4112 = vst.msk [vmem:[#allocation3 + $0x10] sm:$0xff] %vm223_vm2, %v4064_v7  ;;  %v3401_v4 = vadd.f32 %v3353_v18, %v3298_v45  ;;  %v4067_v8 = vadd.f32 %v12907_v26, %v4019_v30  ;;  %v4029_v39 = vld [vmem:[#allocation3 + $0x78] sm:$0xff] }
 0x216   : > { %v3795_v28 = vpop.f32.mrf.mxu0  ;;  %v4478_v40 = vld [vmem:[#allocation3 + $0x8] sm:$0xff]  ;;  %v12981_v46 = vpop.f32.mrf.mxu1 }
 0x217   : > { %3449 = vst.msk [vmem:[#allocation3 + $0x170] sm:$0xff] %vm223_vm2, %v3401_v4  ;;  %4115 = vst.msk [vmem:[#allocation3 + $0x28] sm:$0xff] %vm223_vm2, %v4067_v8  ;;  %v4066_v0 = vadd.f32 %v4018_v52, %v3795_v28  ;;  %v4526_v11 = vadd.f32 %v12975_v47, %v4478_v40  ;;  %v4028_v4 = vld [vmem:[#allocation3 + $0x70] sm:$0xff] }
 0x218   : > { %v12910_v48 = vpop.f32.mrf.mxu0  ;;  %v4477_v16 = vld [vmem:[#allocation3] sm:$0xff]  ;;  %v4258_v5 = vpop.f32.mrf.mxu1 }
 0x219   : > { %4114 = vst.msk [vmem:[#allocation3 + $0x20] sm:$0xff] %vm223_vm2, %v4066_v0  ;;  %4574 = vst.msk [vmem:[#allocation3 + $0x8] sm:$0xff] %vm223_vm2, %v4526_v11  ;;  %v4069_v55 = vadd.f32 %v12910_v48, %v4021_v44  ;;  %v4525_v1 = vadd.f32 %v4477_v16, %v4238_v56  ;;  %v4031_v0 = vld [vmem:[#allocation3 + $0x88] sm:$0xff] }
 0x21a   : > { %v3805_v9 = vpop.f32.mrf.mxu0  ;;  %v4480_v62 = vld [vmem:[#allocation3 + $0x18] sm:$0xff]  ;;  %v12984_v17 = vpop.f32.mrf.mxu1 }
 0x21b   : > { %4117 = vst.msk [vmem:[#allocation3 + $0x38] sm:$0xff] %vm223_vm2, %v4069_v55  ;;  %4573 = vst.msk [vmem:[#allocation3] sm:$0xff] %vm223_vm2, %v4525_v1  ;;  %v4068_v34 = vadd.f32 %v4020_v60, %v3805_v9  ;;  %v4528_v49 = vadd.f32 %v12978_v10, %v4480_v62  ;;  %v4030_v55 = vld [vmem:[#allocation3 + $0x80] sm:$0xff] }
 0x21c   : > { %v12913_v12 = vpop.f32.mrf.mxu0  ;;  %v4479_v21 = vld [vmem:[#allocation3 + $0x10] sm:$0xff]  ;;  %v4268_v3 = vpop.f32.mrf.mxu1 }
 0x21d   : > { %4116 = vst.msk [vmem:[#allocation3 + $0x30] sm:$0xff] %vm223_vm2, %v4068_v34  ;;  %4576 = vst.msk [vmem:[#allocation3 + $0x18] sm:$0xff] %vm223_vm2, %v4528_v49  ;;  %v4071_v35 = vadd.f32 %v12913_v12, %v4023_v51  ;;  %v4527_v61 = vadd.f32 %v4479_v21, %v4248_v50  ;;  %v4033_v34 = vld [vmem:[#allocation3 + $0x98] sm:$0xff] }
 0x21e   : > { %v3815_v43 = vpop.f32.mrf.mxu0  ;;  %v4482_v33 = vld [vmem:[#allocation3 + $0x28] sm:$0xff]  ;;  %v12987_v6 = vpop.f32.mrf.mxu1 }
 0x21f   : > { %4119 = vst.msk [vmem:[#allocation3 + $0x48] sm:$0xff] %vm223_vm2, %v4071_v35  ;;  %4575 = vst.msk [vmem:[#allocation3 + $0x10] sm:$0xff] %vm223_vm2, %v4527_v61  ;;  %v4070_v22 = vadd.f32 %v4022_v38, %v3815_v43  ;;  %v4530_v54 = vadd.f32 %v12981_v46, %v4482_v33  ;;  %v4032_v35 = vld [vmem:[#allocation3 + $0x90] sm:$0xff] }
 0x220   : > { %v12916_v20 = vpop.f32.mrf.mxu0  ;;  %v4481_v36 = vld [vmem:[#allocation3 + $0x20] sm:$0xff]  ;;  %v4278_v29 = vpop.f32.mrf.mxu1 }
 0x221   : > { %4118 = vst.msk [vmem:[#allocation3 + $0x40] sm:$0xff] %vm223_vm2, %v4070_v22  ;;  %4578 = vst.msk [vmem:[#allocation3 + $0x28] sm:$0xff] %vm223_vm2, %v4530_v54  ;;  %v4073_v41 = vadd.f32 %v12916_v20, %v4025_v53  ;;  %v4529_v14 = vadd.f32 %v4481_v36, %v4258_v5  ;;  %v4035_v22 = vld [vmem:[#allocation3 + $0xa8] sm:$0xff] }
 0x222   : > { %v3825_v45 = vpop.f32.mrf.mxu0  ;;  %v4484_v2 = vld [vmem:[#allocation3 + $0x38] sm:$0xff]  ;;  %v12990_v15 = vpop.f32.mrf.mxu1 }
 0x223   : > { %4121 = vst.msk [vmem:[#allocation3 + $0x58] sm:$0xff] %vm223_vm2, %v4073_v41  ;;  %4577 = vst.msk [vmem:[#allocation3 + $0x20] sm:$0xff] %vm223_vm2, %v4529_v14  ;;  %v4072_v63 = vadd.f32 %v4024_v59, %v3825_v45  ;;  %v4532_v31 = vadd.f32 %v12984_v17, %v4484_v2  ;;  %v4034_v41 = vld [vmem:[#allocation3 + $0xa0] sm:$0xff] }
 0x224   : > { %v12919_v47 = vpop.f32.mrf.mxu0  ;;  %v4483_v13 = vld [vmem:[#allocation3 + $0x30] sm:$0xff]  ;;  %v4288_v27 = vpop.f32.mrf.mxu1 }
 0x225   : > { %4120 = vst.msk [vmem:[#allocation3 + $0x50] sm:$0xff] %vm223_vm2, %v4072_v63  ;;  %4580 = vst.msk [vmem:[#allocation3 + $0x38] sm:$0xff] %vm223_vm2, %v4532_v31  ;;  %v4075_v19 = vadd.f32 %v12919_v47, %v4027_v58  ;;  %v4531_v42 = vadd.f32 %v4483_v13, %v4268_v3  ;;  %v4037_v63 = vld [vmem:[#allocation3 + $0xb8] sm:$0xff] }
 0x226   : > { %v3835_v56 = vpop.f32.mrf.mxu0  ;;  %v4486_v25 = vld [vmem:[#allocation3 + $0x48] sm:$0xff]  ;;  %v12993_v32 = vpop.f32.mrf.mxu1 }
 0x227   : > { %4123 = vst.msk [vmem:[#allocation3 + $0x68] sm:$0xff] %vm223_vm2, %v4075_v19  ;;  %4579 = vst.msk [vmem:[#allocation3 + $0x30] sm:$0xff] %vm223_vm2, %v4531_v42  ;;  %v4074_v57 = vadd.f32 %v4026_v37, %v3835_v56  ;;  %v4534_v23 = vadd.f32 %v12987_v6, %v4486_v25  ;;  %v4036_v19 = vld [vmem:[#allocation3 + $0xb0] sm:$0xff] }
 0x228   : > { %v12922_v10 = vpop.f32.mrf.mxu0  ;;  %v4485_v7 = vld [vmem:[#allocation3 + $0x40] sm:$0xff]  ;;  %v4298_v18 = vpop.f32.mrf.mxu1 }
 0x229   : > { %4122 = vst.msk [vmem:[#allocation3 + $0x60] sm:$0xff] %vm223_vm2, %v4074_v57  ;;  %4582 = vst.msk [vmem:[#allocation3 + $0x48] sm:$0xff] %vm223_vm2, %v4534_v23  ;;  %v4077_v26 = vadd.f32 %v12922_v10, %v4029_v39  ;;  %v4533_v30 = vadd.f32 %v4485_v7, %v4278_v29  ;;  %v4039_v57 = vld [vmem:[#allocation3 + $0xc8] sm:$0xff] }
 0x22a   : > { %v3845_v50 = vpop.f32.mrf.mxu0  ;;  %v4488_v8 = vld [vmem:[#allocation3 + $0x58] sm:$0xff]  ;;  %v12996_v28 = vpop.f32.mrf.mxu1 }
 0x22b   : > { %4125 = vst.msk [vmem:[#allocation3 + $0x78] sm:$0xff] %vm223_vm2, %v4077_v26  ;;  %4581 = vst.msk [vmem:[#allocation3 + $0x40] sm:$0xff] %vm223_vm2, %v4533_v30  ;;  %v4076_v52 = vadd.f32 %v4028_v4, %v3845_v50  ;;  %v4536_v40 = vadd.f32 %v12990_v15, %v4488_v8  ;;  %v4038_v26 = vld [vmem:[#allocation3 + $0xc0] sm:$0xff] }
 0x22c   : > { %v12925_v46 = vpop.f32.mrf.mxu0  ;;  %v4487_v11 = vld [vmem:[#allocation3 + $0x50] sm:$0xff]  ;;  %v4308_v48 = vpop.f32.mrf.mxu1 }
 0x22d   : > { %4124 = vst.msk [vmem:[#allocation3 + $0x70] sm:$0xff] %vm223_vm2, %v4076_v52  ;;  %4584 = vst.msk [vmem:[#allocation3 + $0x58] sm:$0xff] %vm223_vm2, %v4536_v40  ;;  %v4079_v44 = vadd.f32 %v12925_v46, %v4031_v0  ;;  %v4535_v16 = vadd.f32 %v4487_v11, %v4288_v27  ;;  %v4041_v52 = vld [vmem:[#allocation3 + $0xd8] sm:$0xff] }
 0x22e   : > { %v3855_v5 = vpop.f32.mrf.mxu0  ;;  %v4490_v1 = vld [vmem:[#allocation3 + $0x68] sm:$0xff]  ;;  %v12999_v9 = vpop.f32.mrf.mxu1 }
 0x22f   : > { %4127 = vst.msk [vmem:[#allocation3 + $0x88] sm:$0xff] %vm223_vm2, %v4079_v44  ;;  %4583 = vst.msk [vmem:[#allocation3 + $0x50] sm:$0xff] %vm223_vm2, %v4535_v16  ;;  %v4078_v60 = vadd.f32 %v4030_v55, %v3855_v5  ;;  %v4538_v62 = vadd.f32 %v12993_v32, %v4490_v1  ;;  %v4040_v44 = vld [vmem:[#allocation3 + $0xd0] sm:$0xff] }
 0x230   : > { %v12928_v17 = vpop.f32.mrf.mxu0  ;;  %v4489_v49 = vld [vmem:[#allocation3 + $0x60] sm:$0xff]  ;;  %v4318_v12 = vpop.f32.mrf.mxu1 }
 0x231   : > { %4126 = vst.msk [vmem:[#allocation3 + $0x80] sm:$0xff] %vm223_vm2, %v4078_v60  ;;  %4586 = vst.msk [vmem:[#allocation3 + $0x68] sm:$0xff] %vm223_vm2, %v4538_v62  ;;  %v4081_v51 = vadd.f32 %v12928_v17, %v4033_v34  ;;  %v4537_v21 = vadd.f32 %v4489_v49, %v4298_v18  ;;  %v4043_v60 = vld [vmem:[#allocation3 + $0xe8] sm:$0xff] }
 0x232   : > { %v3865_v3 = vpop.f32.mrf.mxu0  ;;  %v4492_v61 = vld [vmem:[#allocation3 + $0x78] sm:$0xff]  ;;  %v13002_v43 = vpop.f32.mrf.mxu1 }
 0x233   : > { %4129 = vst.msk [vmem:[#allocation3 + $0x98] sm:$0xff] %vm223_vm2, %v4081_v51  ;;  %4585 = vst.msk [vmem:[#allocation3 + $0x60] sm:$0xff] %vm223_vm2, %v4537_v21  ;;  %v4080_v38 = vadd.f32 %v4032_v35, %v3865_v3  ;;  %v4540_v33 = vadd.f32 %v12996_v28, %v4492_v61  ;;  %v4042_v51 = vld [vmem:[#allocation3 + $0xe0] sm:$0xff] }
 0x234   : > { %v12931_v6 = vpop.f32.mrf.mxu0  ;;  %v4491_v54 = vld [vmem:[#allocation3 + $0x70] sm:$0xff]  ;;  %v4328_v20 = vpop.f32.mrf.mxu1 }
 0x235   : > { %4128 = vst.msk [vmem:[#allocation3 + $0x90] sm:$0xff] %vm223_vm2, %v4080_v38  ;;  %4588 = vst.msk [vmem:[#allocation3 + $0x78] sm:$0xff] %vm223_vm2, %v4540_v33  ;;  %v4083_v53 = vadd.f32 %v12931_v6, %v4035_v22  ;;  %v4539_v36 = vadd.f32 %v4491_v54, %v4308_v48  ;;  %v4045_v38 = vld [vmem:[#allocation3 + $0xf8] sm:$0xff] }
 0x236   : > { %v3875_v29 = vpop.f32.mrf.mxu0  ;;  %v4494_v14 = vld [vmem:[#allocation3 + $0x88] sm:$0xff]  ;;  %v13005_v45 = vpop.f32.mrf.mxu1 }
 0x237   : > { %4131 = vst.msk [vmem:[#allocation3 + $0xa8] sm:$0xff] %vm223_vm2, %v4083_v53  ;;  %4587 = vst.msk [vmem:[#allocation3 + $0x70] sm:$0xff] %vm223_vm2, %v4539_v36  ;;  %v4082_v59 = vadd.f32 %v4034_v41, %v3875_v29  ;;  %v4542_v2 = vadd.f32 %v12999_v9, %v4494_v14  ;;  %v4044_v53 = vld [vmem:[#allocation3 + $0xf0] sm:$0xff] }
 0x238   : > { %v12934_v15 = vpop.f32.mrf.mxu0  ;;  %v4493_v31 = vld [vmem:[#allocation3 + $0x80] sm:$0xff]  ;;  %v4338_v47 = vpop.f32.mrf.mxu1 }
 0x239   : > { %4130 = vst.msk [vmem:[#allocation3 + $0xa0] sm:$0xff] %vm223_vm2, %v4082_v59  ;;  %4590 = vst.msk [vmem:[#allocation3 + $0x88] sm:$0xff] %vm223_vm2, %v4542_v2  ;;  %v4085_v58 = vadd.f32 %v12934_v15, %v4037_v63  ;;  %v4541_v13 = vadd.f32 %v4493_v31, %v4318_v12  ;;  %v4047_v59 = vld [vmem:[#allocation3 + $0x108] sm:$0xff] }
 0x23a   : > { %v3885_v27 = vpop.f32.mrf.mxu0  ;;  %v4496_v42 = vld [vmem:[#allocation3 + $0x98] sm:$0xff]  ;;  %v13008_v56 = vpop.f32.mrf.mxu1 }
 0x23b   : > { %4133 = vst.msk [vmem:[#allocation3 + $0xb8] sm:$0xff] %vm223_vm2, %v4085_v58  ;;  %4589 = vst.msk [vmem:[#allocation3 + $0x80] sm:$0xff] %vm223_vm2, %v4541_v13  ;;  %v4084_v37 = vadd.f32 %v4036_v19, %v3885_v27  ;;  %v4544_v25 = vadd.f32 %v13002_v43, %v4496_v42  ;;  %v4046_v58 = vld [vmem:[#allocation3 + $0x100] sm:$0xff] }
 0x23c   : > { %v12937_v32 = vpop.f32.mrf.mxu0  ;;  %v4495_v23 = vld [vmem:[#allocation3 + $0x90] sm:$0xff]  ;;  %v4348_v10 = vpop.f32.mrf.mxu1 }
 0x23d   : > { %4132 = vst.msk [vmem:[#allocation3 + $0xb0] sm:$0xff] %vm223_vm2, %v4084_v37  ;;  %4592 = vst.msk [vmem:[#allocation3 + $0x98] sm:$0xff] %vm223_vm2, %v4544_v25  ;;  %v4087_v39 = vadd.f32 %v12937_v32, %v4039_v57  ;;  %v4543_v7 = vadd.f32 %v4495_v23, %v4328_v20  ;;  %v4049_v37 = vld [vmem:[#allocation3 + $0x118] sm:$0xff] }
 0x23e   : > { %v3895_v18 = vpop.f32.mrf.mxu0  ;;  %v4498_v30 = vld [vmem:[#allocation3 + $0xa8] sm:$0xff]  ;;  %v13011_v50 = vpop.f32.mrf.mxu1 }
 0x23f   : > { %4135 = vst.msk [vmem:[#allocation3 + $0xc8] sm:$0xff] %vm223_vm2, %v4087_v39  ;;  %4591 = vst.msk [vmem:[#allocation3 + $0x90] sm:$0xff] %vm223_vm2, %v4543_v7  ;;  %v4086_v4 = vadd.f32 %v4038_v26, %v3895_v18  ;;  %v4546_v8 = vadd.f32 %v13005_v45, %v4498_v30  ;;  %v4048_v39 = vld [vmem:[#allocation3 + $0x110] sm:$0xff] }
 0x240   : > { %v12940_v28 = vpop.f32.mrf.mxu0  ;;  %v4497_v40 = vld [vmem:[#allocation3 + $0xa0] sm:$0xff]  ;;  %v4358_v46 = vpop.f32.mrf.mxu1 }
 0x241   : > { %4134 = vst.msk [vmem:[#allocation3 + $0xc0] sm:$0xff] %vm223_vm2, %v4086_v4  ;;  %4594 = vst.msk [vmem:[#allocation3 + $0xa8] sm:$0xff] %vm223_vm2, %v4546_v8  ;;  %v4089_v0 = vadd.f32 %v12940_v28, %v4041_v52  ;;  %v4545_v11 = vadd.f32 %v4497_v40, %v4338_v47  ;;  %v4051_v4 = vld [vmem:[#allocation3 + $0x128] sm:$0xff] }
 0x242   : > { %v3905_v48 = vpop.f32.mrf.mxu0  ;;  %v4500_v16 = vld [vmem:[#allocation3 + $0xb8] sm:$0xff]  ;;  %v13014_v5 = vpop.f32.mrf.mxu1 }
 0x243   : > { %4137 = vst.msk [vmem:[#allocation3 + $0xd8] sm:$0xff] %vm223_vm2, %v4089_v0  ;;  %4593 = vst.msk [vmem:[#allocation3 + $0xa0] sm:$0xff] %vm223_vm2, %v4545_v11  ;;  %v4088_v55 = vadd.f32 %v4040_v44, %v3905_v48  ;;  %v4548_v1 = vadd.f32 %v13008_v56, %v4500_v16  ;;  %v4050_v0 = vld [vmem:[#allocation3 + $0x120] sm:$0xff] }
 0x244   : > { %v12943_v9 = vpop.f32.mrf.mxu0  ;;  %v4499_v62 = vld [vmem:[#allocation3 + $0xb0] sm:$0xff]  ;;  %v4368_v17 = vpop.f32.mrf.mxu1 }
 0x245   : > { %4136 = vst.msk [vmem:[#allocation3 + $0xd0] sm:$0xff] %vm223_vm2, %v4088_v55  ;;  %4596 = vst.msk [vmem:[#allocation3 + $0xb8] sm:$0xff] %vm223_vm2, %v4548_v1  ;;  %v4091_v34 = vadd.f32 %v12943_v9, %v4043_v60  ;;  %v4547_v49 = vadd.f32 %v4499_v62, %v4348_v10  ;;  %v4053_v55 = vld [vmem:[#allocation3 + $0x138] sm:$0xff] }
 0x246   : > { %v3915_v12 = vpop.f32.mrf.mxu0  ;;  %v4502_v21 = vld [vmem:[#allocation3 + $0xc8] sm:$0xff]  ;;  %v13017_v3 = vpop.f32.mrf.mxu1 }
 0x247   : > { %4139 = vst.msk [vmem:[#allocation3 + $0xe8] sm:$0xff] %vm223_vm2, %v4091_v34  ;;  %4595 = vst.msk [vmem:[#allocation3 + $0xb0] sm:$0xff] %vm223_vm2, %v4547_v49  ;;  %v4090_v35 = vadd.f32 %v4042_v51, %v3915_v12  ;;  %v4550_v61 = vadd.f32 %v13011_v50, %v4502_v21  ;;  %v4052_v34 = vld [vmem:[#allocation3 + $0x130] sm:$0xff] }
 0x248   : > { %v12946_v43 = vpop.f32.mrf.mxu0  ;;  %v4501_v33 = vld [vmem:[#allocation3 + $0xc0] sm:$0xff]  ;;  %v4378_v6 = vpop.f32.mrf.mxu1 }
 0x249   : > { %4138 = vst.msk [vmem:[#allocation3 + $0xe0] sm:$0xff] %vm223_vm2, %v4090_v35  ;;  %4598 = vst.msk [vmem:[#allocation3 + $0xc8] sm:$0xff] %vm223_vm2, %v4550_v61  ;;  %v4093_v22 = vadd.f32 %v12946_v43, %v4045_v38  ;;  %v4549_v54 = vadd.f32 %v4501_v33, %v4358_v46  ;;  %v4055_v35 = vld [vmem:[#allocation3 + $0x148] sm:$0xff] }
 0x24a   : > { %v3925_v20 = vpop.f32.mrf.mxu0  ;;  %v4504_v36 = vld [vmem:[#allocation3 + $0xd8] sm:$0xff]  ;;  %v13020_v29 = vpop.f32.mrf.mxu1 }
 0x24b   : > { %4141 = vst.msk [vmem:[#allocation3 + $0xf8] sm:$0xff] %vm223_vm2, %v4093_v22  ;;  %4597 = vst.msk [vmem:[#allocation3 + $0xc0] sm:$0xff] %vm223_vm2, %v4549_v54  ;;  %v4092_v41 = vadd.f32 %v4044_v53, %v3925_v20  ;;  %v4552_v14 = vadd.f32 %v13014_v5, %v4504_v36  ;;  %v4054_v22 = vld [vmem:[#allocation3 + $0x140] sm:$0xff] }
 0x24c   : > { %v12949_v45 = vpop.f32.mrf.mxu0  ;;  %v4503_v2 = vld [vmem:[#allocation3 + $0xd0] sm:$0xff]  ;;  %v4388_v15 = vpop.f32.mrf.mxu1 }
 0x24d   : > { %4140 = vst.msk [vmem:[#allocation3 + $0xf0] sm:$0xff] %vm223_vm2, %v4092_v41  ;;  %4600 = vst.msk [vmem:[#allocation3 + $0xd8] sm:$0xff] %vm223_vm2, %v4552_v14  ;;  %v4095_v63 = vadd.f32 %v12949_v45, %v4047_v59  ;;  %v4551_v31 = vadd.f32 %v4503_v2, %v4368_v17  ;;  %v4057_v41 = vld [vmem:[#allocation3 + $0x158] sm:$0xff] }
 0x24e   : > { %v3935_v47 = vpop.f32.mrf.mxu0  ;;  %v4506_v13 = vld [vmem:[#allocation3 + $0xe8] sm:$0xff]  ;;  %v13023_v27 = vpop.f32.mrf.mxu1 }
 0x24f   : > { %4143 = vst.msk [vmem:[#allocation3 + $0x108] sm:$0xff] %vm223_vm2, %v4095_v63  ;;  %4599 = vst.msk [vmem:[#allocation3 + $0xd0] sm:$0xff] %vm223_vm2, %v4551_v31  ;;  %v4094_v19 = vadd.f32 %v4046_v58, %v3935_v47  ;;  %v4554_v42 = vadd.f32 %v13017_v3, %v4506_v13  ;;  %v4056_v63 = vld [vmem:[#allocation3 + $0x150] sm:$0xff] }
 0x250   : > { %v12952_v56 = vpop.f32.mrf.mxu0  ;;  %v4505_v25 = vld [vmem:[#allocation3 + $0xe0] sm:$0xff]  ;;  %v4398_v32 = vpop.f32.mrf.mxu1 }
 0x251   : > { %4142 = vst.msk [vmem:[#allocation3 + $0x100] sm:$0xff] %vm223_vm2, %v4094_v19  ;;  %4602 = vst.msk [vmem:[#allocation3 + $0xe8] sm:$0xff] %vm223_vm2, %v4554_v42  ;;  %v4097_v57 = vadd.f32 %v12952_v56, %v4049_v37  ;;  %v4553_v23 = vadd.f32 %v4505_v25, %v4378_v6  ;;  %v4059_v19 = vld [vmem:[#allocation3 + $0x168] sm:$0xff] }
 0x252   : > { %v3945_v10 = vpop.f32.mrf.mxu0  ;;  %v4508_v7 = vld [vmem:[#allocation3 + $0xf8] sm:$0xff]  ;;  %v13026_v18 = vpop.f32.mrf.mxu1 }
 0x253   : > { %4145 = vst.msk [vmem:[#allocation3 + $0x118] sm:$0xff] %vm223_vm2, %v4097_v57  ;;  %4601 = vst.msk [vmem:[#allocation3 + $0xe0] sm:$0xff] %vm223_vm2, %v4553_v23  ;;  %v4096_v26 = vadd.f32 %v4048_v39, %v3945_v10  ;;  %v4556_v30 = vadd.f32 %v13020_v29, %v4508_v7  ;;  %v4058_v57 = vld [vmem:[#allocation3 + $0x160] sm:$0xff] }
 0x254   : > { %v12955_v50 = vpop.f32.mrf.mxu0  ;;  %v4507_v8 = vld [vmem:[#allocation3 + $0xf0] sm:$0xff]  ;;  %v4408_v28 = vpop.f32.mrf.mxu1 }
 0x255   : > { %4144 = vst.msk [vmem:[#allocation3 + $0x110] sm:$0xff] %vm223_vm2, %v4096_v26  ;;  %4604 = vst.msk [vmem:[#allocation3 + $0xf8] sm:$0xff] %vm223_vm2, %v4556_v30  ;;  %v4099_v52 = vadd.f32 %v12955_v50, %v4051_v4  ;;  %v4555_v40 = vadd.f32 %v4507_v8, %v4388_v15  ;;  %v4061_v26 = vld [vmem:[#allocation3 + $0x178] sm:$0xff] }
 0x256   : > { %v3955_v46 = vpop.f32.mrf.mxu0  ;;  %v4510_v11 = vld [vmem:[#allocation3 + $0x108] sm:$0xff]  ;;  %v13029_v48 = vpop.f32.mrf.mxu1 }
 0x257   : > { %4147 = vst.msk [vmem:[#allocation3 + $0x128] sm:$0xff] %vm223_vm2, %v4099_v52  ;;  %4603 = vst.msk [vmem:[#allocation3 + $0xf0] sm:$0xff] %vm223_vm2, %v4555_v40  ;;  %v4098_v44 = vadd.f32 %v4050_v0, %v3955_v46  ;;  %v4558_v16 = vadd.f32 %v13023_v27, %v4510_v11 }
 0x258   : > { %v12958_v5 = vpop.f32.mrf.mxu0  ;;  %v4509_v1 = vld [vmem:[#allocation3 + $0x100] sm:$0xff]  ;;  %v4418_v9 = vpop.f32.mrf.mxu1 }
 0x259   : > { %4146 = vst.msk [vmem:[#allocation3 + $0x120] sm:$0xff] %vm223_vm2, %v4098_v44  ;;  %4606 = vst.msk [vmem:[#allocation3 + $0x108] sm:$0xff] %vm223_vm2, %v4558_v16  ;;  %v4101_v60 = vadd.f32 %v12958_v5, %v4053_v55  ;;  %v4557_v62 = vadd.f32 %v4509_v1, %v4398_v32  ;;  %v4941_v44 = vld [vmem:[#allocation3 + $0x8] sm:$0xff] }
 0x25a   : > { %v3965_v17 = vpop.f32.mrf.mxu0  ;;  %v4512_v49 = vld [vmem:[#allocation3 + $0x118] sm:$0xff]  ;;  %v13032_v12 = vpop.f32.mrf.mxu1 }
 0x25b   : > { %4149 = vst.msk [vmem:[#allocation3 + $0x138] sm:$0xff] %vm223_vm2, %v4101_v60  ;;  %4605 = vst.msk [vmem:[#allocation3 + $0x100] sm:$0xff] %vm223_vm2, %v4557_v62  ;;  %v4100_v51 = vadd.f32 %v4052_v34, %v3965_v17  ;;  %v4560_v21 = vadd.f32 %v13026_v18, %v4512_v49 }
 0x25c   : > { %v12961_v3 = vpop.f32.mrf.mxu0  ;;  %v4511_v61 = vld [vmem:[#allocation3 + $0x110] sm:$0xff]  ;;  %v4428_v43 = vpop.f32.mrf.mxu1 }
 0x25d   : > { %4148 = vst.msk [vmem:[#allocation3 + $0x130] sm:$0xff] %vm223_vm2, %v4100_v51  ;;  %4608 = vst.msk [vmem:[#allocation3 + $0x118] sm:$0xff] %vm223_vm2, %v4560_v21  ;;  %v4103_v38 = vadd.f32 %v12961_v3, %v4055_v35  ;;  %v4559_v33 = vadd.f32 %v4511_v61, %v4408_v28  ;;  %v4060_v28 = vld [vmem:[#allocation3 + $0x170] sm:$0xff] }
 0x25e   : > { %v3975_v6 = vpop.f32.mrf.mxu0  ;;  %v4514_v54 = vld [vmem:[#allocation3 + $0x128] sm:$0xff]  ;;  %v13035_v20 = vpop.f32.mrf.mxu1  ;;  %v4942_v61 = vld [vmem:[#allocation3 + $0x10] sm:$0xff] }
 0x25f   : > { %4151 = vst.msk [vmem:[#allocation3 + $0x148] sm:$0xff] %vm223_vm2, %v4103_v38  ;;  %4607 = vst.msk [vmem:[#allocation3 + $0x110] sm:$0xff] %vm223_vm2, %v4559_v33  ;;  %v4102_v53 = vadd.f32 %v4054_v22, %v3975_v6  ;;  %v4562_v36 = vadd.f32 %v13029_v48, %v4514_v54  ;;  %v4945_v54 = vld [vmem:[#allocation3 + $0x28] sm:$0xff] }
 0x260   : > { %v12964_v29 = vpop.f32.mrf.mxu0  ;;  %v4513_v14 = vld [vmem:[#allocation3 + $0x120] sm:$0xff]  ;;  %v4438_v45 = vpop.f32.mrf.mxu1 }
 0x261   : > { %4150 = vst.msk [vmem:[#allocation3 + $0x140] sm:$0xff] %vm223_vm2, %v4102_v53  ;;  %4610 = vst.msk [vmem:[#allocation3 + $0x128] sm:$0xff] %vm223_vm2, %v4562_v36  ;;  %v4105_v59 = vadd.f32 %v12964_v29, %v4057_v41  ;;  %v4561_v2 = vadd.f32 %v4513_v14, %v4418_v9  ;;  %v4940_v9 = vld [vmem:[#allocation3] sm:$0xff] }
 0x262   : > { %v3985_v15 = vpop.f32.mrf.mxu0  ;;  %v4516_v31 = vld [vmem:[#allocation3 + $0x138] sm:$0xff]  ;;  %v13038_v47 = vpop.f32.mrf.mxu1  ;;  %v4944_v29 = vld [vmem:[#allocation3 + $0x20] sm:$0xff] }
 0x263   : > { %4153 = vst.msk [vmem:[#allocation3 + $0x158] sm:$0xff] %vm223_vm2, %v4105_v59  ;;  %4609 = vst.msk [vmem:[#allocation3 + $0x120] sm:$0xff] %vm223_vm2, %v4561_v2  ;;  %v4104_v58 = vadd.f32 %v4056_v63, %v3985_v15  ;;  %v4564_v13 = vadd.f32 %v13032_v12, %v4516_v31  ;;  %v4943_v12 = vld [vmem:[#allocation3 + $0x18] sm:$0xff]  ;;  %v4946_v31 = vld [vmem:[#allocation3 + $0x30] sm:$0xff] }
 0x264   : > { %v12967_v27 = vpop.f32.mrf.mxu0  ;;  %v4515_v42 = vld [vmem:[#allocation3 + $0x130] sm:$0xff]  ;;  %v4448_v56 = vpop.f32.mrf.mxu1  ;;  %v4947_v59 = vld [vmem:[#allocation3 + $0x38] sm:$0xff] }
 0x265   : > { %4152 = vst.msk [vmem:[#allocation3 + $0x150] sm:$0xff] %vm223_vm2, %v4104_v58  ;;  %4612 = vst.msk [vmem:[#allocation3 + $0x138] sm:$0xff] %vm223_vm2, %v4564_v13  ;;  %v4107_v37 = vadd.f32 %v12967_v27, %v4059_v19  ;;  %v4563_v25 = vadd.f32 %v4515_v42, %v4428_v43  ;;  %v4949_v19 = vld [vmem:[#allocation3 + $0x48] sm:$0xff] }
 0x266   : > { %v3995_v32 = vpop.f32.mrf.mxu0  ;;  %v4518_v23 = vld [vmem:[#allocation3 + $0x148] sm:$0xff]  ;;  %v13041_v10 = vpop.f32.mrf.mxu1 }
 0x267   : > { %4155 = vst.msk [vmem:[#allocation3 + $0x168] sm:$0xff] %vm223_vm2, %v4107_v37  ;;  %4611 = vst.msk [vmem:[#allocation3 + $0x130] sm:$0xff] %vm223_vm2, %v4563_v25  ;;  %v4106_v39 = vadd.f32 %v4058_v57, %v3995_v32  ;;  %v4566_v7 = vadd.f32 %v13035_v20, %v4518_v23  ;;  %v4948_v32 = vld [vmem:[#allocation3 + $0x40] sm:$0xff] }
 0x268   : > { %v12970_v18 = vpop.f32.mrf.mxu0  ;;  %v4517_v30 = vld [vmem:[#allocation3 + $0x140] sm:$0xff]  ;;  %v4458_v40 = vpop.f32.mrf.mxu1 }
 0x269   : > { %4154 = vst.msk [vmem:[#allocation3 + $0x160] sm:$0xff] %vm223_vm2, %v4106_v39  ;;  %4614 = vst.msk [vmem:[#allocation3 + $0x148] sm:$0xff] %vm223_vm2, %v4566_v7  ;;  %v4109_v50 = vadd.f32 %v12970_v18, %v4061_v26  ;;  %v4565_v4 = vadd.f32 %v4517_v30, %v4438_v45  ;;  %v4951_v7 = vld [vmem:[#allocation3 + $0x58] sm:$0xff] }
 0x26a   : > { %v4005_v8 = vpop.f32.mrf.mxu0  ;;  %v4520_v52 = vld [vmem:[#allocation3 + $0x158] sm:$0xff]  ;;  %v13044_v60 = vpop.f32.mrf.mxu1 }
 0x26b   : > { %4157 = vst.msk [vmem:[#allocation3 + $0x178] sm:$0xff] %vm223_vm2, %v4109_v50  ;;  %4613 = vst.msk [vmem:[#allocation3 + $0x140] sm:$0xff] %vm223_vm2, %v4565_v4  ;;  %v4108_v46 = vadd.f32 %v4060_v28, %v4005_v8  ;;  %v4568_v0 = vadd.f32 %v13038_v47, %v4520_v52  ;;  %v4950_v4 = vld [vmem:[#allocation3 + $0x50] sm:$0xff] }
 0x26c   : > { %v4519_v11 = vld [vmem:[#allocation3 + $0x150] sm:$0xff]  ;;  %v13049_v48 = vpop.f32.mrf.mxu0  ;;  %v4468_v43 = vpop.f32.mrf.mxu1 }
 0x26d   : > { %4156 = vst.msk [vmem:[#allocation3 + $0x170] sm:$0xff] %vm223_vm2, %v4108_v46  ;;  %4616 = vst.msk [vmem:[#allocation3 + $0x158] sm:$0xff] %vm223_vm2, %v4568_v0  ;;  %v4567_v16 = vadd.f32 %v4519_v11, %v4448_v56  ;;  %v4989_v5 = vadd.f32 %v13049_v48, %v4941_v44  ;;  %v4953_v46 = vld [vmem:[#allocation3 + $0x68] sm:$0xff] }
 0x26e   : > { %v4522_v55 = vld [vmem:[#allocation3 + $0x168] sm:$0xff]  ;;  %v4701_v1 = vpop.f32.mrf.mxu0 }
 0x26f   : > { %4615 = vst.msk [vmem:[#allocation3 + $0x150] sm:$0xff] %vm223_vm2, %v4567_v16  ;;  %5037 = vst.msk [vmem:[#allocation3 + $0x8] sm:$0xff] %vm223_vm2, %v4989_v5  ;;  %v4570_v62 = vadd.f32 %v13041_v10, %v4522_v55  ;;  %v4988_v17 = vadd.f32 %v4940_v9, %v4701_v1  ;;  %v4952_v5 = vld [vmem:[#allocation3 + $0x60] sm:$0xff]  ;;  %v4955_v9 = vld [vmem:[#allocation3 + $0x78] sm:$0xff] }
 0x270   : > { %v4521_v34 = vld [vmem:[#allocation3 + $0x160] sm:$0xff]  ;;  %v13052_v49 = vpop.f32.mrf.mxu0 }
 0x271   : > { %4618 = vst.msk [vmem:[#allocation3 + $0x168] sm:$0xff] %vm223_vm2, %v4570_v62  ;;  %5036 = vst.msk [vmem:[#allocation3] sm:$0xff] %vm223_vm2, %v4988_v17  ;;  %v4569_v51 = vadd.f32 %v4521_v34, %v4458_v40  ;;  %v4991_v21 = vadd.f32 %v13052_v49, %v4943_v12  ;;  %v4954_v12 = vld [vmem:[#allocation3 + $0x70] sm:$0xff] }
 0x272   : > { %v4524_v3 = vld [vmem:[#allocation3 + $0x178] sm:$0xff]  ;;  %v4711_v35 = vpop.f32.mrf.mxu0 }
 0x273   : > { %4617 = vst.msk [vmem:[#allocation3 + $0x160] sm:$0xff] %vm223_vm2, %v4569_v51  ;;  %5039 = vst.msk [vmem:[#allocation3 + $0x18] sm:$0xff] %vm223_vm2, %v4991_v21  ;;  %v4572_v38 = vadd.f32 %v13044_v60, %v4524_v3  ;;  %v4990_v33 = vadd.f32 %v4942_v61, %v4711_v35  ;;  %v4957_v35 = vld [vmem:[#allocation3 + $0x88] sm:$0xff] }
 0x274   : > { %v4523_v6 = vld [vmem:[#allocation3 + $0x170] sm:$0xff]  ;;  %v13055_v22 = vpop.f32.mrf.mxu0 }
 0x275   : > { %4620 = vst.msk [vmem:[#allocation3 + $0x178] sm:$0xff] %vm223_vm2, %v4572_v38  ;;  %5038 = vst.msk [vmem:[#allocation3 + $0x10] sm:$0xff] %vm223_vm2, %v4990_v33  ;;  %v4571_v20 = vadd.f32 %v4523_v6, %v4468_v43  ;;  %v4993_v53 = vadd.f32 %v13055_v22, %v4945_v54  ;;  %v4956_v22 = vld [vmem:[#allocation3 + $0x80] sm:$0xff] }
 0x276   : > { %v4721_v36 = vpop.f32.mrf.mxu0  ;;  %v15958_v15 = vld [vmem:[#allocation3 + $0x8] sm:$0xff] }
 0x277   : > { %4619 = vst.msk [vmem:[#allocation3 + $0x170] sm:$0xff] %vm223_vm2, %v4571_v20  ;;  %5041 = vst.msk [vmem:[#allocation3 + $0x28] sm:$0xff] %vm223_vm2, %v4993_v53  ;;  %v4992_v41 = vadd.f32 %v4944_v29, %v4721_v36  ;;  %v5117_v42 = vsel %vm223_vm2, %v15958_v15, 0.0  ;;  %v4959_v29 = vld [vmem:[#allocation3 + $0x98] sm:$0xff] }
 0x278   : > { %v15955_v14 = vld [vmem:[#allocation3] sm:$0xff]  ;;  %v13058_v45 = vpop.f32.mrf.mxu0 }
 0x279   : > { %5040 = vst.msk [vmem:[#allocation3 + $0x20] sm:$0xff] %vm223_vm2, %v4992_v41  ;;  %v4995_v2 = vadd.f32 %v13058_v45, %v4947_v59  ;;  %v5116_v47 = vsel %vm223_vm2, %v15955_v14, 0.0 }
 0x27a   : > { %v4731_v63 = vpop.f32.mrf.mxu0  ;;  %v15963_v13 = vld [vmem:[#allocation3 + $0x18] sm:$0xff]  ;;  %v5118_v37 = vadd.f32 %v5117_v42, %v5116_v47 }
 0x27b   : > { %5043 = vst.msk [vmem:[#allocation3 + $0x38] sm:$0xff] %vm223_vm2, %v4995_v2  ;;  %v4994_v58 = vadd.f32 %v4946_v31, %v4731_v63  ;;  %v5119_v57 = vsel %vm223_vm2, %v15963_v13, 0.0  ;;  %v4958_v31 = vld [vmem:[#allocation3 + $0x90] sm:$0xff] }
 0x27c   : > { %v13061_v27 = vpop.f32.mrf.mxu0  ;;  %v5120_v30 = vadd.f32 %v5119_v57, %v5118_v37 }
 0x27d   : > { %5042 = vst.msk [vmem:[#allocation3 + $0x30] sm:$0xff] %vm223_vm2, %v4994_v58  ;;  %v4997_v56 = vadd.f32 %v13061_v27, %v4949_v19  ;;  %v4961_v27 = vld [vmem:[#allocation3 + $0xa8] sm:$0xff] }
 0x27e   : > { %v4741_v25 = vpop.f32.mrf.mxu0 }
 0x27f   : > { %5045 = vst.msk [vmem:[#allocation3 + $0x48] sm:$0xff] %vm223_vm2, %v4997_v56  ;;  %v4996_v23 = vadd.f32 %v4948_v32, %v4741_v25  ;;  %v4960_v32 = vld [vmem:[#allocation3 + $0xa0] sm:$0xff] }
 0x280   : > { %v15971_v10 = vld [vmem:[#allocation3 + $0x20] sm:$0xff]  ;;  %v13064_v39 = vpop.f32.mrf.mxu0 }
 0x281   : > { %v5121_v18 = vsel %vm223_vm2, %v15971_v10, 0.0  ;;  %5044 = vst.msk [vmem:[#allocation3 + $0x40] sm:$0xff] %vm223_vm2, %v4996_v23  ;;  %v4999_v26 = vadd.f32 %v13064_v39, %v4951_v7  ;;  %v4963_v7 = vld [vmem:[#allocation3 + $0xb8] sm:$0xff] }
 0x282   : > { %v4751_v50 = vpop.f32.mrf.mxu0  ;;  %v5122_v28 = vadd.f32 %v5121_v18, %v5120_v30  ;;  %v15982_v48 = vld [vmem:[#allocation3 + $0x38] sm:$0xff] }
 0x283   : > { %5047 = vst.msk [vmem:[#allocation3 + $0x58] sm:$0xff] %vm223_vm2, %v4999_v26  ;;  %v4998_v8 = vadd.f32 %v4950_v4, %v4751_v50  ;;  %v5125_v60 = vsel %vm223_vm2, %v15982_v48, 0.0 }
 0x284   : > { %v15977_v52 = vld [vmem:[#allocation3 + $0x30] sm:$0xff]  ;;  %v13067_v40 = vpop.f32.mrf.mxu0 }
 0x285   : > { %v5123_v0 = vsel %vm223_vm2, %v15977_v52, 0.0  ;;  %5046 = vst.msk [vmem:[#allocation3 + $0x50] sm:$0xff] %vm223_vm2, %v4998_v8  ;;  %v5001_v11 = vadd.f32 %v13067_v40, %v4953_v46  ;;  %v4962_v8 = vld [vmem:[#allocation3 + $0xb0] sm:$0xff] }
 0x286   : > { %v5124_v44 = vadd.f32 %v5123_v0, %v5122_v28  ;;  %v4761_v16 = vpop.f32.mrf.mxu0  ;;  %v15988_v17 = vld [vmem:[#allocation3 + $0x48] sm:$0xff] }
 0x287   : > { %5049 = vst.msk [vmem:[#allocation3 + $0x68] sm:$0xff] %vm223_vm2, %v5001_v11  ;;  %v5000_v55 = vadd.f32 %v4952_v5, %v4761_v16  ;;  %v5127_v61 = vsel %vm223_vm2, %v15988_v17, 0.0  ;;  %v4965_v11 = vld [vmem:[#allocation3 + $0xc8] sm:$0xff] }
 0x288   : > { %v13070_v1 = vpop.f32.mrf.mxu0  ;;  %v5126_v34 = vadd.f32 %v5125_v60, %v5124_v44 }
 0x289   : > { %5048 = vst.msk [vmem:[#allocation3 + $0x60] sm:$0xff] %vm223_vm2, %v5000_v55  ;;  %v5003_v62 = vadd.f32 %v13070_v1, %v4955_v9  ;;  %v4964_v9 = vld [vmem:[#allocation3 + $0xc0] sm:$0xff] }
 0x28a   : > { %v4771_v49 = vpop.f32.mrf.mxu0  ;;  %v5128_v33 = vadd.f32 %v5127_v61, %v5126_v34  ;;  %v4967_v34 = vld [vmem:[#allocation3 + $0xd8] sm:$0xff]  ;;  %v4966_v61 = vld [vmem:[#allocation3 + $0xd0] sm:$0xff] }
 0x28b   : > { %5051 = vst.msk [vmem:[#allocation3 + $0x78] sm:$0xff] %vm223_vm2, %v5003_v62  ;;  %v5002_v51 = vadd.f32 %v4954_v12, %v4771_v49 }
 0x28c   : > { %v15991_v21 = vld [vmem:[#allocation3 + $0x50] sm:$0xff]  ;;  %v13073_v3 = vpop.f32.mrf.mxu0 }
 0x28d   : > { %v5129_v43 = vsel %vm223_vm2, %v15991_v21, 0.0  ;;  %5050 = vst.msk [vmem:[#allocation3 + $0x70] sm:$0xff] %vm223_vm2, %v5002_v51  ;;  %v5005_v38 = vadd.f32 %v13073_v3, %v4957_v35 }
 0x28e   : > { %v4781_v6 = vpop.f32.mrf.mxu0  ;;  %v5130_v20 = vadd.f32 %v5129_v43, %v5128_v33  ;;  %v16004_v59 = vld [vmem:[#allocation3 + $0x68] sm:$0xff] }
 0x28f   : > { %5053 = vst.msk [vmem:[#allocation3 + $0x88] sm:$0xff] %vm223_vm2, %v5005_v38  ;;  %v5004_v54 = vadd.f32 %v4956_v22, %v4781_v6  ;;  %v5133_v19 = vsel %vm223_vm2, %v16004_v59, 0.0  ;;  %v4969_v6 = vld [vmem:[#allocation3 + $0xe8] sm:$0xff] }
 0x290   : > { %v15999_v53 = vld [vmem:[#allocation3 + $0x60] sm:$0xff]  ;;  %v13076_v36 = vpop.f32.mrf.mxu0 }
 0x291   : > { %v5131_v41 = vsel %vm223_vm2, %v15999_v53, 0.0  ;;  %5052 = vst.msk [vmem:[#allocation3 + $0x80] sm:$0xff] %vm223_vm2, %v5004_v54  ;;  %v5007_v45 = vadd.f32 %v13076_v36, %v4959_v29 }
 0x292   : > { %v5132_v2 = vadd.f32 %v5131_v41, %v5130_v20  ;;  %v4791_v63 = vpop.f32.mrf.mxu0  ;;  %v16010_v56 = vld [vmem:[#allocation3 + $0x78] sm:$0xff]  ;;  %v4968_v41 = vld [vmem:[#allocation3 + $0xe0] sm:$0xff] }
 0x293   : > { %5055 = vst.msk [vmem:[#allocation3 + $0x98] sm:$0xff] %vm223_vm2, %v5007_v45  ;;  %v5006_v47 = vadd.f32 %v4958_v31, %v4791_v63  ;;  %v5135_v18 = vsel %vm223_vm2, %v16010_v56, 0.0 }
 0x294   : > { %v13079_v58 = vpop.f32.mrf.mxu0  ;;  %v5134_v37 = vadd.f32 %v5133_v19, %v5132_v2 }
 0x295   : > { %5054 = vst.msk [vmem:[#allocation3 + $0x90] sm:$0xff] %vm223_vm2, %v5006_v47  ;;  %v5009_v42 = vadd.f32 %v13079_v58, %v4961_v27  ;;  %v4971_v47 = vld [vmem:[#allocation3 + $0xf8] sm:$0xff] }
 0x296   : > { %v4801_v25 = vpop.f32.mrf.mxu0  ;;  %v5136_v50 = vadd.f32 %v5135_v18, %v5134_v37 }
 0x297   : > { %5057 = vst.msk [vmem:[#allocation3 + $0xa8] sm:$0xff] %vm223_vm2, %v5009_v42  ;;  %v5008_v57 = vadd.f32 %v4960_v32, %v4801_v25  ;;  %v4970_v25 = vld [vmem:[#allocation3 + $0xf0] sm:$0xff] }
 0x298   : > { %v16013_v23 = vld [vmem:[#allocation3 + $0x80] sm:$0xff]  ;;  %v13082_v39 = vpop.f32.mrf.mxu0 }
 0x299   : > { %v5137_v26 = vsel %vm223_vm2, %v16013_v23, 0.0  ;;  %5056 = vst.msk [vmem:[#allocation3 + $0xa0] sm:$0xff] %vm223_vm2, %v5008_v57  ;;  %v5011_v30 = vadd.f32 %v13082_v39, %v4963_v7  ;;  %v4973_v39 = vld [vmem:[#allocation3 + $0x108] sm:$0xff] }
 0x29a   : > { %v4811_v4 = vpop.f32.mrf.mxu0  ;;  %v5138_v40 = vadd.f32 %v5137_v26, %v5136_v50  ;;  %v16026_v5 = vld [vmem:[#allocation3 + $0x98] sm:$0xff] }
 0x29b   : > { %5059 = vst.msk [vmem:[#allocation3 + $0xb8] sm:$0xff] %vm223_vm2, %v5011_v30  ;;  %v5010_v28 = vadd.f32 %v4962_v8, %v4811_v4  ;;  %v5141_v49 = vsel %vm223_vm2, %v16026_v5, 0.0  ;;  %v4972_v4 = vld [vmem:[#allocation3 + $0x100] sm:$0xff] }
 0x29c   : > { %v16021_v46 = vld [vmem:[#allocation3 + $0x90] sm:$0xff]  ;;  %v13085_v0 = vpop.f32.mrf.mxu0 }
 0x29d   : > { %v5139_v44 = vsel %vm223_vm2, %v16021_v46, 0.0  ;;  %5058 = vst.msk [vmem:[#allocation3 + $0xb0] sm:$0xff] %vm223_vm2, %v5010_v28  ;;  %v5013_v16 = vadd.f32 %v13085_v0, %v4965_v11  ;;  %v4975_v0 = vld [vmem:[#allocation3 + $0x118] sm:$0xff] }
 0x29e   : > { %v5140_v55 = vadd.f32 %v5139_v44, %v5138_v40  ;;  %v4821_v1 = vpop.f32.mrf.mxu0  ;;  %v16032_v51 = vld [vmem:[#allocation3 + $0xa8] sm:$0xff] }
 0x29f   : > { %5061 = vst.msk [vmem:[#allocation3 + $0xc8] sm:$0xff] %vm223_vm2, %v5013_v16  ;;  %v5012_v60 = vadd.f32 %v4964_v9, %v4821_v1  ;;  %v5143_v22 = vsel %vm223_vm2, %v16032_v51, 0.0  ;;  %v4974_v9 = vld [vmem:[#allocation3 + $0x110] sm:$0xff] }
 0x2a0   : > { %v13088_v62 = vpop.f32.mrf.mxu0  ;;  %v5142_v3 = vadd.f32 %v5141_v49, %v5140_v55 }
 0x2a1   : > { %5060 = vst.msk [vmem:[#allocation3 + $0xc0] sm:$0xff] %vm223_vm2, %v5012_v60  ;;  %v5015_v12 = vadd.f32 %v13088_v62, %v4967_v34 }
 0x2a2   : > { %v4831_v35 = vpop.f32.mrf.mxu0  ;;  %v5144_v36 = vadd.f32 %v5143_v22, %v5142_v3 }
 0x2a3   : > { %5063 = vst.msk [vmem:[#allocation3 + $0xd8] sm:$0xff] %vm223_vm2, %v5015_v12  ;;  %v5014_v43 = vadd.f32 %v4966_v61, %v4831_v35  ;;  %v4977_v12 = vld [vmem:[#allocation3 + $0x128] sm:$0xff] }
 0x2a4   : > { %v16035_v38 = vld [vmem:[#allocation3 + $0xb0] sm:$0xff]  ;;  %v13091_v33 = vpop.f32.mrf.mxu0 }
 0x2a5   : > { %v5145_v54 = vsel %vm223_vm2, %v16035_v38, 0.0  ;;  %5062 = vst.msk [vmem:[#allocation3 + $0xd0] sm:$0xff] %vm223_vm2, %v5014_v43  ;;  %v5017_v20 = vadd.f32 %v13091_v33, %v4969_v6  ;;  %v4976_v6 = vld [vmem:[#allocation3 + $0x120] sm:$0xff] }
 0x2a6   : > { %v4841_v29 = vpop.f32.mrf.mxu0  ;;  %v5146_v2 = vadd.f32 %v5145_v54, %v5144_v36  ;;  %v16048_v19 = vld [vmem:[#allocation3 + $0xc8] sm:$0xff] }
 0x2a7   : > { %5065 = vst.msk [vmem:[#allocation3 + $0xe8] sm:$0xff] %vm223_vm2, %v5017_v20  ;;  %v5016_v45 = vadd.f32 %v4968_v41, %v4841_v29  ;;  %v5149_v7 = vsel %vm223_vm2, %v16048_v19, 0.0  ;;  %v4979_v20 = vld [vmem:[#allocation3 + $0x138] sm:$0xff] }
 0x2a8   : > { %v16043_v63 = vld [vmem:[#allocation3 + $0xc0] sm:$0xff]  ;;  %v13094_v31 = vpop.f32.mrf.mxu0 }
 0x2a9   : > { %v5147_v58 = vsel %vm223_vm2, %v16043_v63, 0.0  ;;  %5064 = vst.msk [vmem:[#allocation3 + $0xe0] sm:$0xff] %vm223_vm2, %v5016_v45  ;;  %v5019_v27 = vadd.f32 %v13094_v31, %v4971_v47  ;;  %v4978_v31 = vld [vmem:[#allocation3 + $0x130] sm:$0xff] }
 0x2aa   : > { %v5148_v42 = vadd.f32 %v5147_v58, %v5146_v2  ;;  %v4851_v37 = vpop.f32.mrf.mxu0  ;;  %v16054_v26 = vld [vmem:[#allocation3 + $0xd8] sm:$0xff] }
 0x2ab   : > { %5067 = vst.msk [vmem:[#allocation3 + $0xf8] sm:$0xff] %vm223_vm2, %v5019_v27  ;;  %v5018_v32 = vadd.f32 %v4970_v25, %v4851_v37  ;;  %v5151_v11 = vsel %vm223_vm2, %v16054_v26, 0.0 }
 0x2ac   : > { %v13097_v57 = vpop.f32.mrf.mxu0  ;;  %v5150_v30 = vadd.f32 %v5149_v7, %v5148_v42  ;;  %v4981_v42 = vld [vmem:[#allocation3 + $0x148] sm:$0xff]  ;;  %v4980_v7 = vld [vmem:[#allocation3 + $0x140] sm:$0xff] }
 0x2ad   : > { %5066 = vst.msk [vmem:[#allocation3 + $0xf0] sm:$0xff] %vm223_vm2, %v5018_v32  ;;  %v5021_v18 = vadd.f32 %v13097_v57, %v4973_v39 }
 0x2ae   : > { %v4861_v50 = vpop.f32.mrf.mxu0  ;;  %v5152_v55 = vadd.f32 %v5151_v11, %v5150_v30 }
 0x2af   : > { %5069 = vst.msk [vmem:[#allocation3 + $0x108] sm:$0xff] %vm223_vm2, %v5021_v18  ;;  %v5020_v8 = vadd.f32 %v4972_v4, %v4861_v50 }
 0x2b0   : > { %v16057_v28 = vld [vmem:[#allocation3 + $0xe0] sm:$0xff]  ;;  %v13100_v40 = vpop.f32.mrf.mxu0 }
 0x2b1   : > { %v5153_v44 = vsel %vm223_vm2, %v16057_v28, 0.0  ;;  %5068 = vst.msk [vmem:[#allocation3 + $0x100] sm:$0xff] %vm223_vm2, %v5020_v8  ;;  %v5023_v16 = vadd.f32 %v13100_v40, %v4975_v0  ;;  %v4983_v8 = vld [vmem:[#allocation3 + $0x158] sm:$0xff] }
 0x2b2   : > { %v4871_v1 = vpop.f32.mrf.mxu0  ;;  %v5154_v62 = vadd.f32 %v5153_v44, %v5152_v55  ;;  %v16070_v61 = vld [vmem:[#allocation3 + $0xf8] sm:$0xff]  ;;  %v4982_v55 = vld [vmem:[#allocation3 + $0x150] sm:$0xff] }
 0x2b3   : > { %5071 = vst.msk [vmem:[#allocation3 + $0x118] sm:$0xff] %vm223_vm2, %v5023_v16  ;;  %v5022_v60 = vadd.f32 %v4974_v9, %v4871_v1  ;;  %v5157_v36 = vsel %vm223_vm2, %v16070_v61, 0.0 }
 0x2b4   : > { %v16065_v34 = vld [vmem:[#allocation3 + $0xf0] sm:$0xff]  ;;  %v13103_v49 = vpop.f32.mrf.mxu0 }
 0x2b5   : > { %v5155_v3 = vsel %vm223_vm2, %v16065_v34, 0.0  ;;  %5070 = vst.msk [vmem:[#allocation3 + $0x110] sm:$0xff] %vm223_vm2, %v5022_v60  ;;  %v5025_v35 = vadd.f32 %v13103_v49, %v4977_v12  ;;  %v4985_v60 = vld [vmem:[#allocation3 + $0x168] sm:$0xff] }
 0x2b6   : > { %v5156_v43 = vadd.f32 %v5155_v3, %v5154_v62  ;;  %v4881_v33 = vpop.f32.mrf.mxu0  ;;  %v16076_v41 = vld [vmem:[#allocation3 + $0x108] sm:$0xff] }
 0x2b7   : > { %5073 = vst.msk [vmem:[#allocation3 + $0x128] sm:$0xff] %vm223_vm2, %v5025_v35  ;;  %v5024_v22 = vadd.f32 %v4976_v6, %v4881_v33  ;;  %v5159_v37 = vsel %vm223_vm2, %v16076_v41, 0.0 }
 0x2b8   : > { %v13106_v54 = vpop.f32.mrf.mxu0  ;;  %v5158_v45 = vadd.f32 %v5157_v36, %v5156_v43  ;;  %v4984_v43 = vld [vmem:[#allocation3 + $0x160] sm:$0xff] }
 0x2b9   : > { %5072 = vst.msk [vmem:[#allocation3 + $0x120] sm:$0xff] %vm223_vm2, %v5024_v22  ;;  %v5027_v29 = vadd.f32 %v13106_v54, %v4979_v20  ;;  %v4987_v54 = vld [vmem:[#allocation3 + $0x178] sm:$0xff] }
 0x2ba   : > { %v4891_v2 = vpop.f32.mrf.mxu0  ;;  %v5160_v57 = vadd.f32 %v5159_v37, %v5158_v45 }
 0x2bb   : > { %5075 = vst.msk [vmem:[#allocation3 + $0x138] sm:$0xff] %vm223_vm2, %v5027_v29  ;;  %v5026_v47 = vadd.f32 %v4978_v31, %v4891_v2  ;;  %v4986_v31 = vld [vmem:[#allocation3 + $0x170] sm:$0xff] }
 0x2bc   : > { %v16079_v58 = vld [vmem:[#allocation3 + $0x110] sm:$0xff]  ;;  %v13109_v27 = vpop.f32.mrf.mxu0 }
 0x2bd   : > { %v5161_v25 = vsel %vm223_vm2, %v16079_v58, 0.0  ;;  %5074 = vst.msk [vmem:[#allocation3 + $0x130] sm:$0xff] %vm223_vm2, %v5026_v47  ;;  %v5029_v32 = vadd.f32 %v13109_v27, %v4981_v42 }
 0x2be   : > { %v4901_v39 = vpop.f32.mrf.mxu0  ;;  %v5162_v30 = vadd.f32 %v5161_v25, %v5160_v57  ;;  %v16092_v11 = vld [vmem:[#allocation3 + $0x128] sm:$0xff] }
 0x2bf   : > { %5077 = vst.msk [vmem:[#allocation3 + $0x148] sm:$0xff] %vm223_vm2, %v5029_v32  ;;  %v5028_v18 = vadd.f32 %v4980_v7, %v4901_v39  ;;  %v5165_v62 = vsel %vm223_vm2, %v16092_v11, 0.0 }
 0x2c0   : > { %v16087_v50 = vld [vmem:[#allocation3 + $0x120] sm:$0xff]  ;;  %v13112_v4 = vpop.f32.mrf.mxu0 }
 0x2c1   : > { %v5163_v40 = vsel %vm223_vm2, %v16087_v50, 0.0  ;;  %5076 = vst.msk [vmem:[#allocation3 + $0x140] sm:$0xff] %vm223_vm2, %v5028_v18  ;;  %v5031_v0 = vadd.f32 %v13112_v4, %v4983_v8 }
 0x2c2   : > { %v5164_v44 = vadd.f32 %v5163_v40, %v5162_v30  ;;  %v4911_v16 = vpop.f32.mrf.mxu0  ;;  %v16098_v12 = vld [vmem:[#allocation3 + $0x138] sm:$0xff] }
 0x2c3   : > { %5079 = vst.msk [vmem:[#allocation3 + $0x158] sm:$0xff] %vm223_vm2, %v5031_v0  ;;  %v5030_v1 = vadd.f32 %v4982_v55, %v4911_v16  ;;  %v5167_v20 = vsel %vm223_vm2, %v16098_v12, 0.0 }
 0x2c4   : > { %v13115_v9 = vpop.f32.mrf.mxu0  ;;  %v5166_v3 = vadd.f32 %v5165_v62, %v5164_v44 }
 0x2c5   : > { %5078 = vst.msk [vmem:[#allocation3 + $0x150] sm:$0xff] %vm223_vm2, %v5030_v1  ;;  %v5033_v49 = vadd.f32 %v13115_v9, %v4985_v60  ;;  %v5548_v9 = vld [vmem:[%s19143_s2] sm:$0xf]  ;;  %v11167_v60 = vld [vmem:[%s19143_s2 + $0xc] sm:$0xf] }
 0x2c6   : > { %v4921_v35 = vpop.f32.mrf.mxu0  ;;  %v5168_v45 = vadd.f32 %v5167_v20, %v5166_v3  ;;  %13119 = vmatprep.subr.msk.mxu1 %vm533_vm0, %v5548_v9  ;;  %13193 = vmatprep.subr.msk.mxu0 %vm533_vm0, %v11167_v60  ;;  %v16141_v3 = vld [vmem:[%s19143_s2 + $0x18] sm:$0xf] }
 0x2c7   : > { %5081 = vst.msk [vmem:[#allocation3 + $0x168] sm:$0xff] %vm223_vm2, %v5033_v49  ;;  %v5032_v33 = vadd.f32 %v4984_v43, %v4921_v35  ;;  %13120 = vmatpush3.msk.msra.mxu1 %vm533_vm0, %v5548_v9  ;;  %13194 = vmatpush3.msk.msra.mxu0 %vm533_vm0, %v11167_v60 }
 0x2c8   : > { %v16101_v6 = vld [vmem:[#allocation3 + $0x140] sm:$0xff]  ;;  %v13118_v22 = vpop.f32.mrf.mxu0  ;;  %13267 = vmatprep.subr.msk.mxu1 %vm533_vm0, %v16141_v3 }
 0x2c9   : > { %v5169_v36 = vsel %vm223_vm2, %v16101_v6, 0.0  ;;  %5080 = vst.msk [vmem:[#allocation3 + $0x160] sm:$0xff] %vm223_vm2, %v5032_v33  ;;  %v5035_v29 = vadd.f32 %v13118_v22, %v4987_v54 }
 0x2ca   : > { %v4931_v2 = vpop.f32.mrf.mxu0  ;;  %v5170_v27 = vadd.f32 %v5169_v36, %v5168_v45  ;;  %v16109_v42 = vld [vmem:[#allocation3 + $0x158] sm:$0xff] }
 0x2cb   : > { %5083 = vst.msk [vmem:[#allocation3 + $0x178] sm:$0xff] %vm223_vm2, %v5035_v29  ;;  %v5034_v47 = vadd.f32 %v4986_v31, %v4931_v2  ;;  %v5173_v57 = vsel %vm223_vm2, %v16109_v42, 0.0 }
 0x2cc   : > { %v16111_v37 = vld [vmem:[#allocation3 + $0x150] sm:$0xff] }
 0x2cd   : > { %v5171_v25 = vsel %vm223_vm2, %v16111_v37, 0.0  ;;  %5082 = vst.msk [vmem:[#allocation3 + $0x170] sm:$0xff] %vm223_vm2, %v5034_v47 }
 0x2ce   : > { %v5172_v32 = vadd.f32 %v5171_v25, %v5170_v27  ;;  %v16118_v39 = vld [vmem:[#allocation3 + $0x168] sm:$0xff] }
 0x2cf   : > { %v5175_v18 = vsel %vm223_vm2, %v16118_v39, 0.0 }
 0x2d0   : > { %v5174_v7 = vadd.f32 %v5173_v57, %v5172_v32 }
 0x2d2   : > { %v5176_v30 = vadd.f32 %v5175_v18, %v5174_v7 }
 0x2d4   : > { %v16122_v4 = vld [vmem:[#allocation3 + $0x170] sm:$0xff] }
 0x2d5   : > { %v5177_v8 = vsel %vm223_vm2, %v16122_v4, 0.0 }
 0x2d6   : > { %v5178_v40 = vadd.f32 %v5177_v8, %v5176_v30 }
 0x2d8   : > { %v5179_v0 = vrot.slane %v5178_v40, 4 }
 0x2da   : > { %v5180_v44 = vadd.f32 %v5179_v0, %v5178_v40 }
 0x2dc   : > { %v5181_v16 = vrot.slane %v5180_v44, 2 }
 0x2de   : > { %v5182_v55 = vadd.f32 %v5181_v16, %v5180_v44 }
 0x2e0   : > { %v5183_v1 = vrot.slane %v5182_v55, 1 }
 0x2e2   : > { %v5184_v62 = vadd.f32 %v5183_v1, %v5182_v55 }
 0x2e4   : > { %v16136_v49 = vmul.f32 0.00390625, %v5184_v62 }
 0x2e6   : > { %v16145_v35 = vsub.f32 %v15955_v14, %v16136_v49  ;;  %v16149_v43 = vsub.f32 %v15958_v15, %v16136_v49  ;;  %v16155_v33 = vsub.f32 %v15963_v13, %v16136_v49  ;;  %v16159_v22 = vsub.f32 %v15971_v10, %v16136_v49 }
 0x2e7   : > { %v16167_v15 = vsub.f32 %v15977_v52, %v16136_v49  ;;  %v16173_v13 = vsub.f32 %v15982_v48, %v16136_v49  ;;  %v16181_v2 = vsub.f32 %v15988_v17, %v16136_v49  ;;  %v16188_v48 = vsub.f32 %v15991_v21, %v16136_v49 }
 0x2e8   : > { %v5218_v54 = vmul.f32 %v16145_v35, %v16145_v35  ;;  %v5219_v14 = vmul.f32 %v16149_v43, %v16149_v43  ;;  %v5220_v20 = vmul.f32 %v16155_v33, %v16155_v33  ;;  %v5221_v10 = vmul.f32 %v16159_v22, %v16159_v22 }
 0x2e9   : > { %v5222_v52 = vmul.f32 %v16167_v15, %v16167_v15  ;;  %v5223_v27 = vmul.f32 %v16173_v13, %v16173_v13  ;;  %v16195_v17 = vsub.f32 %v15999_v53, %v16136_v49  ;;  %v5224_v57 = vmul.f32 %v16181_v2, %v16181_v2 }
 0x2ea   : > { %v5250_v36 = vsel %vm223_vm2, %v5218_v54, 0.0  ;;  %v5251_v29 = vsel %vm223_vm2, %v5219_v14, 0.0  ;;  %v5253_v31 = vsel %vm223_vm2, %v5220_v20, 0.0  ;;  %v5255_v25 = vsel %vm223_vm2, %v5221_v10, 0.0 }
 0x2eb   : > { %v5252_v45 = vadd.f32 %v5251_v29, %v5250_v36  ;;  %v5257_v7 = vsel %vm223_vm2, %v5222_v52, 0.0  ;;  %v16202_v21 = vsub.f32 %v16004_v59, %v16136_v49  ;;  %v5225_v30 = vmul.f32 %v16188_v48, %v16188_v48 }
 0x2ec   : > { %v5259_v8 = vsel %vm223_vm2, %v5223_v27, 0.0  ;;  %v16209_v53 = vsub.f32 %v16010_v56, %v16136_v49  ;;  %v5226_v0 = vmul.f32 %v16195_v17, %v16195_v17  ;;  %v5261_v44 = vsel %vm223_vm2, %v5224_v57, 0.0 }
 0x2ed   : > { %v5254_v47 = vadd.f32 %v5253_v31, %v5252_v45  ;;  %v16216_v59 = vsub.f32 %v16013_v23, %v16136_v49  ;;  %v5227_v55 = vmul.f32 %v16202_v21, %v16202_v21  ;;  %v5263_v1 = vsel %vm223_vm2, %v5225_v30, 0.0 }
 0x2ee   : > { %v16223_v56 = vsub.f32 %v16021_v46, %v16136_v49  ;;  %v5228_v60 = vmul.f32 %v16209_v53, %v16209_v53  ;;  %v5265_v62 = vsel %vm223_vm2, %v5226_v0, 0.0  ;;  %v16230_v23 = vsub.f32 %v16026_v5, %v16136_v49 }
 0x2ef   : > { %v5256_v32 = vadd.f32 %v5255_v25, %v5254_v47  ;;  %v5229_v14 = vmul.f32 %v16216_v59, %v16216_v59  ;;  %v5267_v20 = vsel %vm223_vm2, %v5227_v55, 0.0  ;;  %v16237_v46 = vsub.f32 %v16032_v51, %v16136_v49 }
 0x2f0   : > { %v5230_v36 = vmul.f32 %v16223_v56, %v16223_v56  ;;  %v5269_v29 = vsel %vm223_vm2, %v5228_v60, 0.0  ;;  %v16244_v5 = vsub.f32 %v16035_v38, %v16136_v49  ;;  %v5231_v52 = vmul.f32 %v16230_v23, %v16230_v23 }
 0x2f1   : > { %v5258_v18 = vadd.f32 %v5257_v7, %v5256_v32  ;;  %v5271_v31 = vsel %vm223_vm2, %v5229_v14, 0.0  ;;  %v16251_v51 = vsub.f32 %v16043_v63, %v16136_v49  ;;  %v5232_v27 = vmul.f32 %v16237_v46, %v16237_v46 }
 0x2f2   : > { %v5273_v25 = vsel %vm223_vm2, %v5230_v36, 0.0  ;;  %v16258_v38 = vsub.f32 %v16048_v19, %v16136_v49  ;;  %v5233_v57 = vmul.f32 %v16244_v5, %v16244_v5  ;;  %v5275_v7 = vsel %vm223_vm2, %v5231_v52, 0.0 }
 0x2f3   : > { %v5260_v40 = vadd.f32 %v5259_v8, %v5258_v18  ;;  %v16265_v63 = vsub.f32 %v16054_v26, %v16136_v49  ;;  %v5234_v30 = vmul.f32 %v16251_v51, %v16251_v51  ;;  %v5277_v8 = vsel %vm223_vm2, %v5232_v27, 0.0 }
 0x2f4   : > { %v16272_v19 = vsub.f32 %v16057_v28, %v16136_v49  ;;  %v5235_v0 = vmul.f32 %v16258_v38, %v16258_v38  ;;  %v16279_v26 = vsub.f32 %v16065_v34, %v16136_v49  ;;  %v16286_v28 = vsub.f32 %v16070_v61, %v16136_v49 }
 0x2f5   : > { %v5262_v16 = vadd.f32 %v5261_v44, %v5260_v40  ;;  %v5279_v44 = vsel %vm223_vm2, %v5233_v57, 0.0  ;;  %v5236_v55 = vmul.f32 %v16265_v63, %v16265_v63  ;;  %v16293_v34 = vsub.f32 %v16076_v41, %v16136_v49 }
 0x2f6   : > { %v5237_v60 = vmul.f32 %v16272_v19, %v16272_v19  ;;  %v5238_v14 = vmul.f32 %v16279_v26, %v16279_v26  ;;  %v16300_v61 = vsub.f32 %v16079_v58, %v16136_v49  ;;  %v5239_v36 = vmul.f32 %v16286_v28, %v16286_v28 }
 0x2f7   : > { %v5264_v9 = vadd.f32 %v5263_v1, %v5262_v16  ;;  %v5281_v1 = vsel %vm223_vm2, %v5234_v30, 0.0  ;;  %v16307_v41 = vsub.f32 %v16087_v50, %v16136_v49  ;;  %v5240_v52 = vmul.f32 %v16293_v34, %v16293_v34 }
 0x2f8   : > { %v16314_v58 = vsub.f32 %v16092_v11, %v16136_v49  ;;  %v5241_v27 = vmul.f32 %v16300_v61, %v16300_v61  ;;  %v16321_v50 = vsub.f32 %v16098_v12, %v16136_v49  ;;  %v16328_v11 = vsub.f32 %v16101_v6, %v16136_v49 }
 0x2f9   : > { %v5266_v54 = vadd.f32 %v5265_v62, %v5264_v9  ;;  %v5283_v62 = vsel %vm223_vm2, %v5235_v0, 0.0  ;;  %v5242_v57 = vmul.f32 %v16307_v41, %v16307_v41  ;;  %v16335_v12 = vsub.f32 %v16111_v37, %v16136_v49 }
 0x2fa   : > { %v5243_v30 = vmul.f32 %v16314_v58, %v16314_v58  ;;  %v5244_v0 = vmul.f32 %v16321_v50, %v16321_v50  ;;  %v16342_v6 = vsub.f32 %v16109_v42, %v16136_v49  ;;  %v16349_v37 = vsub.f32 %v16118_v39, %v16136_v49 }
 0x2fb   : > { %v5268_v10 = vadd.f32 %v5267_v20, %v5266_v54  ;;  %v5285_v20 = vsel %vm223_vm2, %v5236_v55, 0.0  ;;  %v5245_v55 = vmul.f32 %v16328_v11, %v16328_v11  ;;  %v5217_v42 = vsub.f32 %v16122_v4, %v16136_v49 }
 0x2fd   : > { %v5270_v45 = vadd.f32 %v5269_v29, %v5268_v10  ;;  %v5287_v29 = vsel %vm223_vm2, %v5237_v60, 0.0  ;;  %v5246_v60 = vmul.f32 %v16335_v12, %v16335_v12 }
 0x2ff   : > { %v5272_v47 = vadd.f32 %v5271_v31, %v5270_v45  ;;  %v5289_v31 = vsel %vm223_vm2, %v5238_v14, 0.0  ;;  %v5247_v14 = vmul.f32 %v16342_v6, %v16342_v6  ;;  %v5305_v39 = vsel %vm223_vm2, %v5246_v60, 0.0 }
 0x301   : > { %v5274_v32 = vadd.f32 %v5273_v25, %v5272_v47  ;;  %v5291_v25 = vsel %vm223_vm2, %v5239_v36, 0.0  ;;  %v5248_v36 = vmul.f32 %v16349_v37, %v16349_v37 }
 0x303   : > { %v5276_v18 = vadd.f32 %v5275_v7, %v5274_v32  ;;  %v5293_v7 = vsel %vm223_vm2, %v5240_v52, 0.0  ;;  %v5307_v52 = vsel %vm223_vm2, %v5247_v14, 0.0 }
 0x305   : > { %v5278_v40 = vadd.f32 %v5277_v8, %v5276_v18  ;;  %v5295_v8 = vsel %vm223_vm2, %v5241_v27, 0.0 }
 0x307   : > { %v5280_v16 = vadd.f32 %v5279_v44, %v5278_v40  ;;  %v5297_v44 = vsel %vm223_vm2, %v5242_v57, 0.0 }
 0x309   : > { %v5282_v9 = vadd.f32 %v5281_v1, %v5280_v16  ;;  %v5299_v1 = vsel %vm223_vm2, %v5243_v30, 0.0 }
 0x30b   : > { %v5284_v54 = vadd.f32 %v5283_v62, %v5282_v9  ;;  %v5301_v62 = vsel %vm223_vm2, %v5244_v0, 0.0  ;;  %v16368_v0 = vld [vmem:[%s19143_s2 + $0x4] sm:$0xf] }
 0x30c   : > { %13341 = vmatprep.subr.msk.mxu0 %vm533_vm0, %v16368_v0 }
 0x30d   : > { %v5286_v10 = vadd.f32 %v5285_v20, %v5284_v54  ;;  %v5303_v20 = vsel %vm223_vm2, %v5245_v55, 0.0 }
 0x30f   : > { %v5288_v45 = vadd.f32 %v5287_v29, %v5286_v10 }
 0x311   : > { %v5290_v47 = vadd.f32 %v5289_v31, %v5288_v45  ;;  %v5249_v45 = vmul.f32 %v5217_v42, %v5217_v42 }
 0x313   : > { %v5292_v32 = vadd.f32 %v5291_v25, %v5290_v47  ;;  %v5309_v47 = vsel %vm223_vm2, %v5248_v36, 0.0  ;;  %v5311_v4 = vsel %vm223_vm2, %v5249_v45, 0.0 }
 0x315   : > { %v5294_v18 = vadd.f32 %v5293_v7, %v5292_v32 }
 0x317   : > { %v5296_v40 = vadd.f32 %v5295_v8, %v5294_v18 }
 0x319   : > { %v5298_v16 = vadd.f32 %v5297_v44, %v5296_v40 }
 0x31b   : > { %v5300_v9 = vadd.f32 %v5299_v1, %v5298_v16 }
 0x31d   : > { %v5302_v54 = vadd.f32 %v5301_v62, %v5300_v9 }
 0x31f   : > { %v5304_v10 = vadd.f32 %v5303_v20, %v5302_v54 }
 0x321   : > { %v5306_v29 = vadd.f32 %v5305_v39, %v5304_v10 }
 0x323   : > { %v5308_v31 = vadd.f32 %v5307_v52, %v5306_v29 }
 0x325   : > { %v5310_v27 = vadd.f32 %v5309_v47, %v5308_v31 }
 0x327   : > { %v5312_v49 = vadd.f32 %v5311_v4, %v5310_v27 }
 0x329   : > { %v5313_v25 = vrot.slane %v5312_v49, 4 }
 0x32b   : > { %v5314_v32 = vadd.f32 %v5313_v25, %v5312_v49 }
 0x32d   : > { %v5315_v57 = vrot.slane %v5314_v32, 2 }
 0x32f   : > { %v5316_v7 = vadd.f32 %v5315_v57, %v5314_v32 }
 0x331   : > { %v5317_v18 = vrot.slane %v5316_v7, 1 }
 0x333   : > { %v5318_v30 = vadd.f32 %v5317_v18, %v5316_v7 }
 0x335   : > { %v5319_v8 = vmul.f32 0.00390625, %v5318_v30 }
 0x337   : > { %v5320_v40 = vadd.f32 1e-05, %v5319_v8 }
 0x339   : > { %13794 = vrsqrt.f32 %v5320_v40 }
 0x346   : > { %v13795_v44 = vpop.eup %13794 }
 0x347   : > { %v5353_v16 = vmul.f32 %v13795_v44, %v5217_v42  ;;  %v5322_v55 = vmul.f32 %v13795_v44, %v16145_v35  ;;  %v5323_v1 = vmul.f32 %v13795_v44, %v16149_v43  ;;  %v5324_v9 = vmul.f32 %v13795_v44, %v16155_v33 }
 0x348   : > { %v5325_v60 = vmul.f32 %v13795_v44, %v16159_v22  ;;  %v5326_v62 = vmul.f32 %v13795_v44, %v16167_v15  ;;  %v5327_v54 = vmul.f32 %v13795_v44, %v16173_v13  ;;  %v5328_v14 = vmul.f32 %v13795_v44, %v16181_v2 }
 0x349   : > { %v5385_v20 = vmax.f32 %v5353_v16, 0.0  ;;  %v5329_v10 = vmul.f32 %v13795_v44, %v16188_v48  ;;  %v5330_v36 = vmul.f32 %v13795_v44, %v16195_v17  ;;  %v5331_v42 = vmul.f32 %v13795_v44, %v16202_v21 }
 0x34a   : > { %v5332_v35 = vmul.f32 %v13795_v44, %v16209_v53  ;;  %v5333_v43 = vmul.f32 %v13795_v44, %v16216_v59  ;;  %v5334_v33 = vmul.f32 %v13795_v44, %v16223_v56  ;;  %v5335_v22 = vmul.f32 %v13795_v44, %v16230_v23 }
 0x34b   : > { %v5336_v15 = vmul.f32 %v13795_v44, %v16237_v46  ;;  %v16388_v13 = vmul.f32 %v13795_v44, %v16244_v5  ;;  %v16391_v2 = vmul.f32 %v13795_v44, %v16251_v51  ;;  %v16394_v48 = vmul.f32 %v13795_v44, %v16258_v38  ;;  %5417 = vst.msk [vmem:[#allocation2 + $0x189] sm:$0xff] %vm223_vm2, %v5385_v20 }
 0x34c   : > { %v16398_v17 = vmul.f32 %v13795_v44, %v16265_v63  ;;  %v16401_v21 = vmul.f32 %v13795_v44, %v16272_v19  ;;  %v16404_v53 = vmul.f32 %v13795_v44, %v16279_v26  ;;  %v16407_v59 = vmul.f32 %v13795_v44, %v16286_v28 }
 0x34d   : > { %v16410_v56 = vmul.f32 %v13795_v44, %v16293_v34  ;;  %v16413_v23 = vmul.f32 %v13795_v44, %v16300_v61  ;;  %v16416_v46 = vmul.f32 %v13795_v44, %v16307_v41  ;;  %v16419_v5 = vmul.f32 %v13795_v44, %v16314_v58 }
 0x34e   : > { %v16422_v51 = vmul.f32 %v13795_v44, %v16321_v50  ;;  %v16425_v38 = vmul.f32 %v13795_v44, %v16328_v11  ;;  %v16428_v63 = vmul.f32 %v13795_v44, %v16335_v12  ;;  %v16431_v19 = vmul.f32 %v13795_v44, %v16342_v6 }
 0x34f   : > { %v16434_v26 = vmul.f32 %v13795_v44, %v16349_v37  ;;  %v5354_v28 = vmax.f32 %v5322_v55, 0.0  ;;  %v5355_v34 = vmax.f32 %v5323_v1, 0.0  ;;  %v5356_v61 = vmax.f32 %v5324_v9, 0.0 }
 0x350   : > { %v5357_v41 = vmax.f32 %v5325_v60, 0.0  ;;  %v5358_v58 = vmax.f32 %v5326_v62, 0.0  ;;  %v5359_v39 = vmax.f32 %v5327_v54, 0.0  ;;  %v5360_v50 = vmax.f32 %v5328_v14, 0.0 }
 0x351   : > { %v5361_v29 = vmax.f32 %v5329_v10, 0.0  ;;  %v5362_v45 = vmax.f32 %v5330_v36, 0.0  ;;  %v5363_v11 = vmax.f32 %v5331_v42, 0.0  ;;  %v5364_v52 = vmax.f32 %v5332_v35, 0.0  ;;  %5386 = vst.msk [vmem:[#allocation2 + $0x19] sm:$0xff] %vm223_vm2, %v5354_v28  ;;  %5387 = vst.msk [vmem:[#allocation2 + $0x21] sm:$0xff] %vm223_vm2, %v5355_v34 }
 0x352   : > { %5388 = vst.msk [vmem:[#allocation2 + $0x31] sm:$0xff] %vm223_vm2, %v5356_v61  ;;  %5418 = vst.msk [vmem:[#allocation2 + $0x1] sm:$0xff] %vm223_vm2, %v5356_v61  ;;  %v5365_v12 = vmax.f32 %v5333_v43, 0.0  ;;  %v5366_v6 = vmax.f32 %v5334_v33, 0.0  ;;  %v5367_v37 = vmax.f32 %v5335_v22, 0.0  ;;  %v5368_v31 = vmax.f32 %v5336_v15, 0.0 }
 0x353   : > { %5389 = vst.msk [vmem:[#allocation2 + $0x39] sm:$0xff] %vm223_vm2, %v5357_v41  ;;  %5390 = vst.msk [vmem:[#allocation2 + $0x49] sm:$0xff] %vm223_vm2, %v5358_v58  ;;  %v5474_v47 = vld [vmem:[#allocation2 + $0x18f] sm:$0x1]  ;;  %v5369_v27 = vmax.f32 %v16388_v13, 0.0  ;;  %v5370_v4 = vmax.f32 %v16391_v2, 0.0 }
 0x354   : > { %5391 = vst.msk [vmem:[#allocation2 + $0x51] sm:$0xff] %vm223_vm2, %v5359_v39  ;;  %5392 = vst.msk [vmem:[#allocation2 + $0x61] sm:$0xff] %vm223_vm2, %v5360_v50  ;;  %v5371_v49 = vmax.f32 %v16394_v48, 0.0  ;;  %v5372_v25 = vmax.f32 %v16398_v17, 0.0  ;;  %v5373_v32 = vmax.f32 %v16401_v21, 0.0  ;;  %v5374_v57 = vmax.f32 %v16404_v53, 0.0 }
 0x355   : > { %5419 = vst.msk [vmem:[#allocation2 + $0x9] sm:$0xff] %vm223_vm2, %v5357_v41  ;;  %5393 = vst.msk [vmem:[#allocation2 + $0x69] sm:$0xff] %vm223_vm2, %v5361_v29  ;;  %v5375_v7 = vmax.f32 %v16407_v59, 0.0  ;;  %v5376_v18 = vmax.f32 %v16410_v56, 0.0  ;;  %v5377_v30 = vmax.f32 %v16413_v23, 0.0  ;;  %v5378_v8 = vmax.f32 %v16416_v46, 0.0 }
 0x356   : > { %5394 = vst.msk [vmem:[#allocation2 + $0x79] sm:$0xff] %vm223_vm2, %v5362_v45  ;;  %5395 = vst.msk [vmem:[#allocation2 + $0x81] sm:$0xff] %vm223_vm2, %v5363_v11  ;;  %v5379_v40 = vmax.f32 %v16419_v5, 0.0  ;;  %v5380_v44 = vmax.f32 %v16422_v51, 0.0  ;;  %v5381_v16 = vmax.f32 %v16425_v38, 0.0  ;;  %v5382_v55 = vmax.f32 %v16428_v63, 0.0 }
 0x357   : > { %5396 = vst.msk [vmem:[#allocation2 + $0x91] sm:$0xff] %vm223_vm2, %v5364_v52  ;;  %5397 = vst.msk [vmem:[#allocation2 + $0x99] sm:$0xff] %vm223_vm2, %v5365_v12  ;;  %v5383_v1 = vmax.f32 %v16431_v19, 0.0  ;;  %v5384_v9 = vmax.f32 %v16434_v26, 0.0  ;;  %v16531_v28 = vld [vmem:[%s19143_s2 + $0x10] sm:$0xf] }
 0x358   : > { %5492 = vst.msk [vmem:[#allocation2 + $0x191] sm:$0x1] %vm279_vm3, %v5474_v47  ;;  %v5423_v62 = vld [vmem:[#allocation2 + $0x1a] sm:$0x1]  ;;  %v5459_v14 = vld [vmem:[#allocation2 + $0x27] sm:$0x1] }
 0x359   : > { %5398 = vst.msk [vmem:[#allocation2 + $0xa9] sm:$0xff] %vm223_vm2, %v5366_v6  ;;  %5399 = vst.msk [vmem:[#allocation2 + $0xb1] sm:$0xff] %vm223_vm2, %v5367_v37  ;;  %v5422_v60 = vld [vmem:[#allocation2 + $0x2] sm:$0x1]  ;;  %v5424_v20 = vld [vmem:[#allocation2 + $0x32] sm:$0x1] }
 0x35a   : > { %5400 = vst.msk [vmem:[#allocation2 + $0xc1] sm:$0xff] %vm223_vm2, %v5368_v31  ;;  %5401 = vst.msk [vmem:[#allocation2 + $0xc9] sm:$0xff] %vm223_vm2, %v5369_v27  ;;  %v5460_v10 = vld [vmem:[#allocation2 + $0x3f] sm:$0x1]  ;;  %v5425_v36 = vld [vmem:[#allocation2 + $0x4a] sm:$0x1] }
 0x35b   : > { %5402 = vst.msk [vmem:[#allocation2 + $0xd9] sm:$0xff] %vm223_vm2, %v5370_v4  ;;  %5403 = vst.msk [vmem:[#allocation2 + $0xe1] sm:$0xff] %vm223_vm2, %v5371_v49  ;;  %v5461_v42 = vld [vmem:[#allocation2 + $0x57] sm:$0x1]  ;;  %v5426_v35 = vld [vmem:[#allocation2 + $0x62] sm:$0x1] }
 0x35c   : > { %5404 = vst.msk [vmem:[#allocation2 + $0xf1] sm:$0xff] %vm223_vm2, %v5372_v25  ;;  %5405 = vst.msk [vmem:[#allocation2 + $0xf9] sm:$0xff] %vm223_vm2, %v5373_v32  ;;  %v5458_v54 = vld [vmem:[#allocation2 + $0xf] sm:$0x1]  ;;  %v16496_v33 = vld [vmem:[#allocation2 + $0x20] sm:$0xff] }
 0x35d   : > { %5406 = vst.msk [vmem:[#allocation2 + $0x109] sm:$0xff] %vm223_vm2, %v5374_v57  ;;  %5407 = vst.msk [vmem:[#allocation2 + $0x111] sm:$0xff] %vm223_vm2, %v5375_v7  ;;  %v5462_v43 = vld [vmem:[#allocation2 + $0x6f] sm:$0x1]  ;;  %v5427_v22 = vld [vmem:[#allocation2 + $0x7a] sm:$0x1] }
 0x35e   : > { %5408 = vst.msk [vmem:[#allocation2 + $0x121] sm:$0xff] %vm223_vm2, %v5376_v18  ;;  %5409 = vst.msk [vmem:[#allocation2 + $0x129] sm:$0xff] %vm223_vm2, %v5377_v30  ;;  %v5463_v15 = vld [vmem:[#allocation2 + $0x87] sm:$0x1]  ;;  %v16500_v13 = vld [vmem:[#allocation2 + $0x8] sm:$0xff]  ;;  %v6979_v63 = vrot.slane %v16496_v33, 1 }
 0x35f   : > { %5410 = vst.msk [vmem:[#allocation2 + $0x139] sm:$0xff] %vm223_vm2, %v5378_v8  ;;  %5411 = vst.msk [vmem:[#allocation2 + $0x141] sm:$0xff] %vm223_vm2, %v5379_v40  ;;  %v5428_v2 = vld [vmem:[#allocation2 + $0x92] sm:$0x1]  ;;  %v5464_v48 = vld [vmem:[#allocation2 + $0x9f] sm:$0x1] }
 0x360   : > { %5412 = vst.msk [vmem:[#allocation2 + $0x151] sm:$0xff] %vm223_vm2, %v5380_v44  ;;  %5413 = vst.msk [vmem:[#allocation2 + $0x159] sm:$0xff] %vm223_vm2, %v5381_v16  ;;  %v5429_v17 = vld [vmem:[#allocation2 + $0xaa] sm:$0x1]  ;;  %v5465_v21 = vld [vmem:[#allocation2 + $0xb7] sm:$0x1] }
 0x361   : > { %5414 = vst.msk [vmem:[#allocation2 + $0x169] sm:$0xff] %vm223_vm2, %v5382_v55  ;;  %5415 = vst.msk [vmem:[#allocation2 + $0x171] sm:$0xff] %vm223_vm2, %v5383_v1  ;;  %v5430_v56 = vld [vmem:[#allocation2 + $0xc2] sm:$0x1]  ;;  %v6976_v38 = vrot.slane %v16500_v13, 1  ;;  %v16575_v52 = vld [vmem:[#allocation2 + $0x38] sm:$0xff] }
 0x362   : > { %5416 = vst.msk [vmem:[#allocation2 + $0x181] sm:$0xff] %vm223_vm2, %v5384_v9  ;;  %5420 = vst.msk [vmem:[#allocation2 + $0x199] sm:$0xff] %vm223_vm2, %v5382_v55  ;;  %v5466_v58 = vld [vmem:[#allocation2 + $0xcf] sm:$0x1]  ;;  %v5431_v45 = vld [vmem:[#allocation2 + $0xda] sm:$0x1] }
 0x363   : > { %5421 = vst.msk [vmem:[#allocation2 + $0x1a1] sm:$0xff] %vm223_vm2, %v5383_v1  ;;  %v5467_v6 = vld [vmem:[#allocation2 + $0xe7] sm:$0x1]  ;;  %v5432_v31 = vld [vmem:[#allocation2 + $0xf2] sm:$0x1] }
 0x364   : > { %5440 = vst.msk [vmem:[#allocation2] sm:$0x1] %vm279_vm3, %v5422_v60  ;;  %5441 = vst.msk [vmem:[#allocation2 + $0x18] sm:$0x1] %vm279_vm3, %v5423_v62  ;;  %v5468_v27 = vld [vmem:[#allocation2 + $0xff] sm:$0x1] }
 0x365   : > { %5476 = vst.msk [vmem:[#allocation2 + $0x11] sm:$0x1] %vm279_vm3, %v5458_v54  ;;  %5477 = vst.msk [vmem:[#allocation2 + $0x29] sm:$0x1] %vm279_vm3, %v5459_v14  ;;  %v5433_v4 = vld [vmem:[#allocation2 + $0x10a] sm:$0x1] }
 0x366   : > { %5442 = vst.msk [vmem:[#allocation2 + $0x30] sm:$0x1] %vm279_vm3, %v5424_v20  ;;  %5478 = vst.msk [vmem:[#allocation2 + $0x41] sm:$0x1] %vm279_vm3, %v5460_v10  ;;  %v5469_v25 = vld [vmem:[#allocation2 + $0x117] sm:$0x1] }
 0x367   : > { %5443 = vst.msk [vmem:[#allocation2 + $0x48] sm:$0x1] %vm279_vm3, %v5425_v36  ;;  %5479 = vst.msk [vmem:[#allocation2 + $0x59] sm:$0x1] %vm279_vm3, %v5461_v42  ;;  %v5434_v32 = vld [vmem:[#allocation2 + $0x122] sm:$0x1] }
 0x368   : > { %5444 = vst.msk [vmem:[#allocation2 + $0x60] sm:$0x1] %vm279_vm3, %v5426_v35  ;;  %5480 = vst.msk [vmem:[#allocation2 + $0x71] sm:$0x1] %vm279_vm3, %v5462_v43  ;;  %v5470_v7 = vld [vmem:[#allocation2 + $0x12f] sm:$0x1] }
 0x369   : > { %5445 = vst.msk [vmem:[#allocation2 + $0x78] sm:$0x1] %vm279_vm3, %v5427_v22  ;;  %5481 = vst.msk [vmem:[#allocation2 + $0x89] sm:$0x1] %vm279_vm3, %v5463_v15  ;;  %v5435_v18 = vld [vmem:[#allocation2 + $0x13a] sm:$0x1] }
 0x36a   : > { %5446 = vst.msk [vmem:[#allocation2 + $0x90] sm:$0x1] %vm279_vm3, %v5428_v2  ;;  %5482 = vst.msk [vmem:[#allocation2 + $0xa1] sm:$0x1] %vm279_vm3, %v5464_v48  ;;  %v5471_v8 = vld [vmem:[#allocation2 + $0x147] sm:$0x1] }
 0x36b   : > { %v16506_v53 = vld [vmem:[#allocation2] sm:$0xff]  ;;  %v16508_v59 = vld [vmem:[#allocation2 + $0x18] sm:$0xff]  ;;  %5447 = vst.msk [vmem:[#allocation2 + $0xa8] sm:$0x1] %vm279_vm3, %v5429_v17  ;;  %5483 = vst.msk [vmem:[#allocation2 + $0xb9] sm:$0x1] %vm279_vm3, %v5465_v21 }
 0x36c   : > { %19168 = vst [vmem:[#allocation5_spill] sm:$0xff] %v16506_v53  ;;  %13121 = vmatprep.mubr.msk.f32.mxu1 %vm223_vm2, %v16506_v53  ;;  %v19151_v23 = vrot.slane %v16506_v53, 1  ;;  %13195 = vmatprep.mubr.msk.f32.mxu0 %vm223_vm2, %v16508_v59  ;;  %v6978_v46 = vrot.slane %v16508_v59, 1  ;;  %v5496_v5 = vld [vmem:[#allocation2 + $0x10] sm:$0xff]  ;;  %v16518_v51 = vld [vmem:[#allocation2 + $0x28] sm:$0xff]  ;;  %v19149_v34 = vrot.slane %v16506_v53, 2 }
 0x36d   : > { %19169 = vst [vmem:[#allocation6_spill] sm:$0xff] %v16518_v51  ;;  %5448 = vst.msk [vmem:[#allocation2 + $0xc0] sm:$0x1] %vm279_vm3, %v5430_v56  ;;  %13122 = vmatmul.mubr.msk.f32.vlgmr.msra.gmra.mxu1 %vm223_vm2, %v16500_v13  ;;  %13196 = vmatmul.mubr.msk.f32.vlgmr.msra.gmra.mxu0 %vm223_vm2, %v16496_v33  ;;  %v6977_v19 = vrot.slane %v5496_v5, 1  ;;  %v6980_v26 = vrot.slane %v16518_v51, 1  ;;  %v16565_v29 = vld [vmem:[#allocation2 + $0x30] sm:$0xff] }
 0x36e   : > { %13268 = vmatpush3.msk.msra.mxu1 %vm533_vm0, %v16141_v3  ;;  %13124 = vmatprep.mubr.msk.f32.mxu1 %vm223_vm2, %v5496_v5  ;;  %v16541_v61 = vsel %vm1872_vm4, %v19151_v23, %v6976_v38  ;;  %v16545_v41 = vsel %vm1872_vm4, %v6978_v46, %v6979_v63  ;;  %5484 = vst.msk [vmem:[#allocation2 + $0xd1] sm:$0x1] %vm279_vm3, %v5466_v58  ;;  %v8609_v11 = vrot.slane %v5496_v5, 2  ;;  %5449 = vst.msk [vmem:[#allocation2 + $0xd8] sm:$0x1] %vm279_vm3, %v5431_v45  ;;  %v16590_v47 = vld [vmem:[#allocation2 + $0x40] sm:$0xff] }
 0x36f   : > { %13198 = vmatprep.mubr.msk.f32.mxu0 %vm223_vm2, %v16518_v51  ;;  %13342 = vmatpush3.msk.msra.mxu0 %vm533_vm0, %v16368_v0  ;;  %v16553_v3 = vsel %vm1872_vm4, %v6976_v38, %v6977_v19  ;;  %v16557_v39 = vsel %vm1872_vm4, %v6977_v19, %v6978_v46  ;;  %v16563_v50 = vsel %vm1872_vm4, %v6979_v63, %v6980_v26  ;;  %v8608_v0 = vrot.slane %v16500_v13, 2  ;;  %v16597_v49 = vld [vmem:[#allocation2 + $0x48] sm:$0xff]  ;;  %v5436_v40 = vld [vmem:[#allocation2 + $0x152] sm:$0x1]  ;;  %v5472_v16 = vld [vmem:[#allocation2 + $0x15f] sm:$0x1] }
 0x370   : > { %13415 = vmatprep.subr.msk.mxu1 %vm533_vm0, %v16531_v28  ;;  %v8610_v12 = vrot.slane %v16508_v59, 2  ;;  %5485 = vst.msk [vmem:[#allocation2 + $0xe9] sm:$0x1] %vm279_vm3, %v5467_v6  ;;  %5450 = vst.msk [vmem:[#allocation2 + $0xf0] sm:$0x1] %vm279_vm3, %v5432_v31  ;;  %v16619_v44 = vld [vmem:[#allocation2 + $0x50] sm:$0xff] }
 0x371   : > { %13125 = vmatmul.mubr.msk.f32.gmra.mxu1 %vm223_vm2, %v16508_v59  ;;  %13199 = vmatmul.mubr.msk.f32.gmra.mxu0 %vm223_vm2, %v16565_v29  ;;  %v16587_v37 = vsel %vm3505_vm5, %v19149_v34, %v8608_v0  ;;  %5486 = vst.msk [vmem:[#allocation2 + $0x101] sm:$0x1] %vm279_vm3, %v5468_v27  ;;  %5451 = vst.msk [vmem:[#allocation2 + $0x108] sm:$0x1] %vm279_vm3, %v5433_v4  ;;  %v16603_v57 = vsel %vm3505_vm5, %v8608_v0, %v8609_v11  ;;  %v16627_v55 = vld [vmem:[#allocation2 + $0x58] sm:$0xff]  ;;  %v16637_v62 = vld [vmem:[#allocation2 + $0x60] sm:$0xff] }
 0x372   : > { %13127 = vmatprep.mubr.msk.f32.mxu1 %vm223_vm2, %v16496_v33  ;;  %13201 = vmatprep.mubr.msk.f32.mxu0 %vm223_vm2, %v16575_v52  ;;  %19170 = vst [vmem:[#allocation7_spill] sm:$0xff] %v16603_v57  ;;  %5487 = vst.msk [vmem:[#allocation2 + $0x119] sm:$0x1] %vm279_vm3, %v5469_v25  ;;  %v16615_v30 = vsel %vm3505_vm5, %v8609_v11, %v8610_v12  ;;  %v5437_v1 = vld [vmem:[#allocation2 + $0x16a] sm:$0x1]  ;;  %v16650_v10 = vld [vmem:[#allocation2 + $0x70] sm:$0xff] }
 0x373   : > { %5452 = vst.msk [vmem:[#allocation2 + $0x120] sm:$0x1] %vm279_vm3, %v5434_v32  ;;  %19171 = vst [vmem:[#allocation8_spill] sm:$0xff] %v16615_v30  ;;  %v5473_v9 = vld [vmem:[#allocation2 + $0x177] sm:$0x1]  ;;  %v16643_v54 = vld [vmem:[#allocation2 + $0x68] sm:$0xff] }
 0x374   : > { %5488 = vst.msk [vmem:[#allocation2 + $0x131] sm:$0x1] %vm279_vm3, %v5470_v7  ;;  %5453 = vst.msk [vmem:[#allocation2 + $0x138] sm:$0x1] %vm279_vm3, %v5435_v18  ;;  %v5438_v60 = vld [vmem:[#allocation2 + $0x182] sm:$0x1] }
 0x375   : > { %13128 = vmatmul.mubr.msk.f32.gmra.mxu1 %vm223_vm2, %v16518_v51  ;;  %13202 = vmatmul.mubr.msk.f32.gmra.mxu0 %vm223_vm2, %v16590_v47  ;;  %5489 = vst.msk [vmem:[#allocation2 + $0x149] sm:$0x1] %vm279_vm3, %v5471_v8  ;;  %5454 = vst.msk [vmem:[#allocation2 + $0x150] sm:$0x1] %vm279_vm3, %v5436_v40  ;;  %v5439_v14 = vld [vmem:[#allocation2 + $0x19a] sm:$0x1] }
 0x376   : > { %13130 = vmatprep.mubr.msk.f32.mxu1 %vm223_vm2, %v16565_v29  ;;  %13204 = vmatprep.mubr.msk.f32.mxu0 %vm223_vm2, %v16597_v49  ;;  %5490 = vst.msk [vmem:[#allocation2 + $0x161] sm:$0x1] %vm279_vm3, %v5472_v16  ;;  %5455 = vst.msk [vmem:[#allocation2 + $0x168] sm:$0x1] %vm279_vm3, %v5437_v1  ;;  %v5475_v20 = vld [vmem:[#allocation2 + $0x1a7] sm:$0x1] }
 0x377   : > { %5491 = vst.msk [vmem:[#allocation2 + $0x179] sm:$0x1] %vm279_vm3, %v5473_v9  ;;  %5456 = vst.msk [vmem:[#allocation2 + $0x180] sm:$0x1] %vm279_vm3, %v5438_v60  ;;  %v16657_v36 = vld [vmem:[#allocation2 + $0x78] sm:$0xff]  ;;  %v19150_v42 = vrot.slane %v16518_v51, 2 }
 0x378   : > { %5457 = vst.msk [vmem:[#allocation2 + $0x198] sm:$0x1] %vm279_vm3, %v5439_v14  ;;  %5493 = vst.msk [vmem:[#allocation2 + $0x1a9] sm:$0x1] %vm279_vm3, %v5475_v20  ;;  %v16664_v35 = vld [vmem:[#allocation2 + $0x80] sm:$0xff]  ;;  %v16670_v43 = vld [vmem:[#allocation2 + $0x88] sm:$0xff] }
 0x379   : > { %13131 = vmatmul.mubr.msk.f32.gmra.mxu1 %vm223_vm2, %v16575_v52  ;;  %13205 = vmatmul.mubr.msk.f32.gmra.mxu0 %vm223_vm2, %v16619_v44  ;;  %v8611_v22 = vrot.slane %v16496_v33, 2  ;;  %v16677_v15 = vld [vmem:[#allocation2 + $0x90] sm:$0xff]  ;;  %v16695_v33 = vld [vmem:[#allocation2 + $0x98] sm:$0xff]  ;;  %v16701_v48 = vld [vmem:[#allocation2 + $0xa0] sm:$0xff] }
 0x37a   : > { %13133 = vmatprep.mubr.msk.f32.mxu1 %vm223_vm2, %v16590_v47  ;;  %13207 = vmatprep.mubr.msk.f32.mxu0 %vm223_vm2, %v16627_v55  ;;  %v16707_v17 = vld [vmem:[#allocation2 + $0xa8] sm:$0xff]  ;;  %v16713_v21 = vld [vmem:[#allocation2 + $0xb0] sm:$0xff]  ;;  %v16719_v59 = vld [vmem:[#allocation2 + $0xb8] sm:$0xff] }
 0x37b   : > { %v16683_v13 = vsel %vm3505_vm5, %v8610_v12, %v8611_v22  ;;  %v16689_v2 = vsel %vm3505_vm5, %v8611_v22, %v19150_v42  ;;  %v16725_v56 = vld [vmem:[#allocation2 + $0xc0] sm:$0xff]  ;;  %v16731_v46 = vld [vmem:[#allocation2 + $0xc8] sm:$0xff]  ;;  %v16737_v5 = vld [vmem:[#allocation2 + $0xd0] sm:$0xff] }
 0x37c   : > { %19172 = vst [vmem:[#allocation9_spill] sm:$0xff] %v16689_v2  ;;  %v16743_v38 = vld [vmem:[#allocation2 + $0xd8] sm:$0xff]  ;;  %v16749_v63 = vld [vmem:[#allocation2 + $0xe0] sm:$0xff]  ;;  %v16755_v19 = vld [vmem:[#allocation2 + $0xe8] sm:$0xff] }
 0x37d   : > { %13134 = vmatmul.mubr.msk.f32.gmra.mxu1 %vm223_vm2, %v16597_v49  ;;  %13208 = vmatmul.mubr.msk.f32.gmra.mxu0 %vm223_vm2, %v16637_v62  ;;  %v16761_v58 = vld [vmem:[#allocation2 + $0xf0] sm:$0xff]  ;;  %v16767_v45 = vld [vmem:[#allocation2 + $0xf8] sm:$0xff]  ;;  %v16780_v11 = vld [vmem:[#allocation2 + $0x100] sm:$0xff] }
 0x37e   : > { %13136 = vmatprep.mubr.msk.f32.mxu1 %vm223_vm2, %v16619_v44  ;;  %13210 = vmatprep.mubr.msk.f32.mxu0 %vm223_vm2, %v16643_v54  ;;  %v16776_v0 = vld [vmem:[%s19143_s2 + $0x1c] sm:$0xf]  ;;  %v16786_v12 = vld [vmem:[#allocation2 + $0x108] sm:$0xff]  ;;  %v16792_v6 = vld [vmem:[#allocation2 + $0x110] sm:$0xff] }
 0x37f   : > { %13489 = vmatprep.subr.msk.mxu0 %vm533_vm0, %v16776_v0  ;;  %v16798_v31 = vld [vmem:[#allocation2 + $0x118] sm:$0xff]  ;;  %v16804_v27 = vld [vmem:[#allocation2 + $0x120] sm:$0xff]  ;;  %v16810_v4 = vld [vmem:[#allocation2 + $0x128] sm:$0xff] }
 0x380   : > { %v16816_v25 = vld [vmem:[#allocation2 + $0x130] sm:$0xff]  ;;  %v16822_v32 = vld [vmem:[#allocation2 + $0x138] sm:$0xff]  ;;  %v16828_v7 = vld [vmem:[#allocation2 + $0x140] sm:$0xff] }
 0x381   : > { %13137 = vmatmul.mubr.msk.f32.gmra.mxu1 %vm223_vm2, %v16627_v55  ;;  %13211 = vmatmul.mubr.msk.f32.gmra.mxu0 %vm223_vm2, %v16650_v10  ;;  %v16834_v18 = vld [vmem:[#allocation2 + $0x148] sm:$0xff]  ;;  %v16840_v8 = vld [vmem:[#allocation2 + $0x150] sm:$0xff]  ;;  %v16846_v40 = vld [vmem:[#allocation2 + $0x158] sm:$0xff] }
 0x382   : > { %13139 = vmatprep.mubr.msk.f32.mxu1 %vm223_vm2, %v16637_v62  ;;  %13213 = vmatprep.mubr.msk.f32.mxu0 %vm223_vm2, %v16657_v36  ;;  %v16852_v16 = vld [vmem:[#allocation2 + $0x160] sm:$0xff]  ;;  %v16858_v1 = vld [vmem:[#allocation2 + $0x168] sm:$0xff]  ;;  %v16864_v9 = vld [vmem:[#allocation2 + $0x170] sm:$0xff]  ;;  %v7017_v42 = vrot.slane %v16840_v8, 1 }
 0x383   : > { %v16870_v60 = vld [vmem:[#allocation2 + $0x178] sm:$0xff]  ;;  %v16876_v14 = vld [vmem:[#allocation2 + $0x180] sm:$0xff]  ;;  %v16882_v20 = vld [vmem:[#allocation2 + $0x188] sm:$0xff] }
 0x384   : > { %v16888_v22 = vld [vmem:[#allocation2 + $0x190] sm:$0xff]  ;;  %v16905_v34 = vld [vmem:[%s19143_s2 + $0x8] sm:$0xf] }
 0x385   : > { %13140 = vmatmul.mubr.msk.f32.gmra.mxu1 %vm223_vm2, %v16643_v54  ;;  %13214 = vmatmul.mubr.msk.f32.gmra.mxu0 %vm223_vm2, %v16664_v35 }
 0x386   : > { %13142 = vmatprep.mubr.msk.f32.mxu1 %vm223_vm2, %v16650_v10  ;;  %13216 = vmatprep.mubr.msk.f32.mxu0 %vm223_vm2, %v16670_v43 }
 0x389   : > { %13143 = vmatmul.mubr.msk.f32.gmra.mxu1 %vm223_vm2, %v16657_v36  ;;  %13217 = vmatmul.mubr.msk.f32.gmra.mxu0 %vm223_vm2, %v16677_v15 }
 0x38a   : > { %13145 = vmatprep.mubr.msk.f32.mxu1 %vm223_vm2, %v16664_v35  ;;  %13219 = vmatprep.mubr.msk.f32.mxu0 %vm223_vm2, %v16695_v33 }
 0x38d   : > { %13146 = vmatmul.mubr.msk.f32.gmra.mxu1 %vm223_vm2, %v16670_v43  ;;  %13220 = vmatmul.mubr.msk.f32.gmra.mxu0 %vm223_vm2, %v16701_v48 }
 0x38e   : > { %13148 = vmatprep.mubr.msk.f32.mxu1 %vm223_vm2, %v16677_v15  ;;  %13222 = vmatprep.mubr.msk.f32.mxu0 %vm223_vm2, %v16707_v17 }
 0x391   : > { %13149 = vmatmul.mubr.msk.f32.gmra.mxu1 %vm223_vm2, %v16695_v33  ;;  %13223 = vmatmul.mubr.msk.f32.gmra.mxu0 %vm223_vm2, %v16713_v21 }
 0x392   : > { %13151 = vmatprep.mubr.msk.f32.mxu1 %vm223_vm2, %v16701_v48  ;;  %13225 = vmatprep.mubr.msk.f32.mxu0 %vm223_vm2, %v16719_v59 }
 0x395   : > { %13152 = vmatmul.mubr.msk.f32.gmra.mxu1 %vm223_vm2, %v16707_v17  ;;  %13226 = vmatmul.mubr.msk.f32.gmra.mxu0 %vm223_vm2, %v16725_v56 }
 0x396   : > { %13154 = vmatprep.mubr.msk.f32.mxu1 %vm223_vm2, %v16713_v21  ;;  %13228 = vmatprep.mubr.msk.f32.mxu0 %vm223_vm2, %v16731_v46 }
 0x399   : > { %13155 = vmatmul.mubr.msk.f32.gmra.mxu1 %vm223_vm2, %v16719_v59  ;;  %13229 = vmatmul.mubr.msk.f32.gmra.mxu0 %vm223_vm2, %v16737_v5 }
 0x39a   : > { %13157 = vmatprep.mubr.msk.f32.mxu1 %vm223_vm2, %v16725_v56  ;;  %13231 = vmatprep.mubr.msk.f32.mxu0 %vm223_vm2, %v16743_v38 }
 0x39d   : > { %13158 = vmatmul.mubr.msk.f32.gmra.mxu1 %vm223_vm2, %v16731_v46  ;;  %13232 = vmatmul.mubr.msk.f32.gmra.mxu0 %vm223_vm2, %v16749_v63 }
 0x39e   : > { %13160 = vmatprep.mubr.msk.f32.mxu1 %vm223_vm2, %v16737_v5  ;;  %13234 = vmatprep.mubr.msk.f32.mxu0 %vm223_vm2, %v16755_v19 }
 0x3a1   : > { %13161 = vmatmul.mubr.msk.f32.gmra.mxu1 %vm223_vm2, %v16743_v38  ;;  %13235 = vmatmul.mubr.msk.f32.gmra.mxu0 %vm223_vm2, %v16761_v58 }
 0x3a2   : > { %13163 = vmatprep.mubr.msk.f32.mxu1 %vm223_vm2, %v16749_v63  ;;  %13237 = vmatprep.mubr.msk.f32.mxu0 %vm223_vm2, %v16767_v45 }
 0x3a5   : > { %13164 = vmatmul.mubr.msk.f32.gmra.mxu1 %vm223_vm2, %v16755_v19  ;;  %13238 = vmatmul.mubr.msk.f32.gmra.mxu0 %vm223_vm2, %v16780_v11 }
 0x3a6   : > { %13166 = vmatprep.mubr.msk.f32.mxu1 %vm223_vm2, %v16761_v58  ;;  %13240 = vmatprep.mubr.msk.f32.mxu0 %vm223_vm2, %v16786_v12 }
 0x3a9   : > { %13167 = vmatmul.mubr.msk.f32.gmra.mxu1 %vm223_vm2, %v16767_v45  ;;  %13241 = vmatmul.mubr.msk.f32.gmra.mxu0 %vm223_vm2, %v16792_v6 }
 0x3aa   : > { %13169 = vmatprep.mubr.msk.f32.mxu1 %vm223_vm2, %v16780_v11  ;;  %13243 = vmatprep.mubr.msk.f32.mxu0 %vm223_vm2, %v16798_v31 }
 0x3ad   : > { %13170 = vmatmul.mubr.msk.f32.gmra.mxu1 %vm223_vm2, %v16786_v12  ;;  %13244 = vmatmul.mubr.msk.f32.gmra.mxu0 %vm223_vm2, %v16804_v27 }
 0x3ae   : > { %13172 = vmatprep.mubr.msk.f32.mxu1 %vm223_vm2, %v16792_v6  ;;  %13246 = vmatprep.mubr.msk.f32.mxu0 %vm223_vm2, %v16810_v4 }
 0x3b1   : > { %13173 = vmatmul.mubr.msk.f32.gmra.mxu1 %vm223_vm2, %v16798_v31  ;;  %13247 = vmatmul.mubr.msk.f32.gmra.mxu0 %vm223_vm2, %v16816_v25 }
 0x3b2   : > { %13175 = vmatprep.mubr.msk.f32.mxu1 %vm223_vm2, %v16804_v27  ;;  %13249 = vmatprep.mubr.msk.f32.mxu0 %vm223_vm2, %v16822_v32 }
 0x3b5   : > { %13176 = vmatmul.mubr.msk.f32.gmra.mxu1 %vm223_vm2, %v16810_v4  ;;  %13250 = vmatmul.mubr.msk.f32.gmra.mxu0 %vm223_vm2, %v16828_v7 }
 0x3b6   : > { %13178 = vmatprep.mubr.msk.f32.mxu1 %vm223_vm2, %v16816_v25  ;;  %13252 = vmatprep.mubr.msk.f32.mxu0 %vm223_vm2, %v16834_v18 }
 0x3b9   : > { %13179 = vmatmul.mubr.msk.f32.gmra.mxu1 %vm223_vm2, %v16822_v32  ;;  %13253 = vmatmul.mubr.msk.f32.gmra.mxu0 %vm223_vm2, %v16840_v8 }
 0x3ba   : > { %13181 = vmatprep.mubr.msk.f32.mxu1 %vm223_vm2, %v16828_v7  ;;  %13255 = vmatprep.mubr.msk.f32.mxu0 %vm223_vm2, %v16846_v40 }
 0x3bd   : > { %13182 = vmatmul.mubr.msk.f32.gmra.mxu1 %vm223_vm2, %v16834_v18  ;;  %13256 = vmatmul.mubr.msk.f32.gmra.mxu0 %vm223_vm2, %v16852_v16 }
 0x3be   : > { %13184 = vmatprep.mubr.msk.f32.mxu1 %vm223_vm2, %v16840_v8  ;;  %13258 = vmatprep.mubr.msk.f32.mxu0 %vm223_vm2, %v16858_v1 }
 0x3c1   : > { %13185 = vmatmul.mubr.msk.f32.gmra.mxu1 %vm223_vm2, %v16846_v40  ;;  %13259 = vmatmul.mubr.msk.f32.gmra.mxu0 %vm223_vm2, %v16864_v9 }
 0x3c2   : > { %13187 = vmatprep.mubr.msk.f32.mxu1 %vm223_vm2, %v16852_v16  ;;  %13261 = vmatprep.mubr.msk.f32.mxu0 %vm223_vm2, %v16870_v60 }
 0x3c5   : > { %13188 = vmatmul.mubr.msk.f32.gmra.mxu1 %vm223_vm2, %v16858_v1  ;;  %13262 = vmatmul.mubr.msk.f32.gmra.mxu0 %vm223_vm2, %v16876_v14 }
 0x3c6   : > { %13190 = vmatprep.mubr.msk.f32.mxu1 %vm223_vm2, %v16864_v9  ;;  %13264 = vmatprep.mubr.msk.f32.mxu0 %vm223_vm2, %v16882_v20 }
 0x3c9   : > { %13191 = vmatmul.mubr.msk.f32.gmra.mxu1 %vm223_vm2, %v16870_v60  ;;  %13265 = vmatmul.mubr.msk.f32.gmra.mxu0 %vm223_vm2, %v16888_v22 }
 0x3ca   : > { %13269 = vmatprep.mubr.msk.f32.mxu1 %vm223_vm2, %v16565_v29  ;;  %13343 = vmatprep.mubr.msk.f32.mxu0 %vm223_vm2, %v16541_v61  ;;  %v6981_v61 = vrot.slane %v16565_v29, 1 }
 0x3cd   : > { %13270 = vmatmul.mubr.msk.f32.vlgmr.msra.gmra.mxu1 %vm223_vm2, %v16575_v52  ;;  %13344 = vmatmul.mubr.msk.f32.vlgmr.msra.gmra.mxu0 %vm223_vm2, %v16553_v3  ;;  %v16931_v3 = vsel %vm1872_vm4, %v6980_v26, %v6981_v61 }
 0x3ce   : > { %13416 = vmatpush3.msk.msra.mxu1 %vm533_vm0, %v16531_v28  ;;  %13272 = vmatprep.mubr.msk.f32.mxu1 %vm223_vm2, %v16590_v47  ;;  %v6982_v28 = vrot.slane %v16575_v52, 1  ;;  %v6984_v52 = vrot.slane %v16597_v49, 1 }
 0x3cf   : > { %13346 = vmatprep.mubr.msk.f32.mxu0 %vm223_vm2, %v16557_v39  ;;  %13490 = vmatpush3.msk.msra.mxu0 %vm533_vm0, %v16776_v0  ;;  %v6983_v39 = vrot.slane %v16590_v47, 1  ;;  %v6985_v0 = vrot.slane %v16619_v44, 1 }
 0x3d0   : > { %13563 = vmatprep.subr.msk.mxu1 %vm533_vm0, %v16905_v34  ;;  %v16940_v29 = vsel %vm1872_vm4, %v6981_v61, %v6982_v28 }
 0x3d1   : > { %13273 = vmatmul.mubr.msk.f32.gmra.mxu1 %vm223_vm2, %v16597_v49  ;;  %13347 = vmatmul.mubr.msk.f32.gmra.mxu0 %vm223_vm2, %v16545_v41  ;;  %v16949_v26 = vsel %vm1872_vm4, %v6982_v28, %v6983_v39  ;;  %v16957_v47 = vsel %vm1872_vm4, %v6983_v39, %v6984_v52  ;;  %v6986_v49 = vrot.slane %v16627_v55, 1  ;;  %v16967_v61 = vsel %vm1872_vm4, %v6984_v52, %v6985_v0 }
 0x3d2   : > { %13275 = vmatprep.mubr.msk.f32.mxu1 %vm223_vm2, %v16619_v44  ;;  %13349 = vmatprep.mubr.msk.f32.mxu0 %vm223_vm2, %v16563_v50  ;;  %v6987_v28 = vrot.slane %v16637_v62, 1  ;;  %v6988_v44 = vrot.slane %v16643_v54, 1  ;;  %v6989_v39 = vrot.slane %v16650_v10, 1 }
 0x3d4   : > { %v16994_v52 = vsel %vm1872_vm4, %v6987_v28, %v6988_v44 }
 0x3d5   : > { %13276 = vmatmul.mubr.msk.f32.gmra.mxu1 %vm223_vm2, %v16627_v55  ;;  %13350 = vmatmul.mubr.msk.f32.gmra.mxu0 %vm223_vm2, %v16931_v3  ;;  %v16976_v55 = vsel %vm1872_vm4, %v6985_v0, %v6986_v49  ;;  %v6990_v0 = vrot.slane %v16657_v36, 1 }
 0x3d6   : > { %13278 = vmatprep.mubr.msk.f32.mxu1 %vm223_vm2, %v16637_v62  ;;  %13352 = vmatprep.mubr.msk.f32.mxu0 %vm223_vm2, %v16940_v29  ;;  %v16985_v62 = vsel %vm1872_vm4, %v6986_v49, %v6987_v28  ;;  %v6991_v49 = vrot.slane %v16664_v35, 1 }
 0x3d8   : > { %v17021_v28 = vsel %vm1872_vm4, %v6990_v0, %v6991_v49 }
 0x3d9   : > { %13279 = vmatmul.mubr.msk.f32.gmra.mxu1 %vm223_vm2, %v16643_v54  ;;  %13353 = vmatmul.mubr.msk.f32.gmra.mxu0 %vm223_vm2, %v16949_v26  ;;  %v17003_v54 = vsel %vm1872_vm4, %v6988_v44, %v6989_v39  ;;  %v6993_v44 = vrot.slane %v16677_v15, 1 }
 0x3da   : > { %13281 = vmatprep.mubr.msk.f32.mxu1 %vm223_vm2, %v16650_v10  ;;  %13355 = vmatprep.mubr.msk.f32.mxu0 %vm223_vm2, %v16957_v47  ;;  %v17011_v10 = vsel %vm1872_vm4, %v6989_v39, %v6990_v0  ;;  %v6995_v39 = vrot.slane %v16701_v48, 1 }
 0x3dd   : > { %13282 = vmatmul.mubr.msk.f32.gmra.mxu1 %vm223_vm2, %v16657_v36  ;;  %13356 = vmatmul.mubr.msk.f32.gmra.mxu0 %vm223_vm2, %v16967_v61  ;;  %v6992_v36 = vrot.slane %v16670_v43, 1 }
 0x3de   : > { %13284 = vmatprep.mubr.msk.f32.mxu1 %vm223_vm2, %v16664_v35  ;;  %13358 = vmatprep.mubr.msk.f32.mxu0 %vm223_vm2, %v16976_v55  ;;  %v6994_v35 = vrot.slane %v16695_v33, 1 }
 0x3e0   : > { %v17048_v0 = vsel %vm1872_vm4, %v6993_v44, %v6994_v35 }
 0x3e1   : > { %13285 = vmatmul.mubr.msk.f32.gmra.mxu1 %vm223_vm2, %v16670_v43  ;;  %13359 = vmatmul.mubr.msk.f32.gmra.mxu0 %vm223_vm2, %v16985_v62  ;;  %v17030_v43 = vsel %vm1872_vm4, %v6991_v49, %v6992_v36  ;;  %v6996_v49 = vrot.slane %v16707_v17, 1 }
 0x3e2   : > { %13287 = vmatprep.mubr.msk.f32.mxu1 %vm223_vm2, %v16677_v15  ;;  %13361 = vmatprep.mubr.msk.f32.mxu0 %vm223_vm2, %v16994_v52  ;;  %v17039_v15 = vsel %vm1872_vm4, %v6992_v36, %v6993_v44  ;;  %v6997_v36 = vrot.slane %v16713_v21, 1 }
 0x3e4   : > { %v17075_v44 = vsel %vm1872_vm4, %v6996_v49, %v6997_v36 }
 0x3e5   : > { %13288 = vmatmul.mubr.msk.f32.gmra.mxu1 %vm223_vm2, %v16695_v33  ;;  %13362 = vmatmul.mubr.msk.f32.gmra.mxu0 %vm223_vm2, %v17003_v54  ;;  %v17057_v33 = vsel %vm1872_vm4, %v6994_v35, %v6995_v39  ;;  %v6999_v35 = vrot.slane %v16725_v56, 1 }
 0x3e6   : > { %13290 = vmatprep.mubr.msk.f32.mxu1 %vm223_vm2, %v16701_v48  ;;  %13364 = vmatprep.mubr.msk.f32.mxu0 %vm223_vm2, %v17011_v10  ;;  %v17065_v48 = vsel %vm1872_vm4, %v6995_v39, %v6996_v49  ;;  %v7001_v39 = vrot.slane %v16737_v5, 1 }
 0x3e9   : > { %13291 = vmatmul.mubr.msk.f32.gmra.mxu1 %vm223_vm2, %v16707_v17  ;;  %13365 = vmatmul.mubr.msk.f32.gmra.mxu0 %vm223_vm2, %v17021_v28  ;;  %v6998_v17 = vrot.slane %v16719_v59, 1 }
 0x3ea   : > { %13293 = vmatprep.mubr.msk.f32.mxu1 %vm223_vm2, %v16713_v21  ;;  %13367 = vmatprep.mubr.msk.f32.mxu0 %vm223_vm2, %v17030_v43  ;;  %v7000_v21 = vrot.slane %v16731_v46, 1 }
 0x3ec   : > { %v17102_v49 = vsel %vm1872_vm4, %v6999_v35, %v7000_v21 }
 0x3ed   : > { %13294 = vmatmul.mubr.msk.f32.gmra.mxu1 %vm223_vm2, %v16719_v59  ;;  %13368 = vmatmul.mubr.msk.f32.gmra.mxu0 %vm223_vm2, %v17039_v15  ;;  %v17084_v59 = vsel %vm1872_vm4, %v6997_v36, %v6998_v17  ;;  %v7002_v36 = vrot.slane %v16743_v38, 1 }
 0x3ee   : > { %13296 = vmatprep.mubr.msk.f32.mxu1 %vm223_vm2, %v16725_v56  ;;  %13370 = vmatprep.mubr.msk.f32.mxu0 %vm223_vm2, %v17048_v0  ;;  %v17093_v56 = vsel %vm1872_vm4, %v6998_v17, %v6999_v35  ;;  %v7003_v17 = vrot.slane %v16749_v63, 1 }
 0x3f0   : > { %v17129_v35 = vsel %vm1872_vm4, %v7002_v36, %v7003_v17 }
 0x3f1   : > { %13297 = vmatmul.mubr.msk.f32.gmra.mxu1 %vm223_vm2, %v16731_v46  ;;  %13371 = vmatmul.mubr.msk.f32.gmra.mxu0 %vm223_vm2, %v17057_v33  ;;  %v17111_v46 = vsel %vm1872_vm4, %v7000_v21, %v7001_v39  ;;  %v7005_v21 = vrot.slane %v16761_v58, 1 }
 0x3f2   : > { %13299 = vmatprep.mubr.msk.f32.mxu1 %vm223_vm2, %v16737_v5  ;;  %13373 = vmatprep.mubr.msk.f32.mxu0 %vm223_vm2, %v17065_v48  ;;  %v17119_v5 = vsel %vm1872_vm4, %v7001_v39, %v7002_v36  ;;  %v7007_v39 = vrot.slane %v16780_v11, 1 }
 0x3f5   : > { %13300 = vmatmul.mubr.msk.f32.gmra.mxu1 %vm223_vm2, %v16743_v38  ;;  %13374 = vmatmul.mubr.msk.f32.gmra.mxu0 %vm223_vm2, %v17075_v44  ;;  %v7004_v38 = vrot.slane %v16755_v19, 1 }
 0x3f6   : > { %13302 = vmatprep.mubr.msk.f32.mxu1 %vm223_vm2, %v16749_v63  ;;  %13376 = vmatprep.mubr.msk.f32.mxu0 %vm223_vm2, %v17084_v59  ;;  %v7006_v63 = vrot.slane %v16767_v45, 1 }
 0x3f8   : > { %v17156_v36 = vsel %vm1872_vm4, %v7005_v21, %v7006_v63 }
 0x3f9   : > { %13303 = vmatmul.mubr.msk.f32.gmra.mxu1 %vm223_vm2, %v16755_v19  ;;  %13377 = vmatmul.mubr.msk.f32.gmra.mxu0 %vm223_vm2, %v17093_v56  ;;  %v17138_v19 = vsel %vm1872_vm4, %v7003_v17, %v7004_v38  ;;  %v7008_v17 = vrot.slane %v16786_v12, 1 }
 0x3fa   : > { %13305 = vmatprep.mubr.msk.f32.mxu1 %vm223_vm2, %v16761_v58  ;;  %13379 = vmatprep.mubr.msk.f32.mxu0 %vm223_vm2, %v17102_v49  ;;  %v17147_v58 = vsel %vm1872_vm4, %v7004_v38, %v7005_v21  ;;  %v7009_v38 = vrot.slane %v16792_v6, 1 }
 0x3fc   : > { %v17183_v21 = vsel %vm1872_vm4, %v7008_v17, %v7009_v38 }
 0x3fd   : > { %13306 = vmatmul.mubr.msk.f32.gmra.mxu1 %vm223_vm2, %v16767_v45  ;;  %13380 = vmatmul.mubr.msk.f32.gmra.mxu0 %vm223_vm2, %v17111_v46  ;;  %v17165_v45 = vsel %vm1872_vm4, %v7006_v63, %v7007_v39  ;;  %v7011_v63 = vrot.slane %v16804_v27, 1 }
 0x3fe   : > { %13308 = vmatprep.mubr.msk.f32.mxu1 %vm223_vm2, %v16780_v11  ;;  %13382 = vmatprep.mubr.msk.f32.mxu0 %vm223_vm2, %v17119_v5  ;;  %v17173_v11 = vsel %vm1872_vm4, %v7007_v39, %v7008_v17  ;;  %v17189_v39 = vld [vmem:[%s19143_s2 + $0x14] sm:$0xf]  ;;  %v7013_v17 = vrot.slane %v16816_v25, 1 }
 0x3ff   : > { %13637 = vmatprep.subr.msk.mxu0 %vm533_vm0, %v17189_v39 }
 0x401   : > { %13309 = vmatmul.mubr.msk.f32.gmra.mxu1 %vm223_vm2, %v16786_v12  ;;  %13383 = vmatmul.mubr.msk.f32.gmra.mxu0 %vm223_vm2, %v17129_v35  ;;  %v7010_v12 = vrot.slane %v16798_v31, 1 }
 0x402   : > { %13311 = vmatprep.mubr.msk.f32.mxu1 %vm223_vm2, %v16792_v6  ;;  %13385 = vmatprep.mubr.msk.f32.mxu0 %vm223_vm2, %v17138_v19 }
 0x403   : > { %v17197_v6 = vsel %vm1872_vm4, %v7009_v38, %v7010_v12 }
 0x405   : > { %13312 = vmatmul.mubr.msk.f32.gmra.mxu1 %vm223_vm2, %v16798_v31  ;;  %13386 = vmatmul.mubr.msk.f32.gmra.mxu0 %vm223_vm2, %v17147_v58  ;;  %v7012_v31 = vrot.slane %v16810_v4, 1 }
 0x406   : > { %13314 = vmatprep.mubr.msk.f32.mxu1 %vm223_vm2, %v16804_v27  ;;  %13388 = vmatprep.mubr.msk.f32.mxu0 %vm223_vm2, %v17156_v36  ;;  %v17208_v27 = vsel %vm1872_vm4, %v7010_v12, %v7011_v63 }
 0x407   : > { %v17217_v38 = vsel %vm1872_vm4, %v7011_v63, %v7012_v31  ;;  %v7015_v63 = vrot.slane %v16828_v7, 1 }
 0x409   : > { %13315 = vmatmul.mubr.msk.f32.gmra.mxu1 %vm223_vm2, %v16810_v4  ;;  %13389 = vmatmul.mubr.msk.f32.gmra.mxu0 %vm223_vm2, %v17165_v45  ;;  %v7014_v4 = vrot.slane %v16822_v32, 1 }
 0x40a   : > { %13317 = vmatprep.mubr.msk.f32.mxu1 %vm223_vm2, %v16816_v25  ;;  %13391 = vmatprep.mubr.msk.f32.mxu0 %vm223_vm2, %v17173_v11  ;;  %v17226_v25 = vsel %vm1872_vm4, %v7012_v31, %v7013_v17 }
 0x40b   : > { %v17234_v12 = vsel %vm1872_vm4, %v7013_v17, %v7014_v4  ;;  %v17244_v31 = vsel %vm1872_vm4, %v7014_v4, %v7015_v63  ;;  %v7019_v17 = vrot.slane %v16852_v16, 1 }
 0x40d   : > { %13318 = vmatmul.mubr.msk.f32.gmra.mxu1 %vm223_vm2, %v16822_v32  ;;  %13392 = vmatmul.mubr.msk.f32.gmra.mxu0 %vm223_vm2, %v17183_v21  ;;  %v7016_v32 = vrot.slane %v16834_v18, 1 }
 0x40e   : > { %13320 = vmatprep.mubr.msk.f32.mxu1 %vm223_vm2, %v16828_v7  ;;  %13394 = vmatprep.mubr.msk.f32.mxu0 %vm223_vm2, %v17197_v6  ;;  %v7018_v7 = vrot.slane %v16846_v40, 1 }
 0x410   : > { %v17271_v4 = vsel %vm1872_vm4, %v7017_v42, %v7018_v7 }
 0x411   : > { %13321 = vmatmul.mubr.msk.f32.gmra.mxu1 %vm223_vm2, %v16834_v18  ;;  %13395 = vmatmul.mubr.msk.f32.gmra.mxu0 %vm223_vm2, %v17208_v27  ;;  %v17253_v18 = vsel %vm1872_vm4, %v7015_v63, %v7016_v32  ;;  %v7020_v63 = vrot.slane %v16858_v1, 1 }
 0x412   : > { %13323 = vmatprep.mubr.msk.f32.mxu1 %vm223_vm2, %v16840_v8  ;;  %13397 = vmatprep.mubr.msk.f32.mxu0 %vm223_vm2, %v17217_v38  ;;  %v17262_v8 = vsel %vm1872_vm4, %v7016_v32, %v7017_v42  ;;  %v19153_v32 = vrot.slane %v16876_v14, 1 }
 0x413   : > { %v17288_v42 = vsel %vm1872_vm4, %v7019_v17, %v7020_v63 }
 0x415   : > { %13324 = vmatmul.mubr.msk.f32.gmra.mxu1 %vm223_vm2, %v16846_v40  ;;  %13398 = vmatmul.mubr.msk.f32.gmra.mxu0 %vm223_vm2, %v17226_v25  ;;  %v17280_v40 = vsel %vm1872_vm4, %v7018_v7, %v7019_v17  ;;  %v17297_v7 = vld [vmem:[#allocation2 + $0x198] sm:$0xff] }
 0x416   : > { %13326 = vmatprep.mubr.msk.f32.mxu1 %vm223_vm2, %v16852_v16  ;;  %13400 = vmatprep.mubr.msk.f32.mxu0 %vm223_vm2, %v17234_v12  ;;  %v7022_v16 = vrot.slane %v16870_v60, 1 }
 0x419   : > { %13327 = vmatmul.mubr.msk.f32.gmra.mxu1 %vm223_vm2, %v16858_v1  ;;  %13401 = vmatmul.mubr.msk.f32.gmra.mxu0 %vm223_vm2, %v17244_v31  ;;  %v7021_v1 = vrot.slane %v16864_v9, 1 }
 0x41a   : > { %13329 = vmatprep.mubr.msk.f32.mxu1 %vm223_vm2, %v16864_v9  ;;  %13403 = vmatprep.mubr.msk.f32.mxu0 %vm223_vm2, %v17253_v18  ;;  %v17317_v9 = vld [vmem:[#allocation2 + $0x1a8] sm:$0xff] }
 0x41b   : > { %v17301_v23 = vsel %vm1872_vm4, %v7020_v63, %v7021_v1  ;;  %v17311_v17 = vsel %vm1872_vm4, %v7021_v1, %v7022_v16  ;;  %v17323_v63 = vsel %vm1872_vm4, %v7022_v16, %v19153_v32  ;;  %v17340_v16 = vld [vmem:[%s19143_s2 + $0x20] sm:$0xf] }
 0x41c   : > { %19173 = vst [vmem:[#allocation10_spill] sm:$0xff] %v17340_v16 }
 0x41d   : > { %13330 = vmatmul.mubr.msk.f32.gmra.mxu1 %vm223_vm2, %v16870_v60  ;;  %13404 = vmatmul.mubr.msk.f32.gmra.mxu0 %vm223_vm2, %v17262_v8  ;;  %v17307_v60 = vld [vmem:[#allocation2 + $0x1a0] sm:$0xff] }
 0x41e   : > { %13332 = vmatprep.mubr.msk.f32.mxu1 %vm223_vm2, %v16876_v14  ;;  %13406 = vmatprep.mubr.msk.f32.mxu0 %vm223_vm2, %v17271_v4 }
 0x421   : > { %13333 = vmatmul.mubr.msk.f32.gmra.mxu1 %vm223_vm2, %v16882_v20  ;;  %13407 = vmatmul.mubr.msk.f32.gmra.mxu0 %vm223_vm2, %v17280_v40 }
 0x422   : > { %13335 = vmatprep.mubr.msk.f32.mxu1 %vm223_vm2, %v16888_v22  ;;  %13409 = vmatprep.mubr.msk.f32.mxu0 %vm223_vm2, %v17288_v42 }
 0x425   : > { %13336 = vmatmul.mubr.msk.f32.gmra.mxu1 %vm223_vm2, %v17297_v7  ;;  %13410 = vmatmul.mubr.msk.f32.gmra.mxu0 %vm223_vm2, %v17301_v23 }
 0x426   : > { %13338 = vmatprep.mubr.msk.f32.mxu1 %vm223_vm2, %v17307_v60  ;;  %13412 = vmatprep.mubr.msk.f32.mxu0 %vm223_vm2, %v17311_v17 }
 0x429   : > { %13339 = vmatmul.mubr.msk.f32.gmra.mxu1 %vm223_vm2, %v17317_v9  ;;  %13413 = vmatmul.mubr.msk.f32.gmra.mxu0 %vm223_vm2, %v17323_v63 }
 0x42a   : > { %13417 = vmatprep.mubr.msk.f32.mxu1 %vm223_vm2, %v16545_v41  ;;  %13491 = vmatprep.mubr.msk.f32.mxu0 %vm223_vm2, %v16940_v29 }
 0x42d   : > { %v13123_v1 = vpop.f32.mrf.mxu1  ;;  %v13197_v51 = vpop.f32.mrf.mxu0  ;;  %13418 = vmatmul.mubr.msk.f32.vlgmr.msra.gmra.mxu1 %vm223_vm2, %v16563_v50  ;;  %13492 = vmatmul.mubr.msk.f32.vlgmr.msra.gmra.mxu0 %vm223_vm2, %v16949_v26 }
 0x42e   : > { %6002 = vst.msk [vmem:[#allocation3 + $0x8] sm:$0xff] %vm223_vm2, %v13123_v1  ;;  %13564 = vmatpush3.msk.msra.mxu1 %vm533_vm0, %v16905_v34  ;;  %13420 = vmatprep.mubr.msk.f32.mxu1 %vm223_vm2, %v16931_v3 }
 0x42f   : > { %13494 = vmatprep.mubr.msk.f32.mxu0 %vm223_vm2, %v16957_v47  ;;  %v5762_v41 = vpop.f32.mrf.mxu1  ;;  %v6129_v50 = vpop.f32.mrf.mxu0  ;;  %13638 = vmatpush3.msk.msra.mxu0 %vm533_vm0, %v17189_v39 }
 0x430   : > { %6001 = vst.msk [vmem:[#allocation3] sm:$0xff] %vm223_vm2, %v5762_v41  ;;  %13711 = vmatprep.subr.msk.mxu1 %vm533_vm0, %v17340_v16 }
 0x431   : > { %v13126_v1 = vpop.f32.mrf.mxu1  ;;  %v13200_v32 = vpop.f32.mrf.mxu0  ;;  %13421 = vmatmul.mubr.msk.f32.gmra.mxu1 %vm223_vm2, %v16940_v29  ;;  %13495 = vmatmul.mubr.msk.f32.gmra.mxu0 %vm223_vm2, %v16967_v61 }
 0x432   : > { %6004 = vst.msk [vmem:[#allocation3 + $0x18] sm:$0xff] %vm223_vm2, %v13126_v1  ;;  %13423 = vmatprep.mubr.msk.f32.mxu1 %vm223_vm2, %v16949_v26  ;;  %13497 = vmatprep.mubr.msk.f32.mxu0 %vm223_vm2, %v16976_v55 }
 0x433   : > { %v5772_v34 = vpop.f32.mrf.mxu1  ;;  %v6139_v3 = vpop.f32.mrf.mxu0 }
 0x434   : > { %6003 = vst.msk [vmem:[#allocation3 + $0x10] sm:$0xff] %vm223_vm2, %v5772_v34 }
 0x435   : > { %v6369_v39 = vld [vmem:[#allocation3 + $0x8] sm:$0xff]  ;;  %v13129_v41 = vpop.f32.mrf.mxu1  ;;  %v13203_v30 = vpop.f32.mrf.mxu0  ;;  %13424 = vmatmul.mubr.msk.f32.gmra.mxu1 %vm223_vm2, %v16957_v47  ;;  %13498 = vmatmul.mubr.msk.f32.gmra.mxu0 %vm223_vm2, %v16985_v62 }
 0x436   : > { %v6417_v29 = vadd.f32 %v13197_v51, %v6369_v39  ;;  %6006 = vst.msk [vmem:[#allocation3 + $0x28] sm:$0xff] %vm223_vm2, %v13129_v41  ;;  %13426 = vmatprep.mubr.msk.f32.mxu1 %vm223_vm2, %v16967_v61  ;;  %13500 = vmatprep.mubr.msk.f32.mxu0 %vm223_vm2, %v16994_v52 }
 0x437   : > { %v6368_v26 = vld [vmem:[#allocation3] sm:$0xff]  ;;  %v5782_v1 = vpop.f32.mrf.mxu1  ;;  %v6149_v34 = vpop.f32.mrf.mxu0 }
 0x438   : > { %6465 = vst.msk [vmem:[#allocation3 + $0x8] sm:$0xff] %vm223_vm2, %v6417_v29  ;;  %v6416_v16 = vadd.f32 %v6368_v26, %v6129_v50  ;;  %6005 = vst.msk [vmem:[#allocation3 + $0x20] sm:$0xff] %vm223_vm2, %v5782_v1 }
 0x439   : > { %v6371_v47 = vld [vmem:[#allocation3 + $0x18] sm:$0xff]  ;;  %v13132_v2 = vpop.f32.mrf.mxu1  ;;  %v13206_v57 = vpop.f32.mrf.mxu0  ;;  %13427 = vmatmul.mubr.msk.f32.gmra.mxu1 %vm223_vm2, %v16976_v55  ;;  %13501 = vmatmul.mubr.msk.f32.gmra.mxu0 %vm223_vm2, %v17003_v54 }
 0x43a   : > { %6464 = vst.msk [vmem:[#allocation3] sm:$0xff] %vm223_vm2, %v6416_v16  ;;  %v6419_v51 = vadd.f32 %v13200_v32, %v6371_v47  ;;  %6008 = vst.msk [vmem:[#allocation3 + $0x38] sm:$0xff] %vm223_vm2, %v13132_v2  ;;  %13429 = vmatprep.mubr.msk.f32.mxu1 %vm223_vm2, %v16985_v62  ;;  %13503 = vmatprep.mubr.msk.f32.mxu0 %vm223_vm2, %v17011_v10 }
 0x43b   : > { %v6370_v61 = vld [vmem:[#allocation3 + $0x10] sm:$0xff]  ;;  %v5792_v50 = vpop.f32.mrf.mxu1  ;;  %v6159_v39 = vpop.f32.mrf.mxu0 }
 0x43c   : > { %6467 = vst.msk [vmem:[#allocation3 + $0x18] sm:$0xff] %vm223_vm2, %v6419_v51  ;;  %v6418_v55 = vadd.f32 %v6370_v61, %v6139_v3  ;;  %6007 = vst.msk [vmem:[#allocation3 + $0x30] sm:$0xff] %vm223_vm2, %v5792_v50 }
 0x43d   : > { %v6373_v41 = vld [vmem:[#allocation3 + $0x28] sm:$0xff]  ;;  %v13135_v29 = vpop.f32.mrf.mxu1  ;;  %v13209_v16 = vpop.f32.mrf.mxu0  ;;  %13430 = vmatmul.mubr.msk.f32.gmra.mxu1 %vm223_vm2, %v16994_v52  ;;  %13504 = vmatmul.mubr.msk.f32.gmra.mxu0 %vm223_vm2, %v17021_v28 }
 0x43e   : > { %6466 = vst.msk [vmem:[#allocation3 + $0x10] sm:$0xff] %vm223_vm2, %v6418_v55  ;;  %v6421_v2 = vadd.f32 %v13203_v30, %v6373_v41  ;;  %6010 = vst.msk [vmem:[#allocation3 + $0x48] sm:$0xff] %vm223_vm2, %v13135_v29  ;;  %13432 = vmatprep.mubr.msk.f32.mxu1 %vm223_vm2, %v17003_v54  ;;  %13506 = vmatprep.mubr.msk.f32.mxu0 %vm223_vm2, %v17030_v43 }
 0x43f   : > { %v6372_v62 = vld [vmem:[#allocation3 + $0x20] sm:$0xff]  ;;  %v5802_v32 = vpop.f32.mrf.mxu1  ;;  %v6169_v3 = vpop.f32.mrf.mxu0 }
 0x440   : > { %6469 = vst.msk [vmem:[#allocation3 + $0x28] sm:$0xff] %vm223_vm2, %v6421_v2  ;;  %v6420_v52 = vadd.f32 %v6372_v62, %v6149_v34  ;;  %6009 = vst.msk [vmem:[#allocation3 + $0x40] sm:$0xff] %vm223_vm2, %v5802_v32 }
 0x441   : > { %v6375_v26 = vld [vmem:[#allocation3 + $0x38] sm:$0xff]  ;;  %v13138_v1 = vpop.f32.mrf.mxu1  ;;  %v13212_v47 = vpop.f32.mrf.mxu0  ;;  %13433 = vmatmul.mubr.msk.f32.gmra.mxu1 %vm223_vm2, %v17011_v10  ;;  %13507 = vmatmul.mubr.msk.f32.gmra.mxu0 %vm223_vm2, %v17039_v15 }
 0x442   : > { %6468 = vst.msk [vmem:[#allocation3 + $0x20] sm:$0xff] %vm223_vm2, %v6420_v52  ;;  %v6423_v30 = vadd.f32 %v13206_v57, %v6375_v26  ;;  %6012 = vst.msk [vmem:[#allocation3 + $0x58] sm:$0xff] %vm223_vm2, %v13138_v1  ;;  %13435 = vmatprep.mubr.msk.f32.mxu1 %vm223_vm2, %v17021_v28  ;;  %13509 = vmatprep.mubr.msk.f32.mxu0 %vm223_vm2, %v17048_v0 }
 0x443   : > { %v6374_v54 = vld [vmem:[#allocation3 + $0x30] sm:$0xff]  ;;  %v5812_v34 = vpop.f32.mrf.mxu1  ;;  %v6179_v51 = vpop.f32.mrf.mxu0 }
 0x444   : > { %6471 = vst.msk [vmem:[#allocation3 + $0x38] sm:$0xff] %vm223_vm2, %v6423_v30  ;;  %v6422_v10 = vadd.f32 %v6374_v54, %v6159_v39  ;;  %6011 = vst.msk [vmem:[#allocation3 + $0x50] sm:$0xff] %vm223_vm2, %v5812_v34 }
 0x445   : > { %v6377_v61 = vld [vmem:[#allocation3 + $0x48] sm:$0xff]  ;;  %v13141_v50 = vpop.f32.mrf.mxu1  ;;  %v13215_v55 = vpop.f32.mrf.mxu0  ;;  %13436 = vmatmul.mubr.msk.f32.gmra.mxu1 %vm223_vm2, %v17030_v43  ;;  %13510 = vmatmul.mubr.msk.f32.gmra.mxu0 %vm223_vm2, %v17057_v33 }
 0x446   : > { %6470 = vst.msk [vmem:[#allocation3 + $0x30] sm:$0xff] %vm223_vm2, %v6422_v10  ;;  %v6425_v57 = vadd.f32 %v13209_v16, %v6377_v61  ;;  %6014 = vst.msk [vmem:[#allocation3 + $0x68] sm:$0xff] %vm223_vm2, %v13141_v50  ;;  %13438 = vmatprep.mubr.msk.f32.mxu1 %vm223_vm2, %v17039_v15  ;;  %13512 = vmatprep.mubr.msk.f32.mxu0 %vm223_vm2, %v17065_v48 }
 0x447   : > { %v6376_v28 = vld [vmem:[#allocation3 + $0x40] sm:$0xff]  ;;  %v5822_v39 = vpop.f32.mrf.mxu1  ;;  %v6189_v41 = vpop.f32.mrf.mxu0 }
 0x448   : > { %6473 = vst.msk [vmem:[#allocation3 + $0x48] sm:$0xff] %vm223_vm2, %v6425_v57  ;;  %v6424_v43 = vadd.f32 %v6376_v28, %v6169_v3  ;;  %6013 = vst.msk [vmem:[#allocation3 + $0x60] sm:$0xff] %vm223_vm2, %v5822_v39 }
 0x449   : > { %v6379_v29 = vld [vmem:[#allocation3 + $0x58] sm:$0xff]  ;;  %v13144_v2 = vpop.f32.mrf.mxu1  ;;  %v13218_v62 = vpop.f32.mrf.mxu0  ;;  %13439 = vmatmul.mubr.msk.f32.gmra.mxu1 %vm223_vm2, %v17048_v0  ;;  %13513 = vmatmul.mubr.msk.f32.gmra.mxu0 %vm223_vm2, %v17075_v44 }
 0x44a   : > { %6472 = vst.msk [vmem:[#allocation3 + $0x40] sm:$0xff] %vm223_vm2, %v6424_v43  ;;  %v6427_v15 = vadd.f32 %v13212_v47, %v6379_v29  ;;  %6016 = vst.msk [vmem:[#allocation3 + $0x78] sm:$0xff] %vm223_vm2, %v13144_v2  ;;  %13441 = vmatprep.mubr.msk.f32.mxu1 %vm223_vm2, %v17057_v33  ;;  %13515 = vmatprep.mubr.msk.f32.mxu0 %vm223_vm2, %v17084_v59 }
 0x44b   : > { %v6378_v16 = vld [vmem:[#allocation3 + $0x50] sm:$0xff]  ;;  %v5832_v32 = vpop.f32.mrf.mxu1  ;;  %v6199_v3 = vpop.f32.mrf.mxu0 }
 0x44c   : > { %6475 = vst.msk [vmem:[#allocation3 + $0x58] sm:$0xff] %vm223_vm2, %v6427_v15  ;;  %v6426_v0 = vadd.f32 %v6378_v16, %v6179_v51  ;;  %6015 = vst.msk [vmem:[#allocation3 + $0x70] sm:$0xff] %vm223_vm2, %v5832_v32 }
 0x44d   : > { %v6381_v52 = vld [vmem:[#allocation3 + $0x68] sm:$0xff]  ;;  %v13147_v26 = vpop.f32.mrf.mxu1  ;;  %v13221_v1 = vpop.f32.mrf.mxu0  ;;  %13442 = vmatmul.mubr.msk.f32.gmra.mxu1 %vm223_vm2, %v17065_v48  ;;  %13516 = vmatmul.mubr.msk.f32.gmra.mxu0 %vm223_vm2, %v17093_v56 }
 0x44e   : > { %6474 = vst.msk [vmem:[#allocation3 + $0x50] sm:$0xff] %vm223_vm2, %v6426_v0  ;;  %v6429_v33 = vadd.f32 %v13215_v55, %v6381_v52  ;;  %6018 = vst.msk [vmem:[#allocation3 + $0x88] sm:$0xff] %vm223_vm2, %v13147_v26  ;;  %13444 = vmatprep.mubr.msk.f32.mxu1 %vm223_vm2, %v17075_v44  ;;  %13518 = vmatprep.mubr.msk.f32.mxu0 %vm223_vm2, %v17102_v49 }
 0x44f   : > { %v6380_v47 = vld [vmem:[#allocation3 + $0x60] sm:$0xff]  ;;  %v5842_v30 = vpop.f32.mrf.mxu1  ;;  %v6209_v54 = vpop.f32.mrf.mxu0 }
 0x450   : > { %6477 = vst.msk [vmem:[#allocation3 + $0x68] sm:$0xff] %vm223_vm2, %v6429_v33  ;;  %v6428_v48 = vadd.f32 %v6380_v47, %v6189_v41  ;;  %6017 = vst.msk [vmem:[#allocation3 + $0x80] sm:$0xff] %vm223_vm2, %v5842_v30 }
 0x451   : > { %v6383_v34 = vld [vmem:[#allocation3 + $0x78] sm:$0xff]  ;;  %v13150_v51 = vpop.f32.mrf.mxu1  ;;  %v13224_v10 = vpop.f32.mrf.mxu0  ;;  %13445 = vmatmul.mubr.msk.f32.gmra.mxu1 %vm223_vm2, %v17084_v59  ;;  %13519 = vmatmul.mubr.msk.f32.gmra.mxu0 %vm223_vm2, %v17111_v46 }
 0x452   : > { %6476 = vst.msk [vmem:[#allocation3 + $0x60] sm:$0xff] %vm223_vm2, %v6428_v48  ;;  %v6431_v44 = vadd.f32 %v13218_v62, %v6383_v34  ;;  %6020 = vst.msk [vmem:[#allocation3 + $0x98] sm:$0xff] %vm223_vm2, %v13150_v51  ;;  %13447 = vmatprep.mubr.msk.f32.mxu1 %vm223_vm2, %v17093_v56  ;;  %13521 = vmatprep.mubr.msk.f32.mxu0 %vm223_vm2, %v17119_v5 }
 0x453   : > { %v6382_v61 = vld [vmem:[#allocation3 + $0x70] sm:$0xff]  ;;  %v5852_v50 = vpop.f32.mrf.mxu1  ;;  %v6219_v55 = vpop.f32.mrf.mxu0 }
 0x454   : > { %6479 = vst.msk [vmem:[#allocation3 + $0x78] sm:$0xff] %vm223_vm2, %v6431_v44  ;;  %v6430_v59 = vadd.f32 %v6382_v61, %v6199_v3  ;;  %6019 = vst.msk [vmem:[#allocation3 + $0x90] sm:$0xff] %vm223_vm2, %v5852_v50 }
 0x455   : > { %v6385_v57 = vld [vmem:[#allocation3 + $0x88] sm:$0xff]  ;;  %v13153_v28 = vpop.f32.mrf.mxu1  ;;  %v13227_v39 = vpop.f32.mrf.mxu0  ;;  %13448 = vmatmul.mubr.msk.f32.gmra.mxu1 %vm223_vm2, %v17102_v49  ;;  %13522 = vmatmul.mubr.msk.f32.gmra.mxu0 %vm223_vm2, %v17129_v35 }
 0x456   : > { %6478 = vst.msk [vmem:[#allocation3 + $0x70] sm:$0xff] %vm223_vm2, %v6430_v59  ;;  %v6433_v56 = vadd.f32 %v13221_v1, %v6385_v57  ;;  %6022 = vst.msk [vmem:[#allocation3 + $0xa8] sm:$0xff] %vm223_vm2, %v13153_v28  ;;  %13450 = vmatprep.mubr.msk.f32.mxu1 %vm223_vm2, %v17111_v46  ;;  %13524 = vmatprep.mubr.msk.f32.mxu0 %vm223_vm2, %v17138_v19 }
 0x457   : > { %v6384_v41 = vld [vmem:[#allocation3 + $0x80] sm:$0xff]  ;;  %v5862_v43 = vpop.f32.mrf.mxu1  ;;  %v6229_v29 = vpop.f32.mrf.mxu0 }
 0x458   : > { %6481 = vst.msk [vmem:[#allocation3 + $0x88] sm:$0xff] %vm223_vm2, %v6433_v56  ;;  %v6432_v49 = vadd.f32 %v6384_v41, %v6209_v54  ;;  %6021 = vst.msk [vmem:[#allocation3 + $0xa0] sm:$0xff] %vm223_vm2, %v5862_v43 }
 0x459   : > { %v6387_v2 = vld [vmem:[#allocation3 + $0x98] sm:$0xff]  ;;  %v13156_v62 = vpop.f32.mrf.mxu1  ;;  %v13230_v15 = vpop.f32.mrf.mxu0  ;;  %13451 = vmatmul.mubr.msk.f32.gmra.mxu1 %vm223_vm2, %v17119_v5  ;;  %13525 = vmatmul.mubr.msk.f32.gmra.mxu0 %vm223_vm2, %v17147_v58 }
 0x45a   : > { %6480 = vst.msk [vmem:[#allocation3 + $0x80] sm:$0xff] %vm223_vm2, %v6432_v49  ;;  %v6435_v46 = vadd.f32 %v13224_v10, %v6387_v2  ;;  %6024 = vst.msk [vmem:[#allocation3 + $0xb8] sm:$0xff] %vm223_vm2, %v13156_v62  ;;  %13453 = vmatprep.mubr.msk.f32.mxu1 %vm223_vm2, %v17129_v35  ;;  %13527 = vmatprep.mubr.msk.f32.mxu0 %vm223_vm2, %v17156_v36 }
 0x45b   : > { %v6386_v16 = vld [vmem:[#allocation3 + $0x90] sm:$0xff]  ;;  %v5872_v32 = vpop.f32.mrf.mxu1  ;;  %v6239_v3 = vpop.f32.mrf.mxu0 }
 0x45c   : > { %6483 = vst.msk [vmem:[#allocation3 + $0x98] sm:$0xff] %vm223_vm2, %v6435_v46  ;;  %v6434_v5 = vadd.f32 %v6386_v16, %v6219_v55  ;;  %6023 = vst.msk [vmem:[#allocation3 + $0xb0] sm:$0xff] %vm223_vm2, %v5872_v32 }
 0x45d   : > { %v6389_v0 = vld [vmem:[#allocation3 + $0xa8] sm:$0xff]  ;;  %v13159_v52 = vpop.f32.mrf.mxu1  ;;  %v13233_v26 = vpop.f32.mrf.mxu0  ;;  %13454 = vmatmul.mubr.msk.f32.gmra.mxu1 %vm223_vm2, %v17138_v19  ;;  %13528 = vmatmul.mubr.msk.f32.gmra.mxu0 %vm223_vm2, %v17165_v45 }
 0x45e   : > { %6482 = vst.msk [vmem:[#allocation3 + $0x90] sm:$0xff] %vm223_vm2, %v6434_v5  ;;  %v6437_v35 = vadd.f32 %v13227_v39, %v6389_v0  ;;  %6026 = vst.msk [vmem:[#allocation3 + $0xc8] sm:$0xff] %vm223_vm2, %v13159_v52  ;;  %13456 = vmatprep.mubr.msk.f32.mxu1 %vm223_vm2, %v17147_v58  ;;  %13530 = vmatprep.mubr.msk.f32.mxu0 %vm223_vm2, %v17173_v11 }
 0x45f   : > { %v6388_v1 = vld [vmem:[#allocation3 + $0xa0] sm:$0xff]  ;;  %v5882_v33 = vpop.f32.mrf.mxu1  ;;  %v6249_v47 = vpop.f32.mrf.mxu0 }
 0x460   : > { %6485 = vst.msk [vmem:[#allocation3 + $0xa8] sm:$0xff] %vm223_vm2, %v6437_v35  ;;  %v6436_v19 = vadd.f32 %v6388_v1, %v6229_v29  ;;  %6025 = vst.msk [vmem:[#allocation3 + $0xc0] sm:$0xff] %vm223_vm2, %v5882_v33 }
 0x461   : > { %v6391_v30 = vld [vmem:[#allocation3 + $0xb8] sm:$0xff]  ;;  %v13162_v54 = vpop.f32.mrf.mxu1  ;;  %v13236_v48 = vpop.f32.mrf.mxu0  ;;  %13457 = vmatmul.mubr.msk.f32.gmra.mxu1 %vm223_vm2, %v17156_v36  ;;  %13531 = vmatmul.mubr.msk.f32.gmra.mxu0 %vm223_vm2, %v17183_v21 }
 0x462   : > { %6484 = vst.msk [vmem:[#allocation3 + $0xa0] sm:$0xff] %vm223_vm2, %v6436_v19  ;;  %v6439_v58 = vadd.f32 %v13230_v15, %v6391_v30  ;;  %6028 = vst.msk [vmem:[#allocation3 + $0xd8] sm:$0xff] %vm223_vm2, %v13162_v54  ;;  %13459 = vmatprep.mubr.msk.f32.mxu1 %vm223_vm2, %v17165_v45  ;;  %13533 = vmatprep.mubr.msk.f32.mxu0 %vm223_vm2, %v17197_v6 }
 0x463   : > { %v6390_v34 = vld [vmem:[#allocation3 + $0xb0] sm:$0xff]  ;;  %v5892_v51 = vpop.f32.mrf.mxu1  ;;  %v6259_v10 = vpop.f32.mrf.mxu0 }
 0x464   : > { %6487 = vst.msk [vmem:[#allocation3 + $0xb8] sm:$0xff] %vm223_vm2, %v6439_v58  ;;  %v6438_v36 = vadd.f32 %v6390_v34, %v6239_v3  ;;  %6027 = vst.msk [vmem:[#allocation3 + $0xd0] sm:$0xff] %vm223_vm2, %v5892_v51  ;;  %v7024_v34 = vrot.slane %v16882_v20, 1  ;;  %v19174_v20 = vrot.slane %v16876_v14, 1 }
 0x465   : > { %v6393_v44 = vld [vmem:[#allocation3 + $0xc8] sm:$0xff]  ;;  %v13165_v61 = vpop.f32.mrf.mxu1  ;;  %v13239_v50 = vpop.f32.mrf.mxu0  ;;  %13460 = vmatmul.mubr.msk.f32.gmra.mxu1 %vm223_vm2, %v17173_v11  ;;  %13534 = vmatmul.mubr.msk.f32.gmra.mxu0 %vm223_vm2, %v17208_v27 }
 0x466   : > { %6486 = vst.msk [vmem:[#allocation3 + $0xb0] sm:$0xff] %vm223_vm2, %v6438_v36  ;;  %v6441_v45 = vadd.f32 %v13233_v26, %v6393_v44  ;;  %6030 = vst.msk [vmem:[#allocation3 + $0xe8] sm:$0xff] %vm223_vm2, %v13165_v61  ;;  %13462 = vmatprep.mubr.msk.f32.mxu1 %vm223_vm2, %v17183_v21  ;;  %13536 = vmatprep.mubr.msk.f32.mxu0 %vm223_vm2, %v17217_v38 }
 0x467   : > { %v6392_v55 = vld [vmem:[#allocation3 + $0xc0] sm:$0xff]  ;;  %v5902_v59 = vpop.f32.mrf.mxu1  ;;  %v6269_v57 = vpop.f32.mrf.mxu0 }
 0x468   : > { %6489 = vst.msk [vmem:[#allocation3 + $0xc8] sm:$0xff] %vm223_vm2, %v6441_v45  ;;  %v6440_v11 = vadd.f32 %v6392_v55, %v6249_v47  ;;  %6029 = vst.msk [vmem:[#allocation3 + $0xe0] sm:$0xff] %vm223_vm2, %v5902_v59 }
 0x469   : > { %v6395_v28 = vld [vmem:[#allocation3 + $0xd8] sm:$0xff]  ;;  %v13168_v39 = vpop.f32.mrf.mxu1  ;;  %v13242_v56 = vpop.f32.mrf.mxu0  ;;  %13463 = vmatmul.mubr.msk.f32.gmra.mxu1 %vm223_vm2, %v17197_v6  ;;  %13537 = vmatmul.mubr.msk.f32.gmra.mxu0 %vm223_vm2, %v17226_v25 }
 0x46a   : > { %6488 = vst.msk [vmem:[#allocation3 + $0xc0] sm:$0xff] %vm223_vm2, %v6440_v11  ;;  %v6443_v21 = vadd.f32 %v13236_v48, %v6395_v28  ;;  %6032 = vst.msk [vmem:[#allocation3 + $0xf8] sm:$0xff] %vm223_vm2, %v13168_v39  ;;  %13465 = vmatprep.mubr.msk.f32.mxu1 %vm223_vm2, %v17208_v27  ;;  %13539 = vmatprep.mubr.msk.f32.mxu0 %vm223_vm2, %v17234_v12 }
 0x46b   : > { %v6394_v41 = vld [vmem:[#allocation3 + $0xd0] sm:$0xff]  ;;  %v5912_v43 = vpop.f32.mrf.mxu1  ;;  %v6279_v29 = vpop.f32.mrf.mxu0 }
 0x46c   : > { %6491 = vst.msk [vmem:[#allocation3 + $0xd8] sm:$0xff] %vm223_vm2, %v6443_v21  ;;  %v6442_v6 = vadd.f32 %v6394_v41, %v6259_v10  ;;  %6031 = vst.msk [vmem:[#allocation3 + $0xf0] sm:$0xff] %vm223_vm2, %v5912_v43  ;;  %v7027_v21 = vrot.slane %v17307_v60, 1 }
 0x46d   : > { %v6397_v49 = vld [vmem:[#allocation3 + $0xe8] sm:$0xff]  ;;  %v13171_v2 = vpop.f32.mrf.mxu1  ;;  %v13245_v62 = vpop.f32.mrf.mxu0  ;;  %13466 = vmatmul.mubr.msk.f32.gmra.mxu1 %vm223_vm2, %v17217_v38  ;;  %13540 = vmatmul.mubr.msk.f32.gmra.mxu0 %vm223_vm2, %v17244_v31 }
 0x46e   : > { %6490 = vst.msk [vmem:[#allocation3 + $0xd0] sm:$0xff] %vm223_vm2, %v6442_v6  ;;  %v6445_v27 = vadd.f32 %v13239_v50, %v6397_v49  ;;  %6034 = vst.msk [vmem:[#allocation3 + $0x108] sm:$0xff] %vm223_vm2, %v13171_v2  ;;  %13468 = vmatprep.mubr.msk.f32.mxu1 %vm223_vm2, %v17226_v25  ;;  %13542 = vmatprep.mubr.msk.f32.mxu0 %vm223_vm2, %v17253_v18 }
 0x46f   : > { %v6396_v15 = vld [vmem:[#allocation3 + $0xe0] sm:$0xff]  ;;  %v5922_v46 = vpop.f32.mrf.mxu1  ;;  %v6289_v16 = vpop.f32.mrf.mxu0 }
 0x470   : > { %6493 = vst.msk [vmem:[#allocation3 + $0xe8] sm:$0xff] %vm223_vm2, %v6445_v27  ;;  %v6444_v38 = vadd.f32 %v6396_v15, %v6269_v57  ;;  %6033 = vst.msk [vmem:[#allocation3 + $0x100] sm:$0xff] %vm223_vm2, %v5922_v46 }
 0x471   : > { %v6399_v32 = vld [vmem:[#allocation3 + $0xf8] sm:$0xff]  ;;  %v13174_v3 = vpop.f32.mrf.mxu1  ;;  %v13248_v5 = vpop.f32.mrf.mxu0  ;;  %13469 = vmatmul.mubr.msk.f32.gmra.mxu1 %vm223_vm2, %v17234_v12  ;;  %13543 = vmatmul.mubr.msk.f32.gmra.mxu0 %vm223_vm2, %v17262_v8 }
 0x472   : > { %6492 = vst.msk [vmem:[#allocation3 + $0xe0] sm:$0xff] %vm223_vm2, %v6444_v38  ;;  %v6447_v25 = vadd.f32 %v13242_v56, %v6399_v32  ;;  %6036 = vst.msk [vmem:[#allocation3 + $0x118] sm:$0xff] %vm223_vm2, %v13174_v3  ;;  %13471 = vmatprep.mubr.msk.f32.mxu1 %vm223_vm2, %v17244_v31  ;;  %13545 = vmatprep.mubr.msk.f32.mxu0 %vm223_vm2, %v17271_v4  ;;  %v7028_v56 = vrot.slane %v17317_v9, 1  ;;  %v19175_v38 = vrot.slane %v16506_v53, 1 }
 0x473   : > { %v6398_v0 = vld [vmem:[#allocation3 + $0xf0] sm:$0xff]  ;;  %v5932_v52 = vpop.f32.mrf.mxu1  ;;  %v6299_v26 = vpop.f32.mrf.mxu0 }
 0x474   : > { %6495 = vst.msk [vmem:[#allocation3 + $0xf8] sm:$0xff] %vm223_vm2, %v6447_v25  ;;  %v6446_v12 = vadd.f32 %v6398_v0, %v6279_v29  ;;  %6035 = vst.msk [vmem:[#allocation3 + $0x110] sm:$0xff] %vm223_vm2, %v5932_v52  ;;  %v7082_v32 = vsel %vm1872_vm4, %v7028_v56, %v19175_v38  ;;  %v13854_v52 = vld [vmem:[#allocation2 + $0x30] sm:$0xff] }
 0x475   : > { %v6401_v35 = vld [vmem:[#allocation3 + $0x108] sm:$0xff]  ;;  %v13177_v1 = vpop.f32.mrf.mxu1  ;;  %v13251_v33 = vpop.f32.mrf.mxu0  ;;  %13472 = vmatmul.mubr.msk.f32.gmra.mxu1 %vm223_vm2, %v17253_v18  ;;  %13546 = vmatmul.mubr.msk.f32.gmra.mxu0 %vm223_vm2, %v17280_v40 }
 0x476   : > { %6494 = vst.msk [vmem:[#allocation3 + $0xf0] sm:$0xff] %vm223_vm2, %v6446_v12  ;;  %v6449_v31 = vadd.f32 %v13245_v62, %v6401_v35  ;;  %6038 = vst.msk [vmem:[#allocation3 + $0x128] sm:$0xff] %vm223_vm2, %v13177_v1  ;;  %13474 = vmatprep.mubr.msk.f32.mxu1 %vm223_vm2, %v17262_v8  ;;  %13548 = vmatprep.mubr.msk.f32.mxu0 %vm223_vm2, %v17288_v42 }
 0x477   : > { %v6400_v47 = vld [vmem:[#allocation3 + $0x100] sm:$0xff]  ;;  %v5942_v19 = vpop.f32.mrf.mxu1  ;;  %v6309_v30 = vpop.f32.mrf.mxu0 }
 0x478   : > { %6497 = vst.msk [vmem:[#allocation3 + $0x108] sm:$0xff] %vm223_vm2, %v6449_v31  ;;  %v6448_v18 = vadd.f32 %v6400_v47, %v6289_v16  ;;  %6037 = vst.msk [vmem:[#allocation3 + $0x120] sm:$0xff] %vm223_vm2, %v5942_v19  ;;  %v6832_v19 = vld [vmem:[#allocation3 + $0x8] sm:$0xff] }
 0x479   : > { %v6403_v54 = vld [vmem:[#allocation3 + $0x118] sm:$0xff]  ;;  %v13180_v48 = vpop.f32.mrf.mxu1  ;;  %v13254_v58 = vpop.f32.mrf.mxu0  ;;  %13475 = vmatmul.mubr.msk.f32.gmra.mxu1 %vm223_vm2, %v17271_v4  ;;  %13549 = vmatmul.mubr.msk.f32.gmra.mxu0 %vm223_vm2, %v17301_v23  ;;  %v7025_v4 = vrot.slane %v16888_v22, 1  ;;  %v7026_v22 = vrot.slane %v17297_v7, 1 }
 0x47a   : > { %6496 = vst.msk [vmem:[#allocation3 + $0x100] sm:$0xff] %vm223_vm2, %v6448_v18  ;;  %v6451_v8 = vadd.f32 %v13248_v5, %v6403_v54  ;;  %6040 = vst.msk [vmem:[#allocation3 + $0x138] sm:$0xff] %vm223_vm2, %v13180_v48  ;;  %13477 = vmatprep.mubr.msk.f32.mxu1 %vm223_vm2, %v17280_v40  ;;  %13551 = vmatprep.mubr.msk.f32.mxu0 %vm223_vm2, %v17311_v17  ;;  %v7033_v40 = vsel %vm1872_vm4, %v19174_v20, %v7024_v34  ;;  %v19176_v18 = vld [vmem:[#allocation7_spill] sm:$0xff]  ;;  %v13855_v54 = vld [vmem:[#allocation2 + $0x40] sm:$0xff] }
 0x47b   : > { %v6402_v51 = vld [vmem:[#allocation3 + $0x110] sm:$0xff]  ;;  %v5952_v10 = vpop.f32.mrf.mxu1  ;;  %v6319_v36 = vpop.f32.mrf.mxu0  ;;  %v7032_v7 = vsel %vm1872_vm4, %v7024_v34, %v7025_v4  ;;  %v7030_v60 = vsel %vm1872_vm4, %v7026_v22, %v7027_v21  ;;  %v8615_v48 = vrot.slane %v13855_v54, 2  ;;  %v6831_v20 = vld [vmem:[#allocation3] sm:$0xff] }
 0x47c   : > { %6499 = vst.msk [vmem:[#allocation3 + $0x118] sm:$0xff] %vm223_vm2, %v6451_v8  ;;  %v6450_v44 = vadd.f32 %v6402_v51, %v6299_v26  ;;  %6039 = vst.msk [vmem:[#allocation3 + $0x130] sm:$0xff] %vm223_vm2, %v5952_v10  ;;  %v8613_v26 = vrot.slane %v13854_v52, 2  ;;  %v19178_v34 = vld [vmem:[#allocation10_spill] sm:$0xff]  ;;  %v19179_v51 = vld [vmem:[#allocation8_spill] sm:$0xff] }
 0x47d   : > { %v6405_v61 = vld [vmem:[#allocation3 + $0x128] sm:$0xff]  ;;  %v13183_v50 = vpop.f32.mrf.mxu1  ;;  %v13257_v45 = vpop.f32.mrf.mxu0  ;;  %13478 = vmatmul.mubr.msk.f32.gmra.mxu1 %vm223_vm2, %v17288_v42  ;;  %13552 = vmatmul.mubr.msk.f32.gmra.mxu0 %vm223_vm2, %v17323_v63  ;;  %v19180_v10 = vld [vmem:[#allocation6_spill] sm:$0xff] }
 0x47e   : > { %6498 = vst.msk [vmem:[#allocation3 + $0x110] sm:$0xff] %vm223_vm2, %v6450_v44  ;;  %v6453_v55 = vadd.f32 %v13251_v33, %v6405_v61  ;;  %6042 = vst.msk [vmem:[#allocation3 + $0x148] sm:$0xff] %vm223_vm2, %v13183_v50  ;;  %13480 = vmatprep.mubr.msk.f32.mxu1 %vm223_vm2, %v17301_v23  ;;  %13554 = vmatprep.mubr.msk.f32.mxu0 %vm223_vm2, %v7033_v40  ;;  %v7031_v23 = vsel %vm1872_vm4, %v7025_v4, %v7026_v22  ;;  %v13856_v44 = vld [vmem:[#allocation2 + $0x38] sm:$0xff] }
 0x47f   : > { %v6404_v42 = vld [vmem:[#allocation3 + $0x120] sm:$0xff]  ;;  %v5962_v59 = vpop.f32.mrf.mxu1  ;;  %v6329_v57 = vpop.f32.mrf.mxu0  ;;  %v8614_v61 = vrot.slane %v13856_v44, 2 }
 0x480   : > { %6501 = vst.msk [vmem:[#allocation3 + $0x128] sm:$0xff] %vm223_vm2, %v6453_v55  ;;  %v6452_v14 = vadd.f32 %v6404_v42, %v6309_v30  ;;  %6041 = vst.msk [vmem:[#allocation3 + $0x140] sm:$0xff] %vm223_vm2, %v5962_v59  ;;  %v13857_v59 = vld [vmem:[#allocation2 + $0x48] sm:$0xff] }
 0x481   : > { %v6407_v11 = vld [vmem:[#allocation3 + $0x138] sm:$0xff]  ;;  %v13186_v28 = vpop.f32.mrf.mxu1  ;;  %v13260_v39 = vpop.f32.mrf.mxu0  ;;  %13481 = vmatmul.mubr.msk.f32.gmra.mxu1 %vm223_vm2, %v17311_v17  ;;  %13555 = vmatmul.mubr.msk.f32.gmra.mxu0 %vm223_vm2, %v7032_v7  ;;  %v17661_v42 = vsel %vm3505_vm5, %v8613_v26, %v8614_v61 }
 0x482   : > { %6500 = vst.msk [vmem:[#allocation3 + $0x120] sm:$0xff] %vm223_vm2, %v6452_v14  ;;  %v6455_v41 = vadd.f32 %v13254_v58, %v6407_v11  ;;  %6044 = vst.msk [vmem:[#allocation3 + $0x158] sm:$0xff] %vm223_vm2, %v13186_v28  ;;  %13483 = vmatprep.mubr.msk.f32.mxu1 %vm223_vm2, %v17323_v63  ;;  %13557 = vmatprep.mubr.msk.f32.mxu0 %vm223_vm2, %v7031_v23  ;;  %v7029_v63 = vsel %vm1872_vm4, %v7027_v21, %v7028_v56  ;;  %v6834_v11 = vld [vmem:[#allocation3 + $0x18] sm:$0xff] }
 0x483   : > { %v6406_v17 = vld [vmem:[#allocation3 + $0x130] sm:$0xff]  ;;  %v5972_v43 = vpop.f32.mrf.mxu1  ;;  %v6339_v29 = vpop.f32.mrf.mxu0 }
 0x484   : > { %6503 = vst.msk [vmem:[#allocation3 + $0x138] sm:$0xff] %vm223_vm2, %v6455_v41  ;;  %v6454_v6 = vadd.f32 %v6406_v17, %v6319_v36  ;;  %6043 = vst.msk [vmem:[#allocation3 + $0x150] sm:$0xff] %vm223_vm2, %v5972_v43  ;;  %v19181_v36 = vrot.slane %v19180_v10, 2  ;;  %v6833_v41 = vld [vmem:[#allocation3 + $0x10] sm:$0xff]  ;;  %v13858_v43 = vld [vmem:[#allocation2 + $0x50] sm:$0xff] }
 0x485   : > { %v6409_v9 = vld [vmem:[#allocation3 + $0x148] sm:$0xff]  ;;  %v13189_v49 = vpop.f32.mrf.mxu1  ;;  %v13263_v2 = vpop.f32.mrf.mxu0  ;;  %13484 = vmatmul.mubr.msk.f32.gmra.mxu1 %vm223_vm2, %v7033_v40  ;;  %13558 = vmatmul.mubr.msk.f32.gmra.mxu0 %vm223_vm2, %v7030_v60 }
 0x486   : > { %6502 = vst.msk [vmem:[#allocation3 + $0x130] sm:$0xff] %vm223_vm2, %v6454_v6  ;;  %v6457_v62 = vadd.f32 %v13257_v45, %v6409_v9  ;;  %6046 = vst.msk [vmem:[#allocation3 + $0x168] sm:$0xff] %vm223_vm2, %v13189_v49  ;;  %13486 = vmatprep.mubr.msk.f32.mxu1 %vm223_vm2, %v7032_v7  ;;  %13560 = vmatprep.mubr.msk.f32.mxu0 %vm223_vm2, %v7029_v63  ;;  %v8708_v4 = vsel %vm3505_vm5, %v19181_v36, %v8613_v26  ;;  %v13859_v49 = vld [vmem:[#allocation2 + $0x58] sm:$0xff] }
 0x487   : > { %v6408_v27 = vld [vmem:[#allocation3 + $0x140] sm:$0xff]  ;;  %v5982_v15 = vpop.f32.mrf.mxu1  ;;  %v6349_v46 = vpop.f32.mrf.mxu0 }
 0x488   : > { %6505 = vst.msk [vmem:[#allocation3 + $0x148] sm:$0xff] %vm223_vm2, %v6457_v62  ;;  %v6456_v16 = vadd.f32 %v6408_v27, %v6329_v57  ;;  %6045 = vst.msk [vmem:[#allocation3 + $0x160] sm:$0xff] %vm223_vm2, %v5982_v15  ;;  %v8616_v57 = vrot.slane %v13857_v59, 2  ;;  %v6836_v62 = vld [vmem:[#allocation3 + $0x28] sm:$0xff] }
 0x489   : > { %v6411_v3 = vld [vmem:[#allocation3 + $0x158] sm:$0xff]  ;;  %v13192_v5 = vpop.f32.mrf.mxu1  ;;  %v13266_v25 = vpop.f32.mrf.mxu0  ;;  %13487 = vmatmul.mubr.msk.f32.gmra.mxu1 %vm223_vm2, %v7031_v23  ;;  %13561 = vmatmul.mubr.msk.f32.gmra.mxu0 %vm223_vm2, %v7082_v32 }
 0x48a   : > { %6504 = vst.msk [vmem:[#allocation3 + $0x140] sm:$0xff] %vm223_vm2, %v6456_v16  ;;  %v6459_v0 = vadd.f32 %v13260_v39, %v6411_v3  ;;  %6048 = vst.msk [vmem:[#allocation3 + $0x178] sm:$0xff] %vm223_vm2, %v13192_v5  ;;  %13565 = vmatprep.mubr.msk.f32.mxu1 %vm223_vm2, %v16587_v37  ;;  %13639 = vmatprep.mubr.msk.f32.mxu0 %vm223_vm2, %v16683_v13  ;;  %v19177_v37 = vld [vmem:[#allocation9_spill] sm:$0xff]  ;;  %v17671_v39 = vsel %vm3505_vm5, %v8614_v61, %v8615_v48  ;;  %v6835_v5 = vld [vmem:[#allocation3 + $0x20] sm:$0xff] }
 0x48b   : > { %v6410_v12 = vld [vmem:[#allocation3 + $0x150] sm:$0xff]  ;;  %v5992_v35 = vpop.f32.mrf.mxu1  ;;  %v6359_v1 = vpop.f32.mrf.mxu0  ;;  %v17685_v9 = vsel %vm3505_vm5, %v8615_v48, %v8616_v57 }
 0x48c   : > { %6507 = vst.msk [vmem:[#allocation3 + $0x158] sm:$0xff] %vm223_vm2, %v6459_v0  ;;  %v6458_v33 = vadd.f32 %v6410_v12, %v6339_v29  ;;  %6047 = vst.msk [vmem:[#allocation3 + $0x170] sm:$0xff] %vm223_vm2, %v5992_v35  ;;  %v8617_v29 = vrot.slane %v13858_v43, 2 }
 0x48d   : > { %v6413_v31 = vld [vmem:[#allocation3 + $0x168] sm:$0xff]  ;;  %v13271_v47 = vpop.f32.mrf.mxu1  ;;  %v17639_v30 = vpop.f32.mrf.mxu0  ;;  %13566 = vmatmul.mubr.msk.f32.vlgmr.msra.gmra.mxu1 %vm223_vm2, %v19176_v18  ;;  %13640 = vmatmul.mubr.msk.f32.vlgmr.msra.gmra.mxu0 %vm223_vm2, %v19177_v37 }
 0x48e   : > { %6506 = vst.msk [vmem:[#allocation3 + $0x150] sm:$0xff] %vm223_vm2, %v6458_v33  ;;  %v6461_v58 = vadd.f32 %v13263_v2, %v6413_v31  ;;  %v6880_v8 = vadd.f32 %v13271_v47, %v6832_v19  ;;  %13712 = vmatpush3.msk.msra.mxu1 %vm533_vm0, %v19178_v34  ;;  %13568 = vmatprep.mubr.msk.f32.mxu1 %vm223_vm2, %v19179_v51  ;;  %v8618_v2 = vrot.slane %v13859_v49, 2  ;;  %v13861_v47 = vld [vmem:[#allocation2 + $0x70] sm:$0xff] }
 0x48f   : > { %v6412_v50 = vld [vmem:[#allocation3 + $0x160] sm:$0xff]  ;;  %13642 = vmatprep.mubr.msk.f32.mxu0 %vm223_vm2, %v8708_v4  ;;  %v6592_v45 = vpop.f32.mrf.mxu1  ;;  %v17655_v40 = vpop.f32.mrf.mxu0  ;;  %v17694_v15 = vsel %vm3505_vm5, %v8616_v57, %v8617_v29  ;;  %v8621_v19 = vrot.slane %v13861_v47, 2 }
 0x490   : > { %6509 = vst.msk [vmem:[#allocation3 + $0x168] sm:$0xff] %vm223_vm2, %v6461_v58  ;;  %v6460_v22 = vadd.f32 %v6412_v50, %v6349_v46  ;;  %6928 = vst.msk [vmem:[#allocation3 + $0x8] sm:$0xff] %vm223_vm2, %v6880_v8  ;;  %v6879_v55 = vadd.f32 %v6831_v20, %v6592_v45  ;;  %v13860_v46 = vld [vmem:[#allocation2 + $0x60] sm:$0xff]  ;;  %v17708_v26 = vsel %vm3505_vm5, %v8617_v29, %v8618_v2  ;;  %v6840_v45 = vld [vmem:[#allocation3 + $0x48] sm:$0xff] }
 0x491   : > { %v6415_v14 = vld [vmem:[#allocation3 + $0x178] sm:$0xff]  ;;  %v13274_v7 = vpop.f32.mrf.mxu1  ;;  %v17663_v28 = vpop.f32.mrf.mxu0  ;;  %13569 = vmatmul.mubr.msk.f32.gmra.mxu1 %vm223_vm2, %v16683_v13  ;;  %13643 = vmatmul.mubr.msk.f32.gmra.mxu0 %vm223_vm2, %v17661_v42  ;;  %v8619_v16 = vrot.slane %v13860_v46, 2  ;;  %v6837_v8 = vld [vmem:[#allocation3 + $0x30] sm:$0xff]  ;;  %v13866_v49 = vld [vmem:[#allocation2 + $0x90] sm:$0xff] }
 0x492   : > { %6508 = vst.msk [vmem:[#allocation3 + $0x160] sm:$0xff] %vm223_vm2, %v6460_v22  ;;  %v6463_v23 = vadd.f32 %v13266_v25, %v6415_v14  ;;  %6927 = vst.msk [vmem:[#allocation3] sm:$0xff] %vm223_vm2, %v6879_v55  ;;  %v6882_v56 = vadd.f32 %v13274_v7, %v6834_v11  ;;  %13571 = vmatprep.mubr.msk.f32.mxu1 %vm223_vm2, %v19177_v37  ;;  %13645 = vmatprep.mubr.msk.f32.mxu0 %vm223_vm2, %v17671_v39  ;;  %v13862_v37 = vld [vmem:[#allocation2 + $0x68] sm:$0xff]  ;;  %v6839_v14 = vld [vmem:[#allocation3 + $0x40] sm:$0xff] }
 0x493   : > { %v6414_v13 = vld [vmem:[#allocation3 + $0x170] sm:$0xff]  ;;  %v6602_v21 = vpop.f32.mrf.mxu1  ;;  %v17679_v17 = vpop.f32.mrf.mxu0  ;;  %v17718_v31 = vsel %vm3505_vm5, %v8618_v2, %v8619_v16  ;;  %v8620_v54 = vrot.slane %v13862_v37, 2  ;;  %v6842_v29 = vld [vmem:[#allocation3 + $0x58] sm:$0xff]  ;;  %v8625_v2 = vrot.slane %v13866_v49, 2  ;;  %v6848_v49 = vld [vmem:[#allocation3 + $0x88] sm:$0xff] }
 0x494   : > { %6511 = vst.msk [vmem:[#allocation3 + $0x178] sm:$0xff] %vm223_vm2, %v6463_v23  ;;  %v6462_v6 = vadd.f32 %v6414_v13, %v6359_v1  ;;  %6930 = vst.msk [vmem:[#allocation3 + $0x18] sm:$0xff] %vm223_vm2, %v6882_v56  ;;  %v6881_v60 = vadd.f32 %v6833_v41, %v6602_v21  ;;  %v6838_v1 = vld [vmem:[#allocation3 + $0x38] sm:$0xff]  ;;  %v13864_v11 = vld [vmem:[#allocation2 + $0x80] sm:$0xff] }
 0x495   : > { %v13277_v63 = vpop.f32.mrf.mxu1  ;;  %v17687_v27 = vpop.f32.mrf.mxu0  ;;  %13572 = vmatmul.mubr.msk.f32.gmra.mxu1 %vm223_vm2, %v8708_v4  ;;  %13646 = vmatmul.mubr.msk.f32.gmra.mxu0 %vm223_vm2, %v17685_v9  ;;  %v17734_v36 = vsel %vm3505_vm5, %v8619_v16, %v8620_v54  ;;  %v13863_v4 = vld [vmem:[#allocation2 + $0x78] sm:$0xff]  ;;  %v13865_v21 = vld [vmem:[#allocation2 + $0x88] sm:$0xff]  ;;  %v6841_v16 = vld [vmem:[#allocation3 + $0x50] sm:$0xff] }
 0x496   : > { %6510 = vst.msk [vmem:[#allocation3 + $0x170] sm:$0xff] %vm223_vm2, %v6462_v6  ;;  %6929 = vst.msk [vmem:[#allocation3 + $0x10] sm:$0xff] %vm223_vm2, %v6881_v60  ;;  %v6884_v38 = vadd.f32 %v13277_v63, %v6836_v62  ;;  %13574 = vmatprep.mubr.msk.f32.mxu1 %vm223_vm2, %v17661_v42  ;;  %13648 = vmatprep.mubr.msk.f32.mxu0 %vm223_vm2, %v17694_v15  ;;  %v8622_v44 = vrot.slane %v13863_v4, 2  ;;  %v8624_v41 = vrot.slane %v13865_v21, 2  ;;  %v6873_v53 = vld [vmem:[#allocation3 + $0x150] sm:$0xff] }
 0x497   : > { %v7538_v32 = vld [vmem:[#allocation3 + $0x8] sm:$0xff]  ;;  %v6612_v3 = vpop.f32.mrf.mxu1  ;;  %v17702_v25 = vpop.f32.mrf.mxu0 }
 0x498   : > { %v7586_v0 = vadd.f32 %v17639_v30, %v7538_v32  ;;  %6932 = vst.msk [vmem:[#allocation3 + $0x28] sm:$0xff] %vm223_vm2, %v6884_v38  ;;  %v6883_v52 = vadd.f32 %v6835_v5, %v6612_v3  ;;  %v17760_v13 = vsel %vm3505_vm5, %v8621_v19, %v8622_v44 }
 0x499   : > { %v7537_v12 = vld [vmem:[#allocation3] sm:$0xff]  ;;  %v13280_v35 = vpop.f32.mrf.mxu1  ;;  %v17710_v33 = vpop.f32.mrf.mxu0  ;;  %13575 = vmatmul.mubr.msk.f32.gmra.mxu1 %vm223_vm2, %v17671_v39  ;;  %13649 = vmatmul.mubr.msk.f32.gmra.mxu0 %vm223_vm2, %v17708_v26 }
 0x49a   : > { %7634 = vst.msk [vmem:[#allocation3 + $0x8] sm:$0xff] %vm223_vm2, %v7586_v0  ;;  %v7585_v30 = vadd.f32 %v7537_v12, %v17655_v40  ;;  %6931 = vst.msk [vmem:[#allocation3 + $0x20] sm:$0xff] %vm223_vm2, %v6883_v52  ;;  %v6886_v18 = vadd.f32 %v13280_v35, %v6838_v1  ;;  %13577 = vmatprep.mubr.msk.f32.mxu1 %vm223_vm2, %v17685_v9  ;;  %13651 = vmatprep.mubr.msk.f32.mxu0 %vm223_vm2, %v17718_v31  ;;  %v6844_v52 = vld [vmem:[#allocation3 + $0x68] sm:$0xff]  ;;  %v13867_v1 = vld [vmem:[#allocation2 + $0xa0] sm:$0xff] }
 0x49b   : > { %v7540_v48 = vld [vmem:[#allocation3 + $0x18] sm:$0xff]  ;;  %v6622_v58 = vpop.f32.mrf.mxu1  ;;  %v17727_v34 = vpop.f32.mrf.mxu0  ;;  %v17744_v40 = vsel %vm3505_vm5, %v8620_v54, %v8621_v19  ;;  %v17796_v35 = vsel %vm3505_vm5, %v8624_v41, %v8625_v2 }
 0x49c   : > { %7633 = vst.msk [vmem:[#allocation3] sm:$0xff] %vm223_vm2, %v7585_v30  ;;  %v7588_v51 = vadd.f32 %v17663_v28, %v7540_v48  ;;  %6934 = vst.msk [vmem:[#allocation3 + $0x38] sm:$0xff] %vm223_vm2, %v6886_v18  ;;  %v6885_v10 = vadd.f32 %v6837_v8, %v6622_v58  ;;  %v8623_v28 = vrot.slane %v13864_v11, 2  ;;  %v13868_v30 = vld [vmem:[#allocation2 + $0x98] sm:$0xff]  ;;  %v6843_v48 = vld [vmem:[#allocation3 + $0x60] sm:$0xff] }
 0x49d   : > { %v7539_v61 = vld [vmem:[#allocation3 + $0x10] sm:$0xff]  ;;  %v13283_v50 = vpop.f32.mrf.mxu1  ;;  %v17736_v20 = vpop.f32.mrf.mxu0  ;;  %13578 = vmatmul.mubr.msk.f32.gmra.mxu1 %vm223_vm2, %v17694_v15  ;;  %13652 = vmatmul.mubr.msk.f32.gmra.mxu0 %vm223_vm2, %v17734_v36  ;;  %v8626_v18 = vrot.slane %v13868_v30, 2  ;;  %v13873_v30 = vld [vmem:[#allocation2 + $0xd0] sm:$0xff] }
 0x49e   : > { %7636 = vst.msk [vmem:[#allocation3 + $0x18] sm:$0xff] %vm223_vm2, %v7588_v51  ;;  %v7587_v22 = vadd.f32 %v7539_v61, %v17679_v17  ;;  %6933 = vst.msk [vmem:[#allocation3 + $0x30] sm:$0xff] %vm223_vm2, %v6885_v10  ;;  %v6888_v55 = vadd.f32 %v13283_v50, %v6840_v45  ;;  %13580 = vmatprep.mubr.msk.f32.mxu1 %vm223_vm2, %v17708_v26  ;;  %13654 = vmatprep.mubr.msk.f32.mxu0 %vm223_vm2, %v17744_v40  ;;  %v13869_v10 = vld [vmem:[#allocation2 + $0xa8] sm:$0xff] }
 0x49f   : > { %v7542_v59 = vld [vmem:[#allocation3 + $0x28] sm:$0xff]  ;;  %v6632_v57 = vpop.f32.mrf.mxu1  ;;  %v17753_v7 = vpop.f32.mrf.mxu0  ;;  %v17770_v60 = vsel %vm3505_vm5, %v8622_v44, %v8623_v28  ;;  %v17786_v5 = vsel %vm3505_vm5, %v8623_v28, %v8624_v41  ;;  %v17812_v51 = vsel %vm3505_vm5, %v8625_v2, %v8626_v18  ;;  %v8628_v4 = vrot.slane %v13869_v10, 2  ;;  %v6846_v50 = vld [vmem:[#allocation3 + $0x78] sm:$0xff]  ;;  %v13870_v28 = vld [vmem:[#allocation2 + $0xb0] sm:$0xff] }
 0x4a0   : > { %7635 = vst.msk [vmem:[#allocation3 + $0x10] sm:$0xff] %vm223_vm2, %v7587_v22  ;;  %v7590_v23 = vadd.f32 %v17687_v27, %v7542_v59  ;;  %6936 = vst.msk [vmem:[#allocation3 + $0x48] sm:$0xff] %vm223_vm2, %v6888_v55  ;;  %v6887_v56 = vadd.f32 %v6839_v14, %v6632_v57  ;;  %v6845_v14 = vld [vmem:[#allocation3 + $0x70] sm:$0xff]  ;;  %v13871_v41 = vld [vmem:[#allocation2 + $0xb8] sm:$0xff] }
 0x4a1   : > { %v7541_v17 = vld [vmem:[#allocation3 + $0x20] sm:$0xff]  ;;  %v13286_v43 = vpop.f32.mrf.mxu1  ;;  %v17762_v6 = vpop.f32.mrf.mxu0  ;;  %13581 = vmatmul.mubr.msk.f32.gmra.mxu1 %vm223_vm2, %v17718_v31  ;;  %13655 = vmatmul.mubr.msk.f32.gmra.mxu0 %vm223_vm2, %v17760_v13 }
 0x4a2   : > { %7638 = vst.msk [vmem:[#allocation3 + $0x28] sm:$0xff] %vm223_vm2, %v7590_v23  ;;  %v7589_v63 = vadd.f32 %v7541_v17, %v17702_v25  ;;  %6935 = vst.msk [vmem:[#allocation3 + $0x40] sm:$0xff] %vm223_vm2, %v6887_v56  ;;  %v6890_v62 = vadd.f32 %v13286_v43, %v6842_v29  ;;  %13583 = vmatprep.mubr.msk.f32.mxu1 %vm223_vm2, %v17734_v36  ;;  %13657 = vmatprep.mubr.msk.f32.mxu0 %vm223_vm2, %v17770_v60  ;;  %v8629_v23 = vrot.slane %v13870_v28, 2 }
 0x4a3   : > { %v7544_v27 = vld [vmem:[#allocation3 + $0x38] sm:$0xff]  ;;  %v6642_v46 = vpop.f32.mrf.mxu1  ;;  %v17779_v38 = vpop.f32.mrf.mxu0  ;;  %v8630_v17 = vrot.slane %v13871_v41, 2 }
 0x4a4   : > { %7637 = vst.msk [vmem:[#allocation3 + $0x20] sm:$0xff] %vm223_vm2, %v7589_v63  ;;  %v7592_v32 = vadd.f32 %v17710_v33, %v7544_v27  ;;  %6938 = vst.msk [vmem:[#allocation3 + $0x58] sm:$0xff] %vm223_vm2, %v6890_v62  ;;  %v6889_v3 = vadd.f32 %v6841_v16, %v6642_v46  ;;  %v8627_v33 = vrot.slane %v13867_v1, 2  ;;  %v13872_v63 = vld [vmem:[#allocation2 + $0xc0] sm:$0xff] }
 0x4a5   : > { %v7543_v25 = vld [vmem:[#allocation3 + $0x30] sm:$0xff]  ;;  %v13289_v0 = vpop.f32.mrf.mxu1  ;;  %v17788_v12 = vpop.f32.mrf.mxu0  ;;  %13584 = vmatmul.mubr.msk.f32.gmra.mxu1 %vm223_vm2, %v17744_v40  ;;  %13658 = vmatmul.mubr.msk.f32.gmra.mxu0 %vm223_vm2, %v17786_v5  ;;  %v8631_v62 = vrot.slane %v13872_v63, 2 }
 0x4a6   : > { %7640 = vst.msk [vmem:[#allocation3 + $0x38] sm:$0xff] %vm223_vm2, %v7592_v32  ;;  %v7591_v47 = vadd.f32 %v7543_v25, %v17727_v34  ;;  %6937 = vst.msk [vmem:[#allocation3 + $0x50] sm:$0xff] %vm223_vm2, %v6889_v3  ;;  %v6892_v19 = vadd.f32 %v13289_v0, %v6844_v52  ;;  %13586 = vmatprep.mubr.msk.f32.mxu1 %vm223_vm2, %v17760_v13  ;;  %13660 = vmatprep.mubr.msk.f32.mxu0 %vm223_vm2, %v17796_v35  ;;  %v6847_v3 = vld [vmem:[#allocation3 + $0x80] sm:$0xff] }
 0x4a7   : > { %v7546_v37 = vld [vmem:[#allocation3 + $0x48] sm:$0xff]  ;;  %v6652_v54 = vpop.f32.mrf.mxu1  ;;  %v17805_v58 = vpop.f32.mrf.mxu0  ;;  %v17838_v21 = vsel %vm3505_vm5, %v8627_v33, %v8628_v4  ;;  %v17864_v52 = vsel %vm3505_vm5, %v8629_v23, %v8630_v17 }
 0x4a8   : > { %7639 = vst.msk [vmem:[#allocation3 + $0x30] sm:$0xff] %vm223_vm2, %v7591_v47  ;;  %v7594_v8 = vadd.f32 %v17736_v20, %v7546_v37  ;;  %6940 = vst.msk [vmem:[#allocation3 + $0x68] sm:$0xff] %vm223_vm2, %v6892_v19  ;;  %v6891_v34 = vadd.f32 %v6843_v48, %v6652_v54  ;;  %v17822_v20 = vsel %vm3505_vm5, %v8626_v18, %v8627_v33  ;;  %v6850_v47 = vld [vmem:[#allocation3 + $0x98] sm:$0xff]  ;;  %v8633_v18 = vrot.slane %v13873_v30, 2 }
 0x4a9   : > { %v7545_v44 = vld [vmem:[#allocation3 + $0x40] sm:$0xff]  ;;  %v13292_v61 = vpop.f32.mrf.mxu1  ;;  %v17814_v45 = vpop.f32.mrf.mxu0  ;;  %13587 = vmatmul.mubr.msk.f32.gmra.mxu1 %vm223_vm2, %v17770_v60  ;;  %13661 = vmatmul.mubr.msk.f32.gmra.mxu0 %vm223_vm2, %v17812_v51  ;;  %v13874_v48 = vld [vmem:[#allocation2 + $0xc8] sm:$0xff] }
 0x4aa   : > { %7642 = vst.msk [vmem:[#allocation3 + $0x48] sm:$0xff] %vm223_vm2, %v7594_v8  ;;  %v7593_v22 = vadd.f32 %v7545_v44, %v17753_v7  ;;  %6939 = vst.msk [vmem:[#allocation3 + $0x60] sm:$0xff] %vm223_vm2, %v6891_v34  ;;  %v6894_v55 = vadd.f32 %v13292_v61, %v6846_v50  ;;  %13589 = vmatprep.mubr.msk.f32.mxu1 %vm223_vm2, %v17786_v5  ;;  %13663 = vmatprep.mubr.msk.f32.mxu0 %vm223_vm2, %v17822_v20  ;;  %v8632_v8 = vrot.slane %v13874_v48, 2 }
 0x4ab   : > { %v7548_v59 = vld [vmem:[#allocation3 + $0x58] sm:$0xff]  ;;  %v6662_v57 = vpop.f32.mrf.mxu1  ;;  %v17831_v11 = vpop.f32.mrf.mxu0 }
 0x4ac   : > { %7641 = vst.msk [vmem:[#allocation3 + $0x40] sm:$0xff] %vm223_vm2, %v7593_v22  ;;  %v7596_v7 = vadd.f32 %v17762_v6, %v7548_v59  ;;  %6942 = vst.msk [vmem:[#allocation3 + $0x78] sm:$0xff] %vm223_vm2, %v6894_v55  ;;  %v6893_v56 = vadd.f32 %v6845_v14, %v6662_v57  ;;  %v17848_v6 = vsel %vm3505_vm5, %v8628_v4, %v8629_v23  ;;  %v6849_v4 = vld [vmem:[#allocation3 + $0x90] sm:$0xff]  ;;  %v13875_v22 = vld [vmem:[#allocation2 + $0xd8] sm:$0xff] }
 0x4ad   : > { %v7547_v43 = vld [vmem:[#allocation3 + $0x50] sm:$0xff]  ;;  %v13295_v29 = vpop.f32.mrf.mxu1  ;;  %v17840_v2 = vpop.f32.mrf.mxu0  ;;  %13590 = vmatmul.mubr.msk.f32.gmra.mxu1 %vm223_vm2, %v17796_v35  ;;  %13664 = vmatmul.mubr.msk.f32.gmra.mxu0 %vm223_vm2, %v17838_v21  ;;  %v17890_v50 = vsel %vm3505_vm5, %v8631_v62, %v8632_v8  ;;  %v8634_v55 = vrot.slane %v13875_v22, 2  ;;  %v6852_v14 = vld [vmem:[#allocation3 + $0xa8] sm:$0xff] }
 0x4ae   : > { %7644 = vst.msk [vmem:[#allocation3 + $0x58] sm:$0xff] %vm223_vm2, %v7596_v7  ;;  %v7595_v27 = vadd.f32 %v7547_v43, %v17779_v38  ;;  %6941 = vst.msk [vmem:[#allocation3 + $0x70] sm:$0xff] %vm223_vm2, %v6893_v56  ;;  %v6896_v46 = vadd.f32 %v13295_v29, %v6848_v49  ;;  %13592 = vmatprep.mubr.msk.f32.mxu1 %vm223_vm2, %v17812_v51  ;;  %13666 = vmatprep.mubr.msk.f32.mxu0 %vm223_vm2, %v17848_v6  ;;  %v13876_v29 = vld [vmem:[#allocation2 + $0xe0] sm:$0xff] }
 0x4af   : > { %v7550_v16 = vld [vmem:[#allocation3 + $0x68] sm:$0xff]  ;;  %v6672_v32 = vpop.f32.mrf.mxu1  ;;  %v17857_v25 = vpop.f32.mrf.mxu0  ;;  %v8635_v49 = vrot.slane %v13876_v29, 2 }
 0x4b0   : > { %7643 = vst.msk [vmem:[#allocation3 + $0x50] sm:$0xff] %vm223_vm2, %v7595_v27  ;;  %v7598_v0 = vadd.f32 %v17788_v12, %v7550_v16  ;;  %6944 = vst.msk [vmem:[#allocation3 + $0x88] sm:$0xff] %vm223_vm2, %v6896_v46  ;;  %v6895_v38 = vadd.f32 %v6847_v3, %v6672_v32  ;;  %v17874_v12 = vsel %vm3505_vm5, %v8630_v17, %v8631_v62  ;;  %v6851_v17 = vld [vmem:[#allocation3 + $0xa0] sm:$0xff]  ;;  %v13877_v27 = vld [vmem:[#allocation2 + $0xe8] sm:$0xff] }
 0x4b1   : > { %v7549_v1 = vld [vmem:[#allocation3 + $0x60] sm:$0xff]  ;;  %v13298_v33 = vpop.f32.mrf.mxu1  ;;  %v17866_v19 = vpop.f32.mrf.mxu0  ;;  %13593 = vmatmul.mubr.msk.f32.gmra.mxu1 %vm223_vm2, %v17822_v20  ;;  %13667 = vmatmul.mubr.msk.f32.gmra.mxu0 %vm223_vm2, %v17864_v52  ;;  %v17916_v62 = vsel %vm3505_vm5, %v8633_v18, %v8634_v55  ;;  %v8636_v46 = vrot.slane %v13877_v27, 2  ;;  %v6854_v3 = vld [vmem:[#allocation3 + $0xb8] sm:$0xff] }
 0x4b2   : > { %7646 = vst.msk [vmem:[#allocation3 + $0x68] sm:$0xff] %vm223_vm2, %v7598_v0  ;;  %v7597_v37 = vadd.f32 %v7549_v1, %v17805_v58  ;;  %6943 = vst.msk [vmem:[#allocation3 + $0x80] sm:$0xff] %vm223_vm2, %v6895_v38  ;;  %v6898_v54 = vadd.f32 %v13298_v33, %v6850_v47  ;;  %13595 = vmatprep.mubr.msk.f32.mxu1 %vm223_vm2, %v17838_v21  ;;  %13669 = vmatprep.mubr.msk.f32.mxu0 %vm223_vm2, %v17874_v12  ;;  %v13878_v38 = vld [vmem:[#allocation2 + $0xf0] sm:$0xff] }
 0x4b3   : > { %v7552_v34 = vld [vmem:[#allocation3 + $0x78] sm:$0xff]  ;;  %v6682_v10 = vpop.f32.mrf.mxu1  ;;  %v17883_v44 = vpop.f32.mrf.mxu0  ;;  %v8637_v1 = vrot.slane %v13878_v38, 2 }
 0x4b4   : > { %7645 = vst.msk [vmem:[#allocation3 + $0x60] sm:$0xff] %vm223_vm2, %v7597_v37  ;;  %v7600_v58 = vadd.f32 %v17814_v45, %v7552_v34  ;;  %6946 = vst.msk [vmem:[#allocation3 + $0x98] sm:$0xff] %vm223_vm2, %v6898_v54  ;;  %v6897_v61 = vadd.f32 %v6849_v4, %v6682_v10  ;;  %v17900_v45 = vsel %vm3505_vm5, %v8632_v8, %v8633_v18  ;;  %v6853_v37 = vld [vmem:[#allocation3 + $0xb0] sm:$0xff]  ;;  %v6856_v4 = vld [vmem:[#allocation3 + $0xc8] sm:$0xff] }
 0x4b5   : > { %v7551_v59 = vld [vmem:[#allocation3 + $0x70] sm:$0xff]  ;;  %v13301_v57 = vpop.f32.mrf.mxu1  ;;  %v17892_v28 = vpop.f32.mrf.mxu0  ;;  %13596 = vmatmul.mubr.msk.f32.gmra.mxu1 %vm223_vm2, %v17848_v6  ;;  %13670 = vmatmul.mubr.msk.f32.gmra.mxu0 %vm223_vm2, %v17890_v50  ;;  %v17942_v8 = vsel %vm3505_vm5, %v8635_v49, %v8636_v46 }
 0x4b6   : > { %7648 = vst.msk [vmem:[#allocation3 + $0x78] sm:$0xff] %vm223_vm2, %v7600_v58  ;;  %v7599_v23 = vadd.f32 %v7551_v59, %v17831_v11  ;;  %6945 = vst.msk [vmem:[#allocation3 + $0x90] sm:$0xff] %vm223_vm2, %v6897_v61  ;;  %v6900_v7 = vadd.f32 %v13301_v57, %v6852_v14  ;;  %13598 = vmatprep.mubr.msk.f32.mxu1 %vm223_vm2, %v17864_v52  ;;  %13672 = vmatprep.mubr.msk.f32.mxu0 %vm223_vm2, %v17900_v45  ;;  %v13879_v61 = vld [vmem:[#allocation2 + $0x100] sm:$0xff]  ;;  %v13880_v57 = vld [vmem:[#allocation2 + $0xf8] sm:$0xff] }
 0x4b7   : > { %v7554_v56 = vld [vmem:[#allocation3 + $0x88] sm:$0xff]  ;;  %v6692_v41 = vpop.f32.mrf.mxu1  ;;  %v17909_v43 = vpop.f32.mrf.mxu0  ;;  %v8639_v22 = vrot.slane %v13879_v61, 2  ;;  %v8638_v14 = vrot.slane %v13880_v57, 2 }
 0x4b8   : > { %7647 = vst.msk [vmem:[#allocation3 + $0x70] sm:$0xff] %vm223_vm2, %v7599_v23  ;;  %v7602_v11 = vadd.f32 %v17840_v2, %v7554_v56  ;;  %6948 = vst.msk [vmem:[#allocation3 + $0xa8] sm:$0xff] %vm223_vm2, %v6900_v7  ;;  %v6899_v63 = vadd.f32 %v6851_v17, %v6692_v41  ;;  %v17926_v2 = vsel %vm3505_vm5, %v8634_v55, %v8635_v49  ;;  %v6855_v56 = vld [vmem:[#allocation3 + $0xc0] sm:$0xff]  ;;  %v13881_v49 = vld [vmem:[#allocation2 + $0x108] sm:$0xff] }
 0x4b9   : > { %v7553_v16 = vld [vmem:[#allocation3 + $0x80] sm:$0xff]  ;;  %v13304_v32 = vpop.f32.mrf.mxu1  ;;  %v17918_v0 = vpop.f32.mrf.mxu0  ;;  %13599 = vmatmul.mubr.msk.f32.gmra.mxu1 %vm223_vm2, %v17874_v12  ;;  %13673 = vmatmul.mubr.msk.f32.gmra.mxu0 %vm223_vm2, %v17916_v62  ;;  %v17968_v29 = vsel %vm3505_vm5, %v8637_v1, %v8638_v14  ;;  %v6860_v61 = vld [vmem:[#allocation3 + $0xe8] sm:$0xff] }
 0x4ba   : > { %7650 = vst.msk [vmem:[#allocation3 + $0x88] sm:$0xff] %vm223_vm2, %v7602_v11  ;;  %v7601_v33 = vadd.f32 %v7553_v16, %v17857_v25  ;;  %6947 = vst.msk [vmem:[#allocation3 + $0xa0] sm:$0xff] %vm223_vm2, %v6899_v63  ;;  %v6902_v47 = vadd.f32 %v13304_v32, %v6854_v3  ;;  %13601 = vmatprep.mubr.msk.f32.mxu1 %vm223_vm2, %v17890_v50  ;;  %13675 = vmatprep.mubr.msk.f32.mxu0 %vm223_vm2, %v17926_v2  ;;  %v8640_v11 = vrot.slane %v13881_v49, 2 }
 0x4bb   : > { %v7556_v30 = vld [vmem:[#allocation3 + $0x98] sm:$0xff]  ;;  %v6702_v18 = vpop.f32.mrf.mxu1  ;;  %v17935_v54 = vpop.f32.mrf.mxu0 }
 0x4bc   : > { %7649 = vst.msk [vmem:[#allocation3 + $0x80] sm:$0xff] %vm223_vm2, %v7601_v33  ;;  %v7604_v48 = vadd.f32 %v17866_v19, %v7556_v30  ;;  %6950 = vst.msk [vmem:[#allocation3 + $0xb8] sm:$0xff] %vm223_vm2, %v6902_v47  ;;  %v6901_v25 = vadd.f32 %v6853_v37, %v6702_v18  ;;  %v17952_v19 = vsel %vm3505_vm5, %v8636_v46, %v8637_v1  ;;  %v6858_v46 = vld [vmem:[#allocation3 + $0xd8] sm:$0xff]  ;;  %v6857_v33 = vld [vmem:[#allocation3 + $0xd0] sm:$0xff] }
 0x4bd   : > { %v7555_v34 = vld [vmem:[#allocation3 + $0x90] sm:$0xff]  ;;  %v13307_v10 = vpop.f32.mrf.mxu1  ;;  %v17944_v58 = vpop.f32.mrf.mxu0  ;;  %13602 = vmatmul.mubr.msk.f32.gmra.mxu1 %vm223_vm2, %v17900_v45  ;;  %13676 = vmatmul.mubr.msk.f32.gmra.mxu0 %vm223_vm2, %v17942_v8  ;;  %v13882_v30 = vld [vmem:[#allocation2 + $0x110] sm:$0xff] }
 0x4be   : > { %7652 = vst.msk [vmem:[#allocation3 + $0x98] sm:$0xff] %vm223_vm2, %v7604_v48  ;;  %v7603_v55 = vadd.f32 %v7555_v34, %v17883_v44  ;;  %6949 = vst.msk [vmem:[#allocation3 + $0xb0] sm:$0xff] %vm223_vm2, %v6901_v25  ;;  %v6904_v59 = vadd.f32 %v13307_v10, %v6856_v4  ;;  %13604 = vmatprep.mubr.msk.f32.mxu1 %vm223_vm2, %v17916_v62  ;;  %13678 = vmatprep.mubr.msk.f32.mxu0 %vm223_vm2, %v17952_v19  ;;  %v8641_v18 = vrot.slane %v13882_v30, 2  ;;  %v13883_v25 = vld [vmem:[#allocation2 + $0x118] sm:$0xff] }
 0x4bf   : > { %v7558_v23 = vld [vmem:[#allocation3 + $0xa8] sm:$0xff]  ;;  %v6712_v7 = vpop.f32.mrf.mxu1  ;;  %v17961_v41 = vpop.f32.mrf.mxu0  ;;  %v17994_v48 = vsel %vm3505_vm5, %v8639_v22, %v8640_v11  ;;  %v8642_v34 = vrot.slane %v13883_v25, 2 }
 0x4c0   : > { %7651 = vst.msk [vmem:[#allocation3 + $0x90] sm:$0xff] %vm223_vm2, %v7603_v55  ;;  %v7606_v44 = vadd.f32 %v17892_v28, %v7558_v23  ;;  %6952 = vst.msk [vmem:[#allocation3 + $0xc8] sm:$0xff] %vm223_vm2, %v6904_v59  ;;  %v6903_v17 = vadd.f32 %v6855_v56, %v6712_v7  ;;  %v17978_v28 = vsel %vm3505_vm5, %v8638_v14, %v8639_v22  ;;  %v13884_v59 = vld [vmem:[#allocation2 + $0x120] sm:$0xff]  ;;  %v6859_v56 = vld [vmem:[#allocation3 + $0xe0] sm:$0xff] }
 0x4c1   : > { %v7557_v63 = vld [vmem:[#allocation3 + $0xa0] sm:$0xff]  ;;  %v13310_v27 = vpop.f32.mrf.mxu1  ;;  %v17970_v16 = vpop.f32.mrf.mxu0  ;;  %13605 = vmatmul.mubr.msk.f32.gmra.mxu1 %vm223_vm2, %v17926_v2  ;;  %13679 = vmatmul.mubr.msk.f32.gmra.mxu0 %vm223_vm2, %v17968_v29  ;;  %v8643_v22 = vrot.slane %v13884_v59, 2  ;;  %v18020_v49 = vsel %vm3505_vm5, %v8641_v18, %v8642_v34 }
 0x4c2   : > { %7654 = vst.msk [vmem:[#allocation3 + $0xa8] sm:$0xff] %vm223_vm2, %v7606_v44  ;;  %v7605_v32 = vadd.f32 %v7557_v63, %v17909_v43  ;;  %6951 = vst.msk [vmem:[#allocation3 + $0xc0] sm:$0xff] %vm223_vm2, %v6903_v17  ;;  %v6906_v3 = vadd.f32 %v13310_v27, %v6858_v46  ;;  %13607 = vmatprep.mubr.msk.f32.mxu1 %vm223_vm2, %v17942_v8  ;;  %13681 = vmatprep.mubr.msk.f32.mxu0 %vm223_vm2, %v17978_v28  ;;  %v6862_v27 = vld [vmem:[#allocation3 + $0xf8] sm:$0xff] }
 0x4c3   : > { %v7560_v38 = vld [vmem:[#allocation3 + $0xb8] sm:$0xff]  ;;  %v6722_v1 = vpop.f32.mrf.mxu1  ;;  %v17987_v47 = vpop.f32.mrf.mxu0 }
 0x4c4   : > { %7653 = vst.msk [vmem:[#allocation3 + $0xa0] sm:$0xff] %vm223_vm2, %v7605_v32  ;;  %v7608_v43 = vadd.f32 %v17918_v0, %v7560_v38  ;;  %6954 = vst.msk [vmem:[#allocation3 + $0xd8] sm:$0xff] %vm223_vm2, %v6906_v3  ;;  %v6905_v37 = vadd.f32 %v6857_v33, %v6722_v1  ;;  %v18004_v0 = vsel %vm3505_vm5, %v8640_v11, %v8641_v18  ;;  %v13885_v32 = vld [vmem:[#allocation2 + $0x130] sm:$0xff]  ;;  %v13886_v33 = vld [vmem:[#allocation2 + $0x128] sm:$0xff] }
 0x4c5   : > { %v7559_v10 = vld [vmem:[#allocation3 + $0xb0] sm:$0xff]  ;;  %v13313_v4 = vpop.f32.mrf.mxu1  ;;  %v17996_v55 = vpop.f32.mrf.mxu0  ;;  %13608 = vmatmul.mubr.msk.f32.gmra.mxu1 %vm223_vm2, %v17952_v19  ;;  %13682 = vmatmul.mubr.msk.f32.gmra.mxu0 %vm223_vm2, %v17994_v48  ;;  %v8645_v3 = vrot.slane %v13885_v32, 2  ;;  %v8644_v30 = vrot.slane %v13886_v33, 2 }
 0x4c6   : > { %7656 = vst.msk [vmem:[#allocation3 + $0xb8] sm:$0xff] %vm223_vm2, %v7608_v43  ;;  %v7607_v57 = vadd.f32 %v7559_v10, %v17935_v54  ;;  %6953 = vst.msk [vmem:[#allocation3 + $0xd0] sm:$0xff] %vm223_vm2, %v6905_v37  ;;  %v6908_v14 = vadd.f32 %v13313_v4, %v6860_v61  ;;  %13610 = vmatprep.mubr.msk.f32.mxu1 %vm223_vm2, %v17968_v29  ;;  %13684 = vmatprep.mubr.msk.f32.mxu0 %vm223_vm2, %v18004_v0  ;;  %v6861_v37 = vld [vmem:[#allocation3 + $0xf0] sm:$0xff]  ;;  %v13887_v4 = vld [vmem:[#allocation2 + $0x138] sm:$0xff] }
 0x4c7   : > { %v7562_v23 = vld [vmem:[#allocation3 + $0xc8] sm:$0xff]  ;;  %v6732_v7 = vpop.f32.mrf.mxu1  ;;  %v18013_v44 = vpop.f32.mrf.mxu0  ;;  %v18046_v10 = vsel %vm3505_vm5, %v8643_v22, %v8644_v30  ;;  %v8646_v61 = vrot.slane %v13887_v4, 2 }
 0x4c8   : > { %7655 = vst.msk [vmem:[#allocation3 + $0xb0] sm:$0xff] %vm223_vm2, %v7607_v57  ;;  %v7610_v17 = vadd.f32 %v17944_v58, %v7562_v23  ;;  %6956 = vst.msk [vmem:[#allocation3 + $0xe8] sm:$0xff] %vm223_vm2, %v6908_v14  ;;  %v6907_v54 = vadd.f32 %v6859_v56, %v6732_v7  ;;  %v18030_v58 = vsel %vm3505_vm5, %v8642_v34, %v8643_v22  ;;  %v6864_v14 = vld [vmem:[#allocation3 + $0x108] sm:$0xff] }
 0x4c9   : > { %v7561_v11 = vld [vmem:[#allocation3 + $0xc0] sm:$0xff]  ;;  %v13316_v63 = vpop.f32.mrf.mxu1  ;;  %v18022_v46 = vpop.f32.mrf.mxu0  ;;  %13611 = vmatmul.mubr.msk.f32.gmra.mxu1 %vm223_vm2, %v17978_v28  ;;  %13685 = vmatmul.mubr.msk.f32.gmra.mxu0 %vm223_vm2, %v18020_v49 }
 0x4ca   : > { %7658 = vst.msk [vmem:[#allocation3 + $0xc8] sm:$0xff] %vm223_vm2, %v7610_v17  ;;  %v7609_v38 = vadd.f32 %v7561_v11, %v17961_v41  ;;  %6955 = vst.msk [vmem:[#allocation3 + $0xe0] sm:$0xff] %vm223_vm2, %v6907_v54  ;;  %v6910_v1 = vadd.f32 %v13316_v63, %v6862_v27  ;;  %13613 = vmatprep.mubr.msk.f32.mxu1 %vm223_vm2, %v17994_v48  ;;  %13687 = vmatprep.mubr.msk.f32.mxu0 %vm223_vm2, %v18030_v58  ;;  %v6863_v54 = vld [vmem:[#allocation3 + $0x100] sm:$0xff]  ;;  %v13888_v63 = vld [vmem:[#allocation2 + $0x140] sm:$0xff] }
 0x4cb   : > { %v7564_v18 = vld [vmem:[#allocation3 + $0xd8] sm:$0xff]  ;;  %v6742_v43 = vpop.f32.mrf.mxu1  ;;  %v18039_v25 = vpop.f32.mrf.mxu0  ;;  %v8647_v27 = vrot.slane %v13888_v63, 2 }
 0x4cc   : > { %7657 = vst.msk [vmem:[#allocation3 + $0xc0] sm:$0xff] %vm223_vm2, %v7609_v38  ;;  %v7612_v41 = vadd.f32 %v17970_v16, %v7564_v18  ;;  %6958 = vst.msk [vmem:[#allocation3 + $0xf8] sm:$0xff] %vm223_vm2, %v6910_v1  ;;  %v6909_v34 = vadd.f32 %v6861_v37, %v6742_v43  ;;  %v18056_v16 = vsel %vm3505_vm5, %v8644_v30, %v8645_v3  ;;  %v13889_v1 = vld [vmem:[#allocation2 + $0x148] sm:$0xff] }
 0x4cd   : > { %v7563_v59 = vld [vmem:[#allocation3 + $0xd0] sm:$0xff]  ;;  %v13319_v57 = vpop.f32.mrf.mxu1  ;;  %v18048_v23 = vpop.f32.mrf.mxu0  ;;  %13614 = vmatmul.mubr.msk.f32.gmra.mxu1 %vm223_vm2, %v18004_v0  ;;  %13688 = vmatmul.mubr.msk.f32.gmra.mxu0 %vm223_vm2, %v18046_v10  ;;  %v18072_v38 = vsel %vm3505_vm5, %v8645_v3, %v8646_v61  ;;  %v8648_v33 = vrot.slane %v13889_v1, 2  ;;  %v6866_v43 = vld [vmem:[#allocation3 + $0x118] sm:$0xff] }
 0x4ce   : > { %7660 = vst.msk [vmem:[#allocation3 + $0xd8] sm:$0xff] %vm223_vm2, %v7612_v41  ;;  %v7611_v22 = vadd.f32 %v7563_v59, %v17987_v47  ;;  %6957 = vst.msk [vmem:[#allocation3 + $0xf0] sm:$0xff] %vm223_vm2, %v6909_v34  ;;  %v6912_v7 = vadd.f32 %v13319_v57, %v6864_v14  ;;  %13616 = vmatprep.mubr.msk.f32.mxu1 %vm223_vm2, %v18020_v49  ;;  %13690 = vmatprep.mubr.msk.f32.mxu0 %vm223_vm2, %v18056_v16  ;;  %v13890_v41 = vld [vmem:[#allocation2 + $0x150] sm:$0xff]  ;;  %v6865_v14 = vld [vmem:[#allocation3 + $0x110] sm:$0xff] }
 0x4cf   : > { %v7566_v56 = vld [vmem:[#allocation3 + $0xe8] sm:$0xff]  ;;  %v6752_v17 = vpop.f32.mrf.mxu1  ;;  %v18065_v11 = vpop.f32.mrf.mxu0  ;;  %v8649_v3 = vrot.slane %v13890_v41, 2  ;;  %v6867_v41 = vld [vmem:[#allocation3 + $0x120] sm:$0xff] }
 0x4d0   : > { %7659 = vst.msk [vmem:[#allocation3 + $0xd0] sm:$0xff] %vm223_vm2, %v7611_v22  ;;  %v7614_v47 = vadd.f32 %v17996_v55, %v7566_v56  ;;  %6960 = vst.msk [vmem:[#allocation3 + $0x108] sm:$0xff] %vm223_vm2, %v6912_v7  ;;  %v6911_v32 = vadd.f32 %v6863_v54, %v6752_v17  ;;  %v18082_v55 = vsel %vm3505_vm5, %v8646_v61, %v8647_v27  ;;  %v6868_v54 = vld [vmem:[#allocation3 + $0x128] sm:$0xff] }
 0x4d1   : > { %v7565_v30 = vld [vmem:[#allocation3 + $0xe0] sm:$0xff]  ;;  %v13322_v18 = vpop.f32.mrf.mxu1  ;;  %v18074_v37 = vpop.f32.mrf.mxu0  ;;  %13617 = vmatmul.mubr.msk.f32.gmra.mxu1 %vm223_vm2, %v18030_v58  ;;  %13691 = vmatmul.mubr.msk.f32.gmra.mxu0 %vm223_vm2, %v18072_v38  ;;  %v18098_v7 = vsel %vm3505_vm5, %v8647_v27, %v8648_v33 }
 0x4d2   : > { %7662 = vst.msk [vmem:[#allocation3 + $0xe8] sm:$0xff] %vm223_vm2, %v7614_v47  ;;  %v7613_v34 = vadd.f32 %v7565_v30, %v18013_v44  ;;  %6959 = vst.msk [vmem:[#allocation3 + $0x100] sm:$0xff] %vm223_vm2, %v6911_v32  ;;  %v6914_v4 = vadd.f32 %v13322_v18, %v6866_v43  ;;  %13619 = vmatprep.mubr.msk.f32.mxu1 %vm223_vm2, %v18046_v10  ;;  %13693 = vmatprep.mubr.msk.f32.mxu0 %vm223_vm2, %v18082_v55  ;;  %v13891_v47 = vld [vmem:[#allocation2 + $0x160] sm:$0xff]  ;;  %v13892_v30 = vld [vmem:[#allocation2 + $0x158] sm:$0xff] }
 0x4d3   : > { %v7568_v59 = vld [vmem:[#allocation3 + $0xf8] sm:$0xff]  ;;  %v6762_v57 = vpop.f32.mrf.mxu1  ;;  %v18091_v61 = vpop.f32.mrf.mxu0  ;;  %v8651_v32 = vrot.slane %v13891_v47, 2  ;;  %v8650_v18 = vrot.slane %v13892_v30, 2 }
 0x4d4   : > { %7661 = vst.msk [vmem:[#allocation3 + $0xe0] sm:$0xff] %vm223_vm2, %v7613_v34  ;;  %v7616_v22 = vadd.f32 %v18022_v46, %v7568_v59  ;;  %6962 = vst.msk [vmem:[#allocation3 + $0x118] sm:$0xff] %vm223_vm2, %v6914_v4  ;;  %v6913_v44 = vadd.f32 %v6865_v14, %v6762_v57  ;;  %v18108_v46 = vsel %vm3505_vm5, %v8648_v33, %v8649_v3  ;;  %v13893_v57 = vld [vmem:[#allocation2 + $0x168] sm:$0xff] }
 0x4d5   : > { %v7567_v56 = vld [vmem:[#allocation3 + $0xf0] sm:$0xff]  ;;  %v13325_v17 = vpop.f32.mrf.mxu1  ;;  %v18100_v63 = vpop.f32.mrf.mxu0  ;;  %13620 = vmatmul.mubr.msk.f32.gmra.mxu1 %vm223_vm2, %v18056_v16  ;;  %13694 = vmatmul.mubr.msk.f32.gmra.mxu0 %vm223_vm2, %v18098_v7  ;;  %v18124_v59 = vsel %vm3505_vm5, %v8649_v3, %v8650_v18  ;;  %v8652_v14 = vrot.slane %v13893_v57, 2 }
 0x4d6   : > { %7664 = vst.msk [vmem:[#allocation3 + $0xf8] sm:$0xff] %vm223_vm2, %v7616_v22  ;;  %v7615_v27 = vadd.f32 %v7567_v56, %v18039_v25  ;;  %6961 = vst.msk [vmem:[#allocation3 + $0x110] sm:$0xff] %vm223_vm2, %v6913_v44  ;;  %v6916_v1 = vadd.f32 %v13325_v17, %v6868_v54  ;;  %13622 = vmatprep.mubr.msk.f32.mxu1 %vm223_vm2, %v18072_v38  ;;  %13696 = vmatprep.mubr.msk.f32.mxu0 %vm223_vm2, %v18108_v46  ;;  %v6870_v56 = vld [vmem:[#allocation3 + $0x138] sm:$0xff] }
 0x4d7   : > { %v7570_v43 = vld [vmem:[#allocation3 + $0x108] sm:$0xff]  ;;  %v6772_v33 = vpop.f32.mrf.mxu1  ;;  %v18117_v34 = vpop.f32.mrf.mxu0 }
 0x4d8   : > { %7663 = vst.msk [vmem:[#allocation3 + $0xf0] sm:$0xff] %vm223_vm2, %v7615_v27  ;;  %v7618_v25 = vadd.f32 %v18048_v23, %v7570_v43  ;;  %6964 = vst.msk [vmem:[#allocation3 + $0x128] sm:$0xff] %vm223_vm2, %v6916_v1  ;;  %v6915_v4 = vadd.f32 %v6867_v41, %v6772_v33  ;;  %v18134_v23 = vsel %vm3505_vm5, %v8650_v18, %v8651_v32  ;;  %v6869_v1 = vld [vmem:[#allocation3 + $0x130] sm:$0xff]  ;;  %v13894_v18 = vld [vmem:[#allocation2 + $0x170] sm:$0xff] }
 0x4d9   : > { %v7569_v22 = vld [vmem:[#allocation3 + $0x100] sm:$0xff]  ;;  %v13328_v44 = vpop.f32.mrf.mxu1  ;;  %v18126_v17 = vpop.f32.mrf.mxu0  ;;  %13623 = vmatmul.mubr.msk.f32.gmra.mxu1 %vm223_vm2, %v18082_v55  ;;  %13697 = vmatmul.mubr.msk.f32.gmra.mxu0 %vm223_vm2, %v18124_v59  ;;  %19182 = vst [vmem:[#allocation7_spill] sm:$0xff] %v18134_v23  ;;  %v8653_v43 = vrot.slane %v13894_v18, 2  ;;  %v18150_v41 = vsel %vm3505_vm5, %v8651_v32, %v8652_v14 }
 0x4da   : > { %7666 = vst.msk [vmem:[#allocation3 + $0x108] sm:$0xff] %vm223_vm2, %v7618_v25  ;;  %v7617_v3 = vadd.f32 %v7569_v22, %v18065_v11  ;;  %6963 = vst.msk [vmem:[#allocation3 + $0x120] sm:$0xff] %vm223_vm2, %v6915_v4  ;;  %v6918_v54 = vadd.f32 %v13328_v44, %v6870_v56  ;;  %13625 = vmatprep.mubr.msk.f32.mxu1 %vm223_vm2, %v18098_v7  ;;  %13699 = vmatprep.mubr.msk.f32.mxu0 %vm223_vm2, %v18134_v23  ;;  %v13895_v25 = vld [vmem:[#allocation2 + $0x178] sm:$0xff]  ;;  %v6871_v18 = vld [vmem:[#allocation3 + $0x140] sm:$0xff] }
 0x4db   : > { %v7572_v47 = vld [vmem:[#allocation3 + $0x118] sm:$0xff]  ;;  %v6782_v27 = vpop.f32.mrf.mxu1  ;;  %v18143_v30 = vpop.f32.mrf.mxu0  ;;  %19183 = vst [vmem:[#allocation9_spill] sm:$0xff] %v18150_v41  ;;  %v8654_v4 = vrot.slane %v13895_v25, 2  ;;  %v6872_v44 = vld [vmem:[#allocation3 + $0x148] sm:$0xff] }
 0x4dc   : > { %7665 = vst.msk [vmem:[#allocation3 + $0x100] sm:$0xff] %vm223_vm2, %v7617_v3  ;;  %v7620_v11 = vadd.f32 %v18074_v37, %v7572_v47  ;;  %6966 = vst.msk [vmem:[#allocation3 + $0x138] sm:$0xff] %vm223_vm2, %v6918_v54  ;;  %v6917_v33 = vadd.f32 %v6869_v1, %v6782_v27  ;;  %v18160_v37 = vsel %vm3505_vm5, %v8652_v14, %v8653_v43  ;;  %v13896_v3 = vld [vmem:[#allocation2 + $0x180] sm:$0xff] }
 0x4dd   : > { %v7571_v57 = vld [vmem:[#allocation3 + $0x110] sm:$0xff]  ;;  %v13331_v22 = vpop.f32.mrf.mxu1  ;;  %v18152_v56 = vpop.f32.mrf.mxu0  ;;  %13626 = vmatmul.mubr.msk.f32.gmra.mxu1 %vm223_vm2, %v18108_v46  ;;  %13700 = vmatmul.mubr.msk.f32.gmra.mxu0 %vm223_vm2, %v18150_v41  ;;  %v8655_v32 = vrot.slane %v13896_v3, 2  ;;  %v13897_v3 = vld [vmem:[#allocation2 + $0x190] sm:$0xff] }
 0x4de   : > { %7668 = vst.msk [vmem:[#allocation3 + $0x118] sm:$0xff] %vm223_vm2, %v7620_v11  ;;  %v7619_v54 = vadd.f32 %v7571_v57, %v18091_v61  ;;  %6965 = vst.msk [vmem:[#allocation3 + $0x130] sm:$0xff] %vm223_vm2, %v6917_v33  ;;  %v6920_v47 = vadd.f32 %v13331_v22, %v6872_v44  ;;  %13628 = vmatprep.mubr.msk.f32.mxu1 %vm223_vm2, %v18124_v59  ;;  %13702 = vmatprep.mubr.msk.f32.mxu0 %vm223_vm2, %v18160_v37  ;;  %v6874_v22 = vld [vmem:[#allocation3 + $0x158] sm:$0xff] }
 0x4df   : > { %v7574_v27 = vld [vmem:[#allocation3 + $0x128] sm:$0xff]  ;;  %v6792_v1 = vpop.f32.mrf.mxu1  ;;  %v18169_v14 = vpop.f32.mrf.mxu0  ;;  %v18176_v33 = vsel %vm3505_vm5, %v8653_v43, %v8654_v4 }
 0x4e0   : > { %7667 = vst.msk [vmem:[#allocation3 + $0x110] sm:$0xff] %vm223_vm2, %v7619_v54  ;;  %v7622_v11 = vadd.f32 %v18100_v63, %v7574_v27  ;;  %6968 = vst.msk [vmem:[#allocation3 + $0x148] sm:$0xff] %vm223_vm2, %v6920_v47  ;;  %v6919_v61 = vadd.f32 %v6871_v18, %v6792_v1  ;;  %v18186_v63 = vsel %vm3505_vm5, %v8654_v4, %v8655_v32  ;;  %v8657_v54 = vrot.slane %v13897_v3, 2  ;;  %v13898_v47 = vld [vmem:[#allocation2 + $0x188] sm:$0xff]  ;;  %v18195_v3 = vld [vmem:[#allocation2 + $0x198] sm:$0xff] }
 0x4e1   : > { %v7573_v25 = vld [vmem:[#allocation3 + $0x120] sm:$0xff]  ;;  %v13334_v57 = vpop.f32.mrf.mxu1  ;;  %v18178_v44 = vpop.f32.mrf.mxu0  ;;  %13629 = vmatmul.mubr.msk.f32.gmra.mxu1 %vm223_vm2, %v18134_v23  ;;  %13703 = vmatmul.mubr.msk.f32.gmra.mxu0 %vm223_vm2, %v18176_v33  ;;  %v8656_v43 = vrot.slane %v13898_v47, 2  ;;  %v19159_v47 = vrot.slane %v18195_v3, 2 }
 0x4e2   : > { %7670 = vst.msk [vmem:[#allocation3 + $0x128] sm:$0xff] %vm223_vm2, %v7622_v11  ;;  %v7621_v27 = vadd.f32 %v7573_v25, %v18117_v34  ;;  %6967 = vst.msk [vmem:[#allocation3 + $0x140] sm:$0xff] %vm223_vm2, %v6919_v61  ;;  %v6922_v1 = vadd.f32 %v13334_v57, %v6874_v22  ;;  %13631 = vmatprep.mubr.msk.f32.mxu1 %vm223_vm2, %v18150_v41  ;;  %13705 = vmatprep.mubr.msk.f32.mxu0 %vm223_vm2, %v18186_v63  ;;  %v6876_v22 = vld [vmem:[#allocation3 + $0x168] sm:$0xff] }
 0x4e3   : > { %v7576_v18 = vld [vmem:[#allocation3 + $0x138] sm:$0xff]  ;;  %v6802_v4 = vpop.f32.mrf.mxu1  ;;  %v7508_v23 = vpop.f32.mrf.mxu0  ;;  %v18203_v61 = vsel %vm3505_vm5, %v8655_v32, %v8656_v43 }
 0x4e4   : > { %7669 = vst.msk [vmem:[#allocation3 + $0x120] sm:$0xff] %vm223_vm2, %v7621_v27  ;;  %v7624_v34 = vadd.f32 %v18126_v17, %v7576_v18  ;;  %6970 = vst.msk [vmem:[#allocation3 + $0x158] sm:$0xff] %vm223_vm2, %v6922_v1  ;;  %v6921_v11 = vadd.f32 %v6873_v53, %v6802_v4  ;;  %v18211_v17 = vsel %vm3505_vm5, %v8656_v43, %v8657_v54  ;;  %v6875_v18 = vld [vmem:[#allocation3 + $0x160] sm:$0xff] }
 0x4e5   : > { %v7575_v25 = vld [vmem:[#allocation3 + $0x130] sm:$0xff]  ;;  %v13337_v57 = vpop.f32.mrf.mxu1  ;;  %v13411_v41 = vpop.f32.mrf.mxu0  ;;  %13632 = vmatmul.mubr.msk.f32.gmra.mxu1 %vm223_vm2, %v18160_v37  ;;  %13706 = vmatmul.mubr.msk.f32.gmra.mxu0 %vm223_vm2, %v18203_v61 }
 0x4e6   : > { %7672 = vst.msk [vmem:[#allocation3 + $0x138] sm:$0xff] %vm223_vm2, %v7624_v34  ;;  %v7623_v53 = vadd.f32 %v7575_v25, %v18143_v30  ;;  %6969 = vst.msk [vmem:[#allocation3 + $0x150] sm:$0xff] %vm223_vm2, %v6921_v11  ;;  %v6924_v32 = vadd.f32 %v13337_v57, %v6876_v22  ;;  %13634 = vmatprep.mubr.msk.f32.mxu1 %vm223_vm2, %v18176_v33  ;;  %13708 = vmatprep.mubr.msk.f32.mxu0 %vm223_vm2, %v18211_v17  ;;  %v6878_v57 = vld [vmem:[#allocation3 + $0x178] sm:$0xff] }
 0x4e7   : > { %v7578_v27 = vld [vmem:[#allocation3 + $0x148] sm:$0xff]  ;;  %v6812_v1 = vpop.f32.mrf.mxu1  ;;  %v7518_v4 = vpop.f32.mrf.mxu0  ;;  %v18227_v34 = vsel %vm3505_vm5, %v8657_v54, %v19159_v47 }
 0x4e8   : > { %7671 = vst.msk [vmem:[#allocation3 + $0x130] sm:$0xff] %vm223_vm2, %v7623_v53  ;;  %v7626_v43 = vadd.f32 %v18152_v56, %v7578_v27  ;;  %6972 = vst.msk [vmem:[#allocation3 + $0x168] sm:$0xff] %vm223_vm2, %v6924_v32  ;;  %v6923_v30 = vadd.f32 %v6875_v18, %v6812_v1  ;;  %v6877_v27 = vld [vmem:[#allocation3 + $0x170] sm:$0xff] }
 0x4e9   : > { %v7577_v11 = vld [vmem:[#allocation3 + $0x140] sm:$0xff]  ;;  %v13340_v25 = vpop.f32.mrf.mxu1  ;;  %v13414_v22 = vpop.f32.mrf.mxu0  ;;  %13635 = vmatmul.mubr.msk.f32.gmra.mxu1 %vm223_vm2, %v18186_v63  ;;  %13709 = vmatmul.mubr.msk.f32.gmra.mxu0 %vm223_vm2, %v18227_v34 }
 0x4ea   : > { %7674 = vst.msk [vmem:[#allocation3 + $0x148] sm:$0xff] %vm223_vm2, %v7626_v43  ;;  %v7625_v56 = vadd.f32 %v7577_v11, %v18169_v14  ;;  %6971 = vst.msk [vmem:[#allocation3 + $0x160] sm:$0xff] %vm223_vm2, %v6923_v30  ;;  %v6926_v53 = vadd.f32 %v13340_v25, %v6878_v57  ;;  %13713 = vmatprep.mubr.msk.f32.mxu1 %vm223_vm2, %v17661_v42  ;;  %v8001_v14 = vld [vmem:[#allocation3 + $0x8] sm:$0xff]  ;;  %v8000_v57 = vld [vmem:[#allocation3] sm:$0xff] }
 0x4eb   : > { %v7580_v54 = vld [vmem:[#allocation3 + $0x158] sm:$0xff]  ;;  %v6822_v32 = vpop.f32.mrf.mxu1  ;;  %v7528_v1 = vpop.f32.mrf.mxu0 }
 0x4ec   : > { %7673 = vst.msk [vmem:[#allocation3 + $0x140] sm:$0xff] %vm223_vm2, %v7625_v56  ;;  %v7628_v18 = vadd.f32 %v18178_v44, %v7580_v54  ;;  %6974 = vst.msk [vmem:[#allocation3 + $0x178] sm:$0xff] %vm223_vm2, %v6926_v53  ;;  %v6925_v47 = vadd.f32 %v6877_v27, %v6822_v32  ;;  %v8003_v27 = vld [vmem:[#allocation3 + $0x18] sm:$0xff] }
 0x4ed   : > { %v7579_v43 = vld [vmem:[#allocation3 + $0x150] sm:$0xff]  ;;  %v13419_v24 = vpop.f32.mrf.mxu1  ;;  %v13493_v11 = vpop.f32.mrf.mxu0  ;;  %13714 = vmatmul.mubr.msk.f32.vlgmr.msra.gmra.mxu1 %vm223_vm2, %v17671_v39 }
 0x4ee   : > { %7676 = vst.msk [vmem:[#allocation3 + $0x158] sm:$0xff] %vm223_vm2, %v7628_v18  ;;  %v7627_v42 = vadd.f32 %v7579_v43, %v7508_v23  ;;  %6973 = vst.msk [vmem:[#allocation3 + $0x170] sm:$0xff] %vm223_vm2, %v6925_v47  ;;  %v8049_v30 = vadd.f32 %v13419_v24, %v8001_v14  ;;  %13716 = vmatprep.mubr.msk.f32.mxu1 %vm223_vm2, %v17685_v9  ;;  %v8002_v18 = vld [vmem:[#allocation3 + $0x10] sm:$0xff] }
 0x4ef   : > { %v7582_v44 = vld [vmem:[#allocation3 + $0x168] sm:$0xff]  ;;  %v7761_v25 = vpop.f32.mrf.mxu1  ;;  %v8224_v56 = vpop.f32.mrf.mxu0 }
 0x4f0   : > { %7675 = vst.msk [vmem:[#allocation3 + $0x150] sm:$0xff] %vm223_vm2, %v7627_v42  ;;  %v7630_v53 = vadd.f32 %v13411_v41, %v7582_v44  ;;  %8097 = vst.msk [vmem:[#allocation3 + $0x8] sm:$0xff] %vm223_vm2, %v8049_v30  ;;  %v8048_v54 = vadd.f32 %v8000_v57, %v7761_v25  ;;  %v8005_v44 = vld [vmem:[#allocation3 + $0x28] sm:$0xff] }
 0x4f1   : > { %v7581_v39 = vld [vmem:[#allocation3 + $0x160] sm:$0xff]  ;;  %v13422_v32 = vpop.f32.mrf.mxu1  ;;  %v13496_v23 = vpop.f32.mrf.mxu0  ;;  %13717 = vmatmul.mubr.msk.f32.gmra.mxu1 %vm223_vm2, %v17694_v15 }
 0x4f2   : > { %7678 = vst.msk [vmem:[#allocation3 + $0x168] sm:$0xff] %vm223_vm2, %v7630_v53  ;;  %v7629_v24 = vadd.f32 %v7581_v39, %v7518_v4  ;;  %8096 = vst.msk [vmem:[#allocation3] sm:$0xff] %vm223_vm2, %v8048_v54  ;;  %v8051_v9 = vadd.f32 %v13422_v32, %v8003_v27  ;;  %13719 = vmatprep.mubr.msk.f32.mxu1 %vm223_vm2, %v17708_v26  ;;  %v8004_v53 = vld [vmem:[#allocation3 + $0x20] sm:$0xff] }
 0x4f3   : > { %v7584_v41 = vld [vmem:[#allocation3 + $0x178] sm:$0xff]  ;;  %v7771_v47 = vpop.f32.mrf.mxu1  ;;  %v8234_v43 = vpop.f32.mrf.mxu0 }
 0x4f4   : > { %7677 = vst.msk [vmem:[#allocation3 + $0x160] sm:$0xff] %vm223_vm2, %v7629_v24  ;;  %v7632_v14 = vadd.f32 %v13414_v22, %v7584_v41  ;;  %8099 = vst.msk [vmem:[#allocation3 + $0x18] sm:$0xff] %vm223_vm2, %v8051_v9  ;;  %v8050_v42 = vadd.f32 %v8002_v18, %v7771_v47  ;;  %v8007_v24 = vld [vmem:[#allocation3 + $0x38] sm:$0xff]  ;;  %v8006_v47 = vld [vmem:[#allocation3 + $0x30] sm:$0xff] }
 0x4f5   : > { %v7583_v15 = vld [vmem:[#allocation3 + $0x170] sm:$0xff]  ;;  %v13425_v30 = vpop.f32.mrf.mxu1  ;;  %v13499_v4 = vpop.f32.mrf.mxu0  ;;  %13720 = vmatmul.mubr.msk.f32.gmra.mxu1 %vm223_vm2, %v17718_v31 }
 0x4f6   : > { %7680 = vst.msk [vmem:[#allocation3 + $0x178] sm:$0xff] %vm223_vm2, %v7632_v14  ;;  %v7631_v26 = vadd.f32 %v7583_v15, %v7528_v1  ;;  %8098 = vst.msk [vmem:[#allocation3 + $0x10] sm:$0xff] %vm223_vm2, %v8050_v42  ;;  %v8053_v25 = vadd.f32 %v13425_v30, %v8005_v44  ;;  %13722 = vmatprep.mubr.msk.f32.mxu1 %vm223_vm2, %v17734_v36  ;;  %v8009_v30 = vld [vmem:[#allocation3 + $0x48] sm:$0xff] }
 0x4f7   : > { %v8464_v22 = vld [vmem:[#allocation3 + $0x8] sm:$0xff]  ;;  %v7781_v57 = vpop.f32.mrf.mxu1  ;;  %v8244_v54 = vpop.f32.mrf.mxu0 }
 0x4f8   : > { %7679 = vst.msk [vmem:[#allocation3 + $0x170] sm:$0xff] %vm223_vm2, %v7631_v26  ;;  %v8512_v39 = vadd.f32 %v13493_v11, %v8464_v22  ;;  %8101 = vst.msk [vmem:[#allocation3 + $0x28] sm:$0xff] %vm223_vm2, %v8053_v25  ;;  %v8052_v32 = vadd.f32 %v8004_v53, %v7781_v57  ;;  %v8008_v25 = vld [vmem:[#allocation3 + $0x40] sm:$0xff] }
 0x4f9   : > { %v8463_v31 = vld [vmem:[#allocation3] sm:$0xff]  ;;  %v13428_v27 = vpop.f32.mrf.mxu1  ;;  %v13502_v1 = vpop.f32.mrf.mxu0  ;;  %13723 = vmatmul.mubr.msk.f32.gmra.mxu1 %vm223_vm2, %v17744_v40 }
 0x4fa   : > { %8560 = vst.msk [vmem:[#allocation3 + $0x8] sm:$0xff] %vm223_vm2, %v8512_v39  ;;  %v8511_v36 = vadd.f32 %v8463_v31, %v8224_v56  ;;  %8100 = vst.msk [vmem:[#allocation3 + $0x20] sm:$0xff] %vm223_vm2, %v8052_v32  ;;  %v8055_v9 = vadd.f32 %v13428_v27, %v8007_v24  ;;  %13725 = vmatprep.mubr.msk.f32.mxu1 %vm223_vm2, %v17760_v13  ;;  %v8011_v32 = vld [vmem:[#allocation3 + $0x58] sm:$0xff]  ;;  %v8010_v24 = vld [vmem:[#allocation3 + $0x50] sm:$0xff] }
 0x4fb   : > { %v8466_v11 = vld [vmem:[#allocation3 + $0x18] sm:$0xff]  ;;  %v7791_v41 = vpop.f32.mrf.mxu1  ;;  %v8254_v18 = vpop.f32.mrf.mxu0 }
 0x4fc   : > { %8559 = vst.msk [vmem:[#allocation3] sm:$0xff] %vm223_vm2, %v8511_v36  ;;  %v8514_v14 = vadd.f32 %v13496_v23, %v8466_v11  ;;  %8103 = vst.msk [vmem:[#allocation3 + $0x38] sm:$0xff] %vm223_vm2, %v8055_v9  ;;  %v8054_v42 = vadd.f32 %v8006_v47, %v7791_v41  ;;  %v8013_v47 = vld [vmem:[#allocation3 + $0x68] sm:$0xff] }
 0x4fd   : > { %v8465_v40 = vld [vmem:[#allocation3 + $0x10] sm:$0xff]  ;;  %v13431_v15 = vpop.f32.mrf.mxu1  ;;  %v13505_v56 = vpop.f32.mrf.mxu0  ;;  %13726 = vmatmul.mubr.msk.f32.gmra.mxu1 %vm223_vm2, %v17770_v60 }
 0x4fe   : > { %8562 = vst.msk [vmem:[#allocation3 + $0x18] sm:$0xff] %vm223_vm2, %v8514_v14  ;;  %v8513_v13 = vadd.f32 %v8465_v40, %v8234_v43  ;;  %8102 = vst.msk [vmem:[#allocation3 + $0x30] sm:$0xff] %vm223_vm2, %v8054_v42  ;;  %v8057_v44 = vadd.f32 %v13431_v15, %v8009_v30  ;;  %13728 = vmatprep.mubr.msk.f32.mxu1 %vm223_vm2, %v17786_v5  ;;  %v8012_v40 = vld [vmem:[#allocation3 + $0x60] sm:$0xff] }
 0x4ff   : > { %v8468_v23 = vld [vmem:[#allocation3 + $0x28] sm:$0xff]  ;;  %v7801_v26 = vpop.f32.mrf.mxu1  ;;  %v8264_v22 = vpop.f32.mrf.mxu0 }
 0x500   : > { %8561 = vst.msk [vmem:[#allocation3 + $0x10] sm:$0xff] %vm223_vm2, %v8513_v13  ;;  %v8516_v57 = vadd.f32 %v13499_v4, %v8468_v23  ;;  %8105 = vst.msk [vmem:[#allocation3 + $0x48] sm:$0xff] %vm223_vm2, %v8057_v44  ;;  %v8056_v53 = vadd.f32 %v8008_v25, %v7801_v26  ;;  %v8015_v23 = vld [vmem:[#allocation3 + $0x78] sm:$0xff] }
 0x501   : > { %v8467_v60 = vld [vmem:[#allocation3 + $0x20] sm:$0xff]  ;;  %v13434_v39 = vpop.f32.mrf.mxu1  ;;  %v13508_v43 = vpop.f32.mrf.mxu0  ;;  %13729 = vmatmul.mubr.msk.f32.gmra.mxu1 %vm223_vm2, %v17796_v35 }
 0x502   : > { %8564 = vst.msk [vmem:[#allocation3 + $0x28] sm:$0xff] %vm223_vm2, %v8516_v57  ;;  %v8515_v5 = vadd.f32 %v8467_v60, %v8244_v54  ;;  %8104 = vst.msk [vmem:[#allocation3 + $0x40] sm:$0xff] %vm223_vm2, %v8056_v53  ;;  %v8059_v31 = vadd.f32 %v13434_v39, %v8011_v32  ;;  %13731 = vmatprep.mubr.msk.f32.mxu1 %vm223_vm2, %v17812_v51  ;;  %v8014_v57 = vld [vmem:[#allocation3 + $0x70] sm:$0xff] }
 0x503   : > { %v8470_v4 = vld [vmem:[#allocation3 + $0x38] sm:$0xff]  ;;  %v7811_v27 = vpop.f32.mrf.mxu1  ;;  %v8274_v36 = vpop.f32.mrf.mxu0 }
 0x504   : > { %8563 = vst.msk [vmem:[#allocation3 + $0x20] sm:$0xff] %vm223_vm2, %v8515_v5  ;;  %v8518_v9 = vadd.f32 %v13502_v1, %v8470_v4  ;;  %8107 = vst.msk [vmem:[#allocation3 + $0x58] sm:$0xff] %vm223_vm2, %v8059_v31  ;;  %v8058_v11 = vadd.f32 %v8010_v24, %v7811_v27  ;;  %v8017_v5 = vld [vmem:[#allocation3 + $0x88] sm:$0xff]  ;;  %v8016_v27 = vld [vmem:[#allocation3 + $0x80] sm:$0xff] }
 0x505   : > { %v8469_v35 = vld [vmem:[#allocation3 + $0x30] sm:$0xff]  ;;  %v13437_v41 = vpop.f32.mrf.mxu1  ;;  %v13511_v54 = vpop.f32.mrf.mxu0  ;;  %13732 = vmatmul.mubr.msk.f32.gmra.mxu1 %vm223_vm2, %v17822_v20 }
 0x506   : > { %8566 = vst.msk [vmem:[#allocation3 + $0x38] sm:$0xff] %vm223_vm2, %v8518_v9  ;;  %v8517_v51 = vadd.f32 %v8469_v35, %v8254_v18  ;;  %8106 = vst.msk [vmem:[#allocation3 + $0x50] sm:$0xff] %vm223_vm2, %v8058_v11  ;;  %v8061_v14 = vadd.f32 %v13437_v41, %v8013_v47  ;;  %13734 = vmatprep.mubr.msk.f32.mxu1 %vm223_vm2, %v17838_v21  ;;  %v8019_v41 = vld [vmem:[#allocation3 + $0x98] sm:$0xff] }
 0x507   : > { %v8472_v1 = vld [vmem:[#allocation3 + $0x48] sm:$0xff]  ;;  %v7821_v42 = vpop.f32.mrf.mxu1  ;;  %v8284_v15 = vpop.f32.mrf.mxu0 }
 0x508   : > { %8565 = vst.msk [vmem:[#allocation3 + $0x30] sm:$0xff] %vm223_vm2, %v8517_v51  ;;  %v8520_v30 = vadd.f32 %v13505_v56, %v8472_v1  ;;  %8109 = vst.msk [vmem:[#allocation3 + $0x68] sm:$0xff] %vm223_vm2, %v8061_v14  ;;  %v8060_v13 = vadd.f32 %v8012_v40, %v7821_v42  ;;  %v8018_v14 = vld [vmem:[#allocation3 + $0x90] sm:$0xff] }
 0x509   : > { %v8471_v20 = vld [vmem:[#allocation3 + $0x40] sm:$0xff]  ;;  %v13440_v44 = vpop.f32.mrf.mxu1  ;;  %v13514_v18 = vpop.f32.mrf.mxu0  ;;  %13735 = vmatmul.mubr.msk.f32.gmra.mxu1 %vm223_vm2, %v17848_v6 }
 0x50a   : > { %8568 = vst.msk [vmem:[#allocation3 + $0x48] sm:$0xff] %vm223_vm2, %v8520_v30  ;;  %v8519_v21 = vadd.f32 %v8471_v20, %v8264_v22  ;;  %8108 = vst.msk [vmem:[#allocation3 + $0x60] sm:$0xff] %vm223_vm2, %v8060_v13  ;;  %v8063_v26 = vadd.f32 %v13440_v44, %v8015_v23  ;;  %13737 = vmatprep.mubr.msk.f32.mxu1 %vm223_vm2, %v17864_v52  ;;  %v8021_v13 = vld [vmem:[#allocation3 + $0xa8] sm:$0xff] }
 0x50b   : > { %v8474_v56 = vld [vmem:[#allocation3 + $0x58] sm:$0xff]  ;;  %v7831_v25 = vpop.f32.mrf.mxu1  ;;  %v8294_v53 = vpop.f32.mrf.mxu0 }
 0x50c   : > { %8567 = vst.msk [vmem:[#allocation3 + $0x40] sm:$0xff] %vm223_vm2, %v8519_v21  ;;  %v8522_v60 = vadd.f32 %v13508_v43, %v8474_v56  ;;  %8111 = vst.msk [vmem:[#allocation3 + $0x78] sm:$0xff] %vm223_vm2, %v8063_v26  ;;  %v8062_v39 = vadd.f32 %v8014_v57, %v7831_v25  ;;  %v8023_v57 = vld [vmem:[#allocation3 + $0xb8] sm:$0xff] }
 0x50d   : > { %v8473_v6 = vld [vmem:[#allocation3 + $0x50] sm:$0xff]  ;;  %v13443_v32 = vpop.f32.mrf.mxu1  ;;  %v13517_v22 = vpop.f32.mrf.mxu0  ;;  %13738 = vmatmul.mubr.msk.f32.gmra.mxu1 %vm223_vm2, %v17874_v12 }
 0x50e   : > { %8570 = vst.msk [vmem:[#allocation3 + $0x58] sm:$0xff] %vm223_vm2, %v8522_v60  ;;  %v8521_v52 = vadd.f32 %v8473_v6, %v8274_v36  ;;  %8110 = vst.msk [vmem:[#allocation3 + $0x70] sm:$0xff] %vm223_vm2, %v8062_v39  ;;  %v8065_v31 = vadd.f32 %v13443_v32, %v8017_v5  ;;  %13740 = vmatprep.mubr.msk.f32.mxu1 %vm223_vm2, %v17890_v50  ;;  %v8022_v32 = vld [vmem:[#allocation3 + $0xb0] sm:$0xff] }
 0x50f   : > { %v8476_v43 = vld [vmem:[#allocation3 + $0x68] sm:$0xff]  ;;  %v7841_v4 = vpop.f32.mrf.mxu1  ;;  %v8304_v24 = vpop.f32.mrf.mxu0 }
 0x510   : > { %8569 = vst.msk [vmem:[#allocation3 + $0x50] sm:$0xff] %vm223_vm2, %v8521_v52  ;;  %v8524_v9 = vadd.f32 %v13511_v54, %v8476_v43  ;;  %8113 = vst.msk [vmem:[#allocation3 + $0x88] sm:$0xff] %vm223_vm2, %v8065_v31  ;;  %v8064_v11 = vadd.f32 %v8016_v27, %v7841_v4  ;;  %v8025_v43 = vld [vmem:[#allocation3 + $0xc8] sm:$0xff] }
 0x511   : > { %v8475_v12 = vld [vmem:[#allocation3 + $0x60] sm:$0xff]  ;;  %v13446_v35 = vpop.f32.mrf.mxu1  ;;  %v13520_v36 = vpop.f32.mrf.mxu0  ;;  %13741 = vmatmul.mubr.msk.f32.gmra.mxu1 %vm223_vm2, %v17900_v45 }
 0x512   : > { %8572 = vst.msk [vmem:[#allocation3 + $0x68] sm:$0xff] %vm223_vm2, %v8524_v9  ;;  %v8523_v50 = vadd.f32 %v8475_v12, %v8284_v15  ;;  %8112 = vst.msk [vmem:[#allocation3 + $0x80] sm:$0xff] %vm223_vm2, %v8064_v11  ;;  %v8067_v47 = vadd.f32 %v13446_v35, %v8019_v41  ;;  %13743 = vmatprep.mubr.msk.f32.mxu1 %vm223_vm2, %v17916_v62  ;;  %v8024_v11 = vld [vmem:[#allocation3 + $0xc0] sm:$0xff] }
 0x513   : > { %v8478_v54 = vld [vmem:[#allocation3 + $0x78] sm:$0xff]  ;;  %v7851_v51 = vpop.f32.mrf.mxu1  ;;  %v8314_v1 = vpop.f32.mrf.mxu0 }
 0x514   : > { %8571 = vst.msk [vmem:[#allocation3 + $0x60] sm:$0xff] %vm223_vm2, %v8523_v50  ;;  %v8526_v42 = vadd.f32 %v13514_v18, %v8478_v54  ;;  %8115 = vst.msk [vmem:[#allocation3 + $0x98] sm:$0xff] %vm223_vm2, %v8067_v47  ;;  %v8066_v40 = vadd.f32 %v8018_v14, %v7851_v51  ;;  %v8020_v18 = vld [vmem:[#allocation3 + $0xa0] sm:$0xff]  ;;  %v8027_v50 = vld [vmem:[#allocation3 + $0xd8] sm:$0xff] }
 0x515   : > { %v8477_v45 = vld [vmem:[#allocation3 + $0x70] sm:$0xff]  ;;  %v13449_v30 = vpop.f32.mrf.mxu1  ;;  %v13523_v15 = vpop.f32.mrf.mxu0  ;;  %13744 = vmatmul.mubr.msk.f32.gmra.mxu1 %vm223_vm2, %v17926_v2 }
 0x516   : > { %8574 = vst.msk [vmem:[#allocation3 + $0x78] sm:$0xff] %vm223_vm2, %v8526_v42  ;;  %v8525_v62 = vadd.f32 %v8477_v45, %v8294_v53  ;;  %8114 = vst.msk [vmem:[#allocation3 + $0x90] sm:$0xff] %vm223_vm2, %v8066_v40  ;;  %v8069_v20 = vadd.f32 %v13449_v30, %v8021_v13  ;;  %13746 = vmatprep.mubr.msk.f32.mxu1 %vm223_vm2, %v17942_v8  ;;  %v8029_v13 = vld [vmem:[#allocation3 + $0xe8] sm:$0xff] }
 0x517   : > { %v8480_v44 = vld [vmem:[#allocation3 + $0x88] sm:$0xff]  ;;  %v7861_v23 = vpop.f32.mrf.mxu1  ;;  %v8324_v21 = vpop.f32.mrf.mxu0 }
 0x518   : > { %8573 = vst.msk [vmem:[#allocation3 + $0x70] sm:$0xff] %vm223_vm2, %v8525_v62  ;;  %v8528_v26 = vadd.f32 %v13517_v22, %v8480_v44  ;;  %8117 = vst.msk [vmem:[#allocation3 + $0xa8] sm:$0xff] %vm223_vm2, %v8069_v20  ;;  %v8068_v56 = vadd.f32 %v8020_v18, %v7861_v23  ;;  %v8028_v23 = vld [vmem:[#allocation3 + $0xe0] sm:$0xff] }
 0x519   : > { %v8479_v2 = vld [vmem:[#allocation3 + $0x80] sm:$0xff]  ;;  %v13452_v25 = vpop.f32.mrf.mxu1  ;;  %v13526_v53 = vpop.f32.mrf.mxu0  ;;  %13747 = vmatmul.mubr.msk.f32.gmra.mxu1 %vm223_vm2, %v17952_v19 }
 0x51a   : > { %8576 = vst.msk [vmem:[#allocation3 + $0x88] sm:$0xff] %vm223_vm2, %v8528_v26  ;;  %v8527_v8 = vadd.f32 %v8479_v2, %v8304_v24  ;;  %8116 = vst.msk [vmem:[#allocation3 + $0xa0] sm:$0xff] %vm223_vm2, %v8068_v56  ;;  %v8071_v60 = vadd.f32 %v13452_v25, %v8023_v57  ;;  %13749 = vmatprep.mubr.msk.f32.mxu1 %vm223_vm2, %v17968_v29  ;;  %v8031_v2 = vld [vmem:[#allocation3 + $0xf8] sm:$0xff] }
 0x51b   : > { %v8482_v39 = vld [vmem:[#allocation3 + $0x98] sm:$0xff]  ;;  %v7871_v6 = vpop.f32.mrf.mxu1  ;;  %v8334_v5 = vpop.f32.mrf.mxu0 }
 0x51c   : > { %8575 = vst.msk [vmem:[#allocation3 + $0x80] sm:$0xff] %vm223_vm2, %v8527_v8  ;;  %v8530_v22 = vadd.f32 %v13520_v36, %v8482_v39  ;;  %8119 = vst.msk [vmem:[#allocation3 + $0xb8] sm:$0xff] %vm223_vm2, %v8071_v60  ;;  %v8070_v52 = vadd.f32 %v8022_v32, %v7871_v6  ;;  %v8030_v60 = vld [vmem:[#allocation3 + $0xf0] sm:$0xff] }
 0x51d   : > { %v8481_v19 = vld [vmem:[#allocation3 + $0x90] sm:$0xff]  ;;  %v13455_v31 = vpop.f32.mrf.mxu1  ;;  %v13529_v4 = vpop.f32.mrf.mxu0  ;;  %13750 = vmatmul.mubr.msk.f32.gmra.mxu1 %vm223_vm2, %v17978_v28 }
 0x51e   : > { %8578 = vst.msk [vmem:[#allocation3 + $0x98] sm:$0xff] %vm223_vm2, %v8530_v22  ;;  %v8529_v29 = vadd.f32 %v8481_v19, %v8314_v1  ;;  %8118 = vst.msk [vmem:[#allocation3 + $0xb0] sm:$0xff] %vm223_vm2, %v8070_v52  ;;  %v8073_v27 = vadd.f32 %v13455_v31, %v8025_v43  ;;  %13752 = vmatprep.mubr.msk.f32.mxu1 %vm223_vm2, %v17994_v48  ;;  %v8026_v1 = vld [vmem:[#allocation3 + $0xd0] sm:$0xff]  ;;  %v8033_v22 = vld [vmem:[#allocation3 + $0x108] sm:$0xff] }
 0x51f   : > { %v8484_v24 = vld [vmem:[#allocation3 + $0xa8] sm:$0xff]  ;;  %v7881_v9 = vpop.f32.mrf.mxu1  ;;  %v8344_v12 = vpop.f32.mrf.mxu0 }
 0x520   : > { %8577 = vst.msk [vmem:[#allocation3 + $0x90] sm:$0xff] %vm223_vm2, %v8529_v29  ;;  %v8532_v35 = vadd.f32 %v13523_v15, %v8484_v24  ;;  %8121 = vst.msk [vmem:[#allocation3 + $0xc8] sm:$0xff] %vm223_vm2, %v8073_v27  ;;  %v8072_v41 = vadd.f32 %v8024_v11, %v7881_v9  ;;  %v8035_v11 = vld [vmem:[#allocation3 + $0x118] sm:$0xff] }
 0x521   : > { %v8483_v28 = vld [vmem:[#allocation3 + $0xa0] sm:$0xff]  ;;  %v13458_v36 = vpop.f32.mrf.mxu1  ;;  %v13532_v47 = vpop.f32.mrf.mxu0  ;;  %13753 = vmatmul.mubr.msk.f32.gmra.mxu1 %vm223_vm2, %v18004_v0 }
 0x522   : > { %8580 = vst.msk [vmem:[#allocation3 + $0xa8] sm:$0xff] %vm223_vm2, %v8532_v35  ;;  %v8531_v48 = vadd.f32 %v8483_v28, %v8324_v21  ;;  %8120 = vst.msk [vmem:[#allocation3 + $0xc0] sm:$0xff] %vm223_vm2, %v8072_v41  ;;  %v8075_v54 = vadd.f32 %v13458_v36, %v8027_v50  ;;  %13755 = vmatprep.mubr.msk.f32.mxu1 %vm223_vm2, %v18020_v49  ;;  %v8034_v36 = vld [vmem:[#allocation3 + $0x110] sm:$0xff] }
 0x523   : > { %v8486_v51 = vld [vmem:[#allocation3 + $0xb8] sm:$0xff]  ;;  %v7891_v14 = vpop.f32.mrf.mxu1  ;;  %v8354_v42 = vpop.f32.mrf.mxu0 }
 0x524   : > { %8579 = vst.msk [vmem:[#allocation3 + $0xa0] sm:$0xff] %vm223_vm2, %v8531_v48  ;;  %v8534_v40 = vadd.f32 %v13526_v53, %v8486_v51  ;;  %8123 = vst.msk [vmem:[#allocation3 + $0xd8] sm:$0xff] %vm223_vm2, %v8075_v54  ;;  %v8074_v45 = vadd.f32 %v8026_v1, %v7891_v14  ;;  %v8037_v51 = vld [vmem:[#allocation3 + $0x128] sm:$0xff]  ;;  %v19184_v1 = vld [vmem:[#allocation7_spill] sm:$0xff] }
 0x525   : > { %v8485_v0 = vld [vmem:[#allocation3 + $0xb0] sm:$0xff]  ;;  %v13461_v30 = vpop.f32.mrf.mxu1  ;;  %v13535_v15 = vpop.f32.mrf.mxu0  ;;  %13756 = vmatmul.mubr.msk.f32.gmra.mxu1 %vm223_vm2, %v18030_v58 }
 0x526   : > { %8582 = vst.msk [vmem:[#allocation3 + $0xb8] sm:$0xff] %vm223_vm2, %v8534_v40  ;;  %v8533_v49 = vadd.f32 %v8485_v0, %v8334_v5  ;;  %8122 = vst.msk [vmem:[#allocation3 + $0xd0] sm:$0xff] %vm223_vm2, %v8074_v45  ;;  %v8077_v62 = vadd.f32 %v13461_v30, %v8029_v13  ;;  %13758 = vmatprep.mubr.msk.f32.mxu1 %vm223_vm2, %v18046_v10  ;;  %v19185_v40 = vld [vmem:[#allocation9_spill] sm:$0xff]  ;;  %v8036_v30 = vld [vmem:[#allocation3 + $0x120] sm:$0xff] }
 0x527   : > { %v8488_v20 = vld [vmem:[#allocation3 + $0xc8] sm:$0xff]  ;;  %v7901_v44 = vpop.f32.mrf.mxu1  ;;  %v8364_v18 = vpop.f32.mrf.mxu0 }
 0x528   : > { %8581 = vst.msk [vmem:[#allocation3 + $0xb0] sm:$0xff] %vm223_vm2, %v8533_v49  ;;  %v8536_v21 = vadd.f32 %v13529_v4, %v8488_v20  ;;  %8125 = vst.msk [vmem:[#allocation3 + $0xe8] sm:$0xff] %vm223_vm2, %v8077_v62  ;;  %v8076_v26 = vadd.f32 %v8028_v23, %v7901_v44  ;;  %v8032_v4 = vld [vmem:[#allocation3 + $0x100] sm:$0xff]  ;;  %v8039_v44 = vld [vmem:[#allocation3 + $0x138] sm:$0xff] }
 0x529   : > { %v8487_v58 = vld [vmem:[#allocation3 + $0xc0] sm:$0xff]  ;;  %v13464_v56 = vpop.f32.mrf.mxu1  ;;  %v13538_v25 = vpop.f32.mrf.mxu0  ;;  %13759 = vmatmul.mubr.msk.f32.gmra.mxu1 %vm223_vm2, %v18056_v16 }
 0x52a   : > { %8584 = vst.msk [vmem:[#allocation3 + $0xc8] sm:$0xff] %vm223_vm2, %v8536_v21  ;;  %v8535_v10 = vadd.f32 %v8487_v58, %v8344_v12  ;;  %8124 = vst.msk [vmem:[#allocation3 + $0xe0] sm:$0xff] %vm223_vm2, %v8076_v26  ;;  %v8079_v57 = vadd.f32 %v13464_v56, %v8031_v2  ;;  %13761 = vmatprep.mubr.msk.f32.mxu1 %vm223_vm2, %v18072_v38  ;;  %v8038_v56 = vld [vmem:[#allocation3 + $0x130] sm:$0xff] }
 0x52b   : > { %v8490_v53 = vld [vmem:[#allocation3 + $0xd8] sm:$0xff]  ;;  %v7911_v8 = vpop.f32.mrf.mxu1  ;;  %v8374_v39 = vpop.f32.mrf.mxu0 }
 0x52c   : > { %8583 = vst.msk [vmem:[#allocation3 + $0xc0] sm:$0xff] %vm223_vm2, %v8535_v10  ;;  %v8538_v6 = vadd.f32 %v13532_v47, %v8490_v53  ;;  %8127 = vst.msk [vmem:[#allocation3 + $0xf8] sm:$0xff] %vm223_vm2, %v8079_v57  ;;  %v8078_v32 = vadd.f32 %v8030_v60, %v7911_v8  ;;  %v8041_v53 = vld [vmem:[#allocation3 + $0x148] sm:$0xff] }
 0x52d   : > { %v8489_v16 = vld [vmem:[#allocation3 + $0xd0] sm:$0xff]  ;;  %v13467_v5 = vpop.f32.mrf.mxu1  ;;  %v13541_v52 = vpop.f32.mrf.mxu0  ;;  %13762 = vmatmul.mubr.msk.f32.gmra.mxu1 %vm223_vm2, %v18082_v55 }
 0x52e   : > { %8586 = vst.msk [vmem:[#allocation3 + $0xd8] sm:$0xff] %vm223_vm2, %v8538_v6  ;;  %v8537_v38 = vadd.f32 %v8489_v16, %v8354_v42  ;;  %8126 = vst.msk [vmem:[#allocation3 + $0xf0] sm:$0xff] %vm223_vm2, %v8078_v32  ;;  %v8081_v19 = vadd.f32 %v13467_v5, %v8033_v22  ;;  %13764 = vmatprep.mubr.msk.f32.mxu1 %vm223_vm2, %v18098_v7  ;;  %v8040_v32 = vld [vmem:[#allocation3 + $0x140] sm:$0xff] }
 0x52f   : > { %v8492_v31 = vld [vmem:[#allocation3 + $0xe8] sm:$0xff]  ;;  %v7921_v43 = vpop.f32.mrf.mxu1  ;;  %v8384_v29 = vpop.f32.mrf.mxu0 }
 0x530   : > { %8585 = vst.msk [vmem:[#allocation3 + $0xd0] sm:$0xff] %vm223_vm2, %v8537_v38  ;;  %v8540_v27 = vadd.f32 %v13535_v15, %v8492_v31  ;;  %8129 = vst.msk [vmem:[#allocation3 + $0x108] sm:$0xff] %vm223_vm2, %v8081_v19  ;;  %v8080_v24 = vadd.f32 %v8032_v4, %v7921_v43  ;;  %v8043_v38 = vld [vmem:[#allocation3 + $0x158] sm:$0xff] }
 0x531   : > { %v8491_v55 = vld [vmem:[#allocation3 + $0xe0] sm:$0xff]  ;;  %v13470_v9 = vpop.f32.mrf.mxu1  ;;  %v13544_v12 = vpop.f32.mrf.mxu0  ;;  %13765 = vmatmul.mubr.msk.f32.gmra.mxu1 %vm223_vm2, %v18108_v46  ;;  %v13900_v31 = vld [vmem:[#allocation2 + $0x1a8] sm:$0xff] }
 0x532   : > { %8588 = vst.msk [vmem:[#allocation3 + $0xe8] sm:$0xff] %vm223_vm2, %v8540_v27  ;;  %v8539_v7 = vadd.f32 %v8491_v55, %v8364_v18  ;;  %8128 = vst.msk [vmem:[#allocation3 + $0x100] sm:$0xff] %vm223_vm2, %v8080_v24  ;;  %v8083_v35 = vadd.f32 %v13470_v9, %v8035_v11  ;;  %13767 = vmatprep.mubr.msk.f32.mxu1 %vm223_vm2, %v18124_v59  ;;  %v8660_v43 = vrot.slane %v13900_v31, 2  ;;  %v8042_v9 = vld [vmem:[#allocation3 + $0x150] sm:$0xff] }
 0x533   : > { %v8494_v41 = vld [vmem:[#allocation3 + $0xf8] sm:$0xff]  ;;  %v7931_v28 = vpop.f32.mrf.mxu1  ;;  %v8394_v50 = vpop.f32.mrf.mxu0 }
 0x534   : > { %8587 = vst.msk [vmem:[#allocation3 + $0xe0] sm:$0xff] %vm223_vm2, %v8539_v7  ;;  %v8542_v47 = vadd.f32 %v13538_v25, %v8494_v41  ;;  %8131 = vst.msk [vmem:[#allocation3 + $0x118] sm:$0xff] %vm223_vm2, %v8083_v35  ;;  %v8082_v48 = vadd.f32 %v8034_v36, %v7931_v28  ;;  %v19186_v7 = vrot.slane %v18195_v3, 2 }
 0x535   : > { %v8493_v46 = vld [vmem:[#allocation3 + $0xf0] sm:$0xff]  ;;  %v13473_v54 = vpop.f32.mrf.mxu1  ;;  %v13547_v14 = vpop.f32.mrf.mxu0  ;;  %13768 = vmatmul.mubr.msk.f32.gmra.mxu1 %vm223_vm2, %v19184_v1 }
 0x536   : > { %8590 = vst.msk [vmem:[#allocation3 + $0xf8] sm:$0xff] %vm223_vm2, %v8542_v47  ;;  %v8541_v59 = vadd.f32 %v8493_v46, %v8374_v39  ;;  %8130 = vst.msk [vmem:[#allocation3 + $0x110] sm:$0xff] %vm223_vm2, %v8082_v48  ;;  %v8085_v42 = vadd.f32 %v13473_v54, %v8037_v51  ;;  %13770 = vmatprep.mubr.msk.f32.mxu1 %vm223_vm2, %v19185_v40  ;;  %v8044_v51 = vld [vmem:[#allocation3 + $0x160] sm:$0xff] }
 0x537   : > { %v8496_v45 = vld [vmem:[#allocation3 + $0x108] sm:$0xff]  ;;  %v7941_v0 = vpop.f32.mrf.mxu1  ;;  %v8404_v13 = vpop.f32.mrf.mxu0 }
 0x538   : > { %8589 = vst.msk [vmem:[#allocation3 + $0xf0] sm:$0xff] %vm223_vm2, %v8541_v59  ;;  %v8544_v15 = vadd.f32 %v13541_v52, %v8496_v45  ;;  %8133 = vst.msk [vmem:[#allocation3 + $0x128] sm:$0xff] %vm223_vm2, %v8085_v42  ;;  %v8084_v49 = vadd.f32 %v8036_v30, %v7941_v0  ;;  %v19188_v42 = vld [vmem:[#allocation5_spill] sm:$0xff] }
 0x539   : > { %v8495_v62 = vld [vmem:[#allocation3 + $0x100] sm:$0xff]  ;;  %v13476_v20 = vpop.f32.mrf.mxu1  ;;  %v13550_v23 = vpop.f32.mrf.mxu0  ;;  %13771 = vmatmul.mubr.msk.f32.gmra.mxu1 %vm223_vm2, %v18160_v37  ;;  %v19189_v40 = vrot.slane %v19188_v42, 2 }
 0x53a   : > { %8592 = vst.msk [vmem:[#allocation3 + $0x108] sm:$0xff] %vm223_vm2, %v8544_v15  ;;  %v8543_v18 = vadd.f32 %v8495_v62, %v8384_v29  ;;  %8132 = vst.msk [vmem:[#allocation3 + $0x120] sm:$0xff] %vm223_vm2, %v8084_v49  ;;  %v8087_v21 = vadd.f32 %v13476_v20, %v8039_v44  ;;  %13773 = vmatprep.mubr.msk.f32.mxu1 %vm223_vm2, %v18176_v33 }
 0x53b   : > { %v8498_v26 = vld [vmem:[#allocation3 + $0x118] sm:$0xff]  ;;  %v7951_v58 = vpop.f32.mrf.mxu1  ;;  %v8414_v2 = vpop.f32.mrf.mxu0  ;;  %v8714_v45 = vsel %vm3505_vm5, %v8660_v43, %v19189_v40  ;;  %v9178_v40 = vld [vmem:[#allocation3 + $0x48] sm:$0xff] }
 0x53c   : > { %8591 = vst.msk [vmem:[#allocation3 + $0x100] sm:$0xff] %vm223_vm2, %v8543_v18  ;;  %v8546_v25 = vadd.f32 %v13544_v12, %v8498_v26  ;;  %8135 = vst.msk [vmem:[#allocation3 + $0x138] sm:$0xff] %vm223_vm2, %v8087_v21  ;;  %v8086_v10 = vadd.f32 %v8038_v56, %v7951_v58 }
 0x53d   : > { %v8497_v37 = vld [vmem:[#allocation3 + $0x110] sm:$0xff]  ;;  %v13479_v57 = vpop.f32.mrf.mxu1  ;;  %v13553_v8 = vpop.f32.mrf.mxu0  ;;  %13774 = vmatmul.mubr.msk.f32.gmra.mxu1 %vm223_vm2, %v18186_v63 }
 0x53e   : > { %8594 = vst.msk [vmem:[#allocation3 + $0x118] sm:$0xff] %vm223_vm2, %v8546_v25  ;;  %v8545_v33 = vadd.f32 %v8497_v37, %v8394_v50  ;;  %8134 = vst.msk [vmem:[#allocation3 + $0x130] sm:$0xff] %vm223_vm2, %v8086_v10  ;;  %v8089_v60 = vadd.f32 %v13479_v57, %v8041_v53  ;;  %13776 = vmatprep.mubr.msk.f32.mxu1 %vm223_vm2, %v18203_v61  ;;  %v13901_v61 = vld [vmem:[#allocation2 + $0x1a0] sm:$0xff]  ;;  %v8045_v50 = vld [vmem:[#allocation3 + $0x168] sm:$0xff] }
 0x53f   : > { %v8500_v39 = vld [vmem:[#allocation3 + $0x128] sm:$0xff]  ;;  %v7961_v6 = vpop.f32.mrf.mxu1  ;;  %v8424_v16 = vpop.f32.mrf.mxu0  ;;  %v8659_v4 = vrot.slane %v13901_v61, 2 }
 0x540   : > { %8593 = vst.msk [vmem:[#allocation3 + $0x110] sm:$0xff] %vm223_vm2, %v8545_v33  ;;  %v8548_v5 = vadd.f32 %v13547_v14, %v8500_v39  ;;  %8137 = vst.msk [vmem:[#allocation3 + $0x148] sm:$0xff] %vm223_vm2, %v8089_v60  ;;  %v8088_v22 = vadd.f32 %v8040_v32, %v7961_v6 }
 0x541   : > { %v8499_v63 = vld [vmem:[#allocation3 + $0x120] sm:$0xff]  ;;  %v13482_v52 = vpop.f32.mrf.mxu1  ;;  %v13556_v19 = vpop.f32.mrf.mxu0  ;;  %13777 = vmatmul.mubr.msk.f32.gmra.mxu1 %vm223_vm2, %v18211_v17  ;;  %v8662_v41 = vsel %vm3505_vm5, %v19186_v7, %v8659_v4 }
 0x542   : > { %8596 = vst.msk [vmem:[#allocation3 + $0x128] sm:$0xff] %vm223_vm2, %v8548_v5  ;;  %v8547_v29 = vadd.f32 %v8499_v63, %v8404_v13  ;;  %8136 = vst.msk [vmem:[#allocation3 + $0x140] sm:$0xff] %vm223_vm2, %v8088_v22  ;;  %v8091_v27 = vadd.f32 %v13482_v52, %v8043_v38  ;;  %13779 = vmatprep.mubr.msk.f32.mxu1 %vm223_vm2, %v18227_v34  ;;  %v8661_v34 = vsel %vm3505_vm5, %v8659_v4, %v8660_v43  ;;  %v8047_v13 = vld [vmem:[#allocation3 + $0x178] sm:$0xff] }
 0x543   : > { %v8502_v24 = vld [vmem:[#allocation3 + $0x138] sm:$0xff]  ;;  %v7971_v55 = vpop.f32.mrf.mxu1  ;;  %v8434_v11 = vpop.f32.mrf.mxu0 }
 0x544   : > { %8595 = vst.msk [vmem:[#allocation3 + $0x120] sm:$0xff] %vm223_vm2, %v8547_v29  ;;  %v8550_v17 = vadd.f32 %v13550_v23, %v8502_v24  ;;  %8139 = vst.msk [vmem:[#allocation3 + $0x158] sm:$0xff] %vm223_vm2, %v8091_v27  ;;  %v8090_v12 = vadd.f32 %v8042_v9, %v7971_v55  ;;  %v8046_v23 = vld [vmem:[#allocation3 + $0x170] sm:$0xff]  ;;  %v9174_v27 = vld [vmem:[#allocation3 + $0x28] sm:$0xff] }
 0x545   : > { %v8501_v28 = vld [vmem:[#allocation3 + $0x130] sm:$0xff]  ;;  %v13485_v36 = vpop.f32.mrf.mxu1  ;;  %v13559_v47 = vpop.f32.mrf.mxu0  ;;  %13780 = vmatmul.mubr.msk.f32.gmra.mxu1 %vm223_vm2, %v8662_v41 }
 0x546   : > { %8598 = vst.msk [vmem:[#allocation3 + $0x138] sm:$0xff] %vm223_vm2, %v8550_v17  ;;  %v8549_v48 = vadd.f32 %v8501_v28, %v8414_v2  ;;  %8138 = vst.msk [vmem:[#allocation3 + $0x150] sm:$0xff] %vm223_vm2, %v8090_v12  ;;  %v8093_v46 = vadd.f32 %v13485_v36, %v8045_v50  ;;  %13782 = vmatprep.mubr.msk.f32.mxu1 %vm223_vm2, %v8661_v34  ;;  %v9170_v2 = vld [vmem:[#allocation3 + $0x8] sm:$0xff]  ;;  %v9173_v12 = vld [vmem:[#allocation3 + $0x20] sm:$0xff] }
 0x547   : > { %v8504_v3 = vld [vmem:[#allocation3 + $0x148] sm:$0xff]  ;;  %v7981_v54 = vpop.f32.mrf.mxu1  ;;  %v8444_v14 = vpop.f32.mrf.mxu0  ;;  %v9176_v50 = vld [vmem:[#allocation3 + $0x38] sm:$0xff] }
 0x548   : > { %8597 = vst.msk [vmem:[#allocation3 + $0x130] sm:$0xff] %vm223_vm2, %v8549_v48  ;;  %v8552_v1 = vadd.f32 %v13553_v8, %v8504_v3  ;;  %8141 = vst.msk [vmem:[#allocation3 + $0x168] sm:$0xff] %vm223_vm2, %v8093_v46  ;;  %v8092_v59 = vadd.f32 %v8044_v51, %v7981_v54  ;;  %v9169_v8 = vld [vmem:[#allocation3] sm:$0xff]  ;;  %v9175_v54 = vld [vmem:[#allocation3 + $0x30] sm:$0xff] }
 0x549   : > { %v8503_v0 = vld [vmem:[#allocation3 + $0x140] sm:$0xff]  ;;  %v13488_v30 = vpop.f32.mrf.mxu1  ;;  %v13562_v15 = vpop.f32.mrf.mxu0  ;;  %13783 = vmatmul.mubr.msk.f32.gmra.mxu1 %vm223_vm2, %v8714_v45 }
 0x54a   : > { %8600 = vst.msk [vmem:[#allocation3 + $0x148] sm:$0xff] %vm223_vm2, %v8552_v1  ;;  %v8551_v49 = vadd.f32 %v8503_v0, %v8424_v16  ;;  %8140 = vst.msk [vmem:[#allocation3 + $0x160] sm:$0xff] %vm223_vm2, %v8092_v59  ;;  %v8095_v62 = vadd.f32 %v13488_v30, %v8047_v13  ;;  %v9172_v16 = vld [vmem:[#allocation3 + $0x18] sm:$0xff] }
 0x54b   : > { %v8506_v20 = vld [vmem:[#allocation3 + $0x158] sm:$0xff]  ;;  %v7991_v44 = vpop.f32.mrf.mxu1  ;;  %v8454_v18 = vpop.f32.mrf.mxu0 }
 0x54c   : > { %8599 = vst.msk [vmem:[#allocation3 + $0x140] sm:$0xff] %vm223_vm2, %v8551_v49  ;;  %v8554_v21 = vadd.f32 %v13556_v19, %v8506_v20  ;;  %8143 = vst.msk [vmem:[#allocation3 + $0x178] sm:$0xff] %vm223_vm2, %v8095_v62  ;;  %v8094_v26 = vadd.f32 %v8046_v23, %v7991_v44  ;;  %v9171_v19 = vld [vmem:[#allocation3 + $0x10] sm:$0xff]  ;;  %v9177_v49 = vld [vmem:[#allocation3 + $0x40] sm:$0xff] }
 0x54d   : > { %v8505_v58 = vld [vmem:[#allocation3 + $0x150] sm:$0xff]  ;;  %v13567_v56 = vpop.f32.mrf.mxu1  ;;  %v13641_v25 = vpop.f32.mrf.mxu0 }
 0x54e   : > { %8602 = vst.msk [vmem:[#allocation3 + $0x158] sm:$0xff] %vm223_vm2, %v8554_v21  ;;  %v8553_v10 = vadd.f32 %v8505_v58, %v8434_v11  ;;  %8142 = vst.msk [vmem:[#allocation3 + $0x170] sm:$0xff] %vm223_vm2, %v8094_v26  ;;  %v9218_v37 = vadd.f32 %v13567_v56, %v9170_v2  ;;  %v9180_v21 = vld [vmem:[#allocation3 + $0x58] sm:$0xff] }
 0x54f   : > { %v8508_v57 = vld [vmem:[#allocation3 + $0x168] sm:$0xff]  ;;  %v8930_v53 = vpop.f32.mrf.mxu1  ;;  %v9393_v33 = vpop.f32.mrf.mxu0 }
 0x550   : > { %8601 = vst.msk [vmem:[#allocation3 + $0x150] sm:$0xff] %vm223_vm2, %v8553_v10  ;;  %v8556_v60 = vadd.f32 %v13559_v47, %v8508_v57  ;;  %9266 = vst.msk [vmem:[#allocation3 + $0x8] sm:$0xff] %vm223_vm2, %v9218_v37  ;;  %v9217_v39 = vadd.f32 %v9169_v8, %v8930_v53  ;;  %v9179_v10 = vld [vmem:[#allocation3 + $0x50] sm:$0xff] }
 0x551   : > { %v8507_v6 = vld [vmem:[#allocation3 + $0x160] sm:$0xff]  ;;  %v13570_v32 = vpop.f32.mrf.mxu1  ;;  %v13644_v5 = vpop.f32.mrf.mxu0 }
 0x552   : > { %8604 = vst.msk [vmem:[#allocation3 + $0x168] sm:$0xff] %vm223_vm2, %v8556_v60  ;;  %v8555_v22 = vadd.f32 %v8507_v6, %v8444_v14  ;;  %9265 = vst.msk [vmem:[#allocation3] sm:$0xff] %vm223_vm2, %v9217_v39  ;;  %v9220_v63 = vadd.f32 %v13570_v32, %v9172_v16  ;;  %v9182_v60 = vld [vmem:[#allocation3 + $0x68] sm:$0xff] }
 0x553   : > { %v8510_v52 = vld [vmem:[#allocation3 + $0x178] sm:$0xff]  ;;  %v8940_v38 = vpop.f32.mrf.mxu1  ;;  %v9403_v31 = vpop.f32.mrf.mxu0 }
 0x554   : > { %8603 = vst.msk [vmem:[#allocation3 + $0x160] sm:$0xff] %vm223_vm2, %v8555_v22  ;;  %v8558_v43 = vadd.f32 %v13562_v15, %v8510_v52  ;;  %9268 = vst.msk [vmem:[#allocation3 + $0x18] sm:$0xff] %vm223_vm2, %v9220_v63  ;;  %v9219_v61 = vadd.f32 %v9171_v19, %v8940_v38  ;;  %v9181_v22 = vld [vmem:[#allocation3 + $0x60] sm:$0xff] }
 0x555   : > { %v8509_v4 = vld [vmem:[#allocation3 + $0x170] sm:$0xff]  ;;  %v13573_v29 = vpop.f32.mrf.mxu1  ;;  %v13647_v24 = vpop.f32.mrf.mxu0 }
 0x556   : > { %8606 = vst.msk [vmem:[#allocation3 + $0x178] sm:$0xff] %vm223_vm2, %v8558_v43  ;;  %v8557_v55 = vadd.f32 %v8509_v4, %v8454_v18  ;;  %9267 = vst.msk [vmem:[#allocation3 + $0x10] sm:$0xff] %vm223_vm2, %v9219_v61  ;;  %v9222_v9 = vadd.f32 %v13573_v29, %v9174_v27  ;;  %v9184_v43 = vld [vmem:[#allocation3 + $0x78] sm:$0xff] }
 0x557   : > { %v9633_v11 = vld [vmem:[#allocation3 + $0x8] sm:$0xff]  ;;  %v8950_v17 = vpop.f32.mrf.mxu1  ;;  %v9413_v7 = vpop.f32.mrf.mxu0 }
 0x558   : > { %8605 = vst.msk [vmem:[#allocation3 + $0x170] sm:$0xff] %vm223_vm2, %v8557_v55  ;;  %v9681_v35 = vadd.f32 %v13641_v25, %v9633_v11  ;;  %9270 = vst.msk [vmem:[#allocation3 + $0x28] sm:$0xff] %vm223_vm2, %v9222_v9  ;;  %v9221_v41 = vadd.f32 %v9173_v12, %v8950_v17  ;;  %v9183_v55 = vld [vmem:[#allocation3 + $0x70] sm:$0xff] }
 0x559   : > { %v9632_v28 = vld [vmem:[#allocation3] sm:$0xff]  ;;  %v13576_v36 = vpop.f32.mrf.mxu1  ;;  %v13650_v47 = vpop.f32.mrf.mxu0 }
 0x55a   : > { %9729 = vst.msk [vmem:[#allocation3 + $0x8] sm:$0xff] %vm223_vm2, %v9681_v35  ;;  %v9680_v34 = vadd.f32 %v9632_v28, %v9393_v33  ;;  %9269 = vst.msk [vmem:[#allocation3 + $0x20] sm:$0xff] %vm223_vm2, %v9221_v41  ;;  %v9224_v48 = vadd.f32 %v13576_v36, %v9176_v50  ;;  %v9186_v35 = vld [vmem:[#allocation3 + $0x88] sm:$0xff] }
 0x55b   : > { %v9635_v46 = vld [vmem:[#allocation3 + $0x18] sm:$0xff]  ;;  %v8960_v3 = vpop.f32.mrf.mxu1  ;;  %v9423_v51 = vpop.f32.mrf.mxu0 }
 0x55c   : > { %9728 = vst.msk [vmem:[#allocation3] sm:$0xff] %vm223_vm2, %v9680_v34  ;;  %v9683_v14 = vadd.f32 %v13644_v5, %v9635_v46  ;;  %9272 = vst.msk [vmem:[#allocation3 + $0x38] sm:$0xff] %vm223_vm2, %v9224_v48  ;;  %v9223_v1 = vadd.f32 %v9175_v54, %v8960_v3  ;;  %v9185_v34 = vld [vmem:[#allocation3 + $0x80] sm:$0xff] }
 0x55d   : > { %v9634_v59 = vld [vmem:[#allocation3 + $0x10] sm:$0xff]  ;;  %v13579_v42 = vpop.f32.mrf.mxu1  ;;  %v13653_v45 = vpop.f32.mrf.mxu0 }
 0x55e   : > { %9731 = vst.msk [vmem:[#allocation3 + $0x18] sm:$0xff] %vm223_vm2, %v9683_v14  ;;  %v9682_v0 = vadd.f32 %v9634_v59, %v9403_v31  ;;  %9271 = vst.msk [vmem:[#allocation3 + $0x30] sm:$0xff] %vm223_vm2, %v9223_v1  ;;  %v9226_v30 = vadd.f32 %v13579_v42, %v9178_v40  ;;  %v9188_v14 = vld [vmem:[#allocation3 + $0x98] sm:$0xff] }
 0x55f   : > { %v9637_v13 = vld [vmem:[#allocation3 + $0x28] sm:$0xff]  ;;  %v8970_v15 = vpop.f32.mrf.mxu1  ;;  %v9433_v62 = vpop.f32.mrf.mxu0 }
 0x560   : > { %9730 = vst.msk [vmem:[#allocation3 + $0x10] sm:$0xff] %vm223_vm2, %v9682_v0  ;;  %v9685_v20 = vadd.f32 %v13647_v24, %v9637_v13  ;;  %9274 = vst.msk [vmem:[#allocation3 + $0x48] sm:$0xff] %vm223_vm2, %v9226_v30  ;;  %v9225_v44 = vadd.f32 %v9177_v49, %v8970_v15  ;;  %v9187_v0 = vld [vmem:[#allocation3 + $0x90] sm:$0xff] }
 0x561   : > { %v9636_v23 = vld [vmem:[#allocation3 + $0x20] sm:$0xff]  ;;  %v13582_v18 = vpop.f32.mrf.mxu1  ;;  %v13656_v26 = vpop.f32.mrf.mxu0 }
 0x562   : > { %9733 = vst.msk [vmem:[#allocation3 + $0x28] sm:$0xff] %vm223_vm2, %v9685_v20  ;;  %v9684_v58 = vadd.f32 %v9636_v23, %v9413_v7  ;;  %9273 = vst.msk [vmem:[#allocation3 + $0x40] sm:$0xff] %vm223_vm2, %v9225_v44  ;;  %v9228_v56 = vadd.f32 %v13582_v18, %v9180_v21  ;;  %v9190_v20 = vld [vmem:[#allocation3 + $0xa8] sm:$0xff] }
 0x563   : > { %v9639_v2 = vld [vmem:[#allocation3 + $0x38] sm:$0xff]  ;;  %v8980_v25 = vpop.f32.mrf.mxu1  ;;  %v9443_v37 = vpop.f32.mrf.mxu0 }
 0x564   : > { %9732 = vst.msk [vmem:[#allocation3 + $0x20] sm:$0xff] %vm223_vm2, %v9684_v58  ;;  %v9687_v57 = vadd.f32 %v13650_v47, %v9639_v2  ;;  %9276 = vst.msk [vmem:[#allocation3 + $0x58] sm:$0xff] %vm223_vm2, %v9228_v56  ;;  %v9227_v53 = vadd.f32 %v9179_v10, %v8980_v25  ;;  %v9189_v58 = vld [vmem:[#allocation3 + $0xa0] sm:$0xff] }
 0x565   : > { %v9638_v8 = vld [vmem:[#allocation3 + $0x30] sm:$0xff]  ;;  %v13585_v33 = vpop.f32.mrf.mxu1  ;;  %v13659_v39 = vpop.f32.mrf.mxu0 }
 0x566   : > { %9735 = vst.msk [vmem:[#allocation3 + $0x38] sm:$0xff] %vm223_vm2, %v9687_v57  ;;  %v9686_v6 = vadd.f32 %v9638_v8, %v9423_v51  ;;  %9275 = vst.msk [vmem:[#allocation3 + $0x50] sm:$0xff] %vm223_vm2, %v9227_v53  ;;  %v9230_v32 = vadd.f32 %v13585_v33, %v9182_v60  ;;  %v9192_v57 = vld [vmem:[#allocation3 + $0xb8] sm:$0xff] }
 0x567   : > { %v9641_v16 = vld [vmem:[#allocation3 + $0x48] sm:$0xff]  ;;  %v8990_v5 = vpop.f32.mrf.mxu1  ;;  %v9453_v63 = vpop.f32.mrf.mxu0 }
 0x568   : > { %9734 = vst.msk [vmem:[#allocation3 + $0x30] sm:$0xff] %vm223_vm2, %v9686_v6  ;;  %v9689_v52 = vadd.f32 %v13653_v45, %v9641_v16  ;;  %9278 = vst.msk [vmem:[#allocation3 + $0x68] sm:$0xff] %vm223_vm2, %v9230_v32  ;;  %v9229_v38 = vadd.f32 %v9181_v22, %v8990_v5  ;;  %v9191_v6 = vld [vmem:[#allocation3 + $0xb0] sm:$0xff] }
 0x569   : > { %v9640_v19 = vld [vmem:[#allocation3 + $0x40] sm:$0xff]  ;;  %v13588_v31 = vpop.f32.mrf.mxu1  ;;  %v13662_v61 = vpop.f32.mrf.mxu0 }
 0x56a   : > { %9737 = vst.msk [vmem:[#allocation3 + $0x48] sm:$0xff] %vm223_vm2, %v9689_v52  ;;  %v9688_v4 = vadd.f32 %v9640_v19, %v9433_v62  ;;  %9277 = vst.msk [vmem:[#allocation3 + $0x60] sm:$0xff] %vm223_vm2, %v9229_v38  ;;  %v9232_v29 = vadd.f32 %v13588_v31, %v9184_v43  ;;  %v9194_v52 = vld [vmem:[#allocation3 + $0xc8] sm:$0xff] }
 0x56b   : > { %v9643_v27 = vld [vmem:[#allocation3 + $0x58] sm:$0xff]  ;;  %v9000_v24 = vpop.f32.mrf.mxu1  ;;  %v9463_v9 = vpop.f32.mrf.mxu0 }
 0x56c   : > { %9736 = vst.msk [vmem:[#allocation3 + $0x40] sm:$0xff] %vm223_vm2, %v9688_v4  ;;  %v9691_v11 = vadd.f32 %v13656_v26, %v9643_v27  ;;  %9280 = vst.msk [vmem:[#allocation3 + $0x78] sm:$0xff] %vm223_vm2, %v9232_v29  ;;  %v9231_v17 = vadd.f32 %v9183_v55, %v9000_v24  ;;  %v9193_v4 = vld [vmem:[#allocation3 + $0xc0] sm:$0xff] }
 0x56d   : > { %v9642_v12 = vld [vmem:[#allocation3 + $0x50] sm:$0xff]  ;;  %v13591_v7 = vpop.f32.mrf.mxu1  ;;  %v13665_v41 = vpop.f32.mrf.mxu0 }
 0x56e   : > { %9739 = vst.msk [vmem:[#allocation3 + $0x58] sm:$0xff] %vm223_vm2, %v9691_v11  ;;  %v9690_v28 = vadd.f32 %v9642_v12, %v9443_v37  ;;  %9279 = vst.msk [vmem:[#allocation3 + $0x70] sm:$0xff] %vm223_vm2, %v9231_v17  ;;  %v9234_v36 = vadd.f32 %v13591_v7, %v9186_v35  ;;  %v9196_v11 = vld [vmem:[#allocation3 + $0xd8] sm:$0xff] }
 0x56f   : > { %v9645_v50 = vld [vmem:[#allocation3 + $0x68] sm:$0xff]  ;;  %v9010_v47 = vpop.f32.mrf.mxu1  ;;  %v9473_v48 = vpop.f32.mrf.mxu0 }
 0x570   : > { %9738 = vst.msk [vmem:[#allocation3 + $0x50] sm:$0xff] %vm223_vm2, %v9690_v28  ;;  %v9693_v46 = vadd.f32 %v13659_v39, %v9645_v50  ;;  %9282 = vst.msk [vmem:[#allocation3 + $0x88] sm:$0xff] %vm223_vm2, %v9234_v36  ;;  %v9233_v3 = vadd.f32 %v9185_v34, %v9010_v47  ;;  %v9195_v28 = vld [vmem:[#allocation3 + $0xd0] sm:$0xff] }
 0x571   : > { %v9644_v54 = vld [vmem:[#allocation3 + $0x60] sm:$0xff]  ;;  %v13594_v51 = vpop.f32.mrf.mxu1  ;;  %v13668_v1 = vpop.f32.mrf.mxu0 }
 0x572   : > { %9741 = vst.msk [vmem:[#allocation3 + $0x68] sm:$0xff] %vm223_vm2, %v9693_v46  ;;  %v9692_v59 = vadd.f32 %v9644_v54, %v9453_v63  ;;  %9281 = vst.msk [vmem:[#allocation3 + $0x80] sm:$0xff] %vm223_vm2, %v9233_v3  ;;  %v9236_v42 = vadd.f32 %v13594_v51, %v9188_v14  ;;  %v9198_v46 = vld [vmem:[#allocation3 + $0xe8] sm:$0xff] }
 0x573   : > { %v9647_v40 = vld [vmem:[#allocation3 + $0x78] sm:$0xff]  ;;  %v9020_v45 = vpop.f32.mrf.mxu1  ;;  %v9483_v30 = vpop.f32.mrf.mxu0 }
 0x574   : > { %9740 = vst.msk [vmem:[#allocation3 + $0x60] sm:$0xff] %vm223_vm2, %v9692_v59  ;;  %v9695_v13 = vadd.f32 %v13662_v61, %v9647_v40  ;;  %9284 = vst.msk [vmem:[#allocation3 + $0x98] sm:$0xff] %vm223_vm2, %v9236_v42  ;;  %v9235_v15 = vadd.f32 %v9187_v0, %v9020_v45  ;;  %v9197_v59 = vld [vmem:[#allocation3 + $0xe0] sm:$0xff] }
 0x575   : > { %v9646_v49 = vld [vmem:[#allocation3 + $0x70] sm:$0xff]  ;;  %v13597_v62 = vpop.f32.mrf.mxu1  ;;  %v13671_v44 = vpop.f32.mrf.mxu0 }
 0x576   : > { %9743 = vst.msk [vmem:[#allocation3 + $0x78] sm:$0xff] %vm223_vm2, %v9695_v13  ;;  %v9694_v23 = vadd.f32 %v9646_v49, %v9463_v9  ;;  %9283 = vst.msk [vmem:[#allocation3 + $0x90] sm:$0xff] %vm223_vm2, %v9235_v15  ;;  %v9238_v18 = vadd.f32 %v13597_v62, %v9190_v20  ;;  %v9200_v13 = vld [vmem:[#allocation3 + $0xf8] sm:$0xff] }
 0x577   : > { %v9649_v21 = vld [vmem:[#allocation3 + $0x88] sm:$0xff]  ;;  %v9030_v26 = vpop.f32.mrf.mxu1  ;;  %v9493_v56 = vpop.f32.mrf.mxu0 }
 0x578   : > { %9742 = vst.msk [vmem:[#allocation3 + $0x70] sm:$0xff] %vm223_vm2, %v9694_v23  ;;  %v9697_v2 = vadd.f32 %v13665_v41, %v9649_v21  ;;  %9286 = vst.msk [vmem:[#allocation3 + $0xa8] sm:$0xff] %vm223_vm2, %v9238_v18  ;;  %v9237_v25 = vadd.f32 %v9189_v58, %v9030_v26  ;;  %v9199_v23 = vld [vmem:[#allocation3 + $0xf0] sm:$0xff] }
 0x579   : > { %v9648_v10 = vld [vmem:[#allocation3 + $0x80] sm:$0xff]  ;;  %v13600_v37 = vpop.f32.mrf.mxu1  ;;  %v13674_v53 = vpop.f32.mrf.mxu0 }
 0x57a   : > { %9745 = vst.msk [vmem:[#allocation3 + $0x88] sm:$0xff] %vm223_vm2, %v9697_v2  ;;  %v9696_v8 = vadd.f32 %v9648_v10, %v9473_v48  ;;  %9285 = vst.msk [vmem:[#allocation3 + $0xa0] sm:$0xff] %vm223_vm2, %v9237_v25  ;;  %v9240_v33 = vadd.f32 %v13600_v37, %v9192_v57  ;;  %v9202_v2 = vld [vmem:[#allocation3 + $0x108] sm:$0xff] }
 0x57b   : > { %v9651_v60 = vld [vmem:[#allocation3 + $0x98] sm:$0xff]  ;;  %v9040_v39 = vpop.f32.mrf.mxu1  ;;  %v9503_v32 = vpop.f32.mrf.mxu0 }
 0x57c   : > { %9744 = vst.msk [vmem:[#allocation3 + $0x80] sm:$0xff] %vm223_vm2, %v9696_v8  ;;  %v9699_v16 = vadd.f32 %v13668_v1, %v9651_v60  ;;  %9288 = vst.msk [vmem:[#allocation3 + $0xb8] sm:$0xff] %vm223_vm2, %v9240_v33  ;;  %v9239_v5 = vadd.f32 %v9191_v6, %v9040_v39  ;;  %v9201_v8 = vld [vmem:[#allocation3 + $0x100] sm:$0xff] }
 0x57d   : > { %v9650_v22 = vld [vmem:[#allocation3 + $0x90] sm:$0xff]  ;;  %v13603_v63 = vpop.f32.mrf.mxu1  ;;  %v13677_v38 = vpop.f32.mrf.mxu0 }
 0x57e   : > { %9747 = vst.msk [vmem:[#allocation3 + $0x98] sm:$0xff] %vm223_vm2, %v9699_v16  ;;  %v9698_v19 = vadd.f32 %v9650_v22, %v9483_v30  ;;  %9287 = vst.msk [vmem:[#allocation3 + $0xb0] sm:$0xff] %vm223_vm2, %v9239_v5  ;;  %v9242_v31 = vadd.f32 %v13603_v63, %v9194_v52  ;;  %v9204_v16 = vld [vmem:[#allocation3 + $0x118] sm:$0xff] }
 0x57f   : > { %v9653_v43 = vld [vmem:[#allocation3 + $0xa8] sm:$0xff]  ;;  %v9050_v61 = vpop.f32.mrf.mxu1  ;;  %v9513_v29 = vpop.f32.mrf.mxu0 }
 0x580   : > { %9746 = vst.msk [vmem:[#allocation3 + $0x90] sm:$0xff] %vm223_vm2, %v9698_v19  ;;  %v9701_v27 = vadd.f32 %v13671_v44, %v9653_v43  ;;  %9290 = vst.msk [vmem:[#allocation3 + $0xc8] sm:$0xff] %vm223_vm2, %v9242_v31  ;;  %v9241_v24 = vadd.f32 %v9193_v4, %v9050_v61  ;;  %v9203_v19 = vld [vmem:[#allocation3 + $0x110] sm:$0xff] }
 0x581   : > { %v9652_v55 = vld [vmem:[#allocation3 + $0xa0] sm:$0xff]  ;;  %v13606_v9 = vpop.f32.mrf.mxu1  ;;  %v13680_v17 = vpop.f32.mrf.mxu0 }
 0x582   : > { %9749 = vst.msk [vmem:[#allocation3 + $0xa8] sm:$0xff] %vm223_vm2, %v9701_v27  ;;  %v9700_v12 = vadd.f32 %v9652_v55, %v9493_v56  ;;  %9289 = vst.msk [vmem:[#allocation3 + $0xc0] sm:$0xff] %vm223_vm2, %v9241_v24  ;;  %v9244_v7 = vadd.f32 %v13606_v9, %v9196_v11  ;;  %v9206_v27 = vld [vmem:[#allocation3 + $0x128] sm:$0xff] }
 0x583   : > { %v9655_v35 = vld [vmem:[#allocation3 + $0xb8] sm:$0xff]  ;;  %v9060_v41 = vpop.f32.mrf.mxu1  ;;  %v9523_v36 = vpop.f32.mrf.mxu0 }
 0x584   : > { %9748 = vst.msk [vmem:[#allocation3 + $0xa0] sm:$0xff] %vm223_vm2, %v9700_v12  ;;  %v9703_v50 = vadd.f32 %v13674_v53, %v9655_v35  ;;  %9292 = vst.msk [vmem:[#allocation3 + $0xd8] sm:$0xff] %vm223_vm2, %v9244_v7  ;;  %v9243_v47 = vadd.f32 %v9195_v28, %v9060_v41  ;;  %v9205_v12 = vld [vmem:[#allocation3 + $0x120] sm:$0xff] }
 0x585   : > { %v9654_v34 = vld [vmem:[#allocation3 + $0xb0] sm:$0xff]  ;;  %v13609_v48 = vpop.f32.mrf.mxu1  ;;  %v13683_v3 = vpop.f32.mrf.mxu0 }
 0x586   : > { %9751 = vst.msk [vmem:[#allocation3 + $0xb8] sm:$0xff] %vm223_vm2, %v9703_v50  ;;  %v9702_v54 = vadd.f32 %v9654_v34, %v9503_v32  ;;  %9291 = vst.msk [vmem:[#allocation3 + $0xd0] sm:$0xff] %vm223_vm2, %v9243_v47  ;;  %v9246_v51 = vadd.f32 %v13609_v48, %v9198_v46  ;;  %v9208_v50 = vld [vmem:[#allocation3 + $0x138] sm:$0xff] }
 0x587   : > { %v9657_v14 = vld [vmem:[#allocation3 + $0xc8] sm:$0xff]  ;;  %v9070_v1 = vpop.f32.mrf.mxu1  ;;  %v9533_v42 = vpop.f32.mrf.mxu0 }
 0x588   : > { %9750 = vst.msk [vmem:[#allocation3 + $0xb0] sm:$0xff] %vm223_vm2, %v9702_v54  ;;  %v9705_v40 = vadd.f32 %v13677_v38, %v9657_v14  ;;  %9294 = vst.msk [vmem:[#allocation3 + $0xe8] sm:$0xff] %vm223_vm2, %v9246_v51  ;;  %v9245_v45 = vadd.f32 %v9197_v59, %v9070_v1  ;;  %v9207_v54 = vld [vmem:[#allocation3 + $0x130] sm:$0xff] }
 0x589   : > { %v9656_v0 = vld [vmem:[#allocation3 + $0xc0] sm:$0xff]  ;;  %v13612_v30 = vpop.f32.mrf.mxu1  ;;  %v13686_v15 = vpop.f32.mrf.mxu0 }
 0x58a   : > { %9753 = vst.msk [vmem:[#allocation3 + $0xc8] sm:$0xff] %vm223_vm2, %v9705_v40  ;;  %v9704_v49 = vadd.f32 %v9656_v0, %v9513_v29  ;;  %9293 = vst.msk [vmem:[#allocation3 + $0xe0] sm:$0xff] %vm223_vm2, %v9245_v45  ;;  %v9248_v62 = vadd.f32 %v13612_v30, %v9200_v13  ;;  %v9210_v40 = vld [vmem:[#allocation3 + $0x148] sm:$0xff] }
 0x58b   : > { %v9659_v20 = vld [vmem:[#allocation3 + $0xd8] sm:$0xff]  ;;  %v9080_v44 = vpop.f32.mrf.mxu1  ;;  %v9543_v18 = vpop.f32.mrf.mxu0 }
 0x58c   : > { %9752 = vst.msk [vmem:[#allocation3 + $0xc0] sm:$0xff] %vm223_vm2, %v9704_v49  ;;  %v9707_v21 = vadd.f32 %v13680_v17, %v9659_v20  ;;  %9296 = vst.msk [vmem:[#allocation3 + $0xf8] sm:$0xff] %vm223_vm2, %v9248_v62  ;;  %v9247_v26 = vadd.f32 %v9199_v23, %v9080_v44  ;;  %v9209_v49 = vld [vmem:[#allocation3 + $0x140] sm:$0xff] }
 0x58d   : > { %v9658_v58 = vld [vmem:[#allocation3 + $0xd0] sm:$0xff]  ;;  %v13615_v56 = vpop.f32.mrf.mxu1  ;;  %v13689_v25 = vpop.f32.mrf.mxu0 }
 0x58e   : > { %9755 = vst.msk [vmem:[#allocation3 + $0xd8] sm:$0xff] %vm223_vm2, %v9707_v21  ;;  %v9706_v10 = vadd.f32 %v9658_v58, %v9523_v36  ;;  %9295 = vst.msk [vmem:[#allocation3 + $0xf0] sm:$0xff] %vm223_vm2, %v9247_v26  ;;  %v9250_v37 = vadd.f32 %v13615_v56, %v9202_v2  ;;  %v9212_v21 = vld [vmem:[#allocation3 + $0x158] sm:$0xff] }
 0x58f   : > { %v9661_v57 = vld [vmem:[#allocation3 + $0xe8] sm:$0xff]  ;;  %v9090_v53 = vpop.f32.mrf.mxu1  ;;  %v9553_v33 = vpop.f32.mrf.mxu0 }
 0x590   : > { %9754 = vst.msk [vmem:[#allocation3 + $0xd0] sm:$0xff] %vm223_vm2, %v9706_v10  ;;  %v9709_v60 = vadd.f32 %v13683_v3, %v9661_v57  ;;  %9298 = vst.msk [vmem:[#allocation3 + $0x108] sm:$0xff] %vm223_vm2, %v9250_v37  ;;  %v9249_v39 = vadd.f32 %v9201_v8, %v9090_v53  ;;  %v9211_v10 = vld [vmem:[#allocation3 + $0x150] sm:$0xff] }
 0x591   : > { %v9660_v6 = vld [vmem:[#allocation3 + $0xe0] sm:$0xff]  ;;  %v13618_v32 = vpop.f32.mrf.mxu1  ;;  %v13692_v5 = vpop.f32.mrf.mxu0 }
 0x592   : > { %9757 = vst.msk [vmem:[#allocation3 + $0xe8] sm:$0xff] %vm223_vm2, %v9709_v60  ;;  %v9708_v22 = vadd.f32 %v9660_v6, %v9533_v42  ;;  %9297 = vst.msk [vmem:[#allocation3 + $0x100] sm:$0xff] %vm223_vm2, %v9249_v39  ;;  %v9252_v63 = vadd.f32 %v13618_v32, %v9204_v16  ;;  %v9214_v60 = vld [vmem:[#allocation3 + $0x168] sm:$0xff] }
 0x593   : > { %v9663_v52 = vld [vmem:[#allocation3 + $0xf8] sm:$0xff]  ;;  %v9100_v38 = vpop.f32.mrf.mxu1  ;;  %v9563_v31 = vpop.f32.mrf.mxu0 }
 0x594   : > { %9756 = vst.msk [vmem:[#allocation3 + $0xe0] sm:$0xff] %vm223_vm2, %v9708_v22  ;;  %v9711_v43 = vadd.f32 %v13686_v15, %v9663_v52  ;;  %9300 = vst.msk [vmem:[#allocation3 + $0x118] sm:$0xff] %vm223_vm2, %v9252_v63  ;;  %v9251_v61 = vadd.f32 %v9203_v19, %v9100_v38 }
 0x595   : > { %v9662_v4 = vld [vmem:[#allocation3 + $0xf0] sm:$0xff]  ;;  %v13621_v29 = vpop.f32.mrf.mxu1  ;;  %v13695_v24 = vpop.f32.mrf.mxu0 }
 0x596   : > { %9759 = vst.msk [vmem:[#allocation3 + $0xf8] sm:$0xff] %vm223_vm2, %v9711_v43  ;;  %v9710_v55 = vadd.f32 %v9662_v4, %v9543_v18  ;;  %9299 = vst.msk [vmem:[#allocation3 + $0x110] sm:$0xff] %vm223_vm2, %v9251_v61  ;;  %v9254_v9 = vadd.f32 %v13621_v29, %v9206_v27  ;;  %v9215_v27 = vld [vmem:[#allocation3 + $0x170] sm:$0xff] }
 0x597   : > { %v9665_v11 = vld [vmem:[#allocation3 + $0x108] sm:$0xff]  ;;  %v9110_v17 = vpop.f32.mrf.mxu1  ;;  %v9573_v7 = vpop.f32.mrf.mxu0 }
 0x598   : > { %9758 = vst.msk [vmem:[#allocation3 + $0xf0] sm:$0xff] %vm223_vm2, %v9710_v55  ;;  %v9713_v35 = vadd.f32 %v13689_v25, %v9665_v11  ;;  %9302 = vst.msk [vmem:[#allocation3 + $0x128] sm:$0xff] %vm223_vm2, %v9254_v9  ;;  %v9253_v41 = vadd.f32 %v9205_v12, %v9110_v17  ;;  %v10096_v12 = vld [vmem:[#allocation3 + $0x8] sm:$0xff] }
 0x599   : > { %v9664_v28 = vld [vmem:[#allocation3 + $0x100] sm:$0xff]  ;;  %v13624_v36 = vpop.f32.mrf.mxu1  ;;  %v13698_v47 = vpop.f32.mrf.mxu0 }
 0x59a   : > { %9761 = vst.msk [vmem:[#allocation3 + $0x108] sm:$0xff] %vm223_vm2, %v9713_v35  ;;  %v9712_v34 = vadd.f32 %v9664_v28, %v9553_v33  ;;  %9301 = vst.msk [vmem:[#allocation3 + $0x120] sm:$0xff] %vm223_vm2, %v9253_v41  ;;  %v9256_v48 = vadd.f32 %v13624_v36, %v9208_v50  ;;  %v10095_v36 = vld [vmem:[#allocation3] sm:$0xff] }
 0x59b   : > { %v9667_v46 = vld [vmem:[#allocation3 + $0x118] sm:$0xff]  ;;  %v9120_v3 = vpop.f32.mrf.mxu1  ;;  %v9583_v51 = vpop.f32.mrf.mxu0 }
 0x59c   : > { %9760 = vst.msk [vmem:[#allocation3 + $0x100] sm:$0xff] %vm223_vm2, %v9712_v34  ;;  %v9715_v14 = vadd.f32 %v13692_v5, %v9667_v46  ;;  %9304 = vst.msk [vmem:[#allocation3 + $0x138] sm:$0xff] %vm223_vm2, %v9256_v48  ;;  %v9255_v1 = vadd.f32 %v9207_v54, %v9120_v3  ;;  %v9213_v5 = vld [vmem:[#allocation3 + $0x160] sm:$0xff]  ;;  %v10098_v3 = vld [vmem:[#allocation3 + $0x18] sm:$0xff] }
 0x59d   : > { %v9666_v59 = vld [vmem:[#allocation3 + $0x110] sm:$0xff]  ;;  %v13627_v42 = vpop.f32.mrf.mxu1  ;;  %v13701_v45 = vpop.f32.mrf.mxu0 }
 0x59e   : > { %9763 = vst.msk [vmem:[#allocation3 + $0x118] sm:$0xff] %vm223_vm2, %v9715_v14  ;;  %v9714_v0 = vadd.f32 %v9666_v59, %v9563_v31  ;;  %9303 = vst.msk [vmem:[#allocation3 + $0x130] sm:$0xff] %vm223_vm2, %v9255_v1  ;;  %v9258_v30 = vadd.f32 %v13627_v42, %v9210_v40  ;;  %v9216_v31 = vld [vmem:[#allocation3 + $0x178] sm:$0xff]  ;;  %v10097_v59 = vld [vmem:[#allocation3 + $0x10] sm:$0xff] }
 0x59f   : > { %v9669_v13 = vld [vmem:[#allocation3 + $0x128] sm:$0xff]  ;;  %v9130_v15 = vpop.f32.mrf.mxu1  ;;  %v9593_v62 = vpop.f32.mrf.mxu0 }
 0x5a0   : > { %9762 = vst.msk [vmem:[#allocation3 + $0x110] sm:$0xff] %vm223_vm2, %v9714_v0  ;;  %v9717_v20 = vadd.f32 %v13695_v24, %v9669_v13  ;;  %9306 = vst.msk [vmem:[#allocation3 + $0x148] sm:$0xff] %vm223_vm2, %v9258_v30  ;;  %v9257_v44 = vadd.f32 %v9209_v49, %v9130_v15  ;;  %v10100_v13 = vld [vmem:[#allocation3 + $0x28] sm:$0xff] }
 0x5a1   : > { %v9668_v23 = vld [vmem:[#allocation3 + $0x120] sm:$0xff]  ;;  %v13630_v18 = vpop.f32.mrf.mxu1  ;;  %v13704_v26 = vpop.f32.mrf.mxu0 }
 0x5a2   : > { %9765 = vst.msk [vmem:[#allocation3 + $0x128] sm:$0xff] %vm223_vm2, %v9717_v20  ;;  %v9716_v58 = vadd.f32 %v9668_v23, %v9573_v7  ;;  %9305 = vst.msk [vmem:[#allocation3 + $0x140] sm:$0xff] %vm223_vm2, %v9257_v44  ;;  %v9260_v56 = vadd.f32 %v13630_v18, %v9212_v21  ;;  %v10099_v20 = vld [vmem:[#allocation3 + $0x20] sm:$0xff]  ;;  %v10102_v21 = vld [vmem:[#allocation3 + $0x38] sm:$0xff] }
 0x5a3   : > { %v9671_v2 = vld [vmem:[#allocation3 + $0x138] sm:$0xff]  ;;  %v9140_v25 = vpop.f32.mrf.mxu1  ;;  %v9603_v8 = vpop.f32.mrf.mxu0 }
 0x5a4   : > { %9764 = vst.msk [vmem:[#allocation3 + $0x120] sm:$0xff] %vm223_vm2, %v9716_v58  ;;  %v9719_v37 = vadd.f32 %v13698_v47, %v9671_v2  ;;  %9308 = vst.msk [vmem:[#allocation3 + $0x158] sm:$0xff] %vm223_vm2, %v9260_v56  ;;  %v9259_v57 = vadd.f32 %v9211_v10, %v9140_v25  ;;  %v10101_v2 = vld [vmem:[#allocation3 + $0x30] sm:$0xff] }
 0x5a5   : > { %v9670_v53 = vld [vmem:[#allocation3 + $0x130] sm:$0xff]  ;;  %v13633_v33 = vpop.f32.mrf.mxu1  ;;  %v13707_v38 = vpop.f32.mrf.mxu0 }
 0x5a6   : > { %9767 = vst.msk [vmem:[#allocation3 + $0x138] sm:$0xff] %vm223_vm2, %v9719_v37  ;;  %v9718_v39 = vadd.f32 %v9670_v53, %v9583_v51  ;;  %9307 = vst.msk [vmem:[#allocation3 + $0x150] sm:$0xff] %vm223_vm2, %v9259_v57  ;;  %v9262_v6 = vadd.f32 %v13633_v33, %v9214_v60  ;;  %v10104_v53 = vld [vmem:[#allocation3 + $0x48] sm:$0xff] }
 0x5a7   : > { %v9673_v32 = vld [vmem:[#allocation3 + $0x148] sm:$0xff]  ;;  %v9150_v16 = vpop.f32.mrf.mxu1  ;;  %v9613_v11 = vpop.f32.mrf.mxu0 }
 0x5a8   : > { %9766 = vst.msk [vmem:[#allocation3 + $0x130] sm:$0xff] %vm223_vm2, %v9718_v39  ;;  %v9721_v22 = vadd.f32 %v13701_v45, %v9673_v32  ;;  %9310 = vst.msk [vmem:[#allocation3 + $0x168] sm:$0xff] %vm223_vm2, %v9262_v6  ;;  %v9261_v63 = vadd.f32 %v9213_v5, %v9150_v16  ;;  %v10103_v6 = vld [vmem:[#allocation3 + $0x40] sm:$0xff] }
 0x5a9   : > { %v9672_v52 = vld [vmem:[#allocation3 + $0x140] sm:$0xff]  ;;  %v13636_v19 = vpop.f32.mrf.mxu1  ;;  %v13710_v48 = vpop.f32.mrf.mxu0 }
 0x5aa   : > { %9769 = vst.msk [vmem:[#allocation3 + $0x148] sm:$0xff] %vm223_vm2, %v9721_v22  ;;  %v9720_v43 = vadd.f32 %v9672_v52, %v9593_v62  ;;  %9309 = vst.msk [vmem:[#allocation3 + $0x160] sm:$0xff] %vm223_vm2, %v9261_v63  ;;  %v9264_v61 = vadd.f32 %v13636_v19, %v9216_v31  ;;  %v10106_v63 = vld [vmem:[#allocation3 + $0x58] sm:$0xff] }
 0x5ab   : > { %v9675_v4 = vld [vmem:[#allocation3 + $0x158] sm:$0xff]  ;;  %v9160_v29 = vpop.f32.mrf.mxu1  ;;  %v9623_v45 = vpop.f32.mrf.mxu0 }
 0x5ac   : > { %9768 = vst.msk [vmem:[#allocation3 + $0x140] sm:$0xff] %vm223_vm2, %v9720_v43  ;;  %v9723_v24 = vadd.f32 %v13704_v26, %v9675_v4  ;;  %9312 = vst.msk [vmem:[#allocation3 + $0x178] sm:$0xff] %vm223_vm2, %v9264_v61  ;;  %v9263_v55 = vadd.f32 %v9215_v27, %v9160_v29  ;;  %v10105_v43 = vld [vmem:[#allocation3 + $0x50] sm:$0xff] }
 0x5ad   : > { %v9674_v9 = vld [vmem:[#allocation3 + $0x150] sm:$0xff]  ;;  %v13715_v17 = vpop.f32.mrf.mxu1 }
 0x5ae   : > { %9771 = vst.msk [vmem:[#allocation3 + $0x158] sm:$0xff] %vm223_vm2, %v9723_v24  ;;  %v9722_v7 = vadd.f32 %v9674_v9, %v9603_v8  ;;  %9311 = vst.msk [vmem:[#allocation3 + $0x170] sm:$0xff] %vm223_vm2, %v9263_v55  ;;  %v10144_v35 = vadd.f32 %v13715_v17, %v10096_v12  ;;  %v10108_v24 = vld [vmem:[#allocation3 + $0x68] sm:$0xff] }
 0x5af   : > { %v9677_v41 = vld [vmem:[#allocation3 + $0x168] sm:$0xff]  ;;  %v9856_v28 = vpop.f32.mrf.mxu1 }
 0x5b0   : > { %9770 = vst.msk [vmem:[#allocation3 + $0x150] sm:$0xff] %vm223_vm2, %v9722_v7  ;;  %v9725_v50 = vadd.f32 %v13707_v38, %v9677_v41  ;;  %10192 = vst.msk [vmem:[#allocation3 + $0x8] sm:$0xff] %vm223_vm2, %v10144_v35  ;;  %v10143_v47 = vadd.f32 %v10095_v36, %v9856_v28  ;;  %v10107_v7 = vld [vmem:[#allocation3 + $0x60] sm:$0xff]  ;;  %v10110_v28 = vld [vmem:[#allocation3 + $0x78] sm:$0xff] }
 0x5b1   : > { %v9676_v34 = vld [vmem:[#allocation3 + $0x160] sm:$0xff]  ;;  %v13718_v46 = vpop.f32.mrf.mxu1 }
 0x5b2   : > { %9773 = vst.msk [vmem:[#allocation3 + $0x168] sm:$0xff] %vm223_vm2, %v9725_v50  ;;  %v9724_v54 = vadd.f32 %v9676_v34, %v9613_v11  ;;  %10191 = vst.msk [vmem:[#allocation3] sm:$0xff] %vm223_vm2, %v10143_v47  ;;  %v10146_v51 = vadd.f32 %v13718_v46, %v10098_v3  ;;  %v10109_v46 = vld [vmem:[#allocation3 + $0x70] sm:$0xff] }
 0x5b3   : > { %v9679_v14 = vld [vmem:[#allocation3 + $0x178] sm:$0xff]  ;;  %v9866_v1 = vpop.f32.mrf.mxu1 }
 0x5b4   : > { %9772 = vst.msk [vmem:[#allocation3 + $0x160] sm:$0xff] %vm223_vm2, %v9724_v54  ;;  %v9727_v42 = vadd.f32 %v13710_v48, %v9679_v14  ;;  %10194 = vst.msk [vmem:[#allocation3 + $0x18] sm:$0xff] %vm223_vm2, %v10146_v51  ;;  %v10145_v40 = vadd.f32 %v10097_v59, %v9866_v1  ;;  %v10112_v14 = vld [vmem:[#allocation3 + $0x88] sm:$0xff] }
 0x5b5   : > { %v9678_v0 = vld [vmem:[#allocation3 + $0x170] sm:$0xff]  ;;  %v13721_v30 = vpop.f32.mrf.mxu1 }
 0x5b6   : > { %9775 = vst.msk [vmem:[#allocation3 + $0x178] sm:$0xff] %vm223_vm2, %v9727_v42  ;;  %v9726_v15 = vadd.f32 %v9678_v0, %v9623_v45  ;;  %10193 = vst.msk [vmem:[#allocation3 + $0x10] sm:$0xff] %vm223_vm2, %v10145_v40  ;;  %v10148_v49 = vadd.f32 %v13721_v30, %v10100_v13  ;;  %v10111_v0 = vld [vmem:[#allocation3 + $0x80] sm:$0xff] }
 0x5b7   : > { %v9876_v62 = vpop.f32.mrf.mxu1  ;;  %v18549_v58 = vld [vmem:[#allocation3 + $0x8] sm:$0xff] }
 0x5b8   : > { %9774 = vst.msk [vmem:[#allocation3 + $0x170] sm:$0xff] %vm223_vm2, %v9726_v15  ;;  %10196 = vst.msk [vmem:[#allocation3 + $0x28] sm:$0xff] %vm223_vm2, %v10148_v49  ;;  %v10147_v44 = vadd.f32 %v10099_v20, %v9876_v62  ;;  %v10272_v8 = vsel %vm223_vm2, %v18549_v58, 0.0  ;;  %v10114_v62 = vld [vmem:[#allocation3 + $0x98] sm:$0xff] }
 0x5b9   : > { %v18546_v23 = vld [vmem:[#allocation3] sm:$0xff]  ;;  %v13724_v18 = vpop.f32.mrf.mxu1 }
 0x5ba   : > { %10195 = vst.msk [vmem:[#allocation3 + $0x20] sm:$0xff] %vm223_vm2, %v10147_v44  ;;  %v10150_v26 = vadd.f32 %v13724_v18, %v10102_v21  ;;  %v10271_v25 = vsel %vm223_vm2, %v18546_v23, 0.0 }
 0x5bb   : > { %v9886_v56 = vpop.f32.mrf.mxu1  ;;  %v18554_v37 = vld [vmem:[#allocation3 + $0x18] sm:$0xff]  ;;  %v10273_v60 = vadd.f32 %v10272_v8, %v10271_v25 }
 0x5bc   : > { %10198 = vst.msk [vmem:[#allocation3 + $0x38] sm:$0xff] %vm223_vm2, %v10150_v26  ;;  %v10149_v10 = vadd.f32 %v10101_v2, %v9886_v56  ;;  %v10274_v32 = vsel %vm223_vm2, %v18554_v37, 0.0  ;;  %v10113_v56 = vld [vmem:[#allocation3 + $0x90] sm:$0xff] }
 0x5bd   : > { %v13727_v57 = vpop.f32.mrf.mxu1  ;;  %v10275_v19 = vadd.f32 %v10274_v32, %v10273_v60 }
 0x5be   : > { %10197 = vst.msk [vmem:[#allocation3 + $0x30] sm:$0xff] %vm223_vm2, %v10149_v10  ;;  %v10152_v33 = vadd.f32 %v13727_v57, %v10104_v53  ;;  %v10116_v10 = vld [vmem:[#allocation3 + $0xa8] sm:$0xff] }
 0x5bf   : > { %v9896_v39 = vpop.f32.mrf.mxu1 }
 0x5c0   : > { %10200 = vst.msk [vmem:[#allocation3 + $0x48] sm:$0xff] %vm223_vm2, %v10152_v33  ;;  %v10151_v16 = vadd.f32 %v10103_v6, %v9896_v39  ;;  %v10115_v39 = vld [vmem:[#allocation3 + $0xa0] sm:$0xff] }
 0x5c1   : > { %v18562_v5 = vld [vmem:[#allocation3 + $0x20] sm:$0xff]  ;;  %v13730_v22 = vpop.f32.mrf.mxu1 }
 0x5c2   : > { %v10276_v52 = vsel %vm223_vm2, %v18562_v5, 0.0  ;;  %10199 = vst.msk [vmem:[#allocation3 + $0x40] sm:$0xff] %vm223_vm2, %v10151_v16  ;;  %v10154_v38 = vadd.f32 %v13730_v22, %v10106_v63  ;;  %v10118_v22 = vld [vmem:[#allocation3 + $0xb8] sm:$0xff] }
 0x5c3   : > { %v9906_v31 = vpop.f32.mrf.mxu1  ;;  %v10277_v4 = vadd.f32 %v10276_v52, %v10275_v19  ;;  %v18573_v11 = vld [vmem:[#allocation3 + $0x38] sm:$0xff] }
 0x5c4   : > { %10202 = vst.msk [vmem:[#allocation3 + $0x58] sm:$0xff] %vm223_vm2, %v10154_v38  ;;  %v10153_v61 = vadd.f32 %v10105_v43, %v9906_v31  ;;  %v10280_v36 = vsel %vm223_vm2, %v18573_v11, 0.0  ;;  %v10117_v43 = vld [vmem:[#allocation3 + $0xb0] sm:$0xff] }
 0x5c5   : > { %v18568_v29 = vld [vmem:[#allocation3 + $0x30] sm:$0xff]  ;;  %v13733_v27 = vpop.f32.mrf.mxu1 }
 0x5c6   : > { %v10278_v55 = vsel %vm223_vm2, %v18568_v29, 0.0  ;;  %10201 = vst.msk [vmem:[#allocation3 + $0x50] sm:$0xff] %vm223_vm2, %v10153_v61  ;;  %v10156_v9 = vadd.f32 %v13733_v27, %v10108_v24 }
 0x5c7   : > { %v10279_v17 = vadd.f32 %v10278_v55, %v10277_v4  ;;  %v9916_v12 = vpop.f32.mrf.mxu1  ;;  %v18579_v47 = vld [vmem:[#allocation3 + $0x48] sm:$0xff] }
 0x5c8   : > { %10204 = vst.msk [vmem:[#allocation3 + $0x68] sm:$0xff] %vm223_vm2, %v10156_v9  ;;  %v10155_v35 = vadd.f32 %v10107_v7, %v9916_v12  ;;  %v10282_v1 = vsel %vm223_vm2, %v18579_v47, 0.0  ;;  %v10120_v55 = vld [vmem:[#allocation3 + $0xc8] sm:$0xff] }
 0x5c9   : > { %v13736_v41 = vpop.f32.mrf.mxu1  ;;  %v10281_v34 = vadd.f32 %v10280_v36, %v10279_v17 }
 0x5ca   : > { %10203 = vst.msk [vmem:[#allocation3 + $0x60] sm:$0xff] %vm223_vm2, %v10155_v35  ;;  %v10158_v50 = vadd.f32 %v13736_v41, %v10110_v28  ;;  %v10119_v41 = vld [vmem:[#allocation3 + $0xc0] sm:$0xff] }
 0x5cb   : > { %v9926_v48 = vpop.f32.mrf.mxu1  ;;  %v10283_v40 = vadd.f32 %v10282_v1, %v10281_v34 }
 0x5cc   : > { %10206 = vst.msk [vmem:[#allocation3 + $0x78] sm:$0xff] %vm223_vm2, %v10158_v50  ;;  %v10157_v3 = vadd.f32 %v10109_v46, %v9926_v48  ;;  %v10122_v50 = vld [vmem:[#allocation3 + $0xd8] sm:$0xff] }
 0x5cd   : > { %v18582_v54 = vld [vmem:[#allocation3 + $0x50] sm:$0xff]  ;;  %v13739_v51 = vpop.f32.mrf.mxu1 }
 0x5ce   : > { %v10284_v59 = vsel %vm223_vm2, %v18582_v54, 0.0  ;;  %10205 = vst.msk [vmem:[#allocation3 + $0x70] sm:$0xff] %vm223_vm2, %v10157_v3  ;;  %v10160_v42 = vadd.f32 %v13739_v51, %v10112_v14  ;;  %v10121_v14 = vld [vmem:[#allocation3 + $0xd0] sm:$0xff] }
 0x5cf   : > { %v9936_v45 = vpop.f32.mrf.mxu1  ;;  %v10285_v13 = vadd.f32 %v10284_v59, %v10283_v40  ;;  %v18595_v18 = vld [vmem:[#allocation3 + $0x68] sm:$0xff] }
 0x5d0   : > { %10208 = vst.msk [vmem:[#allocation3 + $0x88] sm:$0xff] %vm223_vm2, %v10160_v42  ;;  %v10159_v30 = vadd.f32 %v10111_v0, %v9936_v45  ;;  %v10288_v57 = vsel %vm223_vm2, %v18595_v18, 0.0  ;;  %v10124_v40 = vld [vmem:[#allocation3 + $0xe8] sm:$0xff] }
 0x5d1   : > { %v18590_v15 = vld [vmem:[#allocation3 + $0x60] sm:$0xff]  ;;  %v13742_v49 = vpop.f32.mrf.mxu1 }
 0x5d2   : > { %v10286_v20 = vsel %vm223_vm2, %v18590_v15, 0.0  ;;  %10207 = vst.msk [vmem:[#allocation3 + $0x80] sm:$0xff] %vm223_vm2, %v10159_v30  ;;  %v10162_v44 = vadd.f32 %v13742_v49, %v10114_v62  ;;  %v10123_v62 = vld [vmem:[#allocation3 + $0xe0] sm:$0xff] }
 0x5d3   : > { %v10287_v21 = vadd.f32 %v10286_v20, %v10285_v13  ;;  %v9946_v26 = vpop.f32.mrf.mxu1  ;;  %v18601_v8 = vld [vmem:[#allocation3 + $0x78] sm:$0xff] }
 0x5d4   : > { %10210 = vst.msk [vmem:[#allocation3 + $0x98] sm:$0xff] %vm223_vm2, %v10162_v44  ;;  %v10161_v2 = vadd.f32 %v10113_v56, %v9946_v26  ;;  %v10290_v63 = vsel %vm223_vm2, %v18601_v8, 0.0  ;;  %v10126_v56 = vld [vmem:[#allocation3 + $0xf8] sm:$0xff] }
 0x5d5   : > { %v13745_v25 = vpop.f32.mrf.mxu1  ;;  %v10289_v33 = vadd.f32 %v10288_v57, %v10287_v21 }
 0x5d6   : > { %10209 = vst.msk [vmem:[#allocation3 + $0x90] sm:$0xff] %vm223_vm2, %v10161_v2  ;;  %v10164_v53 = vadd.f32 %v13745_v25, %v10116_v10 }
 0x5d7   : > { %v9956_v60 = vpop.f32.mrf.mxu1  ;;  %v10291_v19 = vadd.f32 %v10290_v63, %v10289_v33  ;;  %v10125_v33 = vld [vmem:[#allocation3 + $0xf0] sm:$0xff] }
 0x5d8   : > { %10212 = vst.msk [vmem:[#allocation3 + $0xa8] sm:$0xff] %vm223_vm2, %v10164_v53  ;;  %v10163_v6 = vadd.f32 %v10115_v39, %v9956_v60 }
 0x5d9   : > { %v18604_v32 = vld [vmem:[#allocation3 + $0x80] sm:$0xff]  ;;  %v13748_v16 = vpop.f32.mrf.mxu1 }
 0x5da   : > { %v10292_v52 = vsel %vm223_vm2, %v18604_v32, 0.0  ;;  %10211 = vst.msk [vmem:[#allocation3 + $0xa0] sm:$0xff] %vm223_vm2, %v10163_v6  ;;  %v10166_v38 = vadd.f32 %v13748_v16, %v10118_v22  ;;  %v10128_v6 = vld [vmem:[#allocation3 + $0x108] sm:$0xff] }
 0x5db   : > { %v9966_v31 = vpop.f32.mrf.mxu1  ;;  %v10293_v4 = vadd.f32 %v10292_v52, %v10291_v19  ;;  %v18617_v12 = vld [vmem:[#allocation3 + $0x98] sm:$0xff]  ;;  %v10127_v19 = vld [vmem:[#allocation3 + $0x100] sm:$0xff] }
 0x5dc   : > { %10214 = vst.msk [vmem:[#allocation3 + $0xb8] sm:$0xff] %vm223_vm2, %v10166_v38  ;;  %v10165_v61 = vadd.f32 %v10117_v43, %v9966_v31  ;;  %v10296_v34 = vsel %vm223_vm2, %v18617_v12, 0.0 }
 0x5dd   : > { %v18612_v27 = vld [vmem:[#allocation3 + $0x90] sm:$0xff]  ;;  %v13751_v24 = vpop.f32.mrf.mxu1 }
 0x5de   : > { %v10294_v9 = vsel %vm223_vm2, %v18612_v27, 0.0  ;;  %10213 = vst.msk [vmem:[#allocation3 + $0xb0] sm:$0xff] %vm223_vm2, %v10165_v61  ;;  %v10168_v17 = vadd.f32 %v13751_v24, %v10120_v55 }
 0x5df   : > { %v10295_v7 = vadd.f32 %v10294_v9, %v10293_v4  ;;  %v9976_v35 = vpop.f32.mrf.mxu1  ;;  %v18623_v46 = vld [vmem:[#allocation3 + $0xa8] sm:$0xff]  ;;  %v10130_v4 = vld [vmem:[#allocation3 + $0x118] sm:$0xff] }
 0x5e0   : > { %10216 = vst.msk [vmem:[#allocation3 + $0xc8] sm:$0xff] %vm223_vm2, %v10168_v17  ;;  %v10167_v28 = vadd.f32 %v10119_v41, %v9976_v35  ;;  %v10298_v45 = vsel %vm223_vm2, %v18623_v46, 0.0  ;;  %v10129_v35 = vld [vmem:[#allocation3 + $0x110] sm:$0xff] }
 0x5e1   : > { %v13754_v36 = vpop.f32.mrf.mxu1  ;;  %v10297_v3 = vadd.f32 %v10296_v34, %v10295_v7  ;;  %v10132_v34 = vld [vmem:[#allocation3 + $0x128] sm:$0xff] }
 0x5e2   : > { %10215 = vst.msk [vmem:[#allocation3 + $0xc0] sm:$0xff] %vm223_vm2, %v10167_v28  ;;  %v10170_v48 = vadd.f32 %v13754_v36, %v10122_v50 }
 0x5e3   : > { %v9986_v51 = vpop.f32.mrf.mxu1  ;;  %v10299_v13 = vadd.f32 %v10298_v45, %v10297_v3 }
 0x5e4   : > { %10218 = vst.msk [vmem:[#allocation3 + $0xd8] sm:$0xff] %vm223_vm2, %v10170_v48  ;;  %v10169_v1 = vadd.f32 %v10121_v14, %v9986_v51 }
 0x5e5   : > { %v18626_v59 = vld [vmem:[#allocation3 + $0xb0] sm:$0xff]  ;;  %v13757_v42 = vpop.f32.mrf.mxu1 }
 0x5e6   : > { %v10300_v0 = vsel %vm223_vm2, %v18626_v59, 0.0  ;;  %10217 = vst.msk [vmem:[#allocation3 + $0xd0] sm:$0xff] %vm223_vm2, %v10169_v1  ;;  %v10172_v30 = vadd.f32 %v13757_v42, %v10124_v40  ;;  %v10131_v42 = vld [vmem:[#allocation3 + $0x120] sm:$0xff] }
 0x5e7   : > { %v9996_v49 = vpop.f32.mrf.mxu1  ;;  %v10301_v44 = vadd.f32 %v10300_v0, %v10299_v13  ;;  %v18639_v10 = vld [vmem:[#allocation3 + $0xc8] sm:$0xff]  ;;  %v10134_v0 = vld [vmem:[#allocation3 + $0x138] sm:$0xff] }
 0x5e8   : > { %10220 = vst.msk [vmem:[#allocation3 + $0xe8] sm:$0xff] %vm223_vm2, %v10172_v30  ;;  %v10171_v20 = vadd.f32 %v10123_v62, %v9996_v49  ;;  %v10304_v16 = vsel %vm223_vm2, %v18639_v10, 0.0 }
 0x5e9   : > { %v18634_v21 = vld [vmem:[#allocation3 + $0xc0] sm:$0xff]  ;;  %v13760_v26 = vpop.f32.mrf.mxu1 }
 0x5ea   : > { %v10302_v2 = vsel %vm223_vm2, %v18634_v21, 0.0  ;;  %10219 = vst.msk [vmem:[#allocation3 + $0xe0] sm:$0xff] %vm223_vm2, %v10171_v20  ;;  %v10174_v25 = vadd.f32 %v13760_v26, %v10126_v56 }
 0x5eb   : > { %v10303_v57 = vadd.f32 %v10302_v2, %v10301_v44  ;;  %v10006_v53 = vpop.f32.mrf.mxu1  ;;  %v18645_v63 = vld [vmem:[#allocation3 + $0xd8] sm:$0xff]  ;;  %v10133_v44 = vld [vmem:[#allocation3 + $0x130] sm:$0xff] }
 0x5ec   : > { %10222 = vst.msk [vmem:[#allocation3 + $0xf8] sm:$0xff] %vm223_vm2, %v10174_v25  ;;  %v10173_v60 = vadd.f32 %v10125_v33, %v10006_v53  ;;  %v10306_v24 = vsel %vm223_vm2, %v18645_v63, 0.0  ;;  %v10136_v25 = vld [vmem:[#allocation3 + $0x148] sm:$0xff] }
 0x5ed   : > { %v13763_v39 = vpop.f32.mrf.mxu1  ;;  %v10305_v52 = vadd.f32 %v10304_v16, %v10303_v57 }
 0x5ee   : > { %10221 = vst.msk [vmem:[#allocation3 + $0xf0] sm:$0xff] %vm223_vm2, %v10173_v60  ;;  %v10176_v22 = vadd.f32 %v13763_v39, %v10128_v6  ;;  %v10135_v6 = vld [vmem:[#allocation3 + $0x140] sm:$0xff] }
 0x5ef   : > { %v10016_v38 = vpop.f32.mrf.mxu1  ;;  %v10307_v17 = vadd.f32 %v10306_v24, %v10305_v52 }
 0x5f0   : > { %10224 = vst.msk [vmem:[#allocation3 + $0x108] sm:$0xff] %vm223_vm2, %v10176_v22  ;;  %v10175_v31 = vadd.f32 %v10127_v19, %v10016_v38  ;;  %v10138_v19 = vld [vmem:[#allocation3 + $0x158] sm:$0xff] }
 0x5f1   : > { %v18648_v43 = vld [vmem:[#allocation3 + $0xe0] sm:$0xff]  ;;  %v13766_v61 = vpop.f32.mrf.mxu1 }
 0x5f2   : > { %v10308_v55 = vsel %vm223_vm2, %v18648_v43, 0.0  ;;  %10223 = vst.msk [vmem:[#allocation3 + $0x100] sm:$0xff] %vm223_vm2, %v10175_v31  ;;  %v10178_v9 = vadd.f32 %v13766_v61, %v10130_v4 }
 0x5f3   : > { %v10026_v7 = vpop.f32.mrf.mxu1  ;;  %v10309_v28 = vadd.f32 %v10308_v55, %v10307_v17  ;;  %v18661_v51 = vld [vmem:[#allocation3 + $0xf8] sm:$0xff] }
 0x5f4   : > { %10226 = vst.msk [vmem:[#allocation3 + $0x118] sm:$0xff] %vm223_vm2, %v10178_v9  ;;  %v10177_v41 = vadd.f32 %v10129_v35, %v10026_v7  ;;  %v10312_v30 = vsel %vm223_vm2, %v18661_v51, 0.0  ;;  %v10137_v9 = vld [vmem:[#allocation3 + $0x150] sm:$0xff]  ;;  %v10140_v35 = vld [vmem:[#allocation3 + $0x168] sm:$0xff] }
 0x5f5   : > { %v18656_v36 = vld [vmem:[#allocation3 + $0xf0] sm:$0xff]  ;;  %v13769_v50 = vpop.f32.mrf.mxu1 }
 0x5f6   : > { %v10310_v48 = vsel %vm223_vm2, %v18656_v36, 0.0  ;;  %10225 = vst.msk [vmem:[#allocation3 + $0x110] sm:$0xff] %vm223_vm2, %v10177_v41  ;;  %v10180_v3 = vadd.f32 %v13769_v50, %v10132_v34 }
 0x5f7   : > { %v10311_v14 = vadd.f32 %v10310_v48, %v10309_v28  ;;  %v10036_v1 = vpop.f32.mrf.mxu1  ;;  %v18667_v49 = vld [vmem:[#allocation3 + $0x108] sm:$0xff] }
 0x5f8   : > { %10228 = vst.msk [vmem:[#allocation3 + $0x128] sm:$0xff] %vm223_vm2, %v10180_v3  ;;  %v10179_v40 = vadd.f32 %v10131_v42, %v10036_v1  ;;  %v10314_v57 = vsel %vm223_vm2, %v18667_v49, 0.0  ;;  %v10139_v3 = vld [vmem:[#allocation3 + $0x160] sm:$0xff] }
 0x5f9   : > { %v13772_v45 = vpop.f32.mrf.mxu1  ;;  %v10313_v62 = vadd.f32 %v10312_v30, %v10311_v14 }
 0x5fa   : > { %10227 = vst.msk [vmem:[#allocation3 + $0x120] sm:$0xff] %vm223_vm2, %v10179_v40  ;;  %v10182_v13 = vadd.f32 %v13772_v45, %v10134_v0  ;;  %v10142_v40 = vld [vmem:[#allocation3 + $0x178] sm:$0xff] }
 0x5fb   : > { %v10046_v20 = vpop.f32.mrf.mxu1  ;;  %v10315_v60 = vadd.f32 %v10314_v57, %v10313_v62 }
 0x5fc   : > { %10230 = vst.msk [vmem:[#allocation3 + $0x138] sm:$0xff] %vm223_vm2, %v10182_v13  ;;  %v10181_v26 = vadd.f32 %v10133_v44, %v10046_v20  ;;  %v10141_v20 = vld [vmem:[#allocation3 + $0x170] sm:$0xff] }
 0x5fd   : > { %v18670_v56 = vld [vmem:[#allocation3 + $0x110] sm:$0xff]  ;;  %v13775_v2 = vpop.f32.mrf.mxu1 }
 0x5fe   : > { %v10316_v53 = vsel %vm223_vm2, %v18670_v56, 0.0  ;;  %10229 = vst.msk [vmem:[#allocation3 + $0x130] sm:$0xff] %vm223_vm2, %v10181_v26  ;;  %v10184_v33 = vadd.f32 %v13775_v2, %v10136_v25 }
 0x5ff   : > { %v10056_v39 = vpop.f32.mrf.mxu1  ;;  %v10317_v22 = vadd.f32 %v10316_v53, %v10315_v60  ;;  %v18683_v4 = vld [vmem:[#allocation3 + $0x128] sm:$0xff] }
 0x600   : > { %10232 = vst.msk [vmem:[#allocation3 + $0x148] sm:$0xff] %vm223_vm2, %v10184_v33  ;;  %v10183_v16 = vadd.f32 %v10135_v6, %v10056_v39  ;;  %v10320_v41 = vsel %vm223_vm2, %v18683_v4, 0.0 }
 0x601   : > { %v18678_v52 = vld [vmem:[#allocation3 + $0x120] sm:$0xff]  ;;  %v13778_v38 = vpop.f32.mrf.mxu1 }
 0x602   : > { %v10318_v31 = vsel %vm223_vm2, %v18678_v52, 0.0  ;;  %10231 = vst.msk [vmem:[#allocation3 + $0x140] sm:$0xff] %vm223_vm2, %v10183_v16  ;;  %v10186_v61 = vadd.f32 %v13778_v38, %v10138_v19 }
 0x603   : > { %v10319_v24 = vadd.f32 %v10318_v31, %v10317_v22  ;;  %v10066_v55 = vpop.f32.mrf.mxu1  ;;  %v18689_v50 = vld [vmem:[#allocation3 + $0x138] sm:$0xff] }
 0x604   : > { %10234 = vst.msk [vmem:[#allocation3 + $0x158] sm:$0xff] %vm223_vm2, %v10186_v61  ;;  %v10185_v17 = vadd.f32 %v10137_v9, %v10066_v55  ;;  %v10322_v45 = vsel %vm223_vm2, %v18689_v50, 0.0 }
 0x605   : > { %v13781_v7 = vpop.f32.mrf.mxu1  ;;  %v10321_v34 = vadd.f32 %v10320_v41, %v10319_v24 }
 0x606   : > { %10233 = vst.msk [vmem:[#allocation3 + $0x150] sm:$0xff] %vm223_vm2, %v10185_v17  ;;  %v10188_v28 = vadd.f32 %v13781_v7, %v10140_v35 }
 0x607   : > { %v10076_v48 = vpop.f32.mrf.mxu1  ;;  %v10323_v13 = vadd.f32 %v10322_v45, %v10321_v34 }
 0x608   : > { %10236 = vst.msk [vmem:[#allocation3 + $0x168] sm:$0xff] %vm223_vm2, %v10188_v28  ;;  %v10187_v14 = vadd.f32 %v10139_v3, %v10076_v48 }
 0x609   : > { %v18692_v1 = vld [vmem:[#allocation3 + $0x140] sm:$0xff]  ;;  %v13784_v42 = vpop.f32.mrf.mxu1 }
 0x60a   : > { %v10324_v0 = vsel %vm223_vm2, %v18692_v1, 0.0  ;;  %10235 = vst.msk [vmem:[#allocation3 + $0x160] sm:$0xff] %vm223_vm2, %v10187_v14  ;;  %v10190_v30 = vadd.f32 %v13784_v42, %v10142_v40 }
 0x60b   : > { %v10086_v62 = vpop.f32.mrf.mxu1  ;;  %v10325_v26 = vadd.f32 %v10324_v0, %v10323_v13  ;;  %v18700_v2 = vld [vmem:[#allocation3 + $0x158] sm:$0xff] }
 0x60c   : > { %10238 = vst.msk [vmem:[#allocation3 + $0x178] sm:$0xff] %vm223_vm2, %v10190_v30  ;;  %v10189_v44 = vadd.f32 %v10141_v20, %v10086_v62  ;;  %v10328_v33 = vsel %vm223_vm2, %v18700_v2, 0.0 }
 0x60d   : > { %v18702_v25 = vld [vmem:[#allocation3 + $0x150] sm:$0xff] }
 0x60e   : > { %v10326_v57 = vsel %vm223_vm2, %v18702_v25, 0.0  ;;  %10237 = vst.msk [vmem:[#allocation3 + $0x170] sm:$0xff] %vm223_vm2, %v10189_v44 }
 0x60f   : > { %v10327_v53 = vadd.f32 %v10326_v57, %v10325_v26  ;;  %v18709_v60 = vld [vmem:[#allocation3 + $0x168] sm:$0xff] }
 0x610   : > { %v10330_v6 = vsel %vm223_vm2, %v18709_v60, 0.0 }
 0x611   : > { %v10329_v39 = vadd.f32 %v10328_v33, %v10327_v53 }
 0x613   : > { %v10331_v16 = vadd.f32 %v10330_v6, %v10329_v39 }
 0x615   : > { %v18713_v22 = vld [vmem:[#allocation3 + $0x170] sm:$0xff] }
 0x616   : > { %v10332_v38 = vsel %vm223_vm2, %v18713_v22, 0.0 }
 0x617   : > { %v10333_v19 = vadd.f32 %v10332_v38, %v10331_v16 }
 0x619   : > { %v10334_v31 = vrot.slane %v10333_v19, 4 }
 0x61b   : > { %v10335_v61 = vadd.f32 %v10334_v31, %v10333_v19 }
 0x61d   : > { %v10336_v24 = vrot.slane %v10335_v61, 2 }
 0x61f   : > { %v10337_v55 = vadd.f32 %v10336_v24, %v10335_v61 }
 0x621   : > { %v10338_v9 = vrot.slane %v10337_v55, 1 }
 0x623   : > { %v10339_v17 = vadd.f32 %v10338_v9, %v10337_v55 }
 0x625   : > { %v18717_v7 = vmul.f32 0.00390625, %v10339_v17 }
 0x627   : > { %v18721_v35 = vsub.f32 %v18546_v23, %v18717_v7  ;;  %v18725_v41 = vsub.f32 %v18549_v58, %v18717_v7  ;;  %v18729_v28 = vsub.f32 %v18554_v37, %v18717_v7  ;;  %v18733_v34 = vsub.f32 %v18562_v5, %v18717_v7 }
 0x628   : > { %v18741_v23 = vsub.f32 %v18568_v29, %v18717_v7  ;;  %v18747_v37 = vsub.f32 %v18573_v11, %v18717_v7  ;;  %v18755_v45 = vsub.f32 %v18579_v47, %v18717_v7  ;;  %v18762_v11 = vsub.f32 %v18582_v54, %v18717_v7 }
 0x629   : > { %v10373_v48 = vmul.f32 %v18721_v35, %v18721_v35  ;;  %v10374_v3 = vmul.f32 %v18725_v41, %v18725_v41  ;;  %v10375_v58 = vmul.f32 %v18729_v28, %v18729_v28  ;;  %v10376_v5 = vmul.f32 %v18733_v34, %v18733_v34 }
 0x62a   : > { %v10377_v29 = vmul.f32 %v18741_v23, %v18741_v23  ;;  %v10378_v13 = vmul.f32 %v18747_v37, %v18747_v37  ;;  %v18769_v47 = vsub.f32 %v18590_v15, %v18717_v7  ;;  %v10379_v44 = vmul.f32 %v18755_v45, %v18755_v45 }
 0x62b   : > { %v10405_v14 = vsel %vm223_vm2, %v10373_v48, 0.0  ;;  %v10406_v42 = vsel %vm223_vm2, %v10374_v3, 0.0  ;;  %v10408_v0 = vsel %vm223_vm2, %v10375_v58, 0.0  ;;  %v10410_v62 = vsel %vm223_vm2, %v10376_v5, 0.0 }
 0x62c   : > { %v10407_v40 = vadd.f32 %v10406_v42, %v10405_v14  ;;  %v10412_v26 = vsel %vm223_vm2, %v10377_v29, 0.0  ;;  %v18776_v54 = vsub.f32 %v18595_v18, %v18717_v7  ;;  %v10380_v53 = vmul.f32 %v18762_v11, %v18762_v11 }
 0x62d   : > { %v10414_v33 = vsel %vm223_vm2, %v10378_v13, 0.0  ;;  %v18783_v15 = vsub.f32 %v18601_v8, %v18717_v7  ;;  %v10381_v6 = vmul.f32 %v18769_v47, %v18769_v47  ;;  %v10416_v16 = vsel %vm223_vm2, %v10379_v44, 0.0 }
 0x62e   : > { %v10409_v30 = vadd.f32 %v10408_v0, %v10407_v40  ;;  %v18790_v18 = vsub.f32 %v18604_v32, %v18717_v7  ;;  %v10382_v19 = vmul.f32 %v18776_v54, %v18776_v54  ;;  %v10418_v31 = vsel %vm223_vm2, %v10380_v53, 0.0 }
 0x62f   : > { %v18797_v8 = vsub.f32 %v18612_v27, %v18717_v7  ;;  %v10383_v24 = vmul.f32 %v18783_v15, %v18783_v15  ;;  %v10420_v55 = vsel %vm223_vm2, %v10381_v6, 0.0  ;;  %v18804_v32 = vsub.f32 %v18617_v12, %v18717_v7 }
 0x630   : > { %v10411_v20 = vadd.f32 %v10410_v62, %v10409_v30  ;;  %v10384_v17 = vmul.f32 %v18790_v18, %v18790_v18  ;;  %v10422_v48 = vsel %vm223_vm2, %v10382_v19, 0.0  ;;  %v18811_v27 = vsub.f32 %v18623_v46, %v18717_v7 }
 0x631   : > { %v10385_v58 = vmul.f32 %v18797_v8, %v18797_v8  ;;  %v10424_v5 = vsel %vm223_vm2, %v10383_v24, 0.0  ;;  %v18818_v12 = vsub.f32 %v18626_v59, %v18717_v7  ;;  %v10386_v42 = vmul.f32 %v18804_v32, %v18804_v32 }
 0x632   : > { %v10413_v57 = vadd.f32 %v10412_v26, %v10411_v20  ;;  %v10426_v40 = vsel %vm223_vm2, %v10384_v17, 0.0  ;;  %v18825_v46 = vsub.f32 %v18634_v21, %v18717_v7  ;;  %v10387_v0 = vmul.f32 %v18811_v27, %v18811_v27 }
 0x633   : > { %v10428_v30 = vsel %vm223_vm2, %v10385_v58, 0.0  ;;  %v18832_v59 = vsub.f32 %v18639_v10, %v18717_v7  ;;  %v10388_v62 = vmul.f32 %v18818_v12, %v18818_v12  ;;  %v10430_v20 = vsel %vm223_vm2, %v10386_v42, 0.0 }
 0x634   : > { %v10415_v39 = vadd.f32 %v10414_v33, %v10413_v57  ;;  %v18839_v21 = vsub.f32 %v18645_v63, %v18717_v7  ;;  %v10389_v26 = vmul.f32 %v18825_v46, %v18825_v46  ;;  %v10432_v57 = vsel %vm223_vm2, %v10387_v0, 0.0 }
 0x635   : > { %v18846_v10 = vsub.f32 %v18648_v43, %v18717_v7  ;;  %v10390_v33 = vmul.f32 %v18832_v59, %v18832_v59  ;;  %v18853_v63 = vsub.f32 %v18656_v36, %v18717_v7  ;;  %v18860_v43 = vsub.f32 %v18661_v51, %v18717_v7 }
 0x636   : > { %v10417_v38 = vadd.f32 %v10416_v16, %v10415_v39  ;;  %v10434_v39 = vsel %vm223_vm2, %v10388_v62, 0.0  ;;  %v10391_v16 = vmul.f32 %v18839_v21, %v18839_v21  ;;  %v18867_v36 = vsub.f32 %v18667_v49, %v18717_v7 }
 0x637   : > { %v18874_v51 = vsub.f32 %v18670_v56, %v18717_v7  ;;  %v18881_v49 = vsub.f32 %v18678_v52, %v18717_v7  ;;  %v18888_v56 = vsub.f32 %v18683_v4, %v18717_v7  ;;  %v18895_v52 = vsub.f32 %v18689_v50, %v18717_v7 }
 0x638   : > { %v10419_v61 = vadd.f32 %v10418_v31, %v10417_v38  ;;  %v10436_v38 = vsel %vm223_vm2, %v10389_v26, 0.0  ;;  %v10392_v31 = vmul.f32 %v18846_v10, %v18846_v10  ;;  %v18902_v4 = vsub.f32 %v18692_v1, %v18717_v7 }
 0x639   : > { %v18909_v50 = vsub.f32 %v18702_v25, %v18717_v7  ;;  %v18916_v1 = vsub.f32 %v18700_v2, %v18717_v7  ;;  %v18923_v25 = vsub.f32 %v18709_v60, %v18717_v7  ;;  %v18930_v2 = vsub.f32 %v18713_v22, %v18717_v7 }
 0x63a   : > { %v10421_v9 = vadd.f32 %v10420_v55, %v10419_v61  ;;  %v10438_v61 = vsel %vm223_vm2, %v10390_v33, 0.0  ;;  %v10393_v55 = vmul.f32 %v18853_v63, %v18853_v63 }
 0x63b   : > { %v10403_v60 = vmul.f32 %v18923_v25, %v18923_v25 }
 0x63c   : > { %v10423_v3 = vadd.f32 %v10422_v48, %v10421_v9  ;;  %v10440_v9 = vsel %vm223_vm2, %v10391_v16, 0.0  ;;  %v10394_v48 = vmul.f32 %v18860_v43, %v18860_v43 }
 0x63d   : > { %v10464_v22 = vsel %vm223_vm2, %v10403_v60, 0.0  ;;  %v10518_v60 = vld [vmem:[%s13989_s25 + $0x48] sm:$0xff] }
 0x63e   : > { %v10425_v14 = vadd.f32 %v10424_v5, %v10423_v3  ;;  %v10442_v3 = vsel %vm223_vm2, %v10392_v31, 0.0  ;;  %v10395_v5 = vmul.f32 %v18867_v36, %v18867_v36 }
 0x640   : > { %v10427_v29 = vadd.f32 %v10426_v40, %v10425_v14  ;;  %v10444_v14 = vsel %vm223_vm2, %v10393_v55, 0.0  ;;  %v10396_v40 = vmul.f32 %v18874_v51, %v18874_v51 }
 0x642   : > { %v10429_v13 = vadd.f32 %v10428_v30, %v10427_v29  ;;  %v10446_v29 = vsel %vm223_vm2, %v10394_v48, 0.0  ;;  %v10397_v30 = vmul.f32 %v18881_v49, %v18881_v49  ;;  %v10404_v48 = vmul.f32 %v18930_v2, %v18930_v2 }
 0x644   : > { %v10431_v44 = vadd.f32 %v10430_v20, %v10429_v13  ;;  %v10448_v13 = vsel %vm223_vm2, %v10395_v5, 0.0  ;;  %v10398_v20 = vmul.f32 %v18888_v56, %v18888_v56  ;;  %v10466_v5 = vsel %vm223_vm2, %v10404_v48, 0.0  ;;  %v10521_v48 = vld [vmem:[%s13989_s25 + $0x60] sm:$0xff] }
 0x646   : > { %v10433_v53 = vadd.f32 %v10432_v57, %v10431_v44  ;;  %v10450_v44 = vsel %vm223_vm2, %v10396_v40, 0.0  ;;  %v10399_v57 = vmul.f32 %v18895_v52, %v18895_v52 }
 0x648   : > { %v10435_v6 = vadd.f32 %v10434_v39, %v10433_v53  ;;  %v10452_v53 = vsel %vm223_vm2, %v10397_v30, 0.0  ;;  %v10400_v39 = vmul.f32 %v18902_v4, %v18902_v4 }
 0x64a   : > { %v10437_v19 = vadd.f32 %v10436_v38, %v10435_v6  ;;  %v10454_v6 = vsel %vm223_vm2, %v10398_v20, 0.0  ;;  %v10401_v38 = vmul.f32 %v18909_v50, %v18909_v50 }
 0x64c   : > { %v10439_v24 = vadd.f32 %v10438_v61, %v10437_v19  ;;  %v10456_v19 = vsel %vm223_vm2, %v10399_v57, 0.0  ;;  %v10402_v61 = vmul.f32 %v18916_v1, %v18916_v1 }
 0x64e   : > { %v10441_v17 = vadd.f32 %v10440_v9, %v10439_v24  ;;  %v10458_v24 = vsel %vm223_vm2, %v10400_v39, 0.0  ;;  %v10460_v9 = vsel %vm223_vm2, %v10401_v38, 0.0 }
 0x650   : > { %v10443_v58 = vadd.f32 %v10442_v3, %v10441_v17  ;;  %v10462_v3 = vsel %vm223_vm2, %v10402_v61, 0.0  ;;  %v10515_v61 = vld [vmem:[%s13989_s25 + $0x30] sm:$0xff] }
 0x652   : > { %v10445_v42 = vadd.f32 %v10444_v14, %v10443_v58 }
 0x654   : > { %v10447_v0 = vadd.f32 %v10446_v29, %v10445_v42 }
 0x656   : > { %v10449_v62 = vadd.f32 %v10448_v13, %v10447_v0 }
 0x658   : > { %v10451_v26 = vadd.f32 %v10450_v44, %v10449_v62 }
 0x65a   : > { %v10453_v33 = vadd.f32 %v10452_v53, %v10451_v26 }
 0x65c   : > { %v10455_v16 = vadd.f32 %v10454_v6, %v10453_v33 }
 0x65e   : > { %v10457_v31 = vadd.f32 %v10456_v19, %v10455_v16 }
 0x660   : > { %v10459_v55 = vadd.f32 %v10458_v24, %v10457_v31  ;;  %v10514_v31 = vld [vmem:[%s13989_s25 + $0x28] sm:$0xff]  ;;  %v10516_v24 = vld [vmem:[%s13989_s25 + $0x38] sm:$0xff] }
 0x662   : > { %v10461_v17 = vadd.f32 %v10460_v9, %v10459_v55  ;;  %v10517_v55 = vld [vmem:[%s13989_s25 + $0x40] sm:$0xff]  ;;  %v10519_v9 = vld [vmem:[%s13989_s25 + $0x50] sm:$0xff] }
 0x664   : > { %v10463_v58 = vadd.f32 %v10462_v3, %v10461_v17  ;;  %v10522_v3 = vld [vmem:[%s13989_s25 + $0x68] sm:$0xff] }
 0x666   : > { %v10465_v7 = vadd.f32 %v10464_v22, %v10463_v58  ;;  %v10523_v58 = vld [vmem:[%s13989_s25 + $0x70] sm:$0xff]  ;;  %v10524_v22 = vld [vmem:[%s13989_s25 + $0x78] sm:$0xff] }
 0x668   : > { %v10467_v14 = vadd.f32 %v10466_v5, %v10465_v7  ;;  %v10525_v7 = vld [vmem:[%s13989_s25 + $0x80] sm:$0xff]  ;;  %v10526_v5 = vld [vmem:[%s13989_s25 + $0x88] sm:$0xff] }
 0x66a   : > { %v10468_v42 = vrot.slane %v10467_v14, 4 }
 0x66c   : > { %v10469_v40 = vadd.f32 %v10468_v42, %v10467_v14  ;;  %v10527_v14 = vld [vmem:[%s13989_s25 + $0x90] sm:$0xff] }
 0x66e   : > { %v10470_v29 = vrot.slane %v10469_v40, 2 }
 0x670   : > { %v10471_v0 = vadd.f32 %v10470_v29, %v10469_v40 }
 0x672   : > { %v10472_v30 = vrot.slane %v10471_v0, 1 }
 0x674   : > { %v10473_v13 = vadd.f32 %v10472_v30, %v10471_v0  ;;  %v10530_v0 = vld [vmem:[%s13989_s25 + $0xa8] sm:$0xff] }
 0x676   : > { %v10474_v62 = vmul.f32 0.00390625, %v10473_v13 }
 0x678   : > { %v10475_v20 = vadd.f32 1e-05, %v10474_v62 }
 0x67a   : > { %13796 = vrsqrt.f32 %v10475_v20 }
 0x687   : > { %v13797_v44 = vpop.eup %13796 }
 0x688   : > { %v10477_v26 = vmul.f32 %v13797_v44, %v18721_v35  ;;  %v10478_v57 = vmul.f32 %v13797_v44, %v18725_v41  ;;  %v10479_v53 = vmul.f32 %v13797_v44, %v18729_v28  ;;  %v10480_v33 = vmul.f32 %v13797_v44, %v18733_v34 }
 0x689   : > { %v10481_v39 = vmul.f32 %v13797_v44, %v18741_v23  ;;  %v10482_v6 = vmul.f32 %v13797_v44, %v18747_v37  ;;  %v10483_v16 = vmul.f32 %v13797_v44, %v18755_v45  ;;  %v10484_v38 = vmul.f32 %v13797_v44, %v18762_v11 }
 0x68a   : > { %v10485_v35 = vmul.f32 %v13797_v44, %v18769_v47  ;;  %v10486_v41 = vmul.f32 %v13797_v44, %v18776_v54  ;;  %v10487_v28 = vmul.f32 %v13797_v44, %v18783_v15  ;;  %v10488_v34 = vmul.f32 %v13797_v44, %v18790_v18  ;;  %v10509_v47 = vld [vmem:[%s13989_s25] sm:$0xff]  ;;  %v10510_v54 = vld [vmem:[%s13989_s25 + $0x8] sm:$0xff]  ;;  %v10511_v15 = vld [vmem:[%s13989_s25 + $0x10] sm:$0xff] }
 0x68b   : > { %v18956_v23 = vmul.f32 %v13797_v44, %v18797_v8  ;;  %v18959_v37 = vmul.f32 %v13797_v44, %v18804_v32  ;;  %v18962_v45 = vmul.f32 %v13797_v44, %v18811_v27  ;;  %v18965_v11 = vmul.f32 %v13797_v44, %v18818_v12  ;;  %v10512_v18 = vld [vmem:[%s13989_s25 + $0x18] sm:$0xff]  ;;  %v10513_v12 = vld [vmem:[%s13989_s25 + $0x20] sm:$0xff] }
 0x68c   : > { %v18972_v19 = vmul.f32 %v13797_v44, %v18825_v46  ;;  %v18975_v8 = vmul.f32 %v13797_v44, %v18832_v59  ;;  %v18978_v32 = vmul.f32 %v13797_v44, %v18839_v21  ;;  %v18981_v27 = vmul.f32 %v13797_v44, %v18846_v10 }
 0x68d   : > { %v18988_v46 = vmul.f32 %v13797_v44, %v18853_v63  ;;  %v18991_v59 = vmul.f32 %v13797_v44, %v18860_v43  ;;  %v18994_v21 = vmul.f32 %v13797_v44, %v18867_v36  ;;  %v18997_v10 = vmul.f32 %v13797_v44, %v18874_v51  ;;  %v10520_v51 = vld [vmem:[%s13989_s25 + $0x58] sm:$0xff] }
 0x68e   : > { %v19003_v17 = vmul.f32 %v13797_v44, %v18881_v49  ;;  %v19006_v63 = vmul.f32 %v13797_v44, %v18888_v56  ;;  %v19009_v43 = vmul.f32 %v13797_v44, %v18895_v52  ;;  %v19012_v36 = vmul.f32 %v13797_v44, %v18902_v4 }
 0x68f   : > { %v19025_v49 = vmul.f32 %v13797_v44, %v18909_v50  ;;  %v19028_v56 = vmul.f32 %v13797_v44, %v18916_v1  ;;  %v19031_v52 = vmul.f32 %v13797_v44, %v18923_v25  ;;  %v19034_v4 = vmul.f32 %v13797_v44, %v18930_v2  ;;  %v10528_v50 = vld [vmem:[%s13989_s25 + $0x98] sm:$0xff]  ;;  %v10529_v25 = vld [vmem:[%s13989_s25 + $0xa0] sm:$0xff]  ;;  %v10531_v2 = vld [vmem:[%s13989_s25 + $0xb0] sm:$0xff] }
 0x690   : > { %v10541_v42 = vadd.f32 %v10509_v47, %v10477_v26  ;;  %v10542_v40 = vadd.f32 %v10510_v54, %v10478_v57  ;;  %v10543_v29 = vadd.f32 %v10511_v15, %v10479_v53  ;;  %v10544_v1 = vadd.f32 %v10512_v18, %v10480_v33  ;;  %v10532_v44 = vld [vmem:[%s13989_s25 + $0xb8] sm:$0xff]  ;;  %v10534_v26 = vld [vmem:[%s13989_s25 + $0xc8] sm:$0xff] }
 0x691   : > { %19190 = vst [vmem:[#allocation10_spill] sm:$0xff] %v19034_v4  ;;  %v10545_v30 = vadd.f32 %v10513_v12, %v10481_v39  ;;  %v10546_v13 = vadd.f32 %v10514_v31, %v10482_v6  ;;  %v10547_v62 = vadd.f32 %v10515_v61, %v10483_v16  ;;  %v10548_v20 = vadd.f32 %v10516_v24, %v10484_v38  ;;  %v10533_v4 = vld [vmem:[%s13989_s25 + $0xc0] sm:$0xff]  ;;  %v10535_v39 = vld [vmem:[%s13989_s25 + $0xd0] sm:$0xff]  ;;  %v10536_v6 = vld [vmem:[%s13989_s25 + $0xd8] sm:$0xff] }
 0x692   : > { %v10549_v57 = vadd.f32 %v10517_v55, %v10485_v35  ;;  %v10550_v53 = vadd.f32 %v10518_v60, %v10486_v41  ;;  %v10551_v33 = vadd.f32 %v10519_v9, %v10487_v28  ;;  %v10552_v47 = vadd.f32 %v10520_v51, %v10488_v34  ;;  %10573 = vst.msk [vmem:[%s19022_s6] sm:$0xff] %vm223_vm2, %v10541_v42  ;;  %v10537_v16 = vld [vmem:[%s13989_s25 + $0xe0] sm:$0xff]  ;;  %v10538_v34 = vld [vmem:[%s13989_s25 + $0xe8] sm:$0xff] }
 0x693   : > { %10574 = vst.msk [vmem:[%s19022_s6 + $0x8] sm:$0xff] %vm223_vm2, %v10542_v40  ;;  %10575 = vst.msk [vmem:[%s19022_s6 + $0x10] sm:$0xff] %vm223_vm2, %v10543_v29  ;;  %v10553_v38 = vadd.f32 %v10521_v48, %v18956_v23  ;;  %v10554_v35 = vadd.f32 %v10522_v3, %v18959_v37  ;;  %v10555_v41 = vadd.f32 %v10523_v58, %v18962_v45  ;;  %v10539_v23 = vld [vmem:[%s13989_s25 + $0xf0] sm:$0xff]  ;;  %v10540_v37 = vld [vmem:[%s13989_s25 + $0xf8] sm:$0xff] }
 0x694   : > { %10576 = vst.msk [vmem:[%s19022_s6 + $0x18] sm:$0xff] %vm223_vm2, %v10544_v1  ;;  %v10556_v28 = vadd.f32 %v10524_v22, %v18965_v11  ;;  %10577 = vst.msk [vmem:[%s19022_s6 + $0x20] sm:$0xff] %vm223_vm2, %v10545_v30  ;;  %v10557_v45 = vadd.f32 %v10525_v7, %v18972_v19  ;;  %v10558_v54 = vadd.f32 %v10526_v5, %v18975_v8 }
 0x695   : > { %10578 = vst.msk [vmem:[%s19022_s6 + $0x28] sm:$0xff] %vm223_vm2, %v10546_v13  ;;  %10579 = vst.msk [vmem:[%s19022_s6 + $0x30] sm:$0xff] %vm223_vm2, %v10547_v62  ;;  %v10559_v11 = vadd.f32 %v10527_v14, %v18978_v32  ;;  %v10560_v15 = vadd.f32 %v10528_v50, %v18981_v27  ;;  %v10561_v18 = vadd.f32 %v10529_v25, %v18988_v46 }
 0x696   : > { %10580 = vst.msk [vmem:[%s19022_s6 + $0x38] sm:$0xff] %vm223_vm2, %v10548_v20  ;;  %10581 = vst.msk [vmem:[%s19022_s6 + $0x40] sm:$0xff] %vm223_vm2, %v10549_v57  ;;  %v10562_v19 = vadd.f32 %v10530_v0, %v18991_v59  ;;  %v10563_v8 = vadd.f32 %v10531_v2, %v18994_v21  ;;  %v10564_v32 = vadd.f32 %v10532_v44, %v18997_v10 }
 0x697   : > { %10582 = vst.msk [vmem:[%s19022_s6 + $0x48] sm:$0xff] %vm223_vm2, %v10550_v53  ;;  %10583 = vst.msk [vmem:[%s19022_s6 + $0x50] sm:$0xff] %vm223_vm2, %v10551_v33  ;;  %v10565_v27 = vadd.f32 %v10533_v4, %v19003_v17  ;;  %v10566_v12 = vadd.f32 %v10534_v26, %v19006_v63  ;;  %v10567_v31 = vadd.f32 %v10535_v39, %v19009_v43 }
 0x698   : > { %10584 = vst.msk [vmem:[%s19022_s6 + $0x58] sm:$0xff] %vm223_vm2, %v10552_v47  ;;  %10585 = vst.msk [vmem:[%s19022_s6 + $0x60] sm:$0xff] %vm223_vm2, %v10553_v38  ;;  %v10568_v61 = vadd.f32 %v10536_v6, %v19012_v36  ;;  %v10569_v24 = vadd.f32 %v10537_v16, %v19025_v49  ;;  %v10570_v46 = vadd.f32 %v10538_v34, %v19028_v56  ;;  %v19191_v21 = vld [vmem:[#allocation10_spill] sm:$0xff] }
 0x699   : > { %10586 = vst.msk [vmem:[%s19022_s6 + $0x68] sm:$0xff] %vm223_vm2, %v10554_v35  ;;  %10587 = vst.msk [vmem:[%s19022_s6 + $0x70] sm:$0xff] %vm223_vm2, %v10555_v41  ;;  %v10571_v59 = vadd.f32 %v10539_v23, %v19031_v52  ;;  %v10572_v10 = vadd.f32 %v10540_v37, %v19191_v21 }
 0x69a   : > { %10588 = vst.msk [vmem:[%s19022_s6 + $0x78] sm:$0xff] %vm223_vm2, %v10556_v28  ;;  %10589 = vst.msk [vmem:[%s19022_s6 + $0x80] sm:$0xff] %vm223_vm2, %v10557_v45 }
 0x69b   : > { %10590 = vst.msk [vmem:[%s19022_s6 + $0x88] sm:$0xff] %vm223_vm2, %v10558_v54  ;;  %10591 = vst.msk [vmem:[%s19022_s6 + $0x90] sm:$0xff] %vm223_vm2, %v10559_v11 }
 0x69c   : > { %10592 = vst.msk [vmem:[%s19022_s6 + $0x98] sm:$0xff] %vm223_vm2, %v10560_v15  ;;  %10593 = vst.msk [vmem:[%s19022_s6 + $0xa0] sm:$0xff] %vm223_vm2, %v10561_v18 }
 0x69d   : > { %10594 = vst.msk [vmem:[%s19022_s6 + $0xa8] sm:$0xff] %vm223_vm2, %v10562_v19  ;;  %10595 = vst.msk [vmem:[%s19022_s6 + $0xb0] sm:$0xff] %vm223_vm2, %v10563_v8 }
 0x69e   : > { %10596 = vst.msk [vmem:[%s19022_s6 + $0xb8] sm:$0xff] %vm223_vm2, %v10564_v32  ;;  %10597 = vst.msk [vmem:[%s19022_s6 + $0xc0] sm:$0xff] %vm223_vm2, %v10565_v27 }
 0x69f   : > { %10598 = vst.msk [vmem:[%s19022_s6 + $0xc8] sm:$0xff] %vm223_vm2, %v10566_v12  ;;  %10599 = vst.msk [vmem:[%s19022_s6 + $0xd0] sm:$0xff] %vm223_vm2, %v10567_v31 }
 0x6a0   : > { %10600 = vst.msk [vmem:[%s19022_s6 + $0xd8] sm:$0xff] %vm223_vm2, %v10568_v61  ;;  %10601 = vst.msk [vmem:[%s19022_s6 + $0xe0] sm:$0xff] %vm223_vm2, %v10569_v24 }
 0x6a1   : > { %10602 = vst.msk [vmem:[%s19022_s6 + $0xe8] sm:$0xff] %vm223_vm2, %v10570_v46  ;;  %10603 = vst.msk [vmem:[%s19022_s6 + $0xf0] sm:$0xff] %vm223_vm2, %v10571_v59 }
 0x6a2   : > { %10604 = vst.msk [vmem:[%s19022_s6 + $0xf8] sm:$0xff] %vm223_vm2, %v10572_v10 }
 0x6a3 PF: > { %s13_s12 = sadd.s32 1, %s13908_s12  }
 0x6a4   : > { %p10_p4 = scmp.ge.s32.totalorder %s13_s12, 4  }
 0x6a6   :  { %12 = sbr.rel (!%p10_p4) target bundleno = 1 (0x1), region = 80 }

</bundles_post_ra>
